<compile_context>
chip_gen: v7x
topology: tpu7x:2x2x1
jax: 0.10.0
libtpu: 0.0.40
codegen_flags: <defaults>
</compile_context>

<pallas_src>
import functools
import math

import jax
import jax.numpy as jnp
from jax.experimental import pallas as pl
from jax.experimental.pallas import tpu as pltpu


# ----------------------------- fused Pallas kernel -----------------------------

def _vit_tab_kernel(
    patches_ref,   # (TB*Sp, CPP) bf16   flattened patch pixels, pad rows = 0
    pos_ref,       # (Sp, D)      f32    cls/pos/patch-bias folded, pad rows = 0
    patch_w_ref,   # (CPP, D)     bf16
    qkv_w_ref,     # (L, D, 3D)   bf16   Q part pre-scaled by 1/sqrt(dh)
    o_w_ref,       # (L*nh, dh, D) bf16  attn output proj split per head
    mi_w_ref,      # (L, D, Dm)   bf16
    mo_w_ref,      # (L, Dm, D)   bf16
    lvec_ref,      # (L*8, 3D)    f32    per-layer LN params / biases
    hvec_ref,      # (8, F1)      f32    final-LN / fc / head biases
    fc1_w_ref,     # (D, F1)      bf16   BN1 folded in
    fc2_w_ref,     # (F1, F2)     bf16   BN2 folded in
    head_w_ref,    # (F2, NCpad)  bf16   6 string heads stacked, lane-padded
    out_ref,       # (TB, NCpad)  f32
    *, num_layers, num_heads, seq_real, ln_eps,
):
    f32, bf16 = jnp.float32, jnp.bfloat16
    Sp, D = pos_ref.shape
    M, CPP = patches_ref.shape
    TB = M // Sp
    dh = D // num_heads
    Dm = mi_w_ref.shape[2]
    F1 = fc1_w_ref.shape[1]
    F2 = fc2_w_ref.shape[1]
    NCpad = head_w_ref.shape[1]

    def layernorm(x, g, b):
        mu = jnp.mean(x, axis=-1, keepdims=True)
        var = jnp.mean((x - mu) ** 2, axis=-1, keepdims=True)
        return (x - mu) * jax.lax.rsqrt(var + ln_eps) * g + b

    def lrelu(y):                      # F.leaky_relu(negative_slope=0.1)
        return jnp.where(y >= 0.0, y, 0.1 * y)

    def lvec(row, width):              # per-layer vector table, static row/slice
        return lvec_ref[row][:width]

    def hvec(row, width):              # head vector table
        return hvec_ref[row][:width]

    # ---- patch embedding over all TB images at once: (M, CPP) @ (CPP, D) ----
    h = jnp.dot(patches_ref[...], patch_w_ref[...], preferred_element_type=f32)
    h = (h.reshape(TB, Sp, D) + pos_ref[...]).reshape(M, D)     # pos broadcast

    # additive key mask (padded tokens excluded), shared across images & heads
    col_ids = jax.lax.broadcasted_iota(jnp.int32, (Sp, Sp), 1)
    neg_mask = jnp.where(col_ids < seq_real, 0.0, -1e30).astype(f32)

    # ---- transformer encoder (pre-LN blocks, HF ViTModel semantics), unrolled ----
    for l in range(num_layers):
        r = 8 * l
        hn = layernorm(h, lvec(r + 0, D), lvec(r + 1, D)).astype(bf16)
        # fused QKV: one (M, D) x (D, 3D) matmul; Q already pre-scaled
        qkv = jnp.dot(hn, qkv_w_ref[l], preferred_element_type=f32) + lvec(r + 2, 3 * D)
        qkv3 = qkv.reshape(TB, Sp, 3 * D).astype(bf16)

        attn = None
        for hh in range(num_heads):
            qh = qkv3[:, :, hh * dh:(hh + 1) * dh]
            kh = qkv3[:, :, D + hh * dh:D + (hh + 1) * dh]
            vh = qkv3[:, :, 2 * D + hh * dh:2 * D + (hh + 1) * dh]
            s = jnp.einsum("bqd,bkd->bqk", qh, kh, preferred_element_type=f32)
            s = s + neg_mask
            s = s - jnp.max(s, axis=-1, keepdims=True)
            p = jnp.exp(s)
            p = p * pl.reciprocal(jnp.sum(p, axis=-1, keepdims=True), approx=True)
            ctx = jnp.einsum("bqk,bkd->bqd", p.astype(bf16), vh,
                             preferred_element_type=f32)
            contrib = jnp.dot(ctx.reshape(M, dh).astype(bf16),
                              o_w_ref[l * num_heads + hh],
                              preferred_element_type=f32)
            attn = contrib if attn is None else attn + contrib

        h = h + attn + lvec(r + 3, D)
        hn = layernorm(h, lvec(r + 4, D), lvec(r + 5, D)).astype(bf16)
        m = jnp.dot(hn, mi_w_ref[l], preferred_element_type=f32) + lvec(r + 6, Dm)
        # TODO(synk): torch.nn.GELU default is exact erf; tanh approximation used here.
        m = jax.nn.gelu(m, approximate=True)
        h = h + jnp.dot(m.astype(bf16), mo_w_ref[l], preferred_element_type=f32) + lvec(r + 7, D)

    # ---- final LN on the TB cls rows, then the tab head on one (TB, .) tile ----
    cls = h.reshape(TB, Sp, D)[:, 0, :]                  # (TB, D)
    cls = layernorm(cls, hvec(0, D), hvec(1, D))
    z = lrelu(jnp.dot(cls.astype(bf16), fc1_w_ref[...],
                      preferred_element_type=f32) + hvec(2, F1))
    z = lrelu(jnp.dot(z.astype(bf16), fc2_w_ref[...],
                      preferred_element_type=f32) + hvec(3, F2))
    out_ref[...] = jnp.dot(z.astype(bf16), head_w_ref[...],
                           preferred_element_type=f32) + hvec(4, NCpad)


# ----------------------------- parameters -----------------------------

CFG = dict(
    image_size=32, patch_size=8, in_chans=3,
    hidden=64, layers=2, heads=2, mlp=128,
    fc1=512, fc2=256, num_classes=19, num_strings=6,
)


def _kaiming_normal(key, fan_in, fan_out, neg_slope=0.0):
    # matches nn.init.kaiming_normal_(mode='fan_out', nonlinearity='leaky_relu')
    gain = math.sqrt(2.0 / (1.0 + neg_slope ** 2))
    std = gain / math.sqrt(fan_out)
    return jax.random.normal(key, (fan_in, fan_out), jnp.float32) * std


def init_params(key, cfg=CFG):
    D, P, C = cfg["hidden"], cfg["patch_size"], cfg["in_chans"]
    n_patches = (cfg["image_size"] // P) ** 2
    keys = iter(jax.random.split(key, 256))
    nrm = lambda shape, std=0.02: jax.random.normal(next(keys), shape, jnp.float32) * std

    p = {}
    # ViT backbone (synthetic small config, HF ViTModel structure)
    p["patch_w"] = nrm((C * P * P, D))
    p["patch_b"] = jnp.zeros((D,), jnp.float32)
    p["cls"] = nrm((1, 1, D))
    p["pos"] = nrm((1, n_patches + 1, D))
    layers = []
    for _ in range(cfg["layers"]):
        layers.append(dict(
            ln1_g=jnp.ones((D,)), ln1_b=jnp.zeros((D,)),
            q_w=nrm((D, D)), q_b=jnp.zeros((D,)),
            k_w=nrm((D, D)), k_b=jnp.zeros((D,)),
            v_w=nrm((D, D)), v_b=jnp.zeros((D,)),
            o_w=nrm((D, D)), o_b=jnp.zeros((D,)),
            ln2_g=jnp.ones((D,)), ln2_b=jnp.zeros((D,)),
            mlp_in_w=nrm((D, cfg["mlp"])), mlp_in_b=jnp.zeros((cfg["mlp"],)),
            mlp_out_w=nrm((cfg["mlp"], D)), mlp_out_b=jnp.zeros((D,)),
        ))
    p["layers"] = layers
    p["lnf_g"] = jnp.ones((D,))
    p["lnf_b"] = jnp.zeros((D,))

    # Guitar-tab head (matches the PyTorch module's __init__ / custom init)
    p["fc1_w"] = _kaiming_normal(next(keys), D, cfg["fc1"])
    p["fc1_b"] = jnp.zeros((cfg["fc1"],))
    p["bn1_g"] = jnp.ones((cfg["fc1"],)); p["bn1_b"] = jnp.zeros((cfg["fc1"],))
    p["bn1_mean"] = jnp.zeros((cfg["fc1"],)); p["bn1_var"] = jnp.ones((cfg["fc1"],))
    p["fc2_w"] = _kaiming_normal(next(keys), cfg["fc1"], cfg["fc2"])
    p["fc2_b"] = jnp.zeros((cfg["fc2"],))
    p["bn2_g"] = jnp.ones((cfg["fc2"],)); p["bn2_b"] = jnp.zeros((cfg["fc2"],))
    p["bn2_mean"] = jnp.zeros((cfg["fc2"],)); p["bn2_var"] = jnp.ones((cfg["fc2"],))
    head_ws = [_kaiming_normal(next(keys), cfg["fc2"], cfg["num_classes"])
               for _ in range(cfg["num_strings"])]
    p["heads_w"] = jnp.concatenate(head_ws, axis=1)   # (256, 6*19)
    p["heads_b"] = jnp.zeros((cfg["num_strings"] * cfg["num_classes"],))
    return p


# ----------------------------- forward pass -----------------------------

def vit_guitar_tab_forward(params, x, cfg=CFG, tb=8):
    """Matches ViTGuitarTabModel.forward (inference). Returns list of 6 (B, num_classes)."""
    B, C, Himg, Wimg = x.shape
    P, D, nh, L = cfg["patch_size"], cfg["hidden"], cfg["heads"], cfg["layers"]
    hp, wp = Himg // P, Wimg // P
    Np = hp * wp
    S = Np + 1
    Sp = ((S + 7) // 8) * 8                           # tokens padded to sublanes (17 -> 24)
    CPP = C * P * P
    Dm = cfg["mlp"]
    F1, F2 = cfg["fc1"], cfg["fc2"]
    nc, ns = cfg["num_classes"], cfg["num_strings"]
    NCpad = ((ns * nc + 127) // 128) * 128            # head output padded to 128 lanes
    dh = D // nh
    bf16 = jnp.bfloat16
    Bp = ((B + tb - 1) // tb) * tb                    # batch padded to a multiple of TB

    # --- patchify (Conv2d k=P, stride=P == unfold + matmul), pad tokens & batch ---
    patches = x.reshape(B, C, hp, P, wp, P).transpose(0, 2, 4, 1, 3, 5)
    patches = patches.reshape(B, Np, CPP)
    # row 0 of each image reserved for the cls token, rows S..Sp-1 zero padding
    patches = jnp.pad(patches, ((0, Bp - B), (1, Sp - S), (0, 0)))
    patches = patches.reshape(Bp * Sp, CPP).astype(bf16)          # pre-flattened

    # cls token + positional embedding, with the patch-embedding bias folded in.
    row0 = (params["cls"][0, 0] + params["pos"][0, 0])[None, :]
    rows = params["pos"][0, 1:] + params["patch_b"][None, :]
    pos_adj = jnp.concatenate(
        [row0, rows, jnp.zeros((Sp - S, D), jnp.float32)], axis=0)           # (Sp, D)

    # --- packed per-layer matmul weights (bf16 MXU operands) ---
    scale = 1.0 / math.sqrt(dh)
    qkv_w = jnp.stack([
        jnp.concatenate([lyr["q_w"] * scale, lyr["k_w"], lyr["v_w"]], axis=1)
        for lyr in params["layers"]]).astype(bf16)                           # (L, D, 3D)
    o_w = jnp.stack([lyr["o_w"] for lyr in params["layers"]])
    o_w = o_w.reshape(L * nh, dh, D).astype(bf16)                            # (L*nh, dh, D)
    mi_w = jnp.stack([lyr["mlp_in_w"] for lyr in params["layers"]]).astype(bf16)
    mo_w = jnp.stack([lyr["mlp_out_w"] for lyr in params["layers"]]).astype(bf16)
    patch_w = params["patch_w"].astype(bf16)

    def padv(v, w):
        v = v.astype(jnp.float32)
        return jnp.pad(v, (0, w - v.shape[0]))

    # --- per-layer vector table: 8 rows per layer, lane width 3D ---
    lvec_rows = []
    for lyr in params["layers"]:
        qkv_b = jnp.concatenate([lyr["q_b"] * scale, lyr["k_b"], lyr["v_b"]])
        lvec_rows += [padv(lyr["ln1_g"], 3 * D), padv(lyr["ln1_b"], 3 * D),
                      padv(qkv_b, 3 * D),        padv(lyr["o_b"], 3 * D),
                      padv(lyr["ln2_g"], 3 * D), padv(lyr["ln2_b"], 3 * D),
                      padv(lyr["mlp_in_b"], 3 * D), padv(lyr["mlp_out_b"], 3 * D)]
    lvec = jnp.stack(lvec_rows)                                              # (L*8, 3D)

    # --- fold eval-mode BatchNorm1d into the fc weights/biases ---
    eps_bn = 1e-5
    s1 = params["bn1_g"] * jax.lax.rsqrt(params["bn1_var"] + eps_bn)
    fc1_w = (params["fc1_w"] * s1[None, :]).astype(bf16)
    fc1_b = params["fc1_b"] * s1 + params["bn1_b"] - params["bn1_mean"] * s1
    s2 = params["bn2_g"] * jax.lax.rsqrt(params["bn2_var"] + eps_bn)
    fc2_w = (params["fc2_w"] * s2[None, :]).astype(bf16)
    fc2_b = params["fc2_b"] * s2 + params["bn2_b"] - params["bn2_mean"] * s2

    # --- stacked string heads padded to a lane-dense 128-wide output ---
    head_w = jnp.pad(params["heads_w"], ((0, 0), (0, NCpad - ns * nc))).astype(bf16)
    head_b = jnp.pad(params["heads_b"], (0, NCpad - ns * nc))

    # --- head / final-LN vector table: (8, F1) f32 ---
    hvec = jnp.stack([padv(params["lnf_g"], F1), padv(params["lnf_b"], F1),
                      padv(fc1_b, F1), padv(fc2_b, F1), padv(head_b, F1),
                      jnp.zeros((F1,), jnp.float32), jnp.zeros((F1,), jnp.float32),
                      jnp.zeros((F1,), jnp.float32)])

    weights = [pos_adj, patch_w, qkv_w, o_w, mi_w, mo_w, lvec, hvec,
               fc1_w, fc2_w, head_w]

    def const_spec(arr):
        zeros = (0,) * arr.ndim
        return pl.BlockSpec(arr.shape, lambda b, z=zeros: z)

    kernel = functools.partial(
        _vit_tab_kernel, num_layers=L, num_heads=nh, seq_real=S, ln_eps=1e-12)

    out = pl.pallas_call(
        kernel,
        out_shape=jax.ShapeDtypeStruct((Bp, NCpad), jnp.float32),
        grid=(Bp // tb,),
        in_specs=[pl.BlockSpec((tb * Sp, CPP), lambda b: (b, 0))]
                 + [const_spec(a) for a in weights],
        out_specs=pl.BlockSpec((tb, NCpad), lambda b: (b, 0)),
        compiler_params=pltpu.CompilerParams(
            dimension_semantics=("parallel",)),
    )(patches, *weights)

    logits = out[:B, :ns * nc]
    return [logits[:, i * nc:(i + 1) * nc] for i in range(ns)]


# ----------------------------- main -----------------------------

if __name__ == "__main__":
    key = jax.random.PRNGKey(0)
    pkey, xkey = jax.random.split(key)
    params = init_params(pkey)
    B = 16   # 2 grid steps of 8 images -> both v7x TensorCores get work
    x = jax.random.normal(
        xkey, (B, CFG["in_chans"], CFG["image_size"], CFG["image_size"]), jnp.float32)
    outs = jax.jit(vit_guitar_tab_forward)(params, x)
    outs = jax.block_until_ready(outs)
    assert len(outs) == CFG["num_strings"]
    assert all(o.shape == (B, CFG["num_classes"]) for o in outs)
    print("KERNEL_OK")
</pallas_src>

<mosaic_0001>
module attributes {stable_mosaic.version = 11 : i64} {
  func.func @_vit_tab_kernel(%arg0: i32, %arg1: memref<192x192xbf16, #tpu.memory_space<vmem>>, %arg2: memref<24x64xf32, #tpu.memory_space<vmem>>, %arg3: memref<192x64xbf16, #tpu.memory_space<vmem>>, %arg4: memref<2x64x192xbf16, #tpu.memory_space<vmem>>, %arg5: memref<4x32x64xbf16, #tpu.memory_space<vmem>>, %arg6: memref<2x64x128xbf16, #tpu.memory_space<vmem>>, %arg7: memref<2x128x64xbf16, #tpu.memory_space<vmem>>, %arg8: memref<16x192xf32, #tpu.memory_space<vmem>>, %arg9: memref<8x512xf32, #tpu.memory_space<vmem>>, %arg10: memref<64x512xbf16, #tpu.memory_space<vmem>>, %arg11: memref<512x256xbf16, #tpu.memory_space<vmem>>, %arg12: memref<256x128xbf16, #tpu.memory_space<vmem>>, %arg13: memref<8x128xf32, #tpu.memory_space<vmem>>) attributes {dimension_semantics = [#tpu.dimension_semantics<parallel>], iteration_bounds = array<i64: 2>, scalar_prefetch = 0 : i64, scratch_operands = 0 : i64, tpu.core_type = #tpu.core_type<tc>, window_params = [{transform_indices = @transform_0, window_bounds = array<i64: 192, 192>}, {pipeline_mode = #tpu.pipeline_mode<synchronous>, transform_indices = @transform_1, window_bounds = array<i64: 24, 64>}, {pipeline_mode = #tpu.pipeline_mode<synchronous>, transform_indices = @transform_2, window_bounds = array<i64: 192, 64>}, {pipeline_mode = #tpu.pipeline_mode<synchronous>, transform_indices = @transform_3, window_bounds = array<i64: 2, 64, 192>}, {pipeline_mode = #tpu.pipeline_mode<synchronous>, transform_indices = @transform_4, window_bounds = array<i64: 4, 32, 64>}, {pipeline_mode = #tpu.pipeline_mode<synchronous>, transform_indices = @transform_5, window_bounds = array<i64: 2, 64, 128>}, {pipeline_mode = #tpu.pipeline_mode<synchronous>, transform_indices = @transform_6, window_bounds = array<i64: 2, 128, 64>}, {pipeline_mode = #tpu.pipeline_mode<synchronous>, transform_indices = @transform_7, window_bounds = array<i64: 16, 192>}, {pipeline_mode = #tpu.pipeline_mode<synchronous>, transform_indices = @transform_8, window_bounds = array<i64: 8, 512>}, {pipeline_mode = #tpu.pipeline_mode<synchronous>, transform_indices = @transform_9, window_bounds = array<i64: 64, 512>}, {pipeline_mode = #tpu.pipeline_mode<synchronous>, transform_indices = @transform_10, window_bounds = array<i64: 512, 256>}, {pipeline_mode = #tpu.pipeline_mode<synchronous>, transform_indices = @transform_11, window_bounds = array<i64: 256, 128>}, {transform_indices = @transform_12, window_bounds = array<i64: 8, 128>}]} {
    %c0 = arith.constant 0 : index
    %c0_0 = arith.constant 0 : index
    %0 = vector.load %arg1[%c0, %c0_0] : memref<192x192xbf16, #tpu.memory_space<vmem>>, vector<192x192xbf16>
    %c0_1 = arith.constant 0 : index
    %c0_2 = arith.constant 0 : index
    %1 = vector.load %arg3[%c0_1, %c0_2] : memref<192x64xbf16, #tpu.memory_space<vmem>>, vector<192x64xbf16>
    %cst = arith.constant dense<0.000000e+00> : vector<192x64xf32>
    %2 = tpu.matmul %0, %1, %cst {dimension_numbers = #tpu.dot_dimension_numbers<[1], [0], [0], [1], [0, 0, 1, 1], [], []>} : vector<192x192xbf16>, vector<192x64xbf16>, vector<192x64xf32> -> vector<192x64xf32>
    %3 = vector.shape_cast %2 : vector<192x64xf32> to vector<8x24x64xf32>
    %c0_3 = arith.constant 0 : index
    %c0_4 = arith.constant 0 : index
    %4 = vector.load %arg2[%c0_3, %c0_4] : memref<24x64xf32, #tpu.memory_space<vmem>>, vector<24x64xf32>
    %5 = vector.shape_cast %4 : vector<24x64xf32> to vector<1x24x64xf32>
    %6 = vector.broadcast %5 : vector<1x24x64xf32> to vector<8x24x64xf32>
    %7 = arith.addf %3, %6 : vector<8x24x64xf32>
    %8 = vector.shape_cast %7 : vector<8x24x64xf32> to vector<192x64xf32>
    %9 = tpu.iota {dimensions = array<i32: 1>} : vector<24x24xi32>
    %c17_i32 = arith.constant 17 : i32
    %10 = vector.broadcast %c17_i32 : i32 to vector<24x24xi32>
    %11 = arith.cmpi slt, %9, %10 : vector<24x24xi32>
    %cst_5 = arith.constant 0.000000e+00 : f32
    %cst_6 = arith.constant -1.000000e+30 : f32
    %12 = vector.broadcast %cst_5 : f32 to vector<24x24xf32>
    %13 = vector.broadcast %cst_6 : f32 to vector<24x24xf32>
    %14 = arith.select %11, %12, %13 : vector<24x24xi1>, vector<24x24xf32>
    %c0_7 = arith.constant 0 : index
    %c0_8 = arith.constant 0 : index
    %15 = vector.load %arg8[%c0_7, %c0_8] : memref<16x192xf32, #tpu.memory_space<vmem>>, vector<1x192xf32>
    %16 = vector.shape_cast %15 : vector<1x192xf32> to vector<192xf32>
    %17 = vector.extract_strided_slice %16 {offsets = [0], sizes = [64], strides = [1]} : vector<192xf32> to vector<64xf32>
    %c1 = arith.constant 1 : index
    %c0_9 = arith.constant 0 : index
    %18 = vector.load %arg8[%c1, %c0_9] : memref<16x192xf32, #tpu.memory_space<vmem>>, vector<1x192xf32>
    %19 = vector.shape_cast %18 : vector<1x192xf32> to vector<192xf32>
    %20 = vector.extract_strided_slice %19 {offsets = [0], sizes = [64], strides = [1]} : vector<192xf32> to vector<64xf32>
    %cst_10 = arith.constant dense<0.000000e+00> : vector<192xf32>
    %21 = vector.multi_reduction <add>, %8, %cst_10 [1] : vector<192x64xf32> to vector<192xf32>
    %22 = vector.shape_cast %21 : vector<192xf32> to vector<192x1xf32>
    %cst_11 = arith.constant 6.400000e+01 : f32
    %23 = vector.broadcast %cst_11 : f32 to vector<192x1xf32>
    %24 = arith.divf %22, %23 : vector<192x1xf32>
    %25 = vector.broadcast %24 : vector<192x1xf32> to vector<192x64xf32>
    %26 = arith.subf %8, %25 : vector<192x64xf32>
    %27 = arith.mulf %26, %26 : vector<192x64xf32>
    %cst_12 = arith.constant dense<0.000000e+00> : vector<192xf32>
    %28 = vector.multi_reduction <add>, %27, %cst_12 [1] : vector<192x64xf32> to vector<192xf32>
    %29 = vector.shape_cast %28 : vector<192xf32> to vector<192x1xf32>
    %cst_13 = arith.constant 6.400000e+01 : f32
    %30 = vector.broadcast %cst_13 : f32 to vector<192x1xf32>
    %31 = arith.divf %29, %30 : vector<192x1xf32>
    %32 = vector.broadcast %24 : vector<192x1xf32> to vector<192x64xf32>
    %33 = arith.subf %8, %32 : vector<192x64xf32>
    %cst_14 = arith.constant 9.99999996E-13 : f32
    %34 = vector.broadcast %cst_14 : f32 to vector<192x1xf32>
    %35 = arith.addf %31, %34 : vector<192x1xf32>
    %36 = math.rsqrt %35 : vector<192x1xf32>
    %37 = vector.broadcast %36 : vector<192x1xf32> to vector<192x64xf32>
    %38 = arith.mulf %33, %37 : vector<192x64xf32>
    %39 = vector.shape_cast %17 : vector<64xf32> to vector<1x64xf32>
    %40 = vector.broadcast %39 : vector<1x64xf32> to vector<192x64xf32>
    %41 = arith.mulf %38, %40 : vector<192x64xf32>
    %42 = vector.shape_cast %20 : vector<64xf32> to vector<1x64xf32>
    %43 = vector.broadcast %42 : vector<1x64xf32> to vector<192x64xf32>
    %44 = arith.addf %41, %43 : vector<192x64xf32>
    %45 = arith.truncf %44 : vector<192x64xf32> to vector<192x64xbf16>
    %c0_15 = arith.constant 0 : index
    %c0_16 = arith.constant 0 : index
    %c0_17 = arith.constant 0 : index
    %46 = vector.load %arg4[%c0_15, %c0_16, %c0_17] : memref<2x64x192xbf16, #tpu.memory_space<vmem>>, vector<1x64x192xbf16>
    %47 = vector.shape_cast %46 : vector<1x64x192xbf16> to vector<64x192xbf16>
    %cst_18 = arith.constant dense<0.000000e+00> : vector<192x192xf32>
    %48 = tpu.matmul %45, %47, %cst_18 {dimension_numbers = #tpu.dot_dimension_numbers<[1], [0], [0], [1], [0, 0, 1, 1], [], []>} : vector<192x64xbf16>, vector<64x192xbf16>, vector<192x192xf32> -> vector<192x192xf32>
    %c2 = arith.constant 2 : index
    %c0_19 = arith.constant 0 : index
    %49 = vector.load %arg8[%c2, %c0_19] : memref<16x192xf32, #tpu.memory_space<vmem>>, vector<1x192xf32>
    %50 = vector.shape_cast %49 : vector<1x192xf32> to vector<192xf32>
    %51 = vector.shape_cast %50 : vector<192xf32> to vector<1x192xf32>
    %52 = vector.broadcast %51 : vector<1x192xf32> to vector<192x192xf32>
    %53 = arith.addf %48, %52 : vector<192x192xf32>
    %54 = vector.shape_cast %53 : vector<192x192xf32> to vector<8x24x192xf32>
    %55 = arith.truncf %54 : vector<8x24x192xf32> to vector<8x24x192xbf16>
    %56 = vector.extract_strided_slice %55 {offsets = [0, 0, 0], sizes = [8, 24, 32], strides = [1, 1, 1]} : vector<8x24x192xbf16> to vector<8x24x32xbf16>
    %57 = vector.extract_strided_slice %55 {offsets = [0, 0, 64], sizes = [8, 24, 32], strides = [1, 1, 1]} : vector<8x24x192xbf16> to vector<8x24x32xbf16>
    %58 = vector.extract_strided_slice %55 {offsets = [0, 0, 128], sizes = [8, 24, 32], strides = [1, 1, 1]} : vector<8x24x192xbf16> to vector<8x24x32xbf16>
    "tpu.trace_start"() <{level = 10 : i32, message = "bqd,bkd->bqk"}> : () -> ()
    %cst_20 = arith.constant dense<0.000000e+00> : vector<8x24x24xf32>
    %59 = tpu.matmul %56, %57, %cst_20 {dimension_numbers = #tpu.dot_dimension_numbers<[2], [2], [1], [1], [0, 0, 0, 1, 1, 1], [0], [0]>} : vector<8x24x32xbf16>, vector<8x24x32xbf16>, vector<8x24x24xf32> -> vector<8x24x24xf32>
    "tpu.trace_stop"() : () -> ()
    %60 = vector.shape_cast %14 : vector<24x24xf32> to vector<1x24x24xf32>
    %61 = vector.broadcast %60 : vector<1x24x24xf32> to vector<8x24x24xf32>
    %62 = arith.addf %59, %61 : vector<8x24x24xf32>
    %cst_21 = arith.constant dense<0xFF800000> : vector<8x24xf32>
    %63 = vector.multi_reduction <maximumf>, %62, %cst_21 [2] : vector<8x24x24xf32> to vector<8x24xf32>
    %64 = vector.shape_cast %63 : vector<8x24xf32> to vector<8x24x1xf32>
    %65 = vector.broadcast %64 : vector<8x24x1xf32> to vector<8x24x24xf32>
    %66 = arith.subf %62, %65 : vector<8x24x24xf32>
    %67 = math.exp %66 : vector<8x24x24xf32>
    %cst_22 = arith.constant dense<0.000000e+00> : vector<8x24xf32>
    %68 = vector.multi_reduction <add>, %67, %cst_22 [2] : vector<8x24x24xf32> to vector<8x24xf32>
    %69 = vector.shape_cast %68 : vector<8x24xf32> to vector<8x24x1xf32>
    %70 = tpu.reciprocal %69 {approx = true} : vector<8x24x1xf32> -> vector<8x24x1xf32>
    %71 = vector.broadcast %70 : vector<8x24x1xf32> to vector<8x24x24xf32>
    %72 = arith.mulf %67, %71 : vector<8x24x24xf32>
    %73 = arith.truncf %72 : vector<8x24x24xf32> to vector<8x24x24xbf16>
    "tpu.trace_start"() <{level = 10 : i32, message = "bqk,bkd->bqd"}> : () -> ()
    %cst_23 = arith.constant dense<0.000000e+00> : vector<8x24x32xf32>
    %74 = tpu.matmul %73, %58, %cst_23 {dimension_numbers = #tpu.dot_dimension_numbers<[2], [1], [1], [2], [0, 0, 0, 1, 1, 2], [0], [0]>} : vector<8x24x24xbf16>, vector<8x24x32xbf16>, vector<8x24x32xf32> -> vector<8x24x32xf32>
    "tpu.trace_stop"() : () -> ()
    %75 = vector.shape_cast %74 : vector<8x24x32xf32> to vector<192x32xf32>
    %76 = arith.truncf %75 : vector<192x32xf32> to vector<192x32xbf16>
    %c0_24 = arith.constant 0 : index
    %c0_25 = arith.constant 0 : index
    %c0_26 = arith.constant 0 : index
    %77 = vector.load %arg5[%c0_24, %c0_25, %c0_26] : memref<4x32x64xbf16, #tpu.memory_space<vmem>>, vector<1x32x64xbf16>
    %78 = vector.shape_cast %77 : vector<1x32x64xbf16> to vector<32x64xbf16>
    %cst_27 = arith.constant dense<0.000000e+00> : vector<192x64xf32>
    %79 = tpu.matmul %76, %78, %cst_27 {dimension_numbers = #tpu.dot_dimension_numbers<[1], [0], [0], [1], [0, 0, 1, 1], [], []>} : vector<192x32xbf16>, vector<32x64xbf16>, vector<192x64xf32> -> vector<192x64xf32>
    %80 = vector.extract_strided_slice %55 {offsets = [0, 0, 32], sizes = [8, 24, 32], strides = [1, 1, 1]} : vector<8x24x192xbf16> to vector<8x24x32xbf16>
    %81 = vector.extract_strided_slice %55 {offsets = [0, 0, 96], sizes = [8, 24, 32], strides = [1, 1, 1]} : vector<8x24x192xbf16> to vector<8x24x32xbf16>
    %82 = vector.extract_strided_slice %55 {offsets = [0, 0, 160], sizes = [8, 24, 32], strides = [1, 1, 1]} : vector<8x24x192xbf16> to vector<8x24x32xbf16>
    "tpu.trace_start"() <{level = 10 : i32, message = "bqd,bkd->bqk"}> : () -> ()
    %cst_28 = arith.constant dense<0.000000e+00> : vector<8x24x24xf32>
    %83 = tpu.matmul %80, %81, %cst_28 {dimension_numbers = #tpu.dot_dimension_numbers<[2], [2], [1], [1], [0, 0, 0, 1, 1, 1], [0], [0]>} : vector<8x24x32xbf16>, vector<8x24x32xbf16>, vector<8x24x24xf32> -> vector<8x24x24xf32>
    "tpu.trace_stop"() : () -> ()
    %84 = vector.shape_cast %14 : vector<24x24xf32> to vector<1x24x24xf32>
    %85 = vector.broadcast %84 : vector<1x24x24xf32> to vector<8x24x24xf32>
    %86 = arith.addf %83, %85 : vector<8x24x24xf32>
    %cst_29 = arith.constant dense<0xFF800000> : vector<8x24xf32>
    %87 = vector.multi_reduction <maximumf>, %86, %cst_29 [2] : vector<8x24x24xf32> to vector<8x24xf32>
    %88 = vector.shape_cast %87 : vector<8x24xf32> to vector<8x24x1xf32>
    %89 = vector.broadcast %88 : vector<8x24x1xf32> to vector<8x24x24xf32>
    %90 = arith.subf %86, %89 : vector<8x24x24xf32>
    %91 = math.exp %90 : vector<8x24x24xf32>
    %cst_30 = arith.constant dense<0.000000e+00> : vector<8x24xf32>
    %92 = vector.multi_reduction <add>, %91, %cst_30 [2] : vector<8x24x24xf32> to vector<8x24xf32>
    %93 = vector.shape_cast %92 : vector<8x24xf32> to vector<8x24x1xf32>
    %94 = tpu.reciprocal %93 {approx = true} : vector<8x24x1xf32> -> vector<8x24x1xf32>
    %95 = vector.broadcast %94 : vector<8x24x1xf32> to vector<8x24x24xf32>
    %96 = arith.mulf %91, %95 : vector<8x24x24xf32>
    %97 = arith.truncf %96 : vector<8x24x24xf32> to vector<8x24x24xbf16>
    "tpu.trace_start"() <{level = 10 : i32, message = "bqk,bkd->bqd"}> : () -> ()
    %cst_31 = arith.constant dense<0.000000e+00> : vector<8x24x32xf32>
    %98 = tpu.matmul %97, %82, %cst_31 {dimension_numbers = #tpu.dot_dimension_numbers<[2], [1], [1], [2], [0, 0, 0, 1, 1, 2], [0], [0]>} : vector<8x24x24xbf16>, vector<8x24x32xbf16>, vector<8x24x32xf32> -> vector<8x24x32xf32>
    "tpu.trace_stop"() : () -> ()
    %99 = vector.shape_cast %98 : vector<8x24x32xf32> to vector<192x32xf32>
    %100 = arith.truncf %99 : vector<192x32xf32> to vector<192x32xbf16>
    %c1_32 = arith.constant 1 : index
    %c0_33 = arith.constant 0 : index
    %c0_34 = arith.constant 0 : index
    %101 = vector.load %arg5[%c1_32, %c0_33, %c0_34] : memref<4x32x64xbf16, #tpu.memory_space<vmem>>, vector<1x32x64xbf16>
    %102 = vector.shape_cast %101 : vector<1x32x64xbf16> to vector<32x64xbf16>
    %cst_35 = arith.constant dense<0.000000e+00> : vector<192x64xf32>
    %103 = tpu.matmul %100, %102, %cst_35 {dimension_numbers = #tpu.dot_dimension_numbers<[1], [0], [0], [1], [0, 0, 1, 1], [], []>} : vector<192x32xbf16>, vector<32x64xbf16>, vector<192x64xf32> -> vector<192x64xf32>
    %104 = arith.addf %79, %103 : vector<192x64xf32>
    %105 = arith.addf %8, %104 : vector<192x64xf32>
    %c3 = arith.constant 3 : index
    %c0_36 = arith.constant 0 : index
    %106 = vector.load %arg8[%c3, %c0_36] : memref<16x192xf32, #tpu.memory_space<vmem>>, vector<1x192xf32>
    %107 = vector.shape_cast %106 : vector<1x192xf32> to vector<192xf32>
    %108 = vector.extract_strided_slice %107 {offsets = [0], sizes = [64], strides = [1]} : vector<192xf32> to vector<64xf32>
    %109 = vector.shape_cast %108 : vector<64xf32> to vector<1x64xf32>
    %110 = vector.broadcast %109 : vector<1x64xf32> to vector<192x64xf32>
    %111 = arith.addf %105, %110 : vector<192x64xf32>
    %c4 = arith.constant 4 : index
    %c0_37 = arith.constant 0 : index
    %112 = vector.load %arg8[%c4, %c0_37] : memref<16x192xf32, #tpu.memory_space<vmem>>, vector<1x192xf32>
    %113 = vector.shape_cast %112 : vector<1x192xf32> to vector<192xf32>
    %114 = vector.extract_strided_slice %113 {offsets = [0], sizes = [64], strides = [1]} : vector<192xf32> to vector<64xf32>
    %c5 = arith.constant 5 : index
    %c0_38 = arith.constant 0 : index
    %115 = vector.load %arg8[%c5, %c0_38] : memref<16x192xf32, #tpu.memory_space<vmem>>, vector<1x192xf32>
    %116 = vector.shape_cast %115 : vector<1x192xf32> to vector<192xf32>
    %117 = vector.extract_strided_slice %116 {offsets = [0], sizes = [64], strides = [1]} : vector<192xf32> to vector<64xf32>
    %cst_39 = arith.constant dense<0.000000e+00> : vector<192xf32>
    %118 = vector.multi_reduction <add>, %111, %cst_39 [1] : vector<192x64xf32> to vector<192xf32>
    %119 = vector.shape_cast %118 : vector<192xf32> to vector<192x1xf32>
    %cst_40 = arith.constant 6.400000e+01 : f32
    %120 = vector.broadcast %cst_40 : f32 to vector<192x1xf32>
    %121 = arith.divf %119, %120 : vector<192x1xf32>
    %122 = vector.broadcast %121 : vector<192x1xf32> to vector<192x64xf32>
    %123 = arith.subf %111, %122 : vector<192x64xf32>
    %124 = arith.mulf %123, %123 : vector<192x64xf32>
    %cst_41 = arith.constant dense<0.000000e+00> : vector<192xf32>
    %125 = vector.multi_reduction <add>, %124, %cst_41 [1] : vector<192x64xf32> to vector<192xf32>
    %126 = vector.shape_cast %125 : vector<192xf32> to vector<192x1xf32>
    %cst_42 = arith.constant 6.400000e+01 : f32
    %127 = vector.broadcast %cst_42 : f32 to vector<192x1xf32>
    %128 = arith.divf %126, %127 : vector<192x1xf32>
    %129 = vector.broadcast %121 : vector<192x1xf32> to vector<192x64xf32>
    %130 = arith.subf %111, %129 : vector<192x64xf32>
    %cst_43 = arith.constant 9.99999996E-13 : f32
    %131 = vector.broadcast %cst_43 : f32 to vector<192x1xf32>
    %132 = arith.addf %128, %131 : vector<192x1xf32>
    %133 = math.rsqrt %132 : vector<192x1xf32>
    %134 = vector.broadcast %133 : vector<192x1xf32> to vector<192x64xf32>
    %135 = arith.mulf %130, %134 : vector<192x64xf32>
    %136 = vector.shape_cast %114 : vector<64xf32> to vector<1x64xf32>
    %137 = vector.broadcast %136 : vector<1x64xf32> to vector<192x64xf32>
    %138 = arith.mulf %135, %137 : vector<192x64xf32>
    %139 = vector.shape_cast %117 : vector<64xf32> to vector<1x64xf32>
    %140 = vector.broadcast %139 : vector<1x64xf32> to vector<192x64xf32>
    %141 = arith.addf %138, %140 : vector<192x64xf32>
    %142 = arith.truncf %141 : vector<192x64xf32> to vector<192x64xbf16>
    %c0_44 = arith.constant 0 : index
    %c0_45 = arith.constant 0 : index
    %c0_46 = arith.constant 0 : index
    %143 = vector.load %arg6[%c0_44, %c0_45, %c0_46] : memref<2x64x128xbf16, #tpu.memory_space<vmem>>, vector<1x64x128xbf16>
    %144 = vector.shape_cast %143 : vector<1x64x128xbf16> to vector<64x128xbf16>
    %cst_47 = arith.constant dense<0.000000e+00> : vector<192x128xf32>
    %145 = tpu.matmul %142, %144, %cst_47 {dimension_numbers = #tpu.dot_dimension_numbers<[1], [0], [0], [1], [0, 0, 1, 1], [], []>} : vector<192x64xbf16>, vector<64x128xbf16>, vector<192x128xf32> -> vector<192x128xf32>
    %c6 = arith.constant 6 : index
    %c0_48 = arith.constant 0 : index
    %146 = vector.load %arg8[%c6, %c0_48] : memref<16x192xf32, #tpu.memory_space<vmem>>, vector<1x192xf32>
    %147 = vector.shape_cast %146 : vector<1x192xf32> to vector<192xf32>
    %148 = vector.extract_strided_slice %147 {offsets = [0], sizes = [128], strides = [1]} : vector<192xf32> to vector<128xf32>
    %149 = vector.shape_cast %148 : vector<128xf32> to vector<1x128xf32>
    %150 = vector.broadcast %149 : vector<1x128xf32> to vector<192x128xf32>
    %151 = arith.addf %145, %150 : vector<192x128xf32>
    %152 = arith.mulf %151, %151 : vector<192x128xf32>
    %153 = arith.mulf %151, %152 : vector<192x128xf32>
    %cst_49 = arith.constant 4.471500e-02 : f32
    %154 = vector.broadcast %cst_49 : f32 to vector<192x128xf32>
    %155 = arith.mulf %154, %153 : vector<192x128xf32>
    %156 = arith.addf %151, %155 : vector<192x128xf32>
    %cst_50 = arith.constant 0.797884583 : f32
    %157 = vector.broadcast %cst_50 : f32 to vector<192x128xf32>
    %158 = arith.mulf %157, %156 : vector<192x128xf32>
    %159 = math.tanh %158 : vector<192x128xf32>
    %cst_51 = arith.constant 1.000000e+00 : f32
    %160 = vector.broadcast %cst_51 : f32 to vector<192x128xf32>
    %161 = arith.addf %160, %159 : vector<192x128xf32>
    %cst_52 = arith.constant 5.000000e-01 : f32
    %162 = vector.broadcast %cst_52 : f32 to vector<192x128xf32>
    %163 = arith.mulf %162, %161 : vector<192x128xf32>
    %164 = arith.mulf %151, %163 : vector<192x128xf32>
    %165 = arith.truncf %164 : vector<192x128xf32> to vector<192x128xbf16>
    %c0_53 = arith.constant 0 : index
    %c0_54 = arith.constant 0 : index
    %c0_55 = arith.constant 0 : index
    %166 = vector.load %arg7[%c0_53, %c0_54, %c0_55] : memref<2x128x64xbf16, #tpu.memory_space<vmem>>, vector<1x128x64xbf16>
    %167 = vector.shape_cast %166 : vector<1x128x64xbf16> to vector<128x64xbf16>
    %cst_56 = arith.constant dense<0.000000e+00> : vector<192x64xf32>
    %168 = tpu.matmul %165, %167, %cst_56 {dimension_numbers = #tpu.dot_dimension_numbers<[1], [0], [0], [1], [0, 0, 1, 1], [], []>} : vector<192x128xbf16>, vector<128x64xbf16>, vector<192x64xf32> -> vector<192x64xf32>
    %169 = arith.addf %111, %168 : vector<192x64xf32>
    %c7 = arith.constant 7 : index
    %c0_57 = arith.constant 0 : index
    %170 = vector.load %arg8[%c7, %c0_57] : memref<16x192xf32, #tpu.memory_space<vmem>>, vector<1x192xf32>
    %171 = vector.shape_cast %170 : vector<1x192xf32> to vector<192xf32>
    %172 = vector.extract_strided_slice %171 {offsets = [0], sizes = [64], strides = [1]} : vector<192xf32> to vector<64xf32>
    %173 = vector.shape_cast %172 : vector<64xf32> to vector<1x64xf32>
    %174 = vector.broadcast %173 : vector<1x64xf32> to vector<192x64xf32>
    %175 = arith.addf %169, %174 : vector<192x64xf32>
    %c8 = arith.constant 8 : index
    %c0_58 = arith.constant 0 : index
    %176 = vector.load %arg8[%c8, %c0_58] : memref<16x192xf32, #tpu.memory_space<vmem>>, vector<1x192xf32>
    %177 = vector.shape_cast %176 : vector<1x192xf32> to vector<192xf32>
    %178 = vector.extract_strided_slice %177 {offsets = [0], sizes = [64], strides = [1]} : vector<192xf32> to vector<64xf32>
    %c9 = arith.constant 9 : index
    %c0_59 = arith.constant 0 : index
    %179 = vector.load %arg8[%c9, %c0_59] : memref<16x192xf32, #tpu.memory_space<vmem>>, vector<1x192xf32>
    %180 = vector.shape_cast %179 : vector<1x192xf32> to vector<192xf32>
    %181 = vector.extract_strided_slice %180 {offsets = [0], sizes = [64], strides = [1]} : vector<192xf32> to vector<64xf32>
    %cst_60 = arith.constant dense<0.000000e+00> : vector<192xf32>
    %182 = vector.multi_reduction <add>, %175, %cst_60 [1] : vector<192x64xf32> to vector<192xf32>
    %183 = vector.shape_cast %182 : vector<192xf32> to vector<192x1xf32>
    %cst_61 = arith.constant 6.400000e+01 : f32
    %184 = vector.broadcast %cst_61 : f32 to vector<192x1xf32>
    %185 = arith.divf %183, %184 : vector<192x1xf32>
    %186 = vector.broadcast %185 : vector<192x1xf32> to vector<192x64xf32>
    %187 = arith.subf %175, %186 : vector<192x64xf32>
    %188 = arith.mulf %187, %187 : vector<192x64xf32>
    %cst_62 = arith.constant dense<0.000000e+00> : vector<192xf32>
    %189 = vector.multi_reduction <add>, %188, %cst_62 [1] : vector<192x64xf32> to vector<192xf32>
    %190 = vector.shape_cast %189 : vector<192xf32> to vector<192x1xf32>
    %cst_63 = arith.constant 6.400000e+01 : f32
    %191 = vector.broadcast %cst_63 : f32 to vector<192x1xf32>
    %192 = arith.divf %190, %191 : vector<192x1xf32>
    %193 = vector.broadcast %185 : vector<192x1xf32> to vector<192x64xf32>
    %194 = arith.subf %175, %193 : vector<192x64xf32>
    %cst_64 = arith.constant 9.99999996E-13 : f32
    %195 = vector.broadcast %cst_64 : f32 to vector<192x1xf32>
    %196 = arith.addf %192, %195 : vector<192x1xf32>
    %197 = math.rsqrt %196 : vector<192x1xf32>
    %198 = vector.broadcast %197 : vector<192x1xf32> to vector<192x64xf32>
    %199 = arith.mulf %194, %198 : vector<192x64xf32>
    %200 = vector.shape_cast %178 : vector<64xf32> to vector<1x64xf32>
    %201 = vector.broadcast %200 : vector<1x64xf32> to vector<192x64xf32>
    %202 = arith.mulf %199, %201 : vector<192x64xf32>
    %203 = vector.shape_cast %181 : vector<64xf32> to vector<1x64xf32>
    %204 = vector.broadcast %203 : vector<1x64xf32> to vector<192x64xf32>
    %205 = arith.addf %202, %204 : vector<192x64xf32>
    %206 = arith.truncf %205 : vector<192x64xf32> to vector<192x64xbf16>
    %c1_65 = arith.constant 1 : index
    %c0_66 = arith.constant 0 : index
    %c0_67 = arith.constant 0 : index
    %207 = vector.load %arg4[%c1_65, %c0_66, %c0_67] : memref<2x64x192xbf16, #tpu.memory_space<vmem>>, vector<1x64x192xbf16>
    %208 = vector.shape_cast %207 : vector<1x64x192xbf16> to vector<64x192xbf16>
    %cst_68 = arith.constant dense<0.000000e+00> : vector<192x192xf32>
    %209 = tpu.matmul %206, %208, %cst_68 {dimension_numbers = #tpu.dot_dimension_numbers<[1], [0], [0], [1], [0, 0, 1, 1], [], []>} : vector<192x64xbf16>, vector<64x192xbf16>, vector<192x192xf32> -> vector<192x192xf32>
    %c10 = arith.constant 10 : index
    %c0_69 = arith.constant 0 : index
    %210 = vector.load %arg8[%c10, %c0_69] : memref<16x192xf32, #tpu.memory_space<vmem>>, vector<1x192xf32>
    %211 = vector.shape_cast %210 : vector<1x192xf32> to vector<192xf32>
    %212 = vector.shape_cast %211 : vector<192xf32> to vector<1x192xf32>
    %213 = vector.broadcast %212 : vector<1x192xf32> to vector<192x192xf32>
    %214 = arith.addf %209, %213 : vector<192x192xf32>
    %215 = vector.shape_cast %214 : vector<192x192xf32> to vector<8x24x192xf32>
    %216 = arith.truncf %215 : vector<8x24x192xf32> to vector<8x24x192xbf16>
    %217 = vector.extract_strided_slice %216 {offsets = [0, 0, 0], sizes = [8, 24, 32], strides = [1, 1, 1]} : vector<8x24x192xbf16> to vector<8x24x32xbf16>
    %218 = vector.extract_strided_slice %216 {offsets = [0, 0, 64], sizes = [8, 24, 32], strides = [1, 1, 1]} : vector<8x24x192xbf16> to vector<8x24x32xbf16>
    %219 = vector.extract_strided_slice %216 {offsets = [0, 0, 128], sizes = [8, 24, 32], strides = [1, 1, 1]} : vector<8x24x192xbf16> to vector<8x24x32xbf16>
    "tpu.trace_start"() <{level = 10 : i32, message = "bqd,bkd->bqk"}> : () -> ()
    %cst_70 = arith.constant dense<0.000000e+00> : vector<8x24x24xf32>
    %220 = tpu.matmul %217, %218, %cst_70 {dimension_numbers = #tpu.dot_dimension_numbers<[2], [2], [1], [1], [0, 0, 0, 1, 1, 1], [0], [0]>} : vector<8x24x32xbf16>, vector<8x24x32xbf16>, vector<8x24x24xf32> -> vector<8x24x24xf32>
    "tpu.trace_stop"() : () -> ()
    %221 = vector.shape_cast %14 : vector<24x24xf32> to vector<1x24x24xf32>
    %222 = vector.broadcast %221 : vector<1x24x24xf32> to vector<8x24x24xf32>
    %223 = arith.addf %220, %222 : vector<8x24x24xf32>
    %cst_71 = arith.constant dense<0xFF800000> : vector<8x24xf32>
    %224 = vector.multi_reduction <maximumf>, %223, %cst_71 [2] : vector<8x24x24xf32> to vector<8x24xf32>
    %225 = vector.shape_cast %224 : vector<8x24xf32> to vector<8x24x1xf32>
    %226 = vector.broadcast %225 : vector<8x24x1xf32> to vector<8x24x24xf32>
    %227 = arith.subf %223, %226 : vector<8x24x24xf32>
    %228 = math.exp %227 : vector<8x24x24xf32>
    %cst_72 = arith.constant dense<0.000000e+00> : vector<8x24xf32>
    %229 = vector.multi_reduction <add>, %228, %cst_72 [2] : vector<8x24x24xf32> to vector<8x24xf32>
    %230 = vector.shape_cast %229 : vector<8x24xf32> to vector<8x24x1xf32>
    %231 = tpu.reciprocal %230 {approx = true} : vector<8x24x1xf32> -> vector<8x24x1xf32>
    %232 = vector.broadcast %231 : vector<8x24x1xf32> to vector<8x24x24xf32>
    %233 = arith.mulf %228, %232 : vector<8x24x24xf32>
    %234 = arith.truncf %233 : vector<8x24x24xf32> to vector<8x24x24xbf16>
    "tpu.trace_start"() <{level = 10 : i32, message = "bqk,bkd->bqd"}> : () -> ()
    %cst_73 = arith.constant dense<0.000000e+00> : vector<8x24x32xf32>
    %235 = tpu.matmul %234, %219, %cst_73 {dimension_numbers = #tpu.dot_dimension_numbers<[2], [1], [1], [2], [0, 0, 0, 1, 1, 2], [0], [0]>} : vector<8x24x24xbf16>, vector<8x24x32xbf16>, vector<8x24x32xf32> -> vector<8x24x32xf32>
    "tpu.trace_stop"() : () -> ()
    %236 = vector.shape_cast %235 : vector<8x24x32xf32> to vector<192x32xf32>
    %237 = arith.truncf %236 : vector<192x32xf32> to vector<192x32xbf16>
    %c2_74 = arith.constant 2 : index
    %c0_75 = arith.constant 0 : index
    %c0_76 = arith.constant 0 : index
    %238 = vector.load %arg5[%c2_74, %c0_75, %c0_76] : memref<4x32x64xbf16, #tpu.memory_space<vmem>>, vector<1x32x64xbf16>
    %239 = vector.shape_cast %238 : vector<1x32x64xbf16> to vector<32x64xbf16>
    %cst_77 = arith.constant dense<0.000000e+00> : vector<192x64xf32>
    %240 = tpu.matmul %237, %239, %cst_77 {dimension_numbers = #tpu.dot_dimension_numbers<[1], [0], [0], [1], [0, 0, 1, 1], [], []>} : vector<192x32xbf16>, vector<32x64xbf16>, vector<192x64xf32> -> vector<192x64xf32>
    %241 = vector.extract_strided_slice %216 {offsets = [0, 0, 32], sizes = [8, 24, 32], strides = [1, 1, 1]} : vector<8x24x192xbf16> to vector<8x24x32xbf16>
    %242 = vector.extract_strided_slice %216 {offsets = [0, 0, 96], sizes = [8, 24, 32], strides = [1, 1, 1]} : vector<8x24x192xbf16> to vector<8x24x32xbf16>
    %243 = vector.extract_strided_slice %216 {offsets = [0, 0, 160], sizes = [8, 24, 32], strides = [1, 1, 1]} : vector<8x24x192xbf16> to vector<8x24x32xbf16>
    "tpu.trace_start"() <{level = 10 : i32, message = "bqd,bkd->bqk"}> : () -> ()
    %cst_78 = arith.constant dense<0.000000e+00> : vector<8x24x24xf32>
    %244 = tpu.matmul %241, %242, %cst_78 {dimension_numbers = #tpu.dot_dimension_numbers<[2], [2], [1], [1], [0, 0, 0, 1, 1, 1], [0], [0]>} : vector<8x24x32xbf16>, vector<8x24x32xbf16>, vector<8x24x24xf32> -> vector<8x24x24xf32>
    "tpu.trace_stop"() : () -> ()
    %245 = vector.shape_cast %14 : vector<24x24xf32> to vector<1x24x24xf32>
    %246 = vector.broadcast %245 : vector<1x24x24xf32> to vector<8x24x24xf32>
    %247 = arith.addf %244, %246 : vector<8x24x24xf32>
    %cst_79 = arith.constant dense<0xFF800000> : vector<8x24xf32>
    %248 = vector.multi_reduction <maximumf>, %247, %cst_79 [2] : vector<8x24x24xf32> to vector<8x24xf32>
    %249 = vector.shape_cast %248 : vector<8x24xf32> to vector<8x24x1xf32>
    %250 = vector.broadcast %249 : vector<8x24x1xf32> to vector<8x24x24xf32>
    %251 = arith.subf %247, %250 : vector<8x24x24xf32>
    %252 = math.exp %251 : vector<8x24x24xf32>
    %cst_80 = arith.constant dense<0.000000e+00> : vector<8x24xf32>
    %253 = vector.multi_reduction <add>, %252, %cst_80 [2] : vector<8x24x24xf32> to vector<8x24xf32>
    %254 = vector.shape_cast %253 : vector<8x24xf32> to vector<8x24x1xf32>
    %255 = tpu.reciprocal %254 {approx = true} : vector<8x24x1xf32> -> vector<8x24x1xf32>
    %256 = vector.broadcast %255 : vector<8x24x1xf32> to vector<8x24x24xf32>
    %257 = arith.mulf %252, %256 : vector<8x24x24xf32>
    %258 = arith.truncf %257 : vector<8x24x24xf32> to vector<8x24x24xbf16>
    "tpu.trace_start"() <{level = 10 : i32, message = "bqk,bkd->bqd"}> : () -> ()
    %cst_81 = arith.constant dense<0.000000e+00> : vector<8x24x32xf32>
    %259 = tpu.matmul %258, %243, %cst_81 {dimension_numbers = #tpu.dot_dimension_numbers<[2], [1], [1], [2], [0, 0, 0, 1, 1, 2], [0], [0]>} : vector<8x24x24xbf16>, vector<8x24x32xbf16>, vector<8x24x32xf32> -> vector<8x24x32xf32>
    "tpu.trace_stop"() : () -> ()
    %260 = vector.shape_cast %259 : vector<8x24x32xf32> to vector<192x32xf32>
    %261 = arith.truncf %260 : vector<192x32xf32> to vector<192x32xbf16>
    %c3_82 = arith.constant 3 : index
    %c0_83 = arith.constant 0 : index
    %c0_84 = arith.constant 0 : index
    %262 = vector.load %arg5[%c3_82, %c0_83, %c0_84] : memref<4x32x64xbf16, #tpu.memory_space<vmem>>, vector<1x32x64xbf16>
    %263 = vector.shape_cast %262 : vector<1x32x64xbf16> to vector<32x64xbf16>
    %cst_85 = arith.constant dense<0.000000e+00> : vector<192x64xf32>
    %264 = tpu.matmul %261, %263, %cst_85 {dimension_numbers = #tpu.dot_dimension_numbers<[1], [0], [0], [1], [0, 0, 1, 1], [], []>} : vector<192x32xbf16>, vector<32x64xbf16>, vector<192x64xf32> -> vector<192x64xf32>
    %265 = arith.addf %240, %264 : vector<192x64xf32>
    %266 = arith.addf %175, %265 : vector<192x64xf32>
    %c11 = arith.constant 11 : index
    %c0_86 = arith.constant 0 : index
    %267 = vector.load %arg8[%c11, %c0_86] : memref<16x192xf32, #tpu.memory_space<vmem>>, vector<1x192xf32>
    %268 = vector.shape_cast %267 : vector<1x192xf32> to vector<192xf32>
    %269 = vector.extract_strided_slice %268 {offsets = [0], sizes = [64], strides = [1]} : vector<192xf32> to vector<64xf32>
    %270 = vector.shape_cast %269 : vector<64xf32> to vector<1x64xf32>
    %271 = vector.broadcast %270 : vector<1x64xf32> to vector<192x64xf32>
    %272 = arith.addf %266, %271 : vector<192x64xf32>
    %c12 = arith.constant 12 : index
    %c0_87 = arith.constant 0 : index
    %273 = vector.load %arg8[%c12, %c0_87] : memref<16x192xf32, #tpu.memory_space<vmem>>, vector<1x192xf32>
    %274 = vector.shape_cast %273 : vector<1x192xf32> to vector<192xf32>
    %275 = vector.extract_strided_slice %274 {offsets = [0], sizes = [64], strides = [1]} : vector<192xf32> to vector<64xf32>
    %c13 = arith.constant 13 : index
    %c0_88 = arith.constant 0 : index
    %276 = vector.load %arg8[%c13, %c0_88] : memref<16x192xf32, #tpu.memory_space<vmem>>, vector<1x192xf32>
    %277 = vector.shape_cast %276 : vector<1x192xf32> to vector<192xf32>
    %278 = vector.extract_strided_slice %277 {offsets = [0], sizes = [64], strides = [1]} : vector<192xf32> to vector<64xf32>
    %cst_89 = arith.constant dense<0.000000e+00> : vector<192xf32>
    %279 = vector.multi_reduction <add>, %272, %cst_89 [1] : vector<192x64xf32> to vector<192xf32>
    %280 = vector.shape_cast %279 : vector<192xf32> to vector<192x1xf32>
    %cst_90 = arith.constant 6.400000e+01 : f32
    %281 = vector.broadcast %cst_90 : f32 to vector<192x1xf32>
    %282 = arith.divf %280, %281 : vector<192x1xf32>
    %283 = vector.broadcast %282 : vector<192x1xf32> to vector<192x64xf32>
    %284 = arith.subf %272, %283 : vector<192x64xf32>
    %285 = arith.mulf %284, %284 : vector<192x64xf32>
    %cst_91 = arith.constant dense<0.000000e+00> : vector<192xf32>
    %286 = vector.multi_reduction <add>, %285, %cst_91 [1] : vector<192x64xf32> to vector<192xf32>
    %287 = vector.shape_cast %286 : vector<192xf32> to vector<192x1xf32>
    %cst_92 = arith.constant 6.400000e+01 : f32
    %288 = vector.broadcast %cst_92 : f32 to vector<192x1xf32>
    %289 = arith.divf %287, %288 : vector<192x1xf32>
    %290 = vector.broadcast %282 : vector<192x1xf32> to vector<192x64xf32>
    %291 = arith.subf %272, %290 : vector<192x64xf32>
    %cst_93 = arith.constant 9.99999996E-13 : f32
    %292 = vector.broadcast %cst_93 : f32 to vector<192x1xf32>
    %293 = arith.addf %289, %292 : vector<192x1xf32>
    %294 = math.rsqrt %293 : vector<192x1xf32>
    %295 = vector.broadcast %294 : vector<192x1xf32> to vector<192x64xf32>
    %296 = arith.mulf %291, %295 : vector<192x64xf32>
    %297 = vector.shape_cast %275 : vector<64xf32> to vector<1x64xf32>
    %298 = vector.broadcast %297 : vector<1x64xf32> to vector<192x64xf32>
    %299 = arith.mulf %296, %298 : vector<192x64xf32>
    %300 = vector.shape_cast %278 : vector<64xf32> to vector<1x64xf32>
    %301 = vector.broadcast %300 : vector<1x64xf32> to vector<192x64xf32>
    %302 = arith.addf %299, %301 : vector<192x64xf32>
    %303 = arith.truncf %302 : vector<192x64xf32> to vector<192x64xbf16>
    %c1_94 = arith.constant 1 : index
    %c0_95 = arith.constant 0 : index
    %c0_96 = arith.constant 0 : index
    %304 = vector.load %arg6[%c1_94, %c0_95, %c0_96] : memref<2x64x128xbf16, #tpu.memory_space<vmem>>, vector<1x64x128xbf16>
    %305 = vector.shape_cast %304 : vector<1x64x128xbf16> to vector<64x128xbf16>
    %cst_97 = arith.constant dense<0.000000e+00> : vector<192x128xf32>
    %306 = tpu.matmul %303, %305, %cst_97 {dimension_numbers = #tpu.dot_dimension_numbers<[1], [0], [0], [1], [0, 0, 1, 1], [], []>} : vector<192x64xbf16>, vector<64x128xbf16>, vector<192x128xf32> -> vector<192x128xf32>
    %c14 = arith.constant 14 : index
    %c0_98 = arith.constant 0 : index
    %307 = vector.load %arg8[%c14, %c0_98] : memref<16x192xf32, #tpu.memory_space<vmem>>, vector<1x192xf32>
    %308 = vector.shape_cast %307 : vector<1x192xf32> to vector<192xf32>
    %309 = vector.extract_strided_slice %308 {offsets = [0], sizes = [128], strides = [1]} : vector<192xf32> to vector<128xf32>
    %310 = vector.shape_cast %309 : vector<128xf32> to vector<1x128xf32>
    %311 = vector.broadcast %310 : vector<1x128xf32> to vector<192x128xf32>
    %312 = arith.addf %306, %311 : vector<192x128xf32>
    %313 = arith.mulf %312, %312 : vector<192x128xf32>
    %314 = arith.mulf %312, %313 : vector<192x128xf32>
    %cst_99 = arith.constant 4.471500e-02 : f32
    %315 = vector.broadcast %cst_99 : f32 to vector<192x128xf32>
    %316 = arith.mulf %315, %314 : vector<192x128xf32>
    %317 = arith.addf %312, %316 : vector<192x128xf32>
    %cst_100 = arith.constant 0.797884583 : f32
    %318 = vector.broadcast %cst_100 : f32 to vector<192x128xf32>
    %319 = arith.mulf %318, %317 : vector<192x128xf32>
    %320 = math.tanh %319 : vector<192x128xf32>
    %cst_101 = arith.constant 1.000000e+00 : f32
    %321 = vector.broadcast %cst_101 : f32 to vector<192x128xf32>
    %322 = arith.addf %321, %320 : vector<192x128xf32>
    %cst_102 = arith.constant 5.000000e-01 : f32
    %323 = vector.broadcast %cst_102 : f32 to vector<192x128xf32>
    %324 = arith.mulf %323, %322 : vector<192x128xf32>
    %325 = arith.mulf %312, %324 : vector<192x128xf32>
    %326 = arith.truncf %325 : vector<192x128xf32> to vector<192x128xbf16>
    %c1_103 = arith.constant 1 : index
    %c0_104 = arith.constant 0 : index
    %c0_105 = arith.constant 0 : index
    %327 = vector.load %arg7[%c1_103, %c0_104, %c0_105] : memref<2x128x64xbf16, #tpu.memory_space<vmem>>, vector<1x128x64xbf16>
    %328 = vector.shape_cast %327 : vector<1x128x64xbf16> to vector<128x64xbf16>
    %cst_106 = arith.constant dense<0.000000e+00> : vector<192x64xf32>
    %329 = tpu.matmul %326, %328, %cst_106 {dimension_numbers = #tpu.dot_dimension_numbers<[1], [0], [0], [1], [0, 0, 1, 1], [], []>} : vector<192x128xbf16>, vector<128x64xbf16>, vector<192x64xf32> -> vector<192x64xf32>
    %330 = arith.addf %272, %329 : vector<192x64xf32>
    %c15 = arith.constant 15 : index
    %c0_107 = arith.constant 0 : index
    %331 = vector.load %arg8[%c15, %c0_107] : memref<16x192xf32, #tpu.memory_space<vmem>>, vector<1x192xf32>
    %332 = vector.shape_cast %331 : vector<1x192xf32> to vector<192xf32>
    %333 = vector.extract_strided_slice %332 {offsets = [0], sizes = [64], strides = [1]} : vector<192xf32> to vector<64xf32>
    %334 = vector.shape_cast %333 : vector<64xf32> to vector<1x64xf32>
    %335 = vector.broadcast %334 : vector<1x64xf32> to vector<192x64xf32>
    %336 = arith.addf %330, %335 : vector<192x64xf32>
    %337 = vector.shape_cast %336 : vector<192x64xf32> to vector<8x24x64xf32>
    %338 = vector.extract_strided_slice %337 {offsets = [0, 0, 0], sizes = [8, 1, 64], strides = [1, 1, 1]} : vector<8x24x64xf32> to vector<8x1x64xf32>
    %339 = vector.shape_cast %338 : vector<8x1x64xf32> to vector<8x64xf32>
    %c0_108 = arith.constant 0 : index
    %c0_109 = arith.constant 0 : index
    %340 = vector.load %arg9[%c0_108, %c0_109] : memref<8x512xf32, #tpu.memory_space<vmem>>, vector<1x512xf32>
    %341 = vector.shape_cast %340 : vector<1x512xf32> to vector<512xf32>
    %342 = vector.extract_strided_slice %341 {offsets = [0], sizes = [64], strides = [1]} : vector<512xf32> to vector<64xf32>
    %c1_110 = arith.constant 1 : index
    %c0_111 = arith.constant 0 : index
    %343 = vector.load %arg9[%c1_110, %c0_111] : memref<8x512xf32, #tpu.memory_space<vmem>>, vector<1x512xf32>
    %344 = vector.shape_cast %343 : vector<1x512xf32> to vector<512xf32>
    %345 = vector.extract_strided_slice %344 {offsets = [0], sizes = [64], strides = [1]} : vector<512xf32> to vector<64xf32>
    %cst_112 = arith.constant dense<0.000000e+00> : vector<8xf32>
    %346 = vector.multi_reduction <add>, %339, %cst_112 [1] : vector<8x64xf32> to vector<8xf32>
    %347 = vector.shape_cast %346 : vector<8xf32> to vector<8x1xf32>
    %cst_113 = arith.constant 6.400000e+01 : f32
    %348 = vector.broadcast %cst_113 : f32 to vector<8x1xf32>
    %349 = arith.divf %347, %348 : vector<8x1xf32>
    %350 = vector.broadcast %349 : vector<8x1xf32> to vector<8x64xf32>
    %351 = arith.subf %339, %350 : vector<8x64xf32>
    %352 = arith.mulf %351, %351 : vector<8x64xf32>
    %cst_114 = arith.constant dense<0.000000e+00> : vector<8xf32>
    %353 = vector.multi_reduction <add>, %352, %cst_114 [1] : vector<8x64xf32> to vector<8xf32>
    %354 = vector.shape_cast %353 : vector<8xf32> to vector<8x1xf32>
    %cst_115 = arith.constant 6.400000e+01 : f32
    %355 = vector.broadcast %cst_115 : f32 to vector<8x1xf32>
    %356 = arith.divf %354, %355 : vector<8x1xf32>
    %357 = vector.broadcast %349 : vector<8x1xf32> to vector<8x64xf32>
    %358 = arith.subf %339, %357 : vector<8x64xf32>
    %cst_116 = arith.constant 9.99999996E-13 : f32
    %359 = vector.broadcast %cst_116 : f32 to vector<8x1xf32>
    %360 = arith.addf %356, %359 : vector<8x1xf32>
    %361 = math.rsqrt %360 : vector<8x1xf32>
    %362 = vector.broadcast %361 : vector<8x1xf32> to vector<8x64xf32>
    %363 = arith.mulf %358, %362 : vector<8x64xf32>
    %364 = vector.shape_cast %342 : vector<64xf32> to vector<1x64xf32>
    %365 = vector.broadcast %364 : vector<1x64xf32> to vector<8x64xf32>
    %366 = arith.mulf %363, %365 : vector<8x64xf32>
    %367 = vector.shape_cast %345 : vector<64xf32> to vector<1x64xf32>
    %368 = vector.broadcast %367 : vector<1x64xf32> to vector<8x64xf32>
    %369 = arith.addf %366, %368 : vector<8x64xf32>
    %370 = arith.truncf %369 : vector<8x64xf32> to vector<8x64xbf16>
    %c0_117 = arith.constant 0 : index
    %c0_118 = arith.constant 0 : index
    %371 = vector.load %arg10[%c0_117, %c0_118] : memref<64x512xbf16, #tpu.memory_space<vmem>>, vector<64x512xbf16>
    %cst_119 = arith.constant dense<0.000000e+00> : vector<8x512xf32>
    %372 = tpu.matmul %370, %371, %cst_119 {dimension_numbers = #tpu.dot_dimension_numbers<[1], [0], [0], [1], [0, 0, 1, 1], [], []>} : vector<8x64xbf16>, vector<64x512xbf16>, vector<8x512xf32> -> vector<8x512xf32>
    %c2_120 = arith.constant 2 : index
    %c0_121 = arith.constant 0 : index
    %373 = vector.load %arg9[%c2_120, %c0_121] : memref<8x512xf32, #tpu.memory_space<vmem>>, vector<1x512xf32>
    %374 = vector.shape_cast %373 : vector<1x512xf32> to vector<512xf32>
    %375 = vector.shape_cast %374 : vector<512xf32> to vector<1x512xf32>
    %376 = vector.broadcast %375 : vector<1x512xf32> to vector<8x512xf32>
    %377 = arith.addf %372, %376 : vector<8x512xf32>
    %cst_122 = arith.constant 0.000000e+00 : f32
    %378 = vector.broadcast %cst_122 : f32 to vector<8x512xf32>
    %379 = arith.cmpf oge, %377, %378 : vector<8x512xf32>
    %cst_123 = arith.constant 1.000000e-01 : f32
    %380 = vector.broadcast %cst_123 : f32 to vector<8x512xf32>
    %381 = arith.mulf %380, %377 : vector<8x512xf32>
    %382 = arith.select %379, %377, %381 : vector<8x512xi1>, vector<8x512xf32>
    %383 = arith.truncf %382 : vector<8x512xf32> to vector<8x512xbf16>
    %c0_124 = arith.constant 0 : index
    %c0_125 = arith.constant 0 : index
    %384 = vector.load %arg11[%c0_124, %c0_125] : memref<512x256xbf16, #tpu.memory_space<vmem>>, vector<512x256xbf16>
    %cst_126 = arith.constant dense<0.000000e+00> : vector<8x256xf32>
    %385 = tpu.matmul %383, %384, %cst_126 {dimension_numbers = #tpu.dot_dimension_numbers<[1], [0], [0], [1], [0, 0, 1, 1], [], []>} : vector<8x512xbf16>, vector<512x256xbf16>, vector<8x256xf32> -> vector<8x256xf32>
    %c3_127 = arith.constant 3 : index
    %c0_128 = arith.constant 0 : index
    %386 = vector.load %arg9[%c3_127, %c0_128] : memref<8x512xf32, #tpu.memory_space<vmem>>, vector<1x512xf32>
    %387 = vector.shape_cast %386 : vector<1x512xf32> to vector<512xf32>
    %388 = vector.extract_strided_slice %387 {offsets = [0], sizes = [256], strides = [1]} : vector<512xf32> to vector<256xf32>
    %389 = vector.shape_cast %388 : vector<256xf32> to vector<1x256xf32>
    %390 = vector.broadcast %389 : vector<1x256xf32> to vector<8x256xf32>
    %391 = arith.addf %385, %390 : vector<8x256xf32>
    %cst_129 = arith.constant 0.000000e+00 : f32
    %392 = vector.broadcast %cst_129 : f32 to vector<8x256xf32>
    %393 = arith.cmpf oge, %391, %392 : vector<8x256xf32>
    %cst_130 = arith.constant 1.000000e-01 : f32
    %394 = vector.broadcast %cst_130 : f32 to vector<8x256xf32>
    %395 = arith.mulf %394, %391 : vector<8x256xf32>
    %396 = arith.select %393, %391, %395 : vector<8x256xi1>, vector<8x256xf32>
    %397 = arith.truncf %396 : vector<8x256xf32> to vector<8x256xbf16>
    %c0_131 = arith.constant 0 : index
    %c0_132 = arith.constant 0 : index
    %398 = vector.load %arg12[%c0_131, %c0_132] : memref<256x128xbf16, #tpu.memory_space<vmem>>, vector<256x128xbf16>
    %cst_133 = arith.constant dense<0.000000e+00> : vector<8x128xf32>
    %399 = tpu.matmul %397, %398, %cst_133 {dimension_numbers = #tpu.dot_dimension_numbers<[1], [0], [0], [1], [0, 0, 1, 1], [], []>} : vector<8x256xbf16>, vector<256x128xbf16>, vector<8x128xf32> -> vector<8x128xf32>
    %c4_134 = arith.constant 4 : index
    %c0_135 = arith.constant 0 : index
    %400 = vector.load %arg9[%c4_134, %c0_135] : memref<8x512xf32, #tpu.memory_space<vmem>>, vector<1x512xf32>
    %401 = vector.shape_cast %400 : vector<1x512xf32> to vector<512xf32>
    %402 = vector.extract_strided_slice %401 {offsets = [0], sizes = [128], strides = [1]} : vector<512xf32> to vector<128xf32>
    %403 = vector.shape_cast %402 : vector<128xf32> to vector<1x128xf32>
    %404 = vector.broadcast %403 : vector<1x128xf32> to vector<8x128xf32>
    %405 = arith.addf %399, %404 : vector<8x128xf32>
    %c0_136 = arith.constant 0 : index
    %c0_137 = arith.constant 0 : index
    %406 = vector.load %arg13[%c0_136, %c0_137] : memref<8x128xf32, #tpu.memory_space<vmem>>, vector<8x128xf32>
    tpu.vector_store %arg13[%c0_136, %c0_137], %405 {strides = array<i32>} : memref<8x128xf32, #tpu.memory_space<vmem>>, vector<8x128xf32>,
    return
  }
  func.func @transform_0(%arg0: i32) -> (i32, i32) {
    %c0_i32 = arith.constant 0 : i32
    %c0_i32_0 = arith.constant 0 : i32
    return %arg0, %c0_i32 : i32, i32
  }
  func.func @transform_1(%arg0: i32) -> (i32, i32) {
    %c0_i32 = arith.constant 0 : i32
    %c0_i32_0 = arith.constant 0 : i32
    %c0_i32_1 = arith.constant 0 : i32
    return %c0_i32, %c0_i32_0 : i32, i32
  }
  func.func @transform_2(%arg0: i32) -> (i32, i32) {
    %c0_i32 = arith.constant 0 : i32
    %c0_i32_0 = arith.constant 0 : i32
    %c0_i32_1 = arith.constant 0 : i32
    return %c0_i32, %c0_i32_0 : i32, i32
  }
  func.func @transform_3(%arg0: i32) -> (i32, i32, i32) {
    %c0_i32 = arith.constant 0 : i32
    %c0_i32_0 = arith.constant 0 : i32
    %c0_i32_1 = arith.constant 0 : i32
    %c0_i32_2 = arith.constant 0 : i32
    return %c0_i32, %c0_i32_0, %c0_i32_1 : i32, i32, i32
  }
  func.func @transform_4(%arg0: i32) -> (i32, i32, i32) {
    %c0_i32 = arith.constant 0 : i32
    %c0_i32_0 = arith.constant 0 : i32
    %c0_i32_1 = arith.constant 0 : i32
    %c0_i32_2 = arith.constant 0 : i32
    return %c0_i32, %c0_i32_0, %c0_i32_1 : i32, i32, i32
  }
  func.func @transform_5(%arg0: i32) -> (i32, i32, i32) {
    %c0_i32 = arith.constant 0 : i32
    %c0_i32_0 = arith.constant 0 : i32
    %c0_i32_1 = arith.constant 0 : i32
    %c0_i32_2 = arith.constant 0 : i32
    return %c0_i32, %c0_i32_0, %c0_i32_1 : i32, i32, i32
  }
  func.func @transform_6(%arg0: i32) -> (i32, i32, i32) {
    %c0_i32 = arith.constant 0 : i32
    %c0_i32_0 = arith.constant 0 : i32
    %c0_i32_1 = arith.constant 0 : i32
    %c0_i32_2 = arith.constant 0 : i32
    return %c0_i32, %c0_i32_0, %c0_i32_1 : i32, i32, i32
  }
  func.func @transform_7(%arg0: i32) -> (i32, i32) {
    %c0_i32 = arith.constant 0 : i32
    %c0_i32_0 = arith.constant 0 : i32
    %c0_i32_1 = arith.constant 0 : i32
    return %c0_i32, %c0_i32_0 : i32, i32
  }
  func.func @transform_8(%arg0: i32) -> (i32, i32) {
    %c0_i32 = arith.constant 0 : i32
    %c0_i32_0 = arith.constant 0 : i32
    %c0_i32_1 = arith.constant 0 : i32
    return %c0_i32, %c0_i32_0 : i32, i32
  }
  func.func @transform_9(%arg0: i32) -> (i32, i32) {
    %c0_i32 = arith.constant 0 : i32
    %c0_i32_0 = arith.constant 0 : i32
    %c0_i32_1 = arith.constant 0 : i32
    return %c0_i32, %c0_i32_0 : i32, i32
  }
  func.func @transform_10(%arg0: i32) -> (i32, i32) {
    %c0_i32 = arith.constant 0 : i32
    %c0_i32_0 = arith.constant 0 : i32
    %c0_i32_1 = arith.constant 0 : i32
    return %c0_i32, %c0_i32_0 : i32, i32
  }
  func.func @transform_11(%arg0: i32) -> (i32, i32) {
    %c0_i32 = arith.constant 0 : i32
    %c0_i32_0 = arith.constant 0 : i32
    %c0_i32_1 = arith.constant 0 : i32
    return %c0_i32, %c0_i32_0 : i32, i32
  }
  func.func @transform_12(%arg0: i32) -> (i32, i32) {
    %c0_i32 = arith.constant 0 : i32
    %c0_i32_0 = arith.constant 0 : i32
    return %arg0, %c0_i32 : i32, i32
  }
}

</mosaic_0001>

<bundles_post_ra>
// kernel: vit_guitar_tab_forward.1
= control target key start
LH: loop header
LB: loop body
LE: loop exit
PB: predicated region body
PF: predicated region fallthrough
CT: control target
= control target key end

     0   :  { %s14315_s21 = smov 0   ;;  %s19311_s0 = inlined_call_operand.vmem [shape: bf16[384,192], index: 0, kind: input, shape index: {}]   ;;  %s19312_s1 = inlined_call_operand.vmem [shape: f32[24,64], index: 1, kind: input, shape index: {}]   ;;  %s19313_s2 = inlined_call_operand.vmem [shape: bf16[192,64], index: 2, kind: input, shape index: {}]   ;;  %s19314_s3 = inlined_call_operand.vmem [shape: bf16[2,64,192], index: 3, kind: input, shape index: {}]   ;;  %s19315_s4 = inlined_call_operand.vmem [shape: bf16[4,32,64], index: 4, kind: input, shape index: {}]   ;;  %s19316_s5 = inlined_call_operand.vmem [shape: bf16[2,64,128], index: 5, kind: input, shape index: {}]   ;;  %s19317_s6 = inlined_call_operand.vmem [shape: bf16[2,128,64], index: 6, kind: input, shape index: {}]   ;;  %s19318_s7 = inlined_call_operand.vmem [shape: f32[16,192], index: 7, kind: input, shape index: {}]   ;;  %s19319_s8 = inlined_call_operand.vmem [shape: f32[8,512], index: 8, kind: input, shape index: {}]   ;;  %s19320_s9 = inlined_call_operand.vmem [shape: bf16[64,512], index: 9, kind: input, shape index: {}]   ;;  %s19321_s10 = inlined_call_operand.vmem [shape: bf16[512,256], index: 10, kind: input, shape index: {}]   ;;  %s19322_s11 = inlined_call_operand.vmem [shape: bf16[256,128], index: 11, kind: input, shape index: {}]   ;;  %s19323_s12 = inlined_call_operand.vmem [shape: f32[16,128], index: 12, kind: output, shape index: {}]  }
   0x1 LB: > { %s14321_s22 = sadd.s32 4294967295, %s14243_s21   ;;  %p11498_p0 = scmp.ge.s32.totalorder %s14243_s21, 1  ;;  %s14243_s21 = sphi %s14315_s21, %s22_s21  }
   0x2   : > { %p364_p1 = scmp.lt.s32.totalorder %s14243_s21, 3 }
   0x4   : > { %p365_p2 = pnand %p11498_p0, %p364_p1 }
   0x6   : > { %368 = sbr.rel (%p365_p2) target bundleno = 7863 (0x1eb7), region = 68 }
   0xd   : > { %v13323_v0 = vld [vmem:[%s19313_s2] sm:$0xff]   ;;  %v19325_v1 = vmov 0   ;;  %s406_s25 = smul.u32 24, %s14321_s22  ;;  %v13324_v2 = vld [vmem:[%s19313_s2 + $0x8] sm:$0xff]   ;;  %v13325_v3 = vld [vmem:[%s19313_s2 + $0x10] sm:$0xff]   ;;  %vm646_vm0 = vcmask 523264  }
   0xe   : > { %683 = vmatprep.subr.bf16.mxu0 %v19325_v1  ;;  %1360 = vmatprep.mubr.bf16.mxu1 %v19325_v1  ;;  %v13326_v4 = vld [vmem:[%s19313_s2 + $0x18] sm:$0xff]   ;;  %v13327_v6 = vld [vmem:[%s19313_s2 + $0x20] sm:$0xff]   ;;  %v13328_v7 = vld [vmem:[%s19313_s2 + $0x28] sm:$0xff]   ;;  %vm1519_vm1 = vcmask 261120   ;;  %s14246_s14 = smov 64   ;;  %vm2329_vm2 = vcmask 1043456  }
   0xf   : > { %684 = vmatpush1.bf16.msra.mxu0 %v13323_v0  ;;  %p407_p3 = scmp.lt.s32.totalorder %s406_s25, 47  ;;  %v13329_v8 = vld [vmem:[%s19313_s2 + $0x30] sm:$0xff]   ;;  %v13330_v9 = vld [vmem:[%s19313_s2 + $0x38] sm:$0xff]   ;;  %v13331_v10 = vld [vmem:[%s19313_s2 + $0x40] sm:$0xff]   ;;  %vm2042_vm4 = vcmask 195584   ;;  %s14248_s15 = smov 32  }
  0x10   : > { %685 = vmatprep.subr.bf16.mxu0 %v19325_v1  ;;  %v13332_v11 = vld [vmem:[%s19313_s2 + $0x48] sm:$0xff]   ;;  %v13333_v12 = vld [vmem:[%s19313_s2 + $0x50] sm:$0xff]   ;;  %v13334_v13 = vld [vmem:[%s19313_s2 + $0x58] sm:$0xff]   ;;  %s14249_s16 = smov 96   ;;  %vm10380_vm5 = vcmask 1041409   ;;  %vm10383_vm6 = vcmask 1042434  }
  0x11   : > { %s19636_s25 = smov (!%p407_p3, %s406_s25), 47  ;;  %v14419_v37 = vld [vmem:[%s19312_s1] sm:$0xff]  ;;  %v14424_v39 = vld [vmem:[%s19312_s1 + $0x8] sm:$0xff]  ;;  %v14437_v46 = vld [vmem:[%s19312_s1 + $0x10] sm:$0xff]  ;;  %vm10386_vm7 = vcmask 1043459   ;;  %vm10389_vm8 = vcmask 1044484  }
  0x12   : > { %s11985_s30 = sshll.u32 %s19636_s25, 3  ;;  %vm10392_vm9 = vcmask 1045509   ;;  %vm10395_vm10 = vcmask 1046534   ;;  %vm10398_vm11 = vcmask 1047559   ;;  %p413_p4 = scmp.lt.s32.totalorder %s14321_s22, 1 }
  0x13   : > { %686 = vmatpush1.bf16.msra.mxu0 %v13324_v2  ;;  %s14345_s17 = scalar_lea.vmem %s19311_s0, %s11985_s30 }
  0x14   : > { %687 = vmatprep.subr.bf16.mxu0 %v19325_v1  ;;  %v13337_v5 = vld [vmem:[%s14345_s17 + $0x4] ss:$8 sps:$4 sm:$0xff]   ;;  %v13335_v14 = vld [vmem:[%s14345_s17] ss:$8 sps:$4 sm:$0xff]   ;;  %v13338_v15 = vld [vmem:[%s14345_s17 + $0x14] ss:$8 sps:$4 sm:$0xff]  }
  0x15   : > { %11538 = vmatprep.mubr.msk.bf16.mxu0 %vm646_vm0, %v13337_v5  ;;  %v13340_v16 = vld [vmem:[%s14345_s17 + $0x10] ss:$8 sps:$4 sm:$0xff]   ;;  %v13341_v17 = vld [vmem:[%s14345_s17 + $0x24] ss:$8 sps:$4 sm:$0xff]   ;;  %v13343_v18 = vld [vmem:[%s14345_s17 + $0x20] ss:$8 sps:$4 sm:$0xff]  }
  0x16   : > { %v13344_v19 = vld [vmem:[%s14345_s17 + $0x34] ss:$8 sps:$4 sm:$0xff]   ;;  %v13346_v20 = vld [vmem:[%s14345_s17 + $0x30] ss:$8 sps:$4 sm:$0xff]   ;;  %v13347_v21 = vld [vmem:[%s14345_s17 + $0x44] ss:$8 sps:$4 sm:$0xff]  }
  0x17   : > { %688 = vmatpush1.bf16.msra.mxu0 %v13325_v3  ;;  %v13349_v22 = vld [vmem:[%s14345_s17 + $0x40] ss:$8 sps:$4 sm:$0xff]   ;;  %v13350_v23 = vld [vmem:[%s14345_s17 + $0x54] ss:$8 sps:$4 sm:$0xff]   ;;  %v13352_v24 = vld [vmem:[%s14345_s17 + $0x50] ss:$8 sps:$4 sm:$0xff]  }
  0x18   : > { %689 = vmatprep.subr.bf16.mxu0 %v19325_v1  ;;  %v13353_v25 = vld [vmem:[%s14345_s17 + $0x64] ss:$8 sps:$4 sm:$0xff]   ;;  %v13355_v26 = vld [vmem:[%s14345_s17 + $0x60] ss:$8 sps:$4 sm:$0xff]   ;;  %v13356_v27 = vld [vmem:[%s14345_s17 + $0x74] ss:$8 sps:$4 sm:$0xff]  }
  0x19   : > { %v13358_v28 = vld [vmem:[%s14345_s17 + $0x70] ss:$8 sps:$4 sm:$0xff]   ;;  %v13359_v29 = vld [vmem:[%s14345_s17 + $0x84] ss:$8 sps:$4 sm:$0xff]   ;;  %v13361_v30 = vld [vmem:[%s14345_s17 + $0x80] ss:$8 sps:$4 sm:$0xff]  }
  0x1a   : > { %v13362_v31 = vld [vmem:[%s14345_s17 + $0x94] ss:$8 sps:$4 sm:$0xff]   ;;  %v13364_v32 = vld [vmem:[%s14345_s17 + $0x90] ss:$8 sps:$4 sm:$0xff]   ;;  %v13365_v33 = vld [vmem:[%s14345_s17 + $0xa4] ss:$8 sps:$4 sm:$0xff]  }
  0x1b   : > { %690 = vmatpush1.bf16.msra.mxu0 %v13326_v4  ;;  %v13367_v34 = vld [vmem:[%s14345_s17 + $0xa0] ss:$8 sps:$4 sm:$0xff]   ;;  %v13368_v35 = vld [vmem:[%s14345_s17 + $0xb4] ss:$8 sps:$4 sm:$0xff]   ;;  %v13370_v36 = vld [vmem:[%s14345_s17 + $0xb0] ss:$8 sps:$4 sm:$0xff]  }
  0x1c   : > { %691 = vmatprep.subr.bf16.mxu0 %v19325_v1  ;;  %s19638_s22 = smov (!%p413_p4, %s14321_s22), 1 }
  0x1d   : > { %s11501_s18 = sshll.u32 %s19638_s22, 3 }
  0x1e   : > { %s416_s23 = scalar_lea.vmem %s19323_s12, %s11501_s18 }
  0x1f   : > { %692 = vmatpush1.bf16.msra.mxu0 %v13327_v6 }
  0x20   : > { %693 = vmatprep.subr.bf16.mxu0 %v19325_v1 }
  0x23   : > { %694 = vmatpush1.bf16.msra.mxu0 %v13328_v7 }
  0x24   : > { %695 = vmatprep.subr.bf16.mxu0 %v19325_v1 }
  0x27   : > { %696 = vmatpush1.bf16.msra.mxu0 %v13329_v8 }
  0x28   : > { %697 = vmatprep.subr.bf16.mxu0 %v19325_v1 }
  0x2b   : > { %698 = vmatpush1.bf16.msra.mxu0 %v13330_v9 }
  0x2c   : > { %699 = vmatprep.subr.bf16.mxu0 %v19325_v1 }
  0x2f   : > { %700 = vmatpush1.bf16.msra.mxu0 %v13331_v10 }
  0x30   : > { %701 = vmatprep.subr.bf16.mxu0 %v19325_v1 }
  0x33   : > { %702 = vmatpush1.bf16.msra.mxu0 %v13332_v11 }
  0x34   : > { %703 = vmatprep.subr.bf16.mxu0 %v19325_v1 }
  0x37   : > { %704 = vmatpush1.bf16.msra.mxu0 %v13333_v12 }
  0x38   : > { %705 = vmatprep.subr.bf16.mxu0 %v19325_v1 }
  0x3b   : > { %706 = vmatpush1.bf16.msra.mxu0 %v13334_v13 }
  0x3e   : > { %716 = vmatmul.mubr.bf16.vlgmr.msra.gmra.mrb[0].mxu0 %v13335_v14 }
  0x3f   : > { %11539 = vmatprep.mubr.msk.bf16.mxu0 %vm646_vm0, %v13338_v15 }
  0x46   : > { %724 = vmatmul.mubr.bf16.gmra.mrb[4].mxu0 %v13340_v16 }
  0x47   : > { %11540 = vmatprep.mubr.msk.bf16.mxu0 %vm646_vm0, %v13341_v17 }
  0x4e   : > { %732 = vmatmul.mubr.bf16.gmra.mrb[8].mxu0 %v13343_v18 }
  0x4f   : > { %11541 = vmatprep.mubr.msk.bf16.mxu0 %vm646_vm0, %v13344_v19 }
  0x56   : > { %740 = vmatmul.mubr.bf16.gmra.mrb[12].mxu0 %v13346_v20 }
  0x57   : > { %11542 = vmatprep.mubr.msk.bf16.mxu0 %vm646_vm0, %v13347_v21 }
  0x5e   : > { %748 = vmatmul.mubr.bf16.gmra.mrb[16].mxu0 %v13349_v22 }
  0x5f   : > { %11543 = vmatprep.mubr.msk.bf16.mxu0 %vm646_vm0, %v13350_v23 }
  0x66   : > { %756 = vmatmul.mubr.bf16.gmra.mrb[20].mxu0 %v13352_v24 }
  0x67   : > { %11544 = vmatprep.mubr.msk.bf16.mxu0 %vm646_vm0, %v13353_v25 }
  0x6e   : > { %764 = vmatmul.mubr.bf16.gmra.mrb[24].mxu0 %v13355_v26 }
  0x6f   : > { %11545 = vmatprep.mubr.msk.bf16.mxu0 %vm646_vm0, %v13356_v27 }
  0x76   : > { %772 = vmatmul.mubr.bf16.gmra.mrb[28].mxu0 %v13358_v28 }
  0x77   : > { %11546 = vmatprep.mubr.msk.bf16.mxu0 %vm646_vm0, %v13359_v29 }
  0x7e   : > { %780 = vmatmul.mubr.bf16.gmra.mrb[32].mxu0 %v13361_v30 }
  0x7f   : > { %11547 = vmatprep.mubr.msk.bf16.mxu0 %vm646_vm0, %v13362_v31 }
  0x86   : > { %788 = vmatmul.mubr.bf16.gmra.mrb[36].mxu0 %v13364_v32 }
  0x87   : > { %11548 = vmatprep.mubr.msk.bf16.mxu0 %vm646_vm0, %v13365_v33 }
  0x8e   : > { %796 = vmatmul.mubr.bf16.gmra.mrb[40].mxu0 %v13367_v34 }
  0x8f   : > { %11549 = vmatprep.mubr.msk.bf16.mxu0 %vm646_vm0, %v13368_v35 }
  0x96   : > { %804 = vmatmul.mubr.bf16.gmra.mrb[44].mxu0 %v13370_v36 }
 0x111   : > { %v717_v38 = vpop.f32.mrb[0].mxu0 }
 0x112   : > { %v14427_v40 = vadd.f32 %v14419_v37, %v717_v38  ;;  %v719_v41 = vpop.f32.mrb[1].mxu0 }
 0x113   : > { %v720_v42 = vpop.f32.mrb[2].mxu0 }
 0x114   : > { %19428 = vst [vmem:[#allocation2_spill] sm:$0xff] %v14427_v40  ;;  %v14430_v43 = vadd.f32 %v14424_v39, %v720_v42  ;;  %v722_v44 = vpop.f32.mrb[3].mxu0  ;;  %v846_v45 = vsel %vm646_vm0, %v14427_v40, 0.0 }
 0x115   : > { %847 = vadd.xlane.f32.xlu0 %v846_v45 }
 0x116   : > { %19429 = vst [vmem:[#allocation3_spill] sm:$0xff] %v14430_v43  ;;  %v849_v47 = vsel %vm646_vm0, %v14430_v43, 0.0 }
 0x119   : > { %850 = vadd.xlane.f32.xlu0 %v849_v47  ;;  %v725_v48 = vpop.f32.mrb[4].mxu0 }
 0x11a   : > { %v14442_v49 = vadd.f32 %v14437_v46, %v725_v48  ;;  %v727_v50 = vpop.f32.mrb[5].mxu0 }
 0x11b   : > { %v728_v51 = vpop.f32.mrb[6].mxu0 }
 0x11c   : > { %19430 = vst [vmem:[#allocation4_spill] sm:$0xff] %v14442_v49  ;;  %v14445_v52 = vadd.f32 %v14419_v37, %v728_v51  ;;  %v730_v53 = vpop.f32.mrb[7].mxu0  ;;  %v852_v54 = vsel %vm646_vm0, %v14442_v49, 0.0 }
 0x11d   : > { %853 = vadd.xlane.f32.xlu1 %v852_v54 }
 0x11e   : > { %19431 = vst [vmem:[#allocation5_spill] sm:$0xff] %v14445_v52  ;;  %v855_v55 = vsel %vm646_vm0, %v14445_v52, 0.0 }
 0x121   : > { %856 = vadd.xlane.f32.xlu1 %v855_v55  ;;  %v733_v56 = vpop.f32.mrb[8].mxu0 }
 0x122   : > { %v14452_v57 = vadd.f32 %v14424_v39, %v733_v56  ;;  %v735_v58 = vpop.f32.mrb[9].mxu0 }
 0x123   : > { %v736_v59 = vpop.f32.mrb[10].mxu0 }
 0x124   : > { %19432 = vst [vmem:[#allocation6_spill] sm:$0xff] %v14452_v57  ;;  %v14455_v60 = vadd.f32 %v14437_v46, %v736_v59  ;;  %v858_v61 = vsel %vm646_vm0, %v14452_v57, 0.0  ;;  %v738_v62 = vpop.f32.mrb[11].mxu0 }
 0x125   : > { %859 = vadd.xlane.f32.xlu0 %v858_v61 }
 0x126   : > { %19433 = vst [vmem:[#allocation7_spill] sm:$0xff] %v14455_v60  ;;  %v861_v63 = vsel %vm646_vm0, %v14455_v60, 0.0 }
 0x127   : > { %862 = vadd.xlane.f32.xlu1 %v861_v63 }
 0x129   : > { %v741_v0 = vpop.f32.mrb[12].mxu0 }
 0x12a   : > { %v14462_v2 = vadd.f32 %v14419_v37, %v741_v0  ;;  %v743_v3 = vpop.f32.mrb[13].mxu0 }
 0x12b   : > { %v744_v4 = vpop.f32.mrb[14].mxu0 }
 0x12c   : > { %19434 = vst [vmem:[#allocation8_spill] sm:$0xff] %v14462_v2  ;;  %v14465_v5 = vadd.f32 %v14424_v39, %v744_v4  ;;  %v864_v6 = vsel %vm646_vm0, %v14462_v2, 0.0  ;;  %v746_v7 = vpop.f32.mrb[15].mxu0 }
 0x12d   : > { %865 = vadd.xlane.f32.xlu0 %v864_v6 }
 0x12e   : > { %19435 = vst [vmem:[#allocation9_spill] sm:$0xff] %v14465_v5  ;;  %v867_v8 = vsel %vm646_vm0, %v14465_v5, 0.0 }
 0x12f   : > { %868 = vadd.xlane.f32.xlu1 %v867_v8 }
 0x131   : > { %v749_v9 = vpop.f32.mrb[16].mxu0 }
 0x132   : > { %v14472_v10 = vadd.f32 %v14437_v46, %v749_v9  ;;  %v751_v11 = vpop.f32.mrb[17].mxu0 }
 0x133   : > { %v752_v12 = vpop.f32.mrb[18].mxu0 }
 0x134   : > { %19436 = vst [vmem:[#allocation10_spill] sm:$0xff] %v14472_v10  ;;  %v14475_v13 = vadd.f32 %v14419_v37, %v752_v12  ;;  %v870_v14 = vsel %vm646_vm0, %v14472_v10, 0.0  ;;  %v754_v15 = vpop.f32.mrb[19].mxu0 }
 0x135   : > { %871 = vadd.xlane.f32.xlu0 %v870_v14 }
 0x136   : > { %19437 = vst [vmem:[#allocation11_spill] sm:$0xff] %v14475_v13  ;;  %v873_v16 = vsel %vm646_vm0, %v14475_v13, 0.0 }
 0x137   : > { %874 = vadd.xlane.f32.xlu1 %v873_v16 }
 0x139   : > { %v757_v17 = vpop.f32.mrb[20].mxu0 }
 0x13a   : > { %v14482_v18 = vadd.f32 %v14424_v39, %v757_v17  ;;  %v759_v19 = vpop.f32.mrb[21].mxu0 }
 0x13b   : > { %v760_v20 = vpop.f32.mrb[22].mxu0 }
 0x13c   : > { %19438 = vst [vmem:[#allocation12_spill] sm:$0xff] %v14482_v18  ;;  %v14485_v21 = vadd.f32 %v14437_v46, %v760_v20  ;;  %v876_v22 = vsel %vm646_vm0, %v14482_v18, 0.0  ;;  %v762_v23 = vpop.f32.mrb[23].mxu0 }
 0x13d   : > { %877 = vadd.xlane.f32.xlu0 %v876_v22 }
 0x13e   : > { %19439 = vst [vmem:[#allocation13_spill] sm:$0xff] %v14485_v21  ;;  %v879_v24 = vsel %vm646_vm0, %v14485_v21, 0.0 }
 0x13f   : > { %880 = vadd.xlane.f32.xlu1 %v879_v24 }
 0x141   : > { %v765_v25 = vpop.f32.mrb[24].mxu0 }
 0x142   : > { %v14492_v26 = vadd.f32 %v14419_v37, %v765_v25  ;;  %v767_v27 = vpop.f32.mrb[25].mxu0 }
 0x143   : > { %v768_v28 = vpop.f32.mrb[26].mxu0 }
 0x144   : > { %19440 = vst [vmem:[#allocation14_spill] sm:$0xff] %v14492_v26  ;;  %v14495_v29 = vadd.f32 %v14424_v39, %v768_v28  ;;  %v882_v30 = vsel %vm646_vm0, %v14492_v26, 0.0  ;;  %v770_v31 = vpop.f32.mrb[27].mxu0 }
 0x145   : > { %883 = vadd.xlane.f32.xlu0 %v882_v30 }
 0x146   : > { %19441 = vst [vmem:[#allocation15_spill] sm:$0xff] %v14495_v29  ;;  %v885_v32 = vsel %vm646_vm0, %v14495_v29, 0.0 }
 0x147   : > { %886 = vadd.xlane.f32.xlu1 %v885_v32 }
 0x149   : > { %v773_v33 = vpop.f32.mrb[28].mxu0 }
 0x14a   : > { %v14502_v34 = vadd.f32 %v14437_v46, %v773_v33  ;;  %v775_v35 = vpop.f32.mrb[29].mxu0 }
 0x14b   : > { %v776_v36 = vpop.f32.mrb[30].mxu0 }
 0x14c   : > { %19442 = vst [vmem:[#allocation16_spill] sm:$0xff] %v14502_v34  ;;  %v14505_v38 = vadd.f32 %v14419_v37, %v776_v36  ;;  %v888_v41 = vsel %vm646_vm0, %v14502_v34, 0.0  ;;  %v778_v42 = vpop.f32.mrb[31].mxu0 }
 0x14d   : > { %889 = vadd.xlane.f32.xlu0 %v888_v41 }
 0x14e   : > { %19443 = vst [vmem:[#allocation17_spill] sm:$0xff] %v14505_v38  ;;  %v891_v44 = vsel %vm646_vm0, %v14505_v38, 0.0 }
 0x14f   : > { %892 = vadd.xlane.f32.xlu1 %v891_v44 }
 0x151   : > { %v781_v45 = vpop.f32.mrb[32].mxu0 }
 0x152   : > { %v14512_v47 = vadd.f32 %v14424_v39, %v781_v45  ;;  %v783_v48 = vpop.f32.mrb[33].mxu0 }
 0x153   : > { %v784_v50 = vpop.f32.mrb[34].mxu0 }
 0x154   : > { %19444 = vst [vmem:[#allocation18_spill] sm:$0xff] %v14512_v47  ;;  %v14515_v51 = vadd.f32 %v14437_v46, %v784_v50  ;;  %v894_v53 = vsel %vm646_vm0, %v14512_v47, 0.0  ;;  %v786_v54 = vpop.f32.mrb[35].mxu0 }
 0x155   : > { %895 = vadd.xlane.f32.xlu0 %v894_v53 }
 0x156   : > { %19445 = vst [vmem:[#allocation19_spill] sm:$0xff] %v14515_v51  ;;  %v897_v55 = vsel %vm646_vm0, %v14515_v51, 0.0 }
 0x157   : > { %898 = vadd.xlane.f32.xlu1 %v897_v55 }
 0x159   : > { %v789_v56 = vpop.f32.mrb[36].mxu0 }
 0x15a   : > { %v14522_v58 = vadd.f32 %v14419_v37, %v789_v56  ;;  %v791_v59 = vpop.f32.mrb[37].mxu0 }
 0x15b   : > { %v792_v61 = vpop.f32.mrb[38].mxu0 }
 0x15c   : > { %19446 = vst [vmem:[#allocation20_spill] sm:$0xff] %v14522_v58  ;;  %v14525_v62 = vadd.f32 %v14424_v39, %v792_v61  ;;  %v900_v63 = vsel %vm646_vm0, %v14522_v58, 0.0  ;;  %v794_v0 = vpop.f32.mrb[39].mxu0 }
 0x15d   : > { %901 = vadd.xlane.f32.xlu0 %v900_v63 }
 0x15e   : > { %19447 = vst [vmem:[#allocation21_spill] sm:$0xff] %v14525_v62  ;;  %v903_v3 = vsel %vm646_vm0, %v14525_v62, 0.0 }
 0x15f   : > { %904 = vadd.xlane.f32.xlu1 %v903_v3 }
 0x161   : > { %v797_v4 = vpop.f32.mrb[40].mxu0 }
 0x162   : > { %v799_v6 = vpop.f32.mrb[41].mxu0  ;;  %v14535_v22 = vadd.f32 %v14437_v46, %v797_v4 }
 0x163   : > { %v800_v7 = vpop.f32.mrb[42].mxu0 }
 0x164   : > { %v802_v8 = vpop.f32.mrb[43].mxu0  ;;  %19448 = vst [vmem:[#allocation22_spill] sm:$0xff] %v14535_v22  ;;  %v906_v31 = vsel %vm646_vm0, %v14535_v22, 0.0  ;;  %v14551_v33 = vadd.f32 %v14419_v37, %v800_v7 }
 0x166   : > { %19449 = vst [vmem:[#allocation23_spill] sm:$0xff] %v14551_v33  ;;  %v909_v37 = vsel %vm646_vm0, %v14551_v33, 0.0 }
 0x169   : > { %v805_v9 = vpop.f32.mrb[44].mxu0 }
 0x16a   : > { %v807_v11 = vpop.f32.mrb[45].mxu0  ;;  %v14555_v42 = vadd.f32 %v14424_v39, %v805_v9 }
 0x16b   : > { %v808_v12 = vpop.f32.mrb[46].mxu0 }
 0x16c   : > { %v810_v14 = vpop.f32.mrb[47].mxu0  ;;  %19450 = vst [vmem:[#allocation24_spill] sm:$0xff] %v14555_v42  ;;  %v912_v39 = vsel %vm646_vm0, %v14555_v42, 0.0  ;;  %v14573_v59 = vadd.f32 %v14437_v46, %v808_v12 }
 0x16e   : > { %19451 = vst [vmem:[#allocation25_spill] sm:$0xff] %v14573_v59  ;;  %v915_v6 = vsel %vm646_vm0, %v14573_v59, 0.0 }
 0x1a2   : > { %v848_v15 = vpop.xlane.xlu0 %847 }
 0x1a3   : > { %v919_v16 = vmul.f32 0.015625, %v848_v15 }
 0x1a5   : > { %v14532_v17 = vsub.f32 %v14427_v40, %v919_v16 }
 0x1a6   : > { %v851_v19 = vpop.xlane.xlu0 %850 }
 0x1a7   : > { %v920_v20 = vmul.f32 0.015625, %v851_v19  ;;  %v967_v23 = vmul.f32 %v14532_v17, %v14532_v17 }
 0x1a9   : > { %v14540_v24 = vsub.f32 %v14430_v43, %v920_v20  ;;  %v991_v25 = vsel %vm646_vm0, %v967_v23, 0.0  ;;  %v13371_v23 = vld [vmem:[%s19314_s3 + $0x4] ss:$8 sps:$4 sm:$0xff]  }
 0x1aa   : > { %v854_v27 = vpop.xlane.xlu1 %853  ;;  %992 = vadd.xlane.f32.xlu0 %v991_v25  ;;  %1328 = vmatprep.subr.bf16.mxu1 %v13371_v23 }
 0x1ab   : > { %v921_v28 = vmul.f32 0.015625, %v854_v27  ;;  %v968_v30 = vmul.f32 %v14540_v24, %v14540_v24  ;;  %v13373_v27 = vld [vmem:[%s19314_s3] ss:$8 sps:$4 sm:$0xff]  }
 0x1ac   : > { %1329 = vmatpush1.bf16.msra.mxu1 %v13373_v27 }
 0x1ad   : > { %v14548_v32 = vsub.f32 %v14442_v49, %v921_v28  ;;  %v994_v35 = vsel %vm646_vm0, %v968_v30, 0.0 }
 0x1ae   : > { %v857_v36 = vpop.xlane.xlu1 %856  ;;  %995 = vadd.xlane.f32.xlu1 %v994_v35  ;;  %907 = vadd.xlane.f32.xlu0 %v906_v31 }
 0x1af   : > { %v922_v41 = vmul.f32 0.015625, %v857_v36  ;;  %v969_v44 = vmul.f32 %v14548_v32, %v14548_v32 }
 0x1b1   : > { %v14560_v45 = vsub.f32 %v14445_v52, %v922_v41  ;;  %v997_v48 = vsel %vm646_vm0, %v969_v44, 0.0  ;;  %v13374_v41 = vld [vmem:[%s19314_s3 + $0x14] ss:$8 sps:$4 sm:$0xff]   ;;  %v13376_v44 = vld [vmem:[%s19314_s3 + $0x10] ss:$8 sps:$4 sm:$0xff]  }
 0x1b2   : > { %v860_v50 = vpop.xlane.xlu0 %859  ;;  %998 = vadd.xlane.f32.xlu0 %v997_v48  ;;  %910 = vadd.xlane.f32.xlu1 %v909_v37 }
 0x1b3   : > { %v923_v53 = vmul.f32 0.015625, %v860_v50  ;;  %v970_v54 = vmul.f32 %v14560_v45, %v14560_v45  ;;  %1330 = vmatprep.subr.bf16.mxu1 %v13374_v41 }
 0x1b4   : > { %v863_v55 = vpop.xlane.xlu1 %862  ;;  %1331 = vmatpush1.bf16.msra.mxu1 %v13376_v44 }
 0x1b5   : > { %v14570_v56 = vsub.f32 %v14452_v57, %v923_v53  ;;  %v924_v61 = vmul.f32 0.015625, %v863_v55  ;;  %v1000_v63 = vsel %vm646_vm0, %v970_v54, 0.0  ;;  %v13377_v54 = vld [vmem:[%s19314_s3 + $0x24] ss:$8 sps:$4 sm:$0xff]   ;;  %v13379_v55 = vld [vmem:[%s19314_s3 + $0x20] ss:$8 sps:$4 sm:$0xff]  }
 0x1b6   : > { %1001 = vadd.xlane.f32.xlu1 %v1000_v63  ;;  %913 = vadd.xlane.f32.xlu0 %v912_v39 }
 0x1b7   : > { %v14577_v0 = vsub.f32 %v14455_v60, %v924_v61  ;;  %v971_v3 = vmul.f32 %v14570_v56, %v14570_v56  ;;  %1332 = vmatprep.subr.bf16.mxu1 %v13377_v54 }
 0x1b8   : > { %1333 = vmatpush1.bf16.msra.mxu1 %v13379_v55 }
 0x1b9   : > { %v1003_v4 = vsel %vm646_vm0, %v971_v3, 0.0  ;;  %v972_v46 = vmul.f32 %v14577_v0, %v14577_v0 }
 0x1ba   : > { %v866_v7 = vpop.xlane.xlu0 %865  ;;  %1004 = vadd.xlane.f32.xlu0 %v1003_v4  ;;  %916 = vadd.xlane.f32.xlu1 %v915_v6 }
 0x1bb   : > { %v925_v8 = vmul.f32 0.015625, %v866_v7  ;;  %v1006_v14 = vsel %vm646_vm0, %v972_v46, 0.0  ;;  %v13380_v46 = vld [vmem:[%s19314_s3 + $0x34] ss:$8 sps:$4 sm:$0xff]   ;;  %v13382_v7 = vld [vmem:[%s19314_s3 + $0x30] ss:$8 sps:$4 sm:$0xff]  }
 0x1bc   : > { %v869_v9 = vpop.xlane.xlu1 %868  ;;  %1334 = vmatprep.subr.bf16.mxu1 %v13380_v46 }
 0x1bd   : > { %v14587_v11 = vsub.f32 %v14462_v2, %v925_v8  ;;  %v926_v12 = vmul.f32 0.015625, %v869_v9  ;;  %1335 = vmatpush1.bf16.msra.mxu1 %v13382_v7 }
 0x1be   : > { %1007 = vadd.xlane.f32.xlu1 %v1006_v14 }
 0x1bf   : > { %v14591_v15 = vsub.f32 %v14465_v5, %v926_v12  ;;  %v973_v16 = vmul.f32 %v14587_v11, %v14587_v11 }
 0x1c1   : > { %v1009_v19 = vsel %vm646_vm0, %v973_v16, 0.0  ;;  %v974_v20 = vmul.f32 %v14591_v15, %v14591_v15 }
 0x1c2   : > { %v872_v25 = vpop.xlane.xlu0 %871  ;;  %1010 = vadd.xlane.f32.xlu0 %v1009_v19 }
 0x1c3   : > { %v927_v28 = vmul.f32 0.015625, %v872_v25  ;;  %v1012_v30 = vsel %vm646_vm0, %v974_v20, 0.0 }
 0x1c4   : > { %v875_v31 = vpop.xlane.xlu1 %874  ;;  %1013 = vadd.xlane.f32.xlu1 %v1012_v30 }
 0x1c5   : > { %v14606_v35 = vsub.f32 %v14472_v10, %v927_v28  ;;  %v928_v36 = vmul.f32 0.015625, %v875_v31 }
 0x1c7   : > { %v14615_v48 = vsub.f32 %v14475_v13, %v928_v36  ;;  %v975_v37 = vmul.f32 %v14606_v35, %v14606_v35 }
 0x1c9   : > { %v1015_v50 = vsel %vm646_vm0, %v975_v37, 0.0  ;;  %v976_v53 = vmul.f32 %v14615_v48, %v14615_v48 }
 0x1ca   : > { %v878_v39 = vpop.xlane.xlu0 %877  ;;  %1016 = vadd.xlane.f32.xlu0 %v1015_v50 }
 0x1cb   : > { %v929_v61 = vmul.f32 0.015625, %v878_v39  ;;  %v1018_v63 = vsel %vm646_vm0, %v976_v53, 0.0 }
 0x1cc   : > { %v881_v3 = vpop.xlane.xlu1 %880  ;;  %1019 = vadd.xlane.f32.xlu1 %v1018_v63 }
 0x1cd   : > { %v14630_v4 = vsub.f32 %v14482_v18, %v929_v61  ;;  %v930_v6 = vmul.f32 0.015625, %v881_v3 }
 0x1cf   : > { %v14639_v8 = vsub.f32 %v14485_v21, %v930_v6  ;;  %v977_v9 = vmul.f32 %v14630_v4, %v14630_v4 }
 0x1d1   : > { %v1021_v12 = vsel %vm646_vm0, %v977_v9, 0.0  ;;  %v978_v14 = vmul.f32 %v14639_v8, %v14639_v8 }
 0x1d2   : > { %v884_v16 = vpop.xlane.xlu0 %883  ;;  %1022 = vadd.xlane.f32.xlu0 %v1021_v12 }
 0x1d3   : > { %v931_v19 = vmul.f32 0.015625, %v884_v16  ;;  %v1024_v20 = vsel %vm646_vm0, %v978_v14, 0.0 }
 0x1d4   : > { %v887_v23 = vpop.xlane.xlu1 %886  ;;  %1025 = vadd.xlane.f32.xlu1 %v1024_v20 }
 0x1d5   : > { %v14648_v25 = vsub.f32 %v14492_v26, %v931_v19  ;;  %v932_v27 = vmul.f32 0.015625, %v887_v23 }
 0x1d7   : > { %v14651_v28 = vsub.f32 %v14495_v29, %v932_v27  ;;  %v979_v30 = vmul.f32 %v14648_v25, %v14648_v25 }
 0x1d9   : > { %v1027_v31 = vsel %vm646_vm0, %v979_v30, 0.0  ;;  %v980_v36 = vmul.f32 %v14651_v28, %v14651_v28 }
 0x1da   : > { %v890_v41 = vpop.xlane.xlu0 %889  ;;  %1028 = vadd.xlane.f32.xlu0 %v1027_v31 }
 0x1db   : > { %v933_v44 = vmul.f32 0.015625, %v890_v41  ;;  %v1030_v37 = vsel %vm646_vm0, %v980_v36, 0.0 }
 0x1dc   : > { %v893_v50 = vpop.xlane.xlu1 %892  ;;  %1031 = vadd.xlane.f32.xlu1 %v1030_v37 }
 0x1dd   : > { %v14660_v53 = vsub.f32 %v14502_v34, %v933_v44  ;;  %v934_v54 = vmul.f32 0.015625, %v893_v50 }
 0x1df   : > { %v14663_v39 = vsub.f32 %v14505_v38, %v934_v54  ;;  %v981_v55 = vmul.f32 %v14660_v53, %v14660_v53 }
 0x1e1   : > { %v1033_v61 = vsel %vm646_vm0, %v981_v55, 0.0  ;;  %v982_v63 = vmul.f32 %v14663_v39, %v14663_v39 }
 0x1e2   : > { %v896_v3 = vpop.xlane.xlu0 %895  ;;  %1034 = vadd.xlane.f32.xlu0 %v1033_v61 }
 0x1e3   : > { %v935_v6 = vmul.f32 0.015625, %v896_v3  ;;  %v1036_v46 = vsel %vm646_vm0, %v982_v63, 0.0 }
 0x1e4   : > { %v899_v7 = vpop.xlane.xlu1 %898  ;;  %1037 = vadd.xlane.f32.xlu1 %v1036_v46 }
 0x1e5   : > { %v14672_v9 = vsub.f32 %v14512_v47, %v935_v6  ;;  %v936_v12 = vmul.f32 0.015625, %v899_v7  ;;  %v19324_v7 = vlaneseq }
 0x1e7   : > { %v14675_v14 = vsub.f32 %v14515_v51, %v936_v12  ;;  %v983_v16 = vmul.f32 %v14672_v9, %v14672_v9 }
 0x1e9   : > { %v1039_v19 = vsel %vm646_vm0, %v983_v16, 0.0  ;;  %v984_v20 = vmul.f32 %v14675_v14, %v14675_v14 }
 0x1ea   : > { %v902_v23 = vpop.xlane.xlu0 %901  ;;  %1040 = vadd.xlane.f32.xlu0 %v1039_v19 }
 0x1eb   : > { %v937_v27 = vmul.f32 0.015625, %v902_v23  ;;  %v1042_v30 = vsel %vm646_vm0, %v984_v20, 0.0 }
 0x1ec   : > { %v905_v31 = vpop.xlane.xlu1 %904  ;;  %1043 = vadd.xlane.f32.xlu1 %v1042_v30  ;;  %v14699_v30 = vshrl.u32 %v19324_v7, 7 }
 0x1ed   : > { %v14684_v36 = vsub.f32 %v14522_v58, %v937_v27  ;;  %v938_v41 = vmul.f32 0.015625, %v905_v31 }
 0x1ee   : > { %19452 = vst [vmem:[#allocation26_spill] sm:$0xff] %v14699_v30 }
 0x1ef   : > { %v14687_v44 = vsub.f32 %v14525_v62, %v938_v41  ;;  %v985_v37 = vmul.f32 %v14684_v36, %v14684_v36 }
 0x1f1   : > { %v1045_v50 = vsel %vm646_vm0, %v985_v37, 0.0  ;;  %v986_v54 = vmul.f32 %v14687_v44, %v14687_v44 }
 0x1f2   : > { %1046 = vadd.xlane.f32.xlu0 %v1045_v50 }
 0x1f3   : > { %v1048_v55 = vsel %vm646_vm0, %v986_v54, 0.0 }
 0x1f4   : > { %1049 = vadd.xlane.f32.xlu1 %v1048_v55 }
 0x237   : > { %v993_v61 = vpop.xlane.xlu0 %992 }
 0x238   : > { %v1063_v63 = vmul.f32 0.015625, %v993_v61 }
 0x23a   : > { %v1087_v3 = vadd.f32 1e-12, %v1063_v63 }
 0x23b   : > { %v996_v6 = vpop.xlane.xlu1 %995  ;;  %v908_v46 = vpop.xlane.xlu0 %907 }
 0x23c   : > { %13563 = vrsqrt.f32 %v1087_v3  ;;  %v1064_v12 = vmul.f32 0.015625, %v996_v6  ;;  %v939_v16 = vmul.f32 0.015625, %v908_v46  ;;  %v14708_v3 = vsub.s32 0, %v14699_v30 }
 0x23e   : > { %v1088_v19 = vadd.f32 1e-12, %v1064_v12  ;;  %v14696_v20 = vsub.f32 %v14535_v22, %v939_v16  ;;  %19453 = vst [vmem:[#allocation27_spill] sm:$0xff] %v14708_v3  ;;  %v843_v16 = vld [vmem:[%s19318_s7] ss:$8 sm:$0x3] }
 0x23f   : > { %v999_v23 = vpop.xlane.xlu0 %998  ;;  %v911_v27 = vpop.xlane.xlu1 %910 }
 0x240   : > { %13565 = vrsqrt.f32 %v1088_v19  ;;  %v1065_v31 = vmul.f32 0.015625, %v999_v23  ;;  %v940_v41 = vmul.f32 0.015625, %v911_v27  ;;  %v987_v37 = vmul.f32 %v14696_v20, %v14696_v20 }
 0x242   : > { %v1089_v50 = vadd.f32 1e-12, %v1065_v31  ;;  %v14704_v54 = vsub.f32 %v14551_v33, %v940_v41  ;;  %v1051_v55 = vsel %vm646_vm0, %v987_v37, 0.0 }
 0x243   : > { %v1002_v61 = vpop.xlane.xlu1 %1001  ;;  %1052 = vadd.xlane.f32.xlu0 %v1051_v55  ;;  %v914_v63 = vpop.xlane.xlu0 %913  ;;  %v14721_v55 = vrot.slane %v843_v16, %v14708_v3 }
 0x244   : > { %13567 = vrsqrt.f32 %v1089_v50  ;;  %v1066_v6 = vmul.f32 0.015625, %v1002_v61  ;;  %v941_v46 = vmul.f32 0.015625, %v914_v63  ;;  %v988_v12 = vmul.f32 %v14704_v54, %v14704_v54 }
 0x246   : > { %v13564_v19 = vpop.eup %13563  ;;  %v1090_v23 = vadd.f32 1e-12, %v1066_v6  ;;  %v14716_v27 = vsub.f32 %v14555_v42, %v941_v46  ;;  %v1054_v31 = vsel %vm646_vm0, %v988_v12, 0.0  ;;  %v11550_v6 = vld [vmem:[%s19318_s7 + $0x1] ss:$8 sm:$0x3] }
 0x247   : > { %v1005_v41 = vpop.xlane.xlu0 %1004  ;;  %1055 = vadd.xlane.f32.xlu1 %v1054_v31  ;;  %v917_v37 = vpop.xlane.xlu1 %916  ;;  %v1135_v50 = vmul.f32 %v13564_v19, %v14532_v17 }
 0x248   : > { %13569 = vrsqrt.f32 %v1090_v23  ;;  %v1067_v61 = vmul.f32 0.015625, %v1005_v41  ;;  %v942_v63 = vmul.f32 0.015625, %v917_v37  ;;  %v989_v7 = vmul.f32 %v14716_v27, %v14716_v27 }
 0x249   : > { %v1165_v23 = vmul.f32 %v14721_v55, %v1135_v50  ;;  %v14735_v41 = vrot.slane %v11550_v6, %v14708_v3 }
 0x24a   : > { %v13566_v46 = vpop.eup %13565  ;;  %v1091_v12 = vadd.f32 1e-12, %v1067_v61  ;;  %v14729_v31 = vsub.f32 %v14573_v59, %v942_v63  ;;  %v1057_v17 = vsel %vm646_vm0, %v989_v7, 0.0 }
 0x24b   : > { %1058 = vadd.xlane.f32.xlu0 %v1057_v17  ;;  %v1008_v16 = vpop.xlane.xlu1 %1007  ;;  %v1136_v19 = vmul.f32 %v13566_v46, %v14540_v24  ;;  %v1195_v24 = vadd.f32 %v14735_v41, %v1165_v23  ;;  %v19454_v23 = vmov 0  }
 0x24c   : > { %13571 = vrsqrt.f32 %v1091_v12  ;;  %v1068_v37 = vmul.f32 0.015625, %v1008_v16  ;;  %v990_v1 = vmul.f32 %v14729_v31, %v14729_v31 }
 0x24d   : > { %v1166_v61 = vmul.f32 %v14721_v55, %v1136_v19 }
 0x24e   : > { %v13568_v63 = vpop.eup %13567  ;;  %v1092_v33 = vadd.f32 1e-12, %v1068_v37  ;;  %v1060_v7 = vsel %vm646_vm0, %v990_v1, 0.0 }
 0x24f   : > { %v1011_v17 = vpop.xlane.xlu0 %1010  ;;  %1061 = vadd.xlane.f32.xlu1 %v1060_v7  ;;  %v1196_v50 = vadd.f32 %v14735_v41, %v1166_v61  ;;  %v1137_v6 = vmul.f32 %v13568_v63, %v14548_v32 }
 0x250   : > { %13573 = vrsqrt.f32 %v1092_v33  ;;  %v1069_v46 = vmul.f32 0.015625, %v1011_v17 }
 0x251   : > { %v1014_v12 = vpop.xlane.xlu1 %1013  ;;  %v1219_v16 = vpack.c.bf16 %v1196_v50, %v1195_v24  ;;  %v1167_v1 = vmul.f32 %v14721_v55, %v1137_v6 }
 0x252   : > { %v13570_v59 = vpop.eup %13569  ;;  %v1093_v22 = vadd.f32 1e-12, %v1069_v46  ;;  %v1070_v42 = vmul.f32 0.015625, %v1014_v12 }
 0x253   : > { %11560 = vmatmul.mubr.msk.bf16.vlgmr.msra.gmra.mrb[0].mxu1 %vm646_vm0, %v1219_v16  ;;  %v1138_v19 = vmul.f32 %v13570_v59, %v14560_v45  ;;  %v1197_v63 = vadd.f32 %v14735_v41, %v1167_v1 }
 0x254   : > { %13575 = vrsqrt.f32 %v1093_v22  ;;  %v1094_v37 = vadd.f32 1e-12, %v1070_v42  ;;  %1370 = vmatprep.mubr.bf16.mxu1 %v19454_v23 }
 0x255   : > { %v1168_v61 = vmul.f32 %v14721_v55, %v1138_v19 }
 0x256   : > { %v13572_v32 = vpop.eup %13571  ;;  %13577 = vrsqrt.f32 %v1094_v37 }
 0x257   : > { %v1017_v33 = vpop.xlane.xlu0 %1016  ;;  %v1198_v7 = vadd.f32 %v14735_v41, %v1168_v61  ;;  %v1139_v17 = vmul.f32 %v13572_v32, %v14570_v56 }
 0x258   : > { %v1071_v24 = vmul.f32 0.015625, %v1017_v33 }
 0x259   : > { %v1020_v50 = vpop.xlane.xlu1 %1019  ;;  %v1220_v45 = vpack.c.bf16 %v1198_v7, %v1197_v63  ;;  %v1169_v46 = vmul.f32 %v14721_v55, %v1139_v17 }
 0x25a   : > { %v13574_v59 = vpop.eup %13573  ;;  %v1095_v6 = vadd.f32 1e-12, %v1071_v24  ;;  %v1072_v22 = vmul.f32 0.015625, %v1020_v50 }
 0x25b   : > { %11561 = vmatmul.mubr.msk.bf16.gmra.mrb[4].mxu1 %vm646_vm0, %v1220_v45  ;;  %v1140_v42 = vmul.f32 %v13574_v59, %v14577_v0  ;;  %v1199_v1 = vadd.f32 %v14735_v41, %v1169_v46 }
 0x25c   : > { %13579 = vrsqrt.f32 %v1095_v6  ;;  %v1096_v12 = vadd.f32 1e-12, %v1072_v22  ;;  %1380 = vmatprep.mubr.bf16.mxu1 %v19454_v23 }
 0x25d   : > { %v1170_v16 = vmul.f32 %v14721_v55, %v1140_v42 }
 0x25e   : > { %v13576_v19 = vpop.eup %13575  ;;  %13581 = vrsqrt.f32 %v1096_v12 }
 0x25f   : > { %v1023_v56 = vpop.xlane.xlu0 %1022  ;;  %v1200_v37 = vadd.f32 %v14735_v41, %v1170_v16  ;;  %v1141_v61 = vmul.f32 %v13576_v19, %v14587_v11 }
 0x260   : > { %v13578_v32 = vpop.eup %13577  ;;  %v1073_v33 = vmul.f32 0.015625, %v1023_v56 }
 0x261   : > { %v1026_v0 = vpop.xlane.xlu1 %1025  ;;  %v1221_v63 = vpack.c.bf16 %v1200_v37, %v1199_v1  ;;  %v1142_v7 = vmul.f32 %v13578_v32, %v14591_v15  ;;  %v1171_v50 = vmul.f32 %v14721_v55, %v1141_v61 }
 0x262   : > { %v1097_v17 = vadd.f32 1e-12, %v1073_v33  ;;  %v1074_v24 = vmul.f32 0.015625, %v1026_v0 }
 0x263   : > { %11562 = vmatmul.mubr.msk.bf16.gmra.mrb[8].mxu1 %vm646_vm0, %v1221_v63  ;;  %v1172_v45 = vmul.f32 %v14721_v55, %v1142_v7  ;;  %v1201_v42 = vadd.f32 %v14735_v41, %v1171_v50 }
 0x264   : > { %13583 = vrsqrt.f32 %v1097_v17  ;;  %v1098_v59 = vadd.f32 1e-12, %v1074_v24  ;;  %1390 = vmatprep.mubr.bf16.mxu1 %v19454_v23 }
 0x265   : > { %v1202_v11 = vadd.f32 %v14735_v41, %v1172_v45 }
 0x266   : > { %v13580_v6 = vpop.eup %13579  ;;  %13585 = vrsqrt.f32 %v1098_v59 }
 0x267   : > { %v1029_v22 = vpop.xlane.xlu0 %1028  ;;  %v1143_v15 = vmul.f32 %v13580_v6, %v14606_v35  ;;  %v1222_v19 = vpack.c.bf16 %v1202_v11, %v1201_v42 }
 0x268   : > { %v13582_v46 = vpop.eup %13581  ;;  %v1075_v12 = vmul.f32 0.015625, %v1029_v22 }
 0x269   : > { %v1032_v16 = vpop.xlane.xlu1 %1031  ;;  %v1144_v56 = vmul.f32 %v13582_v46, %v14615_v48  ;;  %v1173_v61 = vmul.f32 %v14721_v55, %v1143_v15 }
 0x26a   : > { %v1099_v1 = vadd.f32 1e-12, %v1075_v12  ;;  %v1076_v37 = vmul.f32 0.015625, %v1032_v16 }
 0x26b   : > { %11563 = vmatmul.mubr.msk.bf16.gmra.mrb[12].mxu1 %vm646_vm0, %v1222_v19  ;;  %v1174_v32 = vmul.f32 %v14721_v55, %v1144_v56  ;;  %v1203_v7 = vadd.f32 %v14735_v41, %v1173_v61 }
 0x26c   : > { %13587 = vrsqrt.f32 %v1099_v1  ;;  %v1100_v33 = vadd.f32 1e-12, %v1076_v37  ;;  %1400 = vmatprep.mubr.bf16.mxu1 %v19454_v23 }
 0x26d   : > { %v1204_v35 = vadd.f32 %v14735_v41, %v1174_v32 }
 0x26e   : > { %v13584_v0 = vpop.eup %13583  ;;  %13589 = vrsqrt.f32 %v1100_v33 }
 0x26f   : > { %v1035_v63 = vpop.xlane.xlu0 %1034  ;;  %v1145_v48 = vmul.f32 %v13584_v0, %v14630_v4  ;;  %v1223_v45 = vpack.c.bf16 %v1204_v35, %v1203_v7 }
 0x270   : > { %v13586_v17 = vpop.eup %13585  ;;  %v1077_v24 = vmul.f32 0.015625, %v1035_v63 }
 0x271   : > { %v1038_v50 = vpop.xlane.xlu1 %1037  ;;  %v1146_v59 = vmul.f32 %v13586_v17, %v14639_v8  ;;  %v1175_v22 = vmul.f32 %v14721_v55, %v1145_v48 }
 0x272   : > { %v1101_v11 = vadd.f32 1e-12, %v1077_v24  ;;  %v1078_v6 = vmul.f32 0.015625, %v1038_v50 }
 0x273   : > { %11564 = vmatmul.mubr.msk.bf16.gmra.mrb[16].mxu1 %vm646_vm0, %v1223_v45  ;;  %v1176_v42 = vmul.f32 %v14721_v55, %v1146_v59  ;;  %v1205_v16 = vadd.f32 %v14735_v41, %v1175_v22 }
 0x274   : > { %13591 = vrsqrt.f32 %v1101_v11  ;;  %v1102_v15 = vadd.f32 1e-12, %v1078_v6  ;;  %1410 = vmatprep.mubr.bf16.mxu1 %v19454_v23 }
 0x275   : > { %v1206_v4 = vadd.f32 %v14735_v41, %v1176_v42 }
 0x276   : > { %v13588_v46 = vpop.eup %13587  ;;  %13593 = vrsqrt.f32 %v1102_v15 }
 0x277   : > { %v1041_v12 = vpop.xlane.xlu0 %1040  ;;  %v1147_v8 = vmul.f32 %v13588_v46, %v14648_v25  ;;  %v1224_v37 = vpack.c.bf16 %v1206_v4, %v1205_v16 }
 0x278   : > { %v13590_v19 = vpop.eup %13589  ;;  %v1079_v56 = vmul.f32 0.015625, %v1041_v12 }
 0x279   : > { %v1044_v1 = vpop.xlane.xlu1 %1043  ;;  %v1148_v61 = vmul.f32 %v13590_v19, %v14651_v28  ;;  %v1177_v35 = vmul.f32 %v14721_v55, %v1147_v8 }
 0x27a   : > { %v1103_v32 = vadd.f32 1e-12, %v1079_v56  ;;  %v1080_v33 = vmul.f32 0.015625, %v1044_v1 }
 0x27b   : > { %11565 = vmatmul.mubr.msk.bf16.gmra.mrb[20].mxu1 %vm646_vm0, %v1224_v37  ;;  %v1178_v0 = vmul.f32 %v14721_v55, %v1148_v61  ;;  %v1207_v17 = vadd.f32 %v14735_v41, %v1177_v35 }
 0x27c   : > { %13595 = vrsqrt.f32 %v1103_v32  ;;  %v1104_v63 = vadd.f32 1e-12, %v1080_v33  ;;  %1420 = vmatprep.mubr.bf16.mxu1 %v19454_v23 }
 0x27d   : > { %v1208_v25 = vadd.f32 %v14735_v41, %v1178_v0 }
 0x27e   : > { %v13592_v7 = vpop.eup %13591  ;;  %13597 = vrsqrt.f32 %v1104_v63 }
 0x27f   : > { %v1047_v48 = vpop.xlane.xlu0 %1046  ;;  %v1149_v28 = vmul.f32 %v13592_v7, %v14660_v53  ;;  %v1225_v59 = vpack.c.bf16 %v1208_v25, %v1207_v17 }
 0x280   : > { %v13594_v24 = vpop.eup %13593  ;;  %v1081_v50 = vmul.f32 0.015625, %v1047_v48 }
 0x281   : > { %v1050_v45 = vpop.xlane.xlu1 %1049  ;;  %v1150_v11 = vmul.f32 %v13594_v24, %v14663_v39  ;;  %v1179_v42 = vmul.f32 %v14721_v55, %v1149_v28 }
 0x282   : > { %v1105_v6 = vadd.f32 1e-12, %v1081_v50  ;;  %v1082_v22 = vmul.f32 0.015625, %v1050_v45 }
 0x283   : > { %11566 = vmatmul.mubr.msk.bf16.gmra.mrb[24].mxu1 %vm646_vm0, %v1225_v59  ;;  %v1180_v15 = vmul.f32 %v14721_v55, %v1150_v11  ;;  %v1209_v12 = vadd.f32 %v14735_v41, %v1179_v42 }
 0x284   : > { %13599 = vrsqrt.f32 %v1105_v6  ;;  %v1106_v4 = vadd.f32 1e-12, %v1082_v22  ;;  %1430 = vmatprep.mubr.bf16.mxu1 %v19454_v23 }
 0x285   : > { %v1210_v53 = vadd.f32 %v14735_v41, %v1180_v15 }
 0x286   : > { %v13596_v46 = vpop.eup %13595  ;;  %13601 = vrsqrt.f32 %v1106_v4 }
 0x287   : > { %v1151_v39 = vmul.f32 %v13596_v46, %v14672_v9  ;;  %v1226_v8 = vpack.c.bf16 %v1210_v53, %v1209_v12 }
 0x288   : > { %v13598_v16 = vpop.eup %13597 }
 0x289   : > { %v1152_v19 = vmul.f32 %v13598_v16, %v14675_v14  ;;  %v1181_v56 = vmul.f32 %v14721_v55, %v1151_v39 }
 0x28b   : > { %11567 = vmatmul.mubr.msk.bf16.gmra.mrb[28].mxu1 %vm646_vm0, %v1226_v8  ;;  %v1182_v1 = vmul.f32 %v14721_v55, %v1152_v19  ;;  %v1211_v32 = vadd.f32 %v14735_v41, %v1181_v56 }
 0x28c   : > { %1440 = vmatprep.mubr.bf16.mxu1 %v19454_v23 }
 0x28d   : > { %v1212_v37 = vadd.f32 %v14735_v41, %v1182_v1 }
 0x28e   : > { %v13600_v61 = vpop.eup %13599 }
 0x28f   : > { %v1153_v33 = vmul.f32 %v13600_v61, %v14684_v36  ;;  %v1227_v35 = vpack.c.bf16 %v1212_v37, %v1211_v32 }
 0x290   : > { %v13602_v9 = vpop.eup %13601 }
 0x291   : > { %v1154_v0 = vmul.f32 %v13602_v9, %v14687_v44  ;;  %v1183_v14 = vmul.f32 %v14721_v55, %v1153_v33 }
 0x293   : > { %11568 = vmatmul.mubr.msk.bf16.gmra.mrb[32].mxu1 %vm646_vm0, %v1227_v35  ;;  %v1184_v63 = vmul.f32 %v14721_v55, %v1154_v0  ;;  %v1213_v7 = vadd.f32 %v14735_v41, %v1183_v14  ;;  %v14836_v35 = vsub.s32 1, %v14699_v30 }
 0x294   : > { %1450 = vmatprep.mubr.bf16.mxu1 %v19454_v23 }
 0x295   : > { %v1214_v25 = vadd.f32 %v14735_v41, %v1184_v63  ;;  %19455 = vst [vmem:[#allocation28_spill] sm:$0xff] %v14836_v35 }
 0x297   : > { %v1228_v48 = vpack.c.bf16 %v1214_v25, %v1213_v7 }
 0x29b   : > { %11569 = vmatmul.mubr.msk.bf16.gmra.mrb[36].mxu1 %vm646_vm0, %v1228_v48 }
 0x29c   : > { %1460 = vmatprep.mubr.bf16.mxu1 %v19454_v23 }
 0x2d0   : > { %v1053_v36 = vpop.xlane.xlu0 %1052 }
 0x2d1   : > { %v1083_v17 = vmul.f32 0.015625, %v1053_v36 }
 0x2d3   : > { %v1107_v44 = vadd.f32 1e-12, %v1083_v17 }
 0x2d4   : > { %v1056_v28 = vpop.xlane.xlu1 %1055 }
 0x2d5   : > { %13603 = vrsqrt.f32 %v1107_v44  ;;  %v1084_v24 = vmul.f32 0.015625, %v1056_v28 }
 0x2d7   : > { %v1108_v50 = vadd.f32 1e-12, %v1084_v24 }
 0x2d8   : > { %v1059_v45 = vpop.xlane.xlu0 %1058 }
 0x2d9   : > { %13605 = vrsqrt.f32 %v1108_v50  ;;  %v1085_v59 = vmul.f32 0.015625, %v1059_v45 }
 0x2db   : > { %v1109_v11 = vadd.f32 1e-12, %v1085_v59 }
 0x2dc   : > { %v1062_v6 = vpop.xlane.xlu1 %1061 }
 0x2dd   : > { %13607 = vrsqrt.f32 %v1109_v11  ;;  %v1086_v22 = vmul.f32 0.015625, %v1062_v6 }
 0x2df   : > { %v13604_v42 = vpop.eup %13603  ;;  %v1110_v15 = vadd.f32 1e-12, %v1086_v22 }
 0x2e0   : > { %v1155_v4 = vmul.f32 %v13604_v42, %v14696_v20 }
 0x2e1   : > { %13609 = vrsqrt.f32 %v1110_v15 }
 0x2e2   : > { %v1185_v12 = vmul.f32 %v14721_v55, %v1155_v4 }
 0x2e3   : > { %v13606_v53 = vpop.eup %13605 }
 0x2e4   : > { %v1156_v46 = vmul.f32 %v13606_v53, %v14704_v54  ;;  %v1215_v8 = vadd.f32 %v14735_v41, %v1185_v12 }
 0x2e6   : > { %v1186_v39 = vmul.f32 %v14721_v55, %v1156_v46 }
 0x2e7   : > { %v13608_v16 = vpop.eup %13607 }
 0x2e8   : > { %v1216_v19 = vadd.f32 %v14735_v41, %v1186_v39  ;;  %v1157_v56 = vmul.f32 %v13608_v16, %v14716_v27  ;;  %v11551_v27 = vld [vmem:[%s19318_s7 + $0x2] ss:$8 sm:$0x3] }
 0x2ea   : > { %v1229_v1 = vpack.c.bf16 %v1216_v19, %v1215_v8  ;;  %v1187_v61 = vmul.f32 %v14721_v55, %v1157_v56 }
 0x2eb   : > { %v13610_v37 = vpop.eup %13609 }
 0x2ec   : > { %11570 = vmatmul.mubr.msk.bf16.gmra.mrb[40].mxu1 %vm646_vm0, %v1229_v1  ;;  %v1158_v20 = vmul.f32 %v13610_v37, %v14729_v31  ;;  %v1217_v32 = vadd.f32 %v14735_v41, %v1187_v61  ;;  %v14839_v31 = vrot.slane %v11551_v27, %v14708_v3 }
 0x2ed   : > { %1470 = vmatprep.mubr.bf16.mxu1 %v19454_v23 }
 0x2ee   : > { %v1188_v54 = vmul.f32 %v14721_v55, %v1158_v20  ;;  %v14842_v55 = vrot.slane %v11551_v27, %v14836_v35 }
 0x2f0   : > { %v1218_v33 = vadd.f32 %v14735_v41, %v1188_v54 }
 0x2f2   : > { %v1230_v9 = vpack.c.bf16 %v1218_v33, %v1217_v32 }
 0x2f4   : > { %11571 = vmatmul.mubr.msk.bf16.gmra.mrb[44].mxu1 %vm646_vm0, %v1230_v9 }
 0x326   : > { %v1362_v0 = vpop.f32.mrb[0].mxu1 }
 0x327   : > { %v1364_v14 = vpop.f32.mrb[1].mxu1  ;;  %v1363_v41 = vadd.f32 %v1362_v0, %v14839_v31 }
 0x328   : > { %v1366_v63 = vpop.f32.mrb[2].mxu1  ;;  %v1365_v48 = vadd.f32 %v1364_v14, %v14842_v55 }
 0x329   : > { %v1367_v25 = vadd.f32 %v1366_v63, %v14839_v31  ;;  %v1368_v7 = vpop.f32.mrb[3].mxu1 }
 0x32a   : > { %v1369_v36 = vadd.f32 %v1368_v7, %v14842_v55 }
 0x32b   : > { %v14848_v17 = vpack.c.bf16 %v1367_v25, %v1363_v41 }
 0x32c   : > { %v14850_v44 = vpack.c.bf16 %v1369_v36, %v1365_v48 }
 0x32d   : > { %1515 = vrot.lane.b32.xlu0 %v14848_v17, %s14246_s14  ;;  %12396 = vmatprep.mubr.msk.bf16.mxu1 %vm1519_vm1, %v14848_v17 }
 0x32e   : > { %19456 = vst [vmem:[#allocation29_spill] sm:$0xff] %v14850_v44  ;;  %v1372_v28 = vpop.f32.mrb[4].mxu1 }
 0x32f   : > { %v1373_v24 = vadd.f32 %v1372_v28, %v14839_v31  ;;  %v14857_v50 = vpop.f32.mrb[5].mxu1 }
 0x330   : > { %v1376_v45 = vpop.f32.mrb[6].mxu1 }
 0x331   : > { %v14859_v59 = vpack.c.bf16 %v1373_v24, %v1373_v24  ;;  %v1378_v11 = vpop.f32.mrb[7].mxu1  ;;  %v1377_v22 = vadd.f32 %v1376_v45, %v14839_v31 }
 0x332   : > { %v1379_v4 = vadd.f32 %v1378_v11, %v14842_v55 }
 0x333   : > { %1517 = vrot.lane.b32.xlu1 %v14859_v59, %s14246_s14 }
 0x336   : > { %v1382_v6 = vpop.f32.mrb[8].mxu1 }
 0x337   : > { %v1383_v42 = vadd.f32 %v1382_v6, %v14839_v31  ;;  %v1384_v15 = vpop.f32.mrb[9].mxu1 }
 0x338   : > { %v1385_v53 = vadd.f32 %v1384_v15, %v14842_v55  ;;  %v1386_v46 = vpop.f32.mrb[10].mxu1 }
 0x339   : > { %v14867_v12 = vpack.c.bf16 %v1383_v42, %v1377_v22  ;;  %v1387_v39 = vadd.f32 %v1386_v46, %v14839_v31  ;;  %v14870_v16 = vpop.f32.mrb[11].mxu1 }
 0x33a   : > { %v14872_v8 = vpack.c.bf16 %v1385_v53, %v1379_v4 }
 0x33b   : > { %1582 = vrot.lane.b32.xlu1 %v14867_v12, %s14246_s14  ;;  %v14876_v19 = vpack.c.bf16 %v1387_v39, %v1387_v39 }
 0x33e   : > { %v1392_v56 = vpop.f32.mrb[12].mxu1 }
 0x33f   : > { %1584 = vrot.lane.b32.xlu1 %v14876_v19, %s14246_s14  ;;  %v1394_v1 = vpop.f32.mrb[13].mxu1  ;;  %v1393_v20 = vadd.f32 %v1392_v56, %v14839_v31 }
 0x340   : > { %v1396_v37 = vpop.f32.mrb[14].mxu1  ;;  %v1395_v32 = vadd.f32 %v1394_v1, %v14842_v55 }
 0x341   : > { %v1397_v61 = vadd.f32 %v1396_v37, %v14839_v31  ;;  %v1398_v54 = vpop.f32.mrb[15].mxu1 }
 0x342   : > { %v1399_v33 = vadd.f32 %v1398_v54, %v14842_v55 }
 0x343   : > { %v14884_v9 = vpack.c.bf16 %v1397_v61, %v1393_v20 }
 0x344   : > { %v14886_v27 = vpack.c.bf16 %v1399_v33, %v1395_v32 }
 0x345   : > { %1648 = vrot.lane.b32.xlu0 %v14884_v9, %s14246_s14  ;;  %12412 = vmatprep.mubr.msk.bf16.mxu0 %vm1519_vm1, %v14884_v9 }
 0x346   : > { %v1402_v0 = vpop.f32.mrb[16].mxu1 }
 0x347   : > { %v1403_v14 = vadd.f32 %v1402_v0, %v14839_v31  ;;  %v14893_v63 = vpop.f32.mrb[17].mxu1 }
 0x348   : > { %v1406_v41 = vpop.f32.mrb[18].mxu1 }
 0x349   : > { %v14895_v25 = vpack.c.bf16 %v1403_v14, %v1403_v14  ;;  %v1408_v7 = vpop.f32.mrb[19].mxu1  ;;  %v1407_v36 = vadd.f32 %v1406_v41, %v14839_v31 }
 0x34a   : > { %v1409_v45 = vadd.f32 %v1408_v7, %v14842_v55 }
 0x34b   : > { %1650 = vrot.lane.b32.xlu1 %v14895_v25, %s14246_s14 }
 0x34e   : > { %v1412_v48 = vpop.f32.mrb[20].mxu1 }
 0x34f   : > { %v1413_v28 = vadd.f32 %v1412_v48, %v14839_v31  ;;  %v1414_v24 = vpop.f32.mrb[21].mxu1 }
 0x350   : > { %v1415_v11 = vadd.f32 %v1414_v24, %v14842_v55  ;;  %v1416_v6 = vpop.f32.mrb[22].mxu1 }
 0x351   : > { %v14903_v22 = vpack.c.bf16 %v1413_v28, %v1407_v36  ;;  %v1417_v42 = vadd.f32 %v1416_v6, %v14839_v31  ;;  %v14906_v15 = vpop.f32.mrb[23].mxu1 }
 0x352   : > { %v14908_v4 = vpack.c.bf16 %v1415_v11, %v1409_v45 }
 0x353   : > { %v14910_v53 = vpack.c.bf16 %v1417_v42, %v1417_v42  ;;  %1714 = vrot.lane.b32.xlu0 %v14903_v22, %s14246_s14 }
 0x354   : > { %19457 = vst [vmem:[#allocation30_spill] sm:$0xff] %v14908_v4 }
 0x355   : > { %1716 = vrot.lane.b32.xlu1 %v14910_v53, %s14246_s14 }
 0x356   : > { %v1422_v46 = vpop.f32.mrb[24].mxu1 }
 0x357   : > { %v1424_v39 = vpop.f32.mrb[25].mxu1  ;;  %v1423_v1 = vadd.f32 %v1422_v46, %v14839_v31 }
 0x358   : > { %v1426_v56 = vpop.f32.mrb[26].mxu1  ;;  %v1425_v61 = vadd.f32 %v1424_v39, %v14842_v55 }
 0x359   : > { %v1427_v37 = vadd.f32 %v1426_v56, %v14839_v31  ;;  %v1428_v20 = vpop.f32.mrb[27].mxu1 }
 0x35a   : > { %v1429_v54 = vadd.f32 %v1428_v20, %v14842_v55 }
 0x35b   : > { %v14920_v32 = vpack.c.bf16 %v1427_v37, %v1423_v1 }
 0x35c   : > { %v14922_v33 = vpack.c.bf16 %v1429_v54, %v1425_v61 }
 0x35d   : > { %1780 = vrot.lane.b32.xlu0 %v14920_v32, %s14246_s14 }
 0x35e   : > { %v1432_v0 = vpop.f32.mrb[28].mxu1 }
 0x35f   : > { %v1433_v14 = vadd.f32 %v1432_v0, %v14839_v31  ;;  %v14927_v41 = vpop.f32.mrb[29].mxu1 }
 0x360   : > { %v1436_v7 = vpop.f32.mrb[30].mxu1 }
 0x361   : > { %v14929_v48 = vpack.c.bf16 %v1433_v14, %v1433_v14  ;;  %v1438_v36 = vpop.f32.mrb[31].mxu1  ;;  %v1437_v24 = vadd.f32 %v1436_v7, %v14839_v31 }
 0x362   : > { %v1439_v6 = vadd.f32 %v1438_v36, %v14842_v55 }
 0x363   : > { %1782 = vrot.lane.b32.xlu1 %v14929_v48, %s14246_s14 }
 0x366   : > { %v1442_v28 = vpop.f32.mrb[32].mxu1 }
 0x367   : > { %v1443_v45 = vadd.f32 %v1442_v28, %v14839_v31  ;;  %v1444_v11 = vpop.f32.mrb[33].mxu1 }
 0x368   : > { %v1445_v42 = vadd.f32 %v1444_v11, %v14842_v55  ;;  %v1446_v46 = vpop.f32.mrb[34].mxu1 }
 0x369   : > { %v14937_v39 = vpack.c.bf16 %v1443_v45, %v1437_v24  ;;  %v1447_v56 = vadd.f32 %v1446_v46, %v14839_v31  ;;  %v14940_v1 = vpop.f32.mrb[35].mxu1 }
 0x36a   : > { %v14942_v37 = vpack.c.bf16 %v1445_v42, %v1439_v6 }
 0x36b   : > { %v14944_v20 = vpack.c.bf16 %v1447_v56, %v1447_v56  ;;  %1846 = vrot.lane.b32.xlu0 %v14937_v39, %s14246_s14 }
 0x36d   : > { %1848 = vrot.lane.b32.xlu1 %v14944_v20, %s14246_s14 }
 0x36e   : > { %v1452_v61 = vpop.f32.mrb[36].mxu1 }
 0x36f   : > { %v1454_v54 = vpop.f32.mrb[37].mxu1  ;;  %v1453_v14 = vadd.f32 %v1452_v61, %v14839_v31 }
 0x370   : > { %v1456_v0 = vpop.f32.mrb[38].mxu1  ;;  %v1455_v28 = vadd.f32 %v1454_v54, %v14842_v55 }
 0x371   : > { %v1457_v7 = vadd.f32 %v1456_v0, %v14839_v31  ;;  %v1458_v36 = vpop.f32.mrb[39].mxu1 }
 0x372   : > { %v1459_v24 = vadd.f32 %v1458_v36, %v14842_v55 }
 0x373   : > { %v14954_v45 = vpack.c.bf16 %v1457_v7, %v1453_v14 }
 0x374   : > { %v14956_v11 = vpack.c.bf16 %v1459_v24, %v1455_v28 }
 0x375   : > { %19458 = vst [vmem:[#allocation31_spill] sm:$0xff] %v14954_v45  ;;  %1912 = vrot.lane.b32.xlu0 %v14954_v45, %s14246_s14 }
 0x39f   : > { %v1516_v6 = vpop.permute.xlu0 %1515 }
 0x3a0   : > { %13214 = vmatprep.subr.msk.bf16.mxu1 %vm1519_vm1, %v1516_v6  ;;  %v1527_v42 = vsel %vm1519_vm1, %v1516_v6, 0 }
 0x3a1   : > { %12393 = vmatpush3.bf16.xpose.msra.mxu1 %v1527_v42 }
 0x3a5   : > { %v1518_v46 = vpop.permute.xlu1 %1517 }
 0x3a6   : > { %13215 = vmatprep.subr.msk.bf16.mxu1 %vm1519_vm1, %v1518_v46  ;;  %v1530_v56 = vsel %vm1519_vm1, %v1518_v46, 0 }
 0x3a9   : > { %12395 = vmatpush3.bf16.xpose.msra.mxu1 %v1530_v56 }
 0x3ad   : > { %v1583_v61 = vpop.permute.xlu1 %1582 }
 0x3ae   : > { %13216 = vmatprep.subr.msk.bf16.mxu1 %vm1519_vm1, %v1583_v61  ;;  %v1593_v54 = vsel %vm1519_vm1, %v1583_v61, 0 }
 0x3b0   : > { %12397 = vmatmul.mubr.msk.bf16.vlgmr.msra.gmra.mrb[48].mxu1 %vm1519_vm1, %v14859_v59 }
 0x3b1   : > { %12401 = vmatpush3.bf16.xpose.msra.mxu1 %v1593_v54  ;;  %12404 = vmatprep.mubr.msk.bf16.mxu1 %vm1519_vm1, %v14867_v12  ;;  %v1585_v0 = vpop.permute.xlu1 %1584 }
 0x3b2   : > { %13217 = vmatprep.subr.msk.bf16.mxu1 %vm1519_vm1, %v1585_v0  ;;  %v1596_v7 = vsel %vm1519_vm1, %v1585_v0, 0 }
 0x3b7   : > { %v1649_v14 = vpop.permute.xlu0 %1648 }
 0x3b8   : > { %13218 = vmatprep.subr.msk.bf16.mxu0 %vm1519_vm1, %v1649_v14  ;;  %v1659_v36 = vsel %vm1519_vm1, %v1649_v14, 0 }
 0x3b9   : > { %12403 = vmatpush3.bf16.xpose.msra.mxu1 %v1596_v7  ;;  %12409 = vmatpush3.bf16.xpose.msra.mxu0 %v1659_v36 }
 0x3bd   : > { %v1651_v28 = vpop.permute.xlu1 %1650 }
 0x3be   : > { %13219 = vmatprep.subr.msk.bf16.mxu0 %vm1519_vm1, %v1651_v28  ;;  %v1662_v46 = vsel %vm1519_vm1, %v1651_v28, 0 }
 0x3bf   : > { %v1462_v24 = vpop.f32.mrb[40].mxu1 }
 0x3c0   : > { %v1463_v6 = vadd.f32 %v1462_v24, %v14839_v31  ;;  %v14976_v42 = vpop.f32.mrb[41].mxu1  ;;  %12405 = vmatmul.mubr.msk.bf16.vlgmr.msra.gmra.mrb[52].mxu1 %vm1519_vm1, %v14876_v19 }
 0x3c1   : > { %v1466_v56 = vpop.f32.mrb[42].mxu1  ;;  %12411 = vmatpush3.bf16.xpose.msra.mxu0 %v1662_v46  ;;  %12420 = vmatprep.mubr.msk.bf16.mxu1 %vm1519_vm1, %v14903_v22 }
 0x3c2   : > { %v14983_v61 = vpack.c.bf16 %v1463_v6, %v1463_v6  ;;  %v1468_v54 = vpop.f32.mrb[43].mxu1  ;;  %v1467_v28 = vadd.f32 %v1466_v56, %v14839_v31 }
 0x3c3   : > { %v1469_v6 = vadd.f32 %v1468_v54, %v14842_v55 }
 0x3c4   : > { %1914 = vrot.lane.b32.xlu1 %v14983_v61, %s14246_s14 }
 0x3c5   : > { %v1715_v0 = vpop.permute.xlu0 %1714 }
 0x3c6   : > { %13220 = vmatprep.subr.msk.bf16.mxu1 %vm1519_vm1, %v1715_v0  ;;  %v1725_v14 = vsel %vm1519_vm1, %v1715_v0, 0 }
 0x3c7   : > { %v1472_v7 = vpop.f32.mrb[44].mxu1  ;;  %12417 = vmatpush3.bf16.xpose.msra.mxu1 %v1725_v14  ;;  %v1717_v36 = vpop.permute.xlu1 %1716 }
 0x3c8   : > { %v1473_v24 = vadd.f32 %v1472_v7, %v14839_v31  ;;  %v1474_v46 = vpop.f32.mrb[45].mxu1  ;;  %12413 = vmatmul.mubr.msk.bf16.vlgmr.msra.gmra.mrb[48].mxu0 %vm1519_vm1, %v14895_v25  ;;  %13221 = vmatprep.subr.msk.bf16.mxu1 %vm1519_vm1, %v1717_v36  ;;  %v1728_v54 = vsel %vm1519_vm1, %v1717_v36, 0 }
 0x3c9   : > { %v1475_v30 = vadd.f32 %v1474_v46, %v14842_v55  ;;  %v1476_v35 = vpop.f32.mrb[46].mxu1  ;;  %12428 = vmatprep.mubr.msk.bf16.mxu0 %vm1519_vm1, %v14920_v32 }
 0x3ca   : > { %v14998_v0 = vpack.c.bf16 %v1473_v24, %v1467_v28  ;;  %v1477_v56 = vadd.f32 %v1476_v35, %v14839_v31  ;;  %v15001_v14 = vpop.f32.mrb[47].mxu1 }
 0x3cb   : > { %v15003_v7 = vpack.c.bf16 %v1475_v30, %v1469_v6 }
 0x3cc   : > { %19459 = vst [vmem:[#allocation32_spill] sm:$0xff] %v14998_v0  ;;  %v15005_v47 = vpack.c.bf16 %v1477_v56, %v1477_v56  ;;  %1978 = vrot.lane.b32.xlu0 %v14998_v0, %s14246_s14 }
 0x3ce   : > { %19460 = vst [vmem:[#allocation33_spill] sm:$0xff] %v15005_v47  ;;  %1980 = vrot.lane.b32.xlu1 %v15005_v47, %s14246_s14 }
 0x3cf   : > { %v1781_v46 = vpop.permute.xlu0 %1780  ;;  %12419 = vmatpush3.bf16.xpose.msra.mxu1 %v1728_v54 }
 0x3d0   : > { %13222 = vmatprep.subr.msk.bf16.mxu0 %vm1519_vm1, %v1781_v46  ;;  %v1791_v35 = vsel %vm1519_vm1, %v1781_v46, 0 }
 0x3d1   : > { %12425 = vmatpush3.bf16.xpose.msra.mxu0 %v1791_v35 }
 0x3d5   : > { %v1783_v31 = vpop.permute.xlu1 %1782 }
 0x3d6   : > { %12421 = vmatmul.mubr.msk.bf16.vlgmr.msra.gmra.mrb[56].mxu1 %vm1519_vm1, %v14910_v53  ;;  %13223 = vmatprep.subr.msk.bf16.mxu0 %vm1519_vm1, %v1783_v31  ;;  %v1794_v30 = vsel %vm1519_vm1, %v1783_v31, 0  ;;  %v1375_v31 = vadd.f32 %v14857_v50, %v14842_v55 }
 0x3d7   : > { %12436 = vmatprep.mubr.msk.bf16.mxu1 %vm1519_vm1, %v14937_v39 }
 0x3d9   : > { %12427 = vmatpush3.bf16.xpose.msra.mxu0 %v1794_v30 }
 0x3dd   : > { %v1847_v36 = vpop.permute.xlu0 %1846 }
 0x3de   : > { %13224 = vmatprep.subr.msk.bf16.mxu1 %vm1519_vm1, %v1847_v36  ;;  %v1857_v28 = vsel %vm1519_vm1, %v1847_v36, 0  ;;  %v15039_v36 = vpack.c.bf16 %v1375_v31, %v1375_v31 }
 0x3df   : > { %12433 = vmatpush3.bf16.xpose.msra.mxu1 %v1857_v28  ;;  %v1849_v24 = vpop.permute.xlu1 %1848 }
 0x3e0   : > { %12429 = vmatmul.mubr.msk.bf16.vlgmr.msra.gmra.mrb[52].mxu0 %vm1519_vm1, %v14929_v48  ;;  %13225 = vmatprep.subr.msk.bf16.mxu1 %vm1519_vm1, %v1849_v24  ;;  %v1860_v6 = vsel %vm1519_vm1, %v1849_v24, 0  ;;  %19461 = vst [vmem:[#allocation34_spill] sm:$0xff] %v15039_v36  ;;  %v2331_v50 = vsel %vm2329_vm2, %v15039_v36, 0 }
 0x3e1   : > { %12444 = vmatprep.mubr.msk.bf16.mxu0 %vm1519_vm1, %v14954_v45 }
 0x3e7   : > { %v1913_v56 = vpop.permute.xlu0 %1912  ;;  %12435 = vmatpush3.bf16.xpose.msra.mxu1 %v1860_v6 }
 0x3e8   : > { %13226 = vmatprep.subr.msk.bf16.mxu0 %vm1519_vm1, %v1913_v56  ;;  %v1923_v54 = vsel %vm1519_vm1, %v1913_v56, 0  ;;  %v1419_v56 = vadd.f32 %v14906_v15, %v14842_v55  ;;  %v14247_v15 = vmov -1e+30  }
 0x3e9   : > { %12441 = vmatpush3.bf16.xpose.msra.mxu0 %v1923_v54 }
 0x3ea   : > { %v15056_v54 = vpack.c.bf16 %v1419_v56, %v1419_v56 }
 0x3ec   : > { %19462 = vst [vmem:[#allocation35_spill] sm:$0xff] %v15056_v54 }
 0x3ee   : > { %12437 = vmatmul.mubr.msk.bf16.vlgmr.msra.gmra.mrb[60].mxu1 %vm1519_vm1, %v14944_v20 }
 0x3ef   : > { %12452 = vmatprep.mubr.msk.bf16.mxu1 %vm1519_vm1, %v14998_v0 }
 0x436   : > { %v1915_v46 = vpop.permute.xlu1 %1914 }
 0x437   : > { %13227 = vmatprep.subr.msk.bf16.mxu0 %vm1519_vm1, %v1915_v46  ;;  %v1926_v35 = vsel %vm1519_vm1, %v1915_v46, 0  ;;  %v2502_v46 = vsel %vm2329_vm2, %v15056_v54, 0 }
 0x438   : > { %12443 = vmatpush3.bf16.xpose.msra.mxu0 %v1926_v35  ;;  %v19463_v35 = vlaneseq }
 0x439   : > { %12456 = vmatprep.subr.bf16.mxu0 %v14850_v44 }
 0x43a   : > { %v840_v31 = vand.u32 127, %v19463_v35 }
 0x43c   : > { %vm841_vm3 = vcmp.lt.s32.totalorder %v840_v31, 17 }
 0x43e   : > { %v1979_v30 = vpop.permute.xlu0 %1978 }
 0x43f   : > { %12445 = vmatmul.mubr.msk.bf16.vlgmr.msra.gmra.mrb[56].mxu0 %vm1519_vm1, %v14983_v61  ;;  %13228 = vmatprep.subr.msk.bf16.mxu1 %vm1519_vm1, %v1979_v30  ;;  %v1989_v28 = vsel %vm1519_vm1, %v1979_v30, 0  ;;  %v15067_v30 = vsel %vm841_vm3, 0.0, %v14247_v15 }
 0x440   : > { %12449 = vmatpush3.bf16.xpose.msra.mxu1 %v1989_v28  ;;  %12457 = vmatpush3.bf16.msra.mxu0 %v14850_v44  ;;  %v1981_v24 = vpop.permute.xlu1 %1980  ;;  %19464 = vst [vmem:[#allocation36_spill] sm:$0xff] %v15067_v30 }
 0x441   : > { %13229 = vmatprep.subr.msk.bf16.mxu1 %vm1519_vm1, %v1981_v24  ;;  %13230 = vmatprep.subr.msk.bf16.mxu0 %vm2329_vm2, %v15039_v36  ;;  %v1992_v6 = vsel %vm1519_vm1, %v1981_v24, 0 }
 0x444   : > { %12459 = vmatpush3.bf16.msra.mxu0 %v2331_v50 }
 0x445   : > { %12464 = vmatprep.subr.bf16.mxu0 %v14872_v8 }
 0x448   : > { %12451 = vmatpush3.bf16.xpose.msra.mxu1 %v1992_v6 }
 0x449   : > { %12480 = vmatprep.subr.bf16.mxu1 %v14908_v4 }
 0x44f   : > { %12453 = vmatmul.mubr.msk.bf16.vlgmr.msra.gmra.mrb[64].mxu1 %vm1519_vm1, %v15005_v47 }
 0x450   : > { %12481 = vmatpush3.bf16.msra.mxu1 %v14908_v4 }
 0x451   : > { %13233 = vmatprep.subr.msk.bf16.mxu1 %vm2329_vm2, %v15056_v54 }
 0x454   : > { %12483 = vmatpush3.bf16.msra.mxu1 %v2502_v46 }
 0x455   : > { %12496 = vmatprep.subr.bf16.mxu1 %v14942_v37 }
 0x483   : > { %v12398_v28 = vpop.f32.mrb[48].mxu1 }
 0x484   : > { %v1566_v24 = vpop.f32.mrb[49].mxu1  ;;  %v15073_v51 = vadd.f32 %v12398_v28, %v15067_v30 }
 0x485   : > { %v15070_v50 = vadd.f32 %v1566_v24, %v15067_v30  ;;  %v12399_v6 = vpop.f32.mrb[50].mxu1 }
 0x486   : > { %v1569_v56 = vpop.f32.mrb[51].mxu1  ;;  %v2049_v15 = vsel %vm2042_vm4, %v15073_v51, -inf }
 0x487   : > { %v15076_v46 = vadd.f32 %v1569_v56, %v15067_v30  ;;  %v2043_v35 = vsel %vm2042_vm4, %v15070_v50, -inf }
 0x488   : > { %2044 = vmax.xlane.f32.xlu0 %v2043_v35 }
 0x489   : > { %v2046_v31 = vsel %vm2042_vm4, %v15076_v46, -inf }
 0x48a   : > { %2047 = vmax.xlane.f32.xlu1 %v2046_v31 }
 0x48c   : > { %2050 = vmax.xlane.f32.xlu0 %v2049_v15 }
 0x493   : > { %v12406_v24 = vpop.f32.mrb[52].mxu1 }
 0x494   : > { %v15085_v6 = vadd.f32 %v12406_v24, %v15067_v30  ;;  %v1632_v28 = vpop.f32.mrb[53].mxu1 }
 0x495   : > { %v15088_v56 = vadd.f32 %v1632_v28, %v15067_v30  ;;  %v12407_v62 = vpop.f32.mrb[54].mxu1 }
 0x496   : > { %v1635_v58 = vpop.f32.mrb[55].mxu1  ;;  %v2058_v35 = vsel %vm2042_vm4, %v15085_v6, -inf }
 0x497   : > { %v15093_v34 = vadd.f32 %v1635_v58, %v15067_v30  ;;  %2059 = vmax.xlane.f32.xlu1 %v2058_v35  ;;  %v2052_v31 = vsel %vm2042_vm4, %v15088_v56, -inf }
 0x498   : > { %2053 = vmax.xlane.f32.xlu0 %v2052_v31 }
 0x499   : > { %v2055_v24 = vsel %vm2042_vm4, %v15093_v34, -inf }
 0x49b   : > { %v12414_v15 = vpop.f32.mrb[48].mxu0 }
 0x49c   : > { %v15100_v28 = vadd.f32 %v12414_v15, %v15067_v30  ;;  %2056 = vmax.xlane.f32.xlu0 %v2055_v24  ;;  %v1698_v62 = vpop.f32.mrb[49].mxu0 }
 0x49d   : > { %v12415_v29 = vpop.f32.mrb[50].mxu0  ;;  %v15105_v35 = vadd.f32 %v1698_v62, %v15067_v30 }
 0x49e   : > { %v1701_v38 = vpop.f32.mrb[51].mxu0  ;;  %v2067_v58 = vsel %vm2042_vm4, %v15100_v28, -inf }
 0x49f   : > { %v15108_v26 = vadd.f32 %v1701_v38, %v15067_v30  ;;  %v2061_v15 = vsel %vm2042_vm4, %v15105_v35, -inf }
 0x4a0   : > { %2068 = vmax.xlane.f32.xlu0 %v2067_v58 }
 0x4a1   : > { %v2064_v31 = vsel %vm2042_vm4, %v15108_v26, -inf }
 0x4a2   : > { %2065 = vmax.xlane.f32.xlu1 %v2064_v31 }
 0x4a4   : > { %2062 = vmax.xlane.f32.xlu0 %v2061_v15 }
 0x4a9   : > { %v12422_v29 = vpop.f32.mrb[56].mxu1 }
 0x4aa   : > { %v1764_v24 = vpop.f32.mrb[57].mxu1 }
 0x4ab   : > { %v15115_v18 = vadd.f32 %v1764_v24, %v15067_v30  ;;  %v12423_v13 = vpop.f32.mrb[58].mxu1 }
 0x4ac   : > { %v1767_v62 = vpop.f32.mrb[59].mxu1  ;;  %v15128_v13 = vadd.f32 %v12422_v29, %v15067_v30 }
 0x4ad   : > { %v15118_v21 = vadd.f32 %v1767_v62, %v15067_v30  ;;  %v2070_v38 = vsel %vm2042_vm4, %v15115_v18, -inf }
 0x4ae   : > { %2071 = vmax.xlane.f32.xlu1 %v2070_v38 }
 0x4af   : > { %v2073_v58 = vsel %vm2042_vm4, %v15118_v21, -inf }
 0x4b0   : > { %2074 = vmax.xlane.f32.xlu0 %v2073_v58 }
 0x4b3   : > { %v12430_v31 = vpop.f32.mrb[52].mxu0 }
 0x4b4   : > { %v1830_v15 = vpop.f32.mrb[53].mxu0  ;;  %v15136_v60 = vadd.f32 %v12430_v31, %v15067_v30 }
 0x4b5   : > { %v15125_v10 = vadd.f32 %v1830_v15, %v15067_v30  ;;  %v12431_v24 = vpop.f32.mrb[54].mxu0  ;;  %v2076_v15 = vsel %vm2042_vm4, %v15128_v13, -inf }
 0x4b6   : > { %v1833_v2 = vpop.f32.mrb[55].mxu0  ;;  %v2085_v29 = vsel %vm2042_vm4, %v15136_v60, -inf }
 0x4b7   : > { %v15131_v62 = vadd.f32 %v1833_v2, %v15067_v30  ;;  %v2079_v38 = vsel %vm2042_vm4, %v15125_v10, -inf }
 0x4b8   : > { %2080 = vmax.xlane.f32.xlu1 %v2079_v38 }
 0x4b9   : > { %v2082_v58 = vsel %vm2042_vm4, %v15131_v62, -inf }
 0x4ba   : > { %2083 = vmax.xlane.f32.xlu0 %v2082_v58 }
 0x4bc   : > { %2077 = vmax.xlane.f32.xlu1 %v2076_v15 }
 0x4be   : > { %2086 = vmax.xlane.f32.xlu0 %v2085_v29 }
 0x4c1   : > { %v12438_v2 = vpop.f32.mrb[60].mxu1 }
 0x4c2   : > { %v1896_v24 = vpop.f32.mrb[61].mxu1  ;;  %v15148_v57 = vadd.f32 %v12438_v2, %v15067_v30 }
 0x4c3   : > { %v15145_v5 = vadd.f32 %v1896_v24, %v15067_v30  ;;  %v12439_v38 = vpop.f32.mrb[62].mxu1 }
 0x4c4   : > { %v1899_v31 = vpop.f32.mrb[63].mxu1  ;;  %v2094_v24 = vsel %vm2042_vm4, %v15148_v57, -inf }
 0x4c5   : > { %v15151_v58 = vadd.f32 %v1899_v31, %v15067_v30  ;;  %v2088_v15 = vsel %vm2042_vm4, %v15145_v5, -inf }
 0x4c6   : > { %2089 = vmax.xlane.f32.xlu1 %v2088_v15 }
 0x4c7   : > { %v2091_v29 = vsel %vm2042_vm4, %v15151_v58, -inf }
 0x4c8   : > { %2092 = vmax.xlane.f32.xlu0 %v2091_v29 }
 0x4ca   : > { %2095 = vmax.xlane.f32.xlu1 %v2094_v24 }
 0x512   : > { %v12446_v38 = vpop.f32.mrb[56].mxu0 }
 0x513   : > { %v1962_v52 = vpop.f32.mrb[57].mxu0  ;;  %v15163_v49 = vadd.f32 %v12446_v38, %v15067_v30 }
 0x514   : > { %v15160_v2 = vadd.f32 %v1962_v52, %v15067_v30  ;;  %v12447_v43 = vpop.f32.mrb[58].mxu0 }
 0x515   : > { %v2045_v31 = vpop.xlane.xlu0 %2044  ;;  %v1965_v40 = vpop.f32.mrb[59].mxu0  ;;  %v2103_v38 = vsel %vm2042_vm4, %v15163_v49, -inf }
 0x516   : > { %v15166_v15 = vadd.f32 %v1965_v40, %v15067_v30  ;;  %v2097_v29 = vsel %vm2042_vm4, %v15160_v2, -inf  ;;  %v2115_v40 = vsub.f32 %v15070_v50, %v2045_v31 }
 0x517   : > { %v2048_v3 = vpop.xlane.xlu1 %2047  ;;  %2098 = vmax.xlane.f32.xlu0 %v2097_v29 }
 0x518   : > { %v2100_v24 = vsel %vm2042_vm4, %v15166_v15, -inf  ;;  %v2116_v52 = vsub.f32 %v15076_v46, %v2048_v3  ;;  %v2139_v36 = vmul.f32 1.442695, %v2115_v40 }
 0x519   : > { %v2051_v23 = vpop.xlane.xlu0 %2050  ;;  %2101 = vmax.xlane.f32.xlu1 %v2100_v24 }
 0x51a   : > { %v2117_v43 = vsub.f32 %v15073_v51, %v2051_v23  ;;  %v2141_v4 = vmul.f32 1.442695, %v2116_v52 }
 0x51b   : > { %2104 = vmax.xlane.f32.xlu0 %v2103_v38 }
 0x51c   : > { %v2143_v54 = vmul.f32 1.442695, %v2117_v43 }
 0x51e   : > { %13611 = vpow2.f32 %v2143_v54 }
 0x51f   : > { %13613 = vpow2.f32 %v2141_v4 }
 0x520   : > { %13615 = vpow2.f32 %v2139_v36 }
 0x522   : > { %v12454_v29 = vpop.f32.mrb[64].mxu1 }
 0x523   : > { %v2028_v47 = vpop.f32.mrb[65].mxu1  ;;  %v15182_v50 = vadd.f32 %v12454_v29, %v15067_v30 }
 0x524   : > { %v15178_v3 = vadd.f32 %v2028_v47, %v15067_v30  ;;  %v12455_v46 = vpop.f32.mrb[66].mxu1  ;;  %v2060_v24 = vpop.xlane.xlu1 %2059 }
 0x525   : > { %v2120_v51 = vsub.f32 %v15085_v6, %v2060_v24  ;;  %v2054_v23 = vpop.xlane.xlu0 %2053  ;;  %v2031_v44 = vpop.f32.mrb[67].mxu1 }
 0x526   : > { %v2118_v31 = vsub.f32 %v15088_v56, %v2054_v23  ;;  %v15186_v54 = vadd.f32 %v2031_v44, %v15067_v30  ;;  %v2106_v4 = vsel %vm2042_vm4, %v15178_v3, -inf  ;;  %v2112_v44 = vsel %vm2042_vm4, %v15182_v50, -inf }
 0x527   : > { %v2149_v36 = vmul.f32 1.442695, %v2120_v51  ;;  %2107 = vmax.xlane.f32.xlu1 %v2106_v4 }
 0x528   : > { %v2145_v47 = vmul.f32 1.442695, %v2118_v31  ;;  %v2109_v52 = vsel %vm2042_vm4, %v15186_v54, -inf  ;;  %v15192_v6 = vpop.eup %13611 }
 0x529   : > { %13617 = vpow2.f32 %v2149_v36  ;;  %v2057_v43 = vpop.xlane.xlu0 %2056  ;;  %2110 = vmax.xlane.f32.xlu0 %v2109_v52  ;;  %v15197_v56 = vpop.eup %13613  ;;  %v2193_v29 = vsel %vm2042_vm4, %v15192_v6, 0.0 }
 0x52a   : > { %v2119_v38 = vsub.f32 %v15093_v34, %v2057_v43  ;;  %13619 = vpow2.f32 %v2145_v47  ;;  %v15201_v46 = vpop.eup %13615  ;;  %v2190_v34 = vsel %vm2042_vm4, %v15197_v56, 0.0 }
 0x52b   : > { %2113 = vmax.xlane.f32.xlu1 %v2112_v44  ;;  %v2187_v36 = vsel %vm2042_vm4, %v15201_v46, 0.0 }
 0x52c   : > { %v2147_v40 = vmul.f32 1.442695, %v2119_v38 }
 0x52d   : > { %v2069_v24 = vpop.xlane.xlu0 %2068  ;;  %2194 = vadd.xlane.f32.xlu0 %v2193_v29 }
 0x52e   : > { %13621 = vpow2.f32 %v2147_v40  ;;  %v2123_v51 = vsub.f32 %v15100_v28, %v2069_v24 }
 0x52f   : > { %2191 = vadd.xlane.f32.xlu1 %v2190_v34  ;;  %v2066_v23 = vpop.xlane.xlu1 %2065 }
 0x530   : > { %v2155_v31 = vmul.f32 1.442695, %v2123_v51  ;;  %v2122_v4 = vsub.f32 %v15108_v26, %v2066_v23 }
 0x531   : > { %2188 = vadd.xlane.f32.xlu0 %v2187_v36  ;;  %v2063_v47 = vpop.xlane.xlu0 %2062 }
 0x532   : > { %13623 = vpow2.f32 %v2155_v31  ;;  %v2153_v52 = vmul.f32 1.442695, %v2122_v4  ;;  %v2121_v43 = vsub.f32 %v15105_v35, %v2063_v47 }
 0x533   : > { %v15210_v38 = vpop.eup %13617 }
 0x534   : > { %13625 = vpow2.f32 %v2153_v52  ;;  %v2151_v28 = vmul.f32 1.442695, %v2121_v43  ;;  %v2202_v44 = vsel %vm2042_vm4, %v15210_v38, 0.0  ;;  %v15214_v40 = vpop.eup %13619 }
 0x535   : > { %2203 = vadd.xlane.f32.xlu1 %v2202_v44  ;;  %v2196_v29 = vsel %vm2042_vm4, %v15214_v40, 0.0 }
 0x536   : > { %13627 = vpow2.f32 %v2151_v28 }
 0x538   : > { %v15216_v26 = vpop.eup %13621 }
 0x539   : > { %2197 = vadd.xlane.f32.xlu1 %v2196_v29  ;;  %v2199_v35 = vsel %vm2042_vm4, %v15216_v26, 0.0 }
 0x53a   : > { %2200 = vadd.xlane.f32.xlu0 %v2199_v35 }
 0x53b   : > { %v2072_v52 = vpop.xlane.xlu1 %2071 }
 0x53c   : > { %v15222_v24 = vpop.eup %13623  ;;  %v2124_v44 = vsub.f32 %v15115_v18, %v2072_v52 }
 0x53d   : > { %v2075_v51 = vpop.xlane.xlu0 %2074  ;;  %v2211_v34 = vsel %vm2042_vm4, %v15222_v24, 0.0 }
 0x53e   : > { %v15226_v23 = vpop.eup %13625  ;;  %v2125_v31 = vsub.f32 %v15118_v21, %v2075_v51  ;;  %2212 = vadd.xlane.f32.xlu0 %v2211_v34  ;;  %v2157_v34 = vmul.f32 1.442695, %v2124_v44 }
 0x53f   : > { %v2208_v4 = vsel %vm2042_vm4, %v15226_v23, 0.0 }
 0x540   : > { %v15231_v36 = vpop.eup %13627  ;;  %v2159_v47 = vmul.f32 1.442695, %v2125_v31  ;;  %2209 = vadd.xlane.f32.xlu1 %v2208_v4 }
 0x541   : > { %v2205_v43 = vsel %vm2042_vm4, %v15231_v36, 0.0 }
 0x542   : > { %13629 = vpow2.f32 %v2159_v47  ;;  %2206 = vadd.xlane.f32.xlu0 %v2205_v43 }
 0x545   : > { %v2081_v28 = vpop.xlane.xlu1 %2080 }
 0x546   : > { %v2127_v31 = vsub.f32 %v15125_v10, %v2081_v28 }
 0x547   : > { %v2084_v29 = vpop.xlane.xlu0 %2083 }
 0x548   : > { %v2128_v21 = vsub.f32 %v15131_v62, %v2084_v29  ;;  %v2163_v62 = vmul.f32 1.442695, %v2127_v31 }
 0x549   : > { %v2078_v35 = vpop.xlane.xlu1 %2077 }
 0x54a   : > { %v2126_v51 = vsub.f32 %v15128_v13, %v2078_v35  ;;  %v2165_v43 = vmul.f32 1.442695, %v2128_v21 }
 0x54b   : > { %v2087_v30 = vpop.xlane.xlu0 %2086 }
 0x54c   : > { %v15238_v0 = vpop.eup %13629  ;;  %v2161_v4 = vmul.f32 1.442695, %v2126_v51  ;;  %v2129_v45 = vsub.f32 %v15136_v60, %v2087_v30 }
 0x54d   : > { %v2217_v47 = vsel %vm2042_vm4, %v15238_v0, 0.0 }
 0x54e   : > { %13631 = vpow2.f32 %v2161_v4  ;;  %v2167_v18 = vmul.f32 1.442695, %v2129_v45  ;;  %2218 = vadd.xlane.f32.xlu0 %v2217_v47 }
 0x54f   : > { %13633 = vpow2.f32 %v2157_v34 }
 0x550   : > { %13635 = vpow2.f32 %v2167_v18 }
 0x551   : > { %13637 = vpow2.f32 %v2165_v43 }
 0x552   : > { %13639 = vpow2.f32 %v2163_v62 }
 0x553   : > { %v2090_v13 = vpop.xlane.xlu1 %2089 }
 0x554   : > { %v2130_v44 = vsub.f32 %v15145_v5, %v2090_v13 }
 0x555   : > { %v2093_v52 = vpop.xlane.xlu0 %2092 }
 0x556   : > { %v2131_v10 = vsub.f32 %v15151_v58, %v2093_v52  ;;  %v2169_v51 = vmul.f32 1.442695, %v2130_v44 }
 0x557   : > { %v2096_v28 = vpop.xlane.xlu1 %2095 }
 0x558   : > { %v15246_v60 = vpop.eup %13631  ;;  %v2171_v30 = vmul.f32 1.442695, %v2131_v10  ;;  %v2132_v29 = vsub.f32 %v15148_v57, %v2096_v28 }
 0x559   : > { %v15249_v35 = vpop.eup %13633  ;;  %v2220_v45 = vsel %vm2042_vm4, %v15246_v60, 0.0 }
 0x55a   : > { %v15253_v21 = vpop.eup %13635  ;;  %13641 = vpow2.f32 %v2171_v30  ;;  %v2173_v34 = vmul.f32 1.442695, %v2132_v29  ;;  %2221 = vadd.xlane.f32.xlu1 %v2220_v45  ;;  %v2214_v57 = vsel %vm2042_vm4, %v15249_v35, 0.0 }
 0x55b   : > { %v2229_v5 = vsel %vm2042_vm4, %v15253_v21, 0.0  ;;  %v15257_v58 = vpop.eup %13637 }
 0x55c   : > { %13643 = vpow2.f32 %v2173_v34  ;;  %2230 = vadd.xlane.f32.xlu0 %v2229_v5  ;;  %v15261_v31 = vpop.eup %13639  ;;  %v2226_v4 = vsel %vm2042_vm4, %v15257_v58, 0.0 }
 0x55d   : > { %13645 = vpow2.f32 %v2169_v51  ;;  %v2223_v47 = vsel %vm2042_vm4, %v15261_v31, 0.0 }
 0x55e   : > { %2215 = vadd.xlane.f32.xlu1 %v2214_v57 }
 0x560   : > { %2227 = vadd.xlane.f32.xlu0 %v2226_v4 }
 0x562   : > { %2224 = vadd.xlane.f32.xlu1 %v2223_v47 }
 0x564   : > { %v15267_v43 = vpop.eup %13641 }
 0x565   : > { %v2235_v18 = vsel %vm2042_vm4, %v15267_v43, 0.0 }
 0x566   : > { %v15271_v62 = vpop.eup %13643  ;;  %2236 = vadd.xlane.f32.xlu0 %v2235_v18 }
 0x567   : > { %v2238_v13 = vsel %vm2042_vm4, %v15271_v62, 0.0  ;;  %v15275_v52 = vpop.eup %13645 }
 0x568   : > { %2239 = vadd.xlane.f32.xlu1 %v2238_v13  ;;  %v2232_v44 = vsel %vm2042_vm4, %v15275_v52, 0.0 }
 0x56c   : > { %2233 = vadd.xlane.f32.xlu1 %v2232_v44 }
 0x5a4   : > { %v2099_v10 = vpop.xlane.xlu0 %2098 }
 0x5a5   : > { %v2133_v30 = vsub.f32 %v15160_v2, %v2099_v10 }
 0x5a6   : > { %v2102_v28 = vpop.xlane.xlu1 %2101 }
 0x5a7   : > { %v2134_v29 = vsub.f32 %v15166_v15, %v2102_v28  ;;  %v2175_v5 = vmul.f32 1.442695, %v2133_v30 }
 0x5a8   : > { %v2105_v45 = vpop.xlane.xlu0 %2104 }
 0x5a9   : > { %v2177_v51 = vmul.f32 1.442695, %v2134_v29  ;;  %v2135_v34 = vsub.f32 %v15163_v49, %v2105_v45 }
 0x5ab   : > { %13647 = vpow2.f32 %v2177_v51  ;;  %v2179_v57 = vmul.f32 1.442695, %v2135_v34 }
 0x5ad   : > { %13649 = vpow2.f32 %v2179_v57 }
 0x5ae   : > { %13651 = vpow2.f32 %v2175_v5 }
 0x5b4   : > { %v2108_v4 = vpop.xlane.xlu1 %2107 }
 0x5b5   : > { %v15282_v47 = vpop.eup %13647  ;;  %v2136_v18 = vsub.f32 %v15178_v3, %v2108_v4 }
 0x5b6   : > { %v2111_v13 = vpop.xlane.xlu0 %2110  ;;  %v2244_v2 = vsel %vm2042_vm4, %v15282_v47, 0.0 }
 0x5b7   : > { %v15287_v44 = vpop.eup %13649  ;;  %v2181_v15 = vmul.f32 1.442695, %v2136_v18  ;;  %v2137_v10 = vsub.f32 %v15186_v54, %v2111_v13  ;;  %2245 = vadd.xlane.f32.xlu1 %v2244_v2 }
 0x5b8   : > { %v2114_v49 = vpop.xlane.xlu1 %2113  ;;  %v2247_v28 = vsel %vm2042_vm4, %v15287_v44, 0.0  ;;  %v15292_v30 = vpop.eup %13651 }
 0x5b9   : > { %v2183_v29 = vmul.f32 1.442695, %v2137_v10  ;;  %v2138_v45 = vsub.f32 %v15182_v50, %v2114_v49  ;;  %2248 = vadd.xlane.f32.xlu0 %v2247_v28  ;;  %13653 = vpow2.f32 %v2181_v15  ;;  %v2241_v54 = vsel %vm2042_vm4, %v15292_v30, 0.0 }
 0x5ba   : > { %v2195_v3 = vpop.xlane.xlu0 %2194 }
 0x5bb   : > { %13655 = vpow2.f32 %v2183_v29  ;;  %v2185_v51 = vmul.f32 1.442695, %v2138_v45 }
 0x5bc   : > { %13657 = vrcp.f32 %v2195_v3  ;;  %v2192_v34 = vpop.xlane.xlu1 %2191 }
 0x5bd   : > { %13659 = vpow2.f32 %v2185_v51  ;;  %2242 = vadd.xlane.f32.xlu0 %v2241_v54 }
 0x5be   : > { %13661 = vrcp.f32 %v2192_v34  ;;  %v2189_v5 = vpop.xlane.xlu0 %2188  ;;  %v1389_v34 = vadd.f32 %v14870_v16, %v14842_v55 }
 0x5bf   : > { %13663 = vrcp.f32 %v2189_v5 }
 0x5c2   : > { %v2204_v57 = vpop.xlane.xlu1 %2203 }
 0x5c3   : > { %v15297_v4 = vpop.eup %13653  ;;  %13665 = vrcp.f32 %v2204_v57 }
 0x5c4   : > { %v2250_v5 = vsel %vm2042_vm4, %v15297_v4, 0.0 }
 0x5c5   : > { %v15299_v18 = vpop.eup %13655 }
 0x5c6   : > { %v13658_v50 = vpop.eup %13657  ;;  %v2198_v13 = vpop.xlane.xlu1 %2197  ;;  %v2253_v2 = vsel %vm2042_vm4, %v15299_v18, 0.0 }
 0x5c7   : > { %v15303_v15 = vpop.eup %13659  ;;  %13667 = vrcp.f32 %v2198_v13  ;;  %2254 = vadd.xlane.f32.xlu0 %v2253_v2  ;;  %v2201_v10 = vpop.xlane.xlu0 %2200  ;;  %v2285_v45 = vmul.f32 %v13658_v50, %v15192_v6  ;;  %v15315_v50 = vpack.c.bf16 %v1389_v34, %v1389_v34 }
 0x5c8   : > { %v13662_v49 = vpop.eup %13661  ;;  %13669 = vrcp.f32 %v2201_v10  ;;  %v2256_v28 = vsel %vm2042_vm4, %v15303_v15, 0.0 }
 0x5c9   : > { %v13664_v29 = vpop.eup %13663  ;;  %2257 = vadd.xlane.f32.xlu1 %v2256_v28  ;;  %v2284_v51 = vmul.f32 %v13662_v49, %v15197_v56  ;;  %v2308_v2 = vpack.c.bf16 %v2285_v45, %v2285_v45  ;;  %v2388_v28 = vsel %vm2329_vm2, %v15315_v50, 0  ;;  %v1405_v45 = vadd.f32 %v14893_v63, %v14842_v55 }
 0x5ca   : > { %v2283_v3 = vmul.f32 %v13664_v29, %v15201_v46 }
 0x5cb   : > { %v2213_v54 = vpop.xlane.xlu0 %2212 }
 0x5cc   : > { %v2307_v57 = vpack.c.bf16 %v2284_v51, %v2283_v3  ;;  %13671 = vrcp.f32 %v2213_v54 }
 0x5cd   : > { %2251 = vadd.xlane.f32.xlu1 %v2250_v5  ;;  %v2210_v13 = vpop.xlane.xlu1 %2209  ;;  %v13666_v6 = vpop.eup %13665 }
 0x5ce   : > { %13673 = vrcp.f32 %v2210_v13  ;;  %12460 = vmatprep.mubr.msk.bf16.mxu0 %vm2042_vm4, %v2307_v57  ;;  %v2288_v49 = vmul.f32 %v13666_v6, %v15210_v38  ;;  %v1435_v57 = vadd.f32 %v14927_v41, %v14842_v55 }
 0x5cf   : > { %12461 = vmatmul.mubr.msk.bf16.vlgmr.msra.gmra.mrb[60].mxu0 %vm2042_vm4, %v2308_v2  ;;  %v2207_v56 = vpop.xlane.xlu0 %2206 }
 0x5d0   : > { %12465 = vmatpush3.bf16.msra.mxu0 %v14872_v8  ;;  %13675 = vrcp.f32 %v2207_v56  ;;  %v2310_v51 = vpack.c.bf16 %v2288_v49, %v2288_v49 }
 0x5d1   : > { %v13668_v16 = vpop.eup %13667  ;;  %13231 = vmatprep.subr.msk.bf16.mxu0 %vm2329_vm2, %v15315_v50 }
 0x5d2   : > { %v13670_v46 = vpop.eup %13669  ;;  %v2286_v10 = vmul.f32 %v13668_v16, %v15214_v40  ;;  %v15330_v40 = vpack.c.bf16 %v1405_v45, %v1405_v45 }
 0x5d3   : > { %v2287_v29 = vmul.f32 %v13670_v46, %v15216_v26 }
 0x5d4   : > { %12467 = vmatpush3.bf16.msra.mxu0 %v2388_v28  ;;  %v2445_v13 = vsel %vm2329_vm2, %v15330_v40, 0 }
 0x5d5   : > { %12472 = vmatprep.subr.bf16.mxu0 %v14886_v27  ;;  %v2309_v3 = vpack.c.bf16 %v2287_v29, %v2286_v10 }
 0x5d6   : > { %v13672_v34 = vpop.eup %13671 }
 0x5d7   : > { %12468 = vmatprep.mubr.msk.bf16.mxu0 %vm2042_vm4, %v2309_v3  ;;  %v2291_v63 = vmul.f32 %v13672_v34, %v15222_v24  ;;  %v1449_v34 = vadd.f32 %v14940_v1, %v14842_v55 }
 0x5d8   : > { %v13674_v54 = vpop.eup %13673  ;;  %12469 = vmatmul.mubr.msk.bf16.vlgmr.msra.gmra.mrb[64].mxu0 %vm2042_vm4, %v2310_v51 }
 0x5d9   : > { %12473 = vmatpush3.bf16.msra.mxu0 %v14886_v27  ;;  %v2290_v5 = vmul.f32 %v13674_v54, %v15226_v23  ;;  %v2312_v24 = vpack.c.bf16 %v2291_v63, %v2291_v63  ;;  %v15349_v23 = vpack.c.bf16 %v1435_v57, %v1435_v57  ;;  %v1465_v63 = vadd.f32 %v14976_v42, %v14842_v55 }
 0x5da   : > { %v13676_v38 = vpop.eup %13675  ;;  %13232 = vmatprep.subr.msk.bf16.mxu0 %vm2329_vm2, %v15330_v40 }
 0x5db   : > { %v2289_v26 = vmul.f32 %v13676_v38, %v15231_v36  ;;  %v2559_v41 = vsel %vm2329_vm2, %v15349_v23, 0  ;;  %v2219_v36 = vpop.xlane.xlu0 %2218 }
 0x5dd   : > { %12475 = vmatpush3.bf16.msra.mxu0 %v2445_v13  ;;  %2800 = vrot.lane.b32.xlu0 %v14848_v17, %s14248_s15  ;;  %v2311_v2 = vpack.c.bf16 %v2290_v5, %v2289_v26 }
 0x5de   : > { %12488 = vmatprep.subr.bf16.mxu0 %v14922_v33  ;;  %2802 = vrot.lane.b32.xlu1 %v14859_v59, %s14248_s15 }
 0x5df   : > { %12476 = vmatprep.mubr.msk.bf16.mxu0 %vm2042_vm4, %v2311_v2 }
 0x5e0   : > { %12477 = vmatmul.mubr.msk.bf16.vlgmr.msra.gmra.mrb[68].mxu0 %vm2042_vm4, %v2312_v24  ;;  %v1479_v24 = vadd.f32 %v15001_v14, %v14842_v55  ;;  %v19471_v14 = vld [vmem:[#allocation35_spill] sm:$0xff] }
 0x5e1   : > { %12489 = vmatpush3.bf16.msra.mxu0 %v14922_v33  ;;  %2870 = vrot.lane.b32.xlu0 %v14876_v19, %s14248_s15 }
 0x5e2   : > { %13234 = vmatprep.subr.msk.bf16.mxu0 %vm2329_vm2, %v15349_v23  ;;  %2868 = vrot.lane.b32.xlu1 %v14867_v12, %s14248_s15 }
 0x5e5   : > { %12491 = vmatpush3.bf16.msra.mxu0 %v2559_v41  ;;  %2798 = vrot.lane.b32.xlu0 %v14859_v59, %s14249_s16 }
 0x5e6   : > { %12504 = vmatprep.subr.bf16.mxu0 %v14956_v11  ;;  %2796 = vrot.lane.b32.xlu1 %v14848_v17, %s14249_s16 }
 0x5e7   : > { %v2222_v6 = vpop.xlane.xlu1 %2221 }
 0x5e8   : > { %13677 = vrcp.f32 %v2222_v6  ;;  %v15429_v6 = vpack.c.bf16 %v1479_v24, %v1479_v24 }
 0x5e9   : > { %2938 = vrot.lane.b32.xlu0 %v14895_v25, %s14248_s15  ;;  %v2231_v56 = vpop.xlane.xlu0 %2230  ;;  %13679 = vrcp.f32 %v2219_v36 }
 0x5ea   : > { %2936 = vrot.lane.b32.xlu1 %v14884_v9, %s14248_s15  ;;  %v2730_v55 = vsel %vm2329_vm2, %v15429_v6, 0 }
 0x5eb   : > { %v2216_v16 = vpop.xlane.xlu1 %2215 }
 0x5ec   : > { %13681 = vrcp.f32 %v2216_v16 }
 0x5ed   : > { %13683 = vrcp.f32 %v2231_v56  ;;  %2866 = vrot.lane.b32.xlu0 %v14876_v19, %s14249_s16  ;;  %v2228_v59 = vpop.xlane.xlu0 %2227 }
 0x5ee   : > { %13685 = vrcp.f32 %v2228_v59  ;;  %2864 = vrot.lane.b32.xlu1 %v14867_v12, %s14249_s16 }
 0x5ef   : > { %v2225_v17 = vpop.xlane.xlu1 %2224 }
 0x5f0   : > { %13687 = vrcp.f32 %v2225_v17 }
 0x5f1   : > { %3006 = vrot.lane.b32.xlu0 %v14910_v53, %s14248_s15 }
 0x5f2   : > { %3004 = vrot.lane.b32.xlu1 %v14903_v22, %s14248_s15  ;;  %v13678_v46 = vpop.eup %13677 }
 0x5f3   : > { %v13680_v10 = vpop.eup %13679  ;;  %v2237_v49 = vpop.xlane.xlu0 %2236  ;;  %v2294_v12 = vmul.f32 %v13678_v46, %v15246_v60 }
 0x5f4   : > { %v2293_v3 = vmul.f32 %v13680_v10, %v15238_v0 }
 0x5f5   : > { %v2240_v28 = vpop.xlane.xlu1 %2239  ;;  %2934 = vrot.lane.b32.xlu0 %v14895_v25, %s14249_s16 }
 0x5f6   : > { %v13682_v19 = vpop.eup %13681  ;;  %2932 = vrot.lane.b32.xlu1 %v14884_v9, %s14249_s16  ;;  %13689 = vrcp.f32 %v2240_v28  ;;  %v2314_v9 = vpack.c.bf16 %v2294_v12, %v2294_v12 }
 0x5f7   : > { %v13684_v29 = vpop.eup %13683  ;;  %v2292_v45 = vmul.f32 %v13682_v19, %v15249_v35  ;;  %13691 = vrcp.f32 %v2237_v49  ;;  %v1504_v35 = vpack.c.bf16 %v1449_v34, %v1449_v34 }
 0x5f8   : > { %v13686_v51 = vpop.eup %13685  ;;  %v2297_v60 = vmul.f32 %v13684_v29, %v15253_v21 }
 0x5f9   : > { %v2234_v54 = vpop.xlane.xlu1 %2233  ;;  %3074 = vrot.lane.b32.xlu0 %v14929_v48, %s14248_s15  ;;  %v2313_v25 = vpack.c.bf16 %v2293_v3, %v2292_v45  ;;  %v2296_v1 = vmul.f32 %v13686_v51, %v15257_v58  ;;  %v15405_v58 = vpack.c.bf16 %v1465_v63, %v1465_v63  ;;  %v2616_v42 = vsel %vm2329_vm2, %v1504_v35, 0 }
 0x5fa   : > { %v13688_v38 = vpop.eup %13687  ;;  %13693 = vrcp.f32 %v2234_v54  ;;  %3072 = vrot.lane.b32.xlu1 %v14920_v32, %s14248_s15  ;;  %v2316_v21 = vpack.c.bf16 %v2297_v60, %v2297_v60 }
 0x5fb   : > { %12484 = vmatprep.mubr.msk.bf16.mxu1 %vm2042_vm4, %v2313_v25  ;;  %v2295_v0 = vmul.f32 %v13688_v38, %v15261_v31  ;;  %v2673_v5 = vsel %vm2329_vm2, %v15405_v58, 0 }
 0x5fc   : > { %12485 = vmatmul.mubr.msk.bf16.vlgmr.msra.gmra.mrb[68].mxu1 %vm2042_vm4, %v2314_v9 }
 0x5fd   : > { %12497 = vmatpush3.bf16.msra.mxu1 %v14942_v37  ;;  %3002 = vrot.lane.b32.xlu0 %v14910_v53, %s14249_s16  ;;  %v2315_v26 = vpack.c.bf16 %v2296_v1, %v2295_v0 }
 0x5fe   : > { %13235 = vmatprep.subr.msk.bf16.mxu1 %vm2329_vm2, %v1504_v35  ;;  %3000 = vrot.lane.b32.xlu1 %v14903_v22, %s14249_s16 }
 0x5ff   : > { %12492 = vmatprep.mubr.msk.bf16.mxu0 %vm2042_vm4, %v2315_v26 }
 0x600   : > { %12493 = vmatmul.mubr.msk.bf16.vlgmr.msra.gmra.mrb[72].mxu0 %vm2042_vm4, %v2316_v21  ;;  %v13690_v31 = vpop.eup %13689 }
 0x601   : > { %12499 = vmatpush3.bf16.msra.mxu1 %v2616_v42  ;;  %12505 = vmatpush3.bf16.msra.mxu0 %v14956_v11  ;;  %v13692_v53 = vpop.eup %13691  ;;  %v2300_v57 = vmul.f32 %v13690_v31, %v15271_v62 }
 0x602   : > { %3142 = vrot.lane.b32.xlu0 %v14944_v20, %s14248_s15  ;;  %13236 = vmatprep.subr.msk.bf16.mxu0 %vm2329_vm2, %v15405_v58  ;;  %v2299_v2 = vmul.f32 %v13692_v53, %v15267_v43  ;;  %v19465_v43 = vld [vmem:[#allocation31_spill] sm:$0xff] }
 0x603   : > { %12512 = vmatprep.subr.bf16.mxu1 %v15003_v7  ;;  %3140 = vrot.lane.b32.xlu1 %v14937_v39, %s14248_s15  ;;  %v2318_v36 = vpack.c.bf16 %v2300_v57, %v2300_v57 }
 0x604   : > { %v13694_v22 = vpop.eup %13693 }
 0x605   : > { %12507 = vmatpush3.bf16.msra.mxu0 %v2673_v5  ;;  %v2298_v13 = vmul.f32 %v13694_v22, %v15275_v52 }
 0x606   : > { %3070 = vrot.lane.b32.xlu0 %v14929_v48, %s14249_s16  ;;  %v19467_v48 = vld [vmem:[#allocation29_spill] sm:$0xff] }
 0x607   : > { %3068 = vrot.lane.b32.xlu1 %v14920_v32, %s14249_s16  ;;  %v2317_v41 = vpack.c.bf16 %v2299_v2, %v2298_v13  ;;  %v19466_v32 = vld [vmem:[#allocation32_spill] sm:$0xff] }
 0x609   : > { %12500 = vmatprep.mubr.msk.bf16.mxu1 %vm2042_vm4, %v2317_v41 }
 0x60a   : > { %3210 = vrot.lane.b32.xlu0 %v14983_v61, %s14248_s15  ;;  %12501 = vmatmul.mubr.msk.bf16.vlgmr.msra.gmra.mrb[72].mxu1 %vm2042_vm4, %v2318_v36 }
 0x60b   : > { %3208 = vrot.lane.b32.xlu1 %v19465_v43, %s14248_s15  ;;  %12513 = vmatpush3.bf16.msra.mxu1 %v15003_v7 }
 0x60c   : > { %13237 = vmatprep.subr.msk.bf16.mxu1 %vm2329_vm2, %v15429_v6 }
 0x60e   : > { %3138 = vrot.lane.b32.xlu0 %v14944_v20, %s14249_s16  ;;  %v19468_v20 = vld [vmem:[#allocation33_spill] sm:$0xff] }
 0x60f   : > { %3136 = vrot.lane.b32.xlu1 %v14937_v39, %s14249_s16  ;;  %12515 = vmatpush3.bf16.msra.mxu1 %v2730_v55  ;;  %v19469_v39 = vld [vmem:[#allocation34_spill] sm:$0xff] }
 0x612   : > { %3206 = vrot.lane.b32.xlu0 %v14983_v61, %s14249_s16  ;;  %v19470_v61 = vld [vmem:[#allocation30_spill] sm:$0xff] }
 0x613   : > { %3276 = vrot.lane.b32.xlu1 %v19466_v32, %s14248_s15 }
 0x616   : > { %3272 = vrot.lane.b32.xlu0 %v19466_v32, %s14249_s16 }
 0x617   : > { %3204 = vrot.lane.b32.xlu1 %v19465_v43, %s14249_s16 }
 0x61a   : > { %3622 = vrot.lane.b32.xlu0 %v19467_v48, %s14249_s16 }
 0x61b   : > { %3278 = vrot.lane.b32.xlu1 %v19468_v20, %s14248_s15 }
 0x61e   : > { %3624 = vrot.lane.b32.xlu0 %v19469_v39, %s14249_s16 }
 0x61f   : > { %3274 = vrot.lane.b32.xlu1 %v19468_v20, %s14249_s16 }
 0x622   : > { %3688 = vrot.lane.b32.xlu0 %v15315_v50, %s14249_s16 }
 0x623   : > { %3686 = vrot.lane.b32.xlu1 %v14872_v8, %s14249_s16 }
 0x626   : > { %3752 = vrot.lane.b32.xlu0 %v15330_v40, %s14249_s16 }
 0x627   : > { %3750 = vrot.lane.b32.xlu1 %v14886_v27, %s14249_s16 }
 0x62a   : > { %3878 = vrot.lane.b32.xlu0 %v14922_v33, %s14249_s16 }
 0x62b   : > { %3814 = vrot.lane.b32.xlu1 %v19470_v61, %s14249_s16 }
 0x62f   : > { %3816 = vrot.lane.b32.xlu1 %v19471_v14, %s14249_s16 }
 0x633   : > { %3942 = vrot.lane.b32.xlu1 %v14942_v37, %s14249_s16 }
 0x637   : > { %3880 = vrot.lane.b32.xlu1 %v15349_v23, %s14249_s16 }
 0x63b   : > { %3944 = vrot.lane.b32.xlu1 %v1504_v35, %s14249_s16 }
 0x644   : > { %v2246_v8 = vpop.xlane.xlu1 %2245 }
 0x646   : > { %v2249_v62 = vpop.xlane.xlu0 %2248 }
 0x647   : > { %13695 = vrcp.f32 %v2249_v62 }
 0x648   : > { %13697 = vrcp.f32 %v2246_v8 }
 0x64a   : > { %v2243_v27 = vpop.xlane.xlu0 %2242 }
 0x64b   : > { %13699 = vrcp.f32 %v2243_v27 }
 0x651   : > { %v13696_v33 = vpop.eup %13695 }
 0x652   : > { %v13698_v52 = vpop.eup %13697  ;;  %v2303_v56 = vmul.f32 %v13696_v33, %v15287_v44 }
 0x653   : > { %v2302_v59 = vmul.f32 %v13698_v52, %v15282_v47 }
 0x654   : > { %v2255_v50 = vpop.xlane.xlu0 %2254  ;;  %v2320_v46 = vpack.c.bf16 %v2303_v56, %v2303_v56 }
 0x655   : > { %v13700_v40 = vpop.eup %13699 }
 0x656   : > { %v2258_v16 = vpop.xlane.xlu1 %2257  ;;  %v2301_v37 = vmul.f32 %v13700_v40, %v15292_v30 }
 0x657   : > { %13701 = vrcp.f32 %v2258_v16 }
 0x658   : > { %v2801_v23 = vpop.permute.xlu0 %2800  ;;  %v2319_v17 = vpack.c.bf16 %v2302_v59, %v2301_v37  ;;  %13703 = vrcp.f32 %v2255_v50 }
 0x659   : > { %13238 = vmatprep.subr.msk.bf16.mxu0 %vm1519_vm1, %v2801_v23  ;;  %v2811_v10 = vsel %vm1519_vm1, %v2801_v23, 0 }
 0x65a   : > { %v2252_v49 = vpop.xlane.xlu1 %2251  ;;  %12508 = vmatprep.mubr.msk.bf16.mxu0 %vm2042_vm4, %v2319_v17 }
 0x65b   : > { %13705 = vrcp.f32 %v2252_v49  ;;  %12509 = vmatmul.mubr.msk.bf16.vlgmr.msra.gmra.mrb[76].mxu0 %vm2042_vm4, %v2320_v46 }
 0x65c   : > { %12521 = vmatpush3.bf16.xpose.msra.mxu0 %v2811_v10  ;;  %v2871_v44 = vpop.permute.xlu0 %2870 }
 0x65d   : > { %v2882_v26 = vsel %vm1519_vm1, %v2871_v44, 0 }
 0x65e   : > { %v2803_v30 = vpop.permute.xlu1 %2802 }
 0x65f   : > { %13239 = vmatprep.subr.msk.bf16.mxu0 %vm1519_vm1, %v2803_v30  ;;  %v2814_v29 = vsel %vm1519_vm1, %v2803_v30, 0 }
 0x660   : > { %v2799_v47 = vpop.permute.xlu0 %2798 }
 0x661   : > { %v13702_v28 = vpop.eup %13701 }
 0x662   : > { %v2869_v19 = vpop.permute.xlu1 %2868  ;;  %v13704_v12 = vpop.eup %13703  ;;  %v2306_v51 = vmul.f32 %v13702_v28, %v15303_v15 }
 0x663   : > { %13240 = vmatprep.subr.msk.bf16.mxu1 %vm1519_vm1, %v2869_v19  ;;  %v2305_v25 = vmul.f32 %v13704_v12, %v15299_v18  ;;  %v2879_v1 = vsel %vm1519_vm1, %v2869_v19, 0 }
 0x664   : > { %12523 = vmatpush3.bf16.xpose.msra.mxu0 %v2814_v29  ;;  %v2939_v45 = vpop.permute.xlu0 %2938  ;;  %v2322_v60 = vpack.c.bf16 %v2306_v51, %v2306_v51 }
 0x665   : > { %v13706_v3 = vpop.eup %13705  ;;  %v2950_v21 = vsel %vm1519_vm1, %v2939_v45, 0 }
 0x666   : > { %v2797_v34 = vpop.permute.xlu1 %2796  ;;  %v2304_v54 = vmul.f32 %v13706_v3, %v15297_v4 }
 0x667   : > { %12524 = vmatprep.mubr.msk.bf16.mxu0 %vm1519_vm1, %v2797_v34 }
 0x668   : > { %v2867_v38 = vpop.permute.xlu0 %2866  ;;  %v2321_v9 = vpack.c.bf16 %v2305_v25, %v2304_v54 }
 0x66a   : > { %v2937_v0 = vpop.permute.xlu1 %2936  ;;  %12516 = vmatprep.mubr.msk.bf16.mxu1 %vm2042_vm4, %v2321_v9 }
 0x66b   : > { %12525 = vmatmul.mubr.msk.bf16.vlgmr.msra.gmra.mrb[80].mxu0 %vm1519_vm1, %v2799_v47  ;;  %12517 = vmatmul.mubr.msk.bf16.vlgmr.msra.gmra.mrb[76].mxu1 %vm2042_vm4, %v2322_v60  ;;  %v2947_v15 = vsel %vm1519_vm1, %v2937_v0, 0 }
 0x66c   : > { %12529 = vmatpush3.bf16.xpose.msra.mxu1 %v2879_v1  ;;  %13242 = vmatprep.subr.msk.bf16.mxu0 %vm1519_vm1, %v2937_v0  ;;  %v3007_v4 = vpop.permute.xlu0 %3006 }
 0x66d   : > { %13241 = vmatprep.subr.msk.bf16.mxu1 %vm1519_vm1, %v2871_v44  ;;  %12537 = vmatpush3.bf16.xpose.msra.mxu0 %v2947_v15  ;;  %v3018_v36 = vsel %vm1519_vm1, %v3007_v4, 0 }
 0x66e   : > { %13243 = vmatprep.subr.msk.bf16.mxu0 %vm1519_vm1, %v2939_v45  ;;  %v2865_v18 = vpop.permute.xlu1 %2864 }
 0x66f   : > { %12532 = vmatprep.mubr.msk.bf16.mxu1 %vm1519_vm1, %v2865_v18 }
 0x670   : > { %v2935_v35 = vpop.permute.xlu0 %2934 }
 0x672   : > { %v3005_v63 = vpop.permute.xlu1 %3004 }
 0x673   : > { %v3015_v5 = vsel %vm1519_vm1, %v3005_v63, 0 }
 0x674   : > { %12531 = vmatpush3.bf16.xpose.msra.mxu1 %v2882_v26  ;;  %v3075_v42 = vpop.permute.xlu0 %3074 }
 0x675   : > { %12539 = vmatpush3.bf16.xpose.msra.mxu0 %v2950_v21  ;;  %13244 = vmatprep.subr.msk.bf16.mxu1 %vm1519_vm1, %v3005_v63  ;;  %v3086_v43 = vsel %vm1519_vm1, %v3075_v42, 0 }
 0x676   : > { %v2933_v31 = vpop.permute.xlu1 %2932 }
 0x677   : > { %12540 = vmatprep.mubr.msk.bf16.mxu0 %vm1519_vm1, %v2933_v31 }
 0x678   : > { %v3003_v53 = vpop.permute.xlu0 %3002 }
 0x67a   : > { %v3073_v22 = vpop.permute.xlu1 %3072 }
 0x67b   : > { %12533 = vmatmul.mubr.msk.bf16.vlgmr.msra.gmra.mrb[80].mxu1 %vm1519_vm1, %v2867_v38  ;;  %13246 = vmatprep.subr.msk.bf16.mxu0 %vm1519_vm1, %v3073_v22  ;;  %v3083_v57 = vsel %vm1519_vm1, %v3073_v22, 0 }
 0x67c   : > { %12541 = vmatmul.mubr.msk.bf16.vlgmr.msra.gmra.mrb[84].mxu0 %vm1519_vm1, %v2935_v35  ;;  %12545 = vmatpush3.bf16.xpose.msra.mxu1 %v3015_v5  ;;  %v3143_v13 = vpop.permute.xlu0 %3142 }
 0x67d   : > { %13245 = vmatprep.subr.msk.bf16.mxu1 %vm1519_vm1, %v3007_v4  ;;  %12553 = vmatpush3.bf16.xpose.msra.mxu0 %v3083_v57  ;;  %v3154_v33 = vsel %vm1519_vm1, %v3143_v13, 0 }
 0x67e   : > { %13247 = vmatprep.subr.msk.bf16.mxu0 %vm1519_vm1, %v3075_v42  ;;  %v3001_v2 = vpop.permute.xlu1 %3000 }
 0x67f   : > { %12548 = vmatprep.mubr.msk.bf16.mxu1 %vm1519_vm1, %v3001_v2 }
 0x680   : > { %v3071_v24 = vpop.permute.xlu0 %3070 }
 0x682   : > { %v3141_v41 = vpop.permute.xlu1 %3140 }
 0x683   : > { %v3151_v39 = vsel %vm1519_vm1, %v3141_v41, 0 }
 0x684   : > { %12547 = vmatpush3.bf16.xpose.msra.mxu1 %v3018_v36  ;;  %v3211_v55 = vpop.permute.xlu0 %3210 }
 0x685   : > { %12555 = vmatpush3.bf16.xpose.msra.mxu0 %v3086_v43  ;;  %13248 = vmatprep.subr.msk.bf16.mxu1 %vm1519_vm1, %v3141_v41  ;;  %v3222_v52 = vsel %vm1519_vm1, %v3211_v55, 0 }
 0x686   : > { %v3069_v32 = vpop.permute.xlu1 %3068 }
 0x687   : > { %12556 = vmatprep.mubr.msk.bf16.mxu0 %vm1519_vm1, %v3069_v32 }
 0x688   : > { %v3139_v48 = vpop.permute.xlu0 %3138 }
 0x68a   : > { %v3209_v20 = vpop.permute.xlu1 %3208 }
 0x68b   : > { %12549 = vmatmul.mubr.msk.bf16.vlgmr.msra.gmra.mrb[84].mxu1 %vm1519_vm1, %v3003_v53  ;;  %13250 = vmatprep.subr.msk.bf16.mxu0 %vm1519_vm1, %v3209_v20  ;;  %v3219_v61 = vsel %vm1519_vm1, %v3209_v20, 0 }
 0x68c   : > { %12557 = vmatmul.mubr.msk.bf16.vlgmr.msra.gmra.mrb[88].mxu0 %vm1519_vm1, %v3071_v24  ;;  %12561 = vmatpush3.bf16.xpose.msra.mxu1 %v3151_v39  ;;  %v3207_v14 = vpop.permute.xlu0 %3206 }
 0x68d   : > { %13249 = vmatprep.subr.msk.bf16.mxu1 %vm1519_vm1, %v3143_v13  ;;  %12569 = vmatpush3.bf16.xpose.msra.mxu0 %v3219_v61  ;;  %v19477_v61 = vld [vmem:[#allocation36_spill] sm:$0xff] }
 0x68e   : > { %13251 = vmatprep.subr.msk.bf16.mxu0 %vm1519_vm1, %v3211_v55  ;;  %v3137_v8 = vpop.permute.xlu1 %3136 }
 0x68f   : > { %12564 = vmatprep.mubr.msk.bf16.mxu1 %vm1519_vm1, %v3137_v8 }
 0x690   : > { %v3273_v62 = vpop.permute.xlu0 %3272 }
 0x692   : > { %v3277_v27 = vpop.permute.xlu1 %3276 }
 0x693   : > { %v3287_v16 = vsel %vm1519_vm1, %v3277_v27, 0 }
 0x694   : > { %12563 = vmatpush3.bf16.xpose.msra.mxu1 %v3154_v33  ;;  %v3623_v50 = vpop.permute.xlu0 %3622 }
 0x695   : > { %12571 = vmatpush3.bf16.xpose.msra.mxu0 %v3222_v52  ;;  %13252 = vmatprep.subr.msk.bf16.mxu1 %vm1519_vm1, %v3277_v27 }
 0x696   : > { %12584 = vmatprep.subr.bf16.mxu0 %v3623_v50  ;;  %v3205_v40 = vpop.permute.xlu1 %3204 }
 0x697   : > { %12572 = vmatprep.mubr.msk.bf16.mxu0 %vm1519_vm1, %v3205_v40 }
 0x698   : > { %v3625_v37 = vpop.permute.xlu0 %3624 }
 0x699   : > { %v3634_v23 = vsel %vm2329_vm2, %v3625_v37, 0 }
 0x69a   : > { %v3279_v56 = vpop.permute.xlu1 %3278 }
 0x69b   : > { %12565 = vmatmul.mubr.msk.bf16.vlgmr.msra.gmra.mrb[88].mxu1 %vm1519_vm1, %v3139_v48  ;;  %v3290_v49 = vsel %vm1519_vm1, %v3279_v56, 0 }
 0x69c   : > { %12573 = vmatmul.mubr.msk.bf16.vlgmr.msra.gmra.mrb[92].mxu0 %vm1519_vm1, %v3207_v14  ;;  %12577 = vmatpush3.bf16.xpose.msra.mxu1 %v3287_v16  ;;  %v3689_v12 = vpop.permute.xlu0 %3688 }
 0x69d   : > { %12580 = vmatprep.mubr.msk.bf16.mxu1 %vm1519_vm1, %v3273_v62  ;;  %13253 = vmatprep.subr.msk.bf16.mxu1 %vm1519_vm1, %v3279_v56  ;;  %v3698_v54 = vsel %vm2329_vm2, %v3689_v12, 0 }
 0x69e   : > { %12585 = vmatpush3.bf16.msra.mxu0 %v3623_v50  ;;  %v3275_v59 = vpop.permute.xlu1 %3274 }
 0x69f   : > { %13254 = vmatprep.subr.msk.bf16.mxu0 %vm2329_vm2, %v3625_v37 }
 0x6a2   : > { %12587 = vmatpush3.bf16.msra.mxu0 %v3634_v23  ;;  %v3687_v17 = vpop.permute.xlu1 %3686  ;;  %v15538_v46 = vpop.f32.mrb[60].mxu0 }
 0x6a3   : > { %v15540_v10 = vpop.f32.mrb[61].mxu0 }
 0x6a4   : > { %12579 = vmatpush3.bf16.xpose.msra.mxu1 %v3290_v49  ;;  %v12463_v44 = vpop.f32.mrb[62].mxu0 }
 0x6a5   : > { %12592 = vmatprep.subr.bf16.mxu1 %v3687_v17  ;;  %v15543_v30 = vpop.f32.mrb[63].mxu0 }
 0x6a6   : > { %v15547_v28 = vpop.permute.xlu1 %3750 }
 0x6a7   : > { %12600 = vmatprep.subr.bf16.mxu0 %v15547_v28 }
 0x6aa   : > { %v15563_v25 = vpop.permute.xlu1 %3814 }
 0x6ab   : > { %12581 = vmatmul.mubr.msk.bf16.vlgmr.msra.gmra.mrb[92].mxu1 %vm1519_vm1, %v3275_v59  ;;  %v15551_v19 = vpop.f32.mrb[64].mxu0 }
 0x6ac   : > { %12593 = vmatpush3.bf16.msra.mxu1 %v3687_v17  ;;  %v15553_v29 = vpop.f32.mrb[65].mxu0 }
 0x6ad   : > { %13255 = vmatprep.subr.msk.bf16.mxu1 %vm2329_vm2, %v3689_v12  ;;  %v12471_v3 = vpop.f32.mrb[66].mxu0 }
 0x6ae   : > { %v15558_v51 = vpop.f32.mrb[67].mxu0 }
 0x6b0   : > { %12595 = vmatpush3.bf16.msra.mxu1 %v3698_v54 }
 0x6b1   : > { %12608 = vmatprep.subr.bf16.mxu1 %v15563_v25 }
 0x6b3   : > { %v15566_v38 = vpop.f32.mrb[68].mxu0 }
 0x6b4   : > { %v15568_v9 = vpop.f32.mrb[69].mxu0 }
 0x6b5   : > { %v12479_v60 = vpop.f32.mrb[70].mxu0 }
 0x6b6   : > { %v15570_v0 = vpop.f32.mrb[71].mxu0 }
 0x6cf   : > { %v15574_v15 = vpop.f32.mrb[68].mxu1 }
 0x6d0   : > { %v15576_v4 = vpop.f32.mrb[69].mxu1 }
 0x6d1   : > { %v12487_v35 = vpop.f32.mrb[70].mxu1 }
 0x6d2   : > { %v15580_v63 = vpop.f32.mrb[71].mxu1 }
 0x6d3   : > { %v15584_v21 = vpop.f32.mrb[72].mxu0 }
 0x6d4   : > { %v15586_v42 = vpop.f32.mrb[73].mxu0 }
 0x6d5   : > { %v12495_v31 = vpop.f32.mrb[74].mxu0 }
 0x6d6   : > { %v15588_v53 = vpop.f32.mrb[75].mxu0 }
 0x6dd   : > { %v15592_v5 = vpop.f32.mrb[72].mxu1 }
 0x6de   : > { %v15594_v57 = vpop.f32.mrb[73].mxu1 }
 0x6df   : > { %v12503_v2 = vpop.f32.mrb[74].mxu1 }
 0x6e0   : > { %v15598_v24 = vpop.f32.mrb[75].mxu1 }
 0x6e1   : > { %19472 = vst [vmem:[#allocation31_spill] sm:$0xff] %v15598_v24 }
 0x72e   : > { %v15602_v36 = vpop.f32.mrb[76].mxu0 }
 0x72f   : > { %19473 = vst [vmem:[#allocation32_spill] sm:$0xff] %v15602_v36  ;;  %v15604_v43 = vpop.f32.mrb[77].mxu0 }
 0x730   : > { %19474 = vst [vmem:[#allocation29_spill] sm:$0xff] %v15604_v43  ;;  %v12511_v55 = vpop.f32.mrb[78].mxu0 }
 0x731   : > { %v15606_v32 = vpop.f32.mrb[79].mxu0 }
 0x732   : > { %19475 = vst [vmem:[#allocation33_spill] sm:$0xff] %v15606_v32 }
 0x73e   : > { %v12526_v20 = vpop.f32.mrb[80].mxu0  ;;  %v15610_v39 = vpop.f32.mrb[76].mxu1 }
 0x73f   : > { %19476 = vst [vmem:[#allocation34_spill] sm:$0xff] %v15610_v39  ;;  %v15613_v14 = vadd.f32 %v12526_v20, %v19477_v61  ;;  %v2850_v8 = vpop.f32.mrb[81].mxu0  ;;  %v15615_v62 = vpop.f32.mrb[77].mxu1 }
 0x740   : > { %19478 = vst [vmem:[#allocation30_spill] sm:$0xff] %v15615_v62  ;;  %v12527_v33 = vpop.f32.mrb[82].mxu0  ;;  %v12519_v52 = vpop.f32.mrb[78].mxu1  ;;  %v15620_v50 = vadd.f32 %v2850_v8, %v19477_v61 }
 0x741   : > { %v2853_v40 = vpop.f32.mrb[83].mxu0  ;;  %v15622_v56 = vpop.f32.mrb[79].mxu1  ;;  %v3346_v16 = vsel %vm2042_vm4, %v15613_v14, -inf }
 0x742   : > { %19479 = vst [vmem:[#allocation35_spill] sm:$0xff] %v15622_v56  ;;  %v15627_v37 = vadd.f32 %v2853_v40, %v19477_v61  ;;  %3347 = vmax.xlane.f32.xlu0 %v3346_v16  ;;  %v3340_v17 = vsel %vm2042_vm4, %v15620_v50, -inf }
 0x744   : > { %v3343_v23 = vsel %vm2042_vm4, %v15627_v37, -inf }
 0x745   : > { %3344 = vmax.xlane.f32.xlu1 %v3343_v23 }
 0x746   : > { %3341 = vmax.xlane.f32.xlu0 %v3340_v17 }
 0x74e   : > { %v12534_v49 = vpop.f32.mrb[80].mxu1 }
 0x74f   : > { %v15636_v44 = vadd.f32 %v12534_v49, %v19477_v61  ;;  %v2918_v12 = vpop.f32.mrb[81].mxu1  ;;  %v12542_v3 = vpop.f32.mrb[84].mxu0 }
 0x750   : > { %v15639_v54 = vadd.f32 %v2918_v12, %v19477_v61  ;;  %v12535_v60 = vpop.f32.mrb[82].mxu1  ;;  %v2986_v35 = vpop.f32.mrb[85].mxu0  ;;  %v15644_v20 = vadd.f32 %v12542_v3, %v19477_v61 }
 0x751   : > { %v2921_v31 = vpop.f32.mrb[83].mxu1  ;;  %v12543_v2 = vpop.f32.mrb[86].mxu0  ;;  %v3355_v55 = vsel %vm2042_vm4, %v15636_v44, -inf  ;;  %v15659_v17 = vadd.f32 %v2986_v35, %v19477_v61 }
 0x752   : > { %3356 = vmax.xlane.f32.xlu1 %v3355_v55  ;;  %v2989_v8 = vpop.f32.mrb[87].mxu0  ;;  %v3349_v33 = vsel %vm2042_vm4, %v15639_v54, -inf  ;;  %v15654_v16 = vadd.f32 %v2921_v31, %v19477_v61  ;;  %v3364_v23 = vsel %vm2042_vm4, %v15644_v20, -inf }
 0x753   : > { %v15649_v52 = vadd.f32 %v2989_v8, %v19477_v61  ;;  %3350 = vmax.xlane.f32.xlu0 %v3349_v33  ;;  %v3358_v3 = vsel %vm2042_vm4, %v15659_v17, -inf }
 0x754   : > { %v3352_v49 = vsel %vm2042_vm4, %v15654_v16, -inf }
 0x755   : > { %v3361_v40 = vsel %vm2042_vm4, %v15649_v52, -inf }
 0x756   : > { %3362 = vmax.xlane.f32.xlu1 %v3361_v40 }
 0x757   : > { %3365 = vmax.xlane.f32.xlu0 %v3364_v23 }
 0x75b   : > { %3353 = vmax.xlane.f32.xlu0 %v3352_v49 }
 0x75e   : > { %v12550_v12 = vpop.f32.mrb[84].mxu1 }
 0x75f   : > { %v15666_v60 = vadd.f32 %v12550_v12, %v19477_v61  ;;  %3359 = vmax.xlane.f32.xlu0 %v3358_v3  ;;  %v3054_v31 = vpop.f32.mrb[85].mxu1  ;;  %v12558_v2 = vpop.f32.mrb[88].mxu0 }
 0x760   : > { %v15669_v55 = vadd.f32 %v12558_v2, %v19477_v61  ;;  %v12551_v8 = vpop.f32.mrb[86].mxu1  ;;  %v3122_v35 = vpop.f32.mrb[89].mxu0  ;;  %v15672_v33 = vadd.f32 %v3054_v31, %v19477_v61 }
 0x761   : > { %v3057_v40 = vpop.f32.mrb[87].mxu1  ;;  %v12559_v23 = vpop.f32.mrb[90].mxu0  ;;  %v3373_v49 = vsel %vm2042_vm4, %v15666_v60, -inf  ;;  %v15687_v8 = vadd.f32 %v3122_v35, %v19477_v61 }
 0x762   : > { %v15677_v59 = vadd.f32 %v3057_v40, %v19477_v61  ;;  %3374 = vmax.xlane.f32.xlu1 %v3373_v49  ;;  %v3125_v12 = vpop.f32.mrb[91].mxu0  ;;  %v3382_v3 = vsel %vm2042_vm4, %v15669_v55, -inf  ;;  %v3367_v31 = vsel %vm2042_vm4, %v15672_v33, -inf }
 0x763   : > { %3383 = vmax.xlane.f32.xlu0 %v3382_v3  ;;  %v15682_v2 = vadd.f32 %v3125_v12, %v19477_v61  ;;  %v3376_v49 = vsel %vm2042_vm4, %v15687_v8, -inf }
 0x764   : > { %v3370_v40 = vsel %vm2042_vm4, %v15677_v59, -inf }
 0x765   : > { %v3379_v23 = vsel %vm2042_vm4, %v15682_v2, -inf }
 0x766   : > { %3368 = vmax.xlane.f32.xlu1 %v3367_v31 }
 0x767   : > { %3371 = vmax.xlane.f32.xlu0 %v3370_v40 }
 0x76a   : > { %3380 = vmax.xlane.f32.xlu1 %v3379_v23 }
 0x76b   : > { %3377 = vmax.xlane.f32.xlu0 %v3376_v49 }
 0x76e   : > { %v12566_v12 = vpop.f32.mrb[88].mxu1 }
 0x76f   : > { %v15696_v3 = vadd.f32 %v12566_v12, %v19477_v61  ;;  %v3190_v27 = vpop.f32.mrb[89].mxu1  ;;  %v12574_v35 = vpop.f32.mrb[92].mxu0 }
 0x770   : > { %v15699_v31 = vadd.f32 %v12574_v35, %v19477_v61  ;;  %v12567_v48 = vpop.f32.mrb[90].mxu1  ;;  %v3258_v41 = vpop.f32.mrb[93].mxu0  ;;  %v15702_v40 = vadd.f32 %v3190_v27, %v19477_v61 }
 0x771   : > { %v3193_v13 = vpop.f32.mrb[91].mxu1  ;;  %v12575_v23 = vpop.f32.mrb[94].mxu0  ;;  %v3391_v22 = vsel %vm2042_vm4, %v15696_v3, -inf  ;;  %v15717_v35 = vadd.f32 %v3258_v41, %v19477_v61 }
 0x772   : > { %v15707_v49 = vadd.f32 %v3193_v13, %v19477_v61  ;;  %3392 = vmax.xlane.f32.xlu1 %v3391_v22  ;;  %v3261_v12 = vpop.f32.mrb[95].mxu0  ;;  %v3400_v26 = vsel %vm2042_vm4, %v15699_v31, -inf  ;;  %v3385_v27 = vsel %vm2042_vm4, %v15702_v40, -inf }
 0x773   : > { %3401 = vmax.xlane.f32.xlu0 %v3400_v26  ;;  %v15712_v48 = vadd.f32 %v3261_v12, %v19477_v61  ;;  %v3394_v26 = vsel %vm2042_vm4, %v15717_v35, -inf }
 0x774   : > { %v3388_v13 = vsel %vm2042_vm4, %v15707_v49, -inf }
 0x775   : > { %v3397_v22 = vsel %vm2042_vm4, %v15712_v48, -inf }
 0x776   : > { %3386 = vmax.xlane.f32.xlu1 %v3385_v27 }
 0x777   : > { %3389 = vmax.xlane.f32.xlu0 %v3388_v13 }
 0x77a   : > { %3398 = vmax.xlane.f32.xlu1 %v3397_v22 }
 0x77b   : > { %3395 = vmax.xlane.f32.xlu0 %v3394_v26 }
 0x77e   : > { %v12582_v23 = vpop.f32.mrb[92].mxu1 }
 0x77f   : > { %v15726_v12 = vadd.f32 %v12582_v23, %v19477_v61  ;;  %v3326_v18 = vpop.f32.mrb[93].mxu1 }
 0x780   : > { %v12583_v41 = vpop.f32.mrb[94].mxu1  ;;  %v15729_v27 = vadd.f32 %v3326_v18, %v19477_v61  ;;  %v15744_v18 = vpop.permute.xlu1 %3816 }
 0x781   : > { %v3329_v1 = vpop.f32.mrb[95].mxu1  ;;  %v3409_v13 = vsel %vm2042_vm4, %v15726_v12, -inf }
 0x782   : > { %v15734_v34 = vadd.f32 %v3329_v1, %v19477_v61  ;;  %3410 = vmax.xlane.f32.xlu1 %v3409_v13  ;;  %v3403_v26 = vsel %vm2042_vm4, %v15729_v27, -inf  ;;  %v15748_v1 = vpop.permute.xlu0 %3752 }
 0x784   : > { %v3406_v22 = vsel %vm2042_vm4, %v15734_v34, -inf  ;;  %v15746_v23 = vpop.permute.xlu1 %3942 }
 0x785   : > { %3407 = vmax.xlane.f32.xlu0 %v3406_v22 }
 0x786   : > { %3404 = vmax.xlane.f32.xlu1 %v3403_v26  ;;  %v15752_v13 = vpop.permute.xlu0 %3878 }
 0x788   : > { %v15750_v41 = vpop.permute.xlu1 %3880 }
 0x78c   : > { %v15754_v22 = vpop.permute.xlu1 %3944 }
 0x797   : > { %4008 = vrot.lane.b32.xlu1 %v15405_v58, %s14249_s16 }
 0x79b   : > { %4006 = vrot.lane.b32.xlu0 %v14956_v11, %s14249_s16 }
 0x7cf   : > { %v3348_v45 = vpop.xlane.xlu0 %3347 }
 0x7d0   : > { %v3414_v26 = vsub.f32 %v15613_v14, %v3348_v45 }
 0x7d2   : > { %v3440_v47 = vmul.f32 1.442695, %v3414_v26  ;;  %v3345_v58 = vpop.xlane.xlu1 %3344 }
 0x7d3   : > { %v3413_v61 = vsub.f32 %v15627_v37, %v3345_v58  ;;  %v3342_v11 = vpop.xlane.xlu0 %3341 }
 0x7d4   : > { %13707 = vpow2.f32 %v3440_v47  ;;  %v3412_v56 = vsub.f32 %v15620_v50, %v3342_v11 }
 0x7d5   : > { %v3438_v39 = vmul.f32 1.442695, %v3413_v61 }
 0x7d6   : > { %v3436_v36 = vmul.f32 1.442695, %v3412_v56 }
 0x7d7   : > { %13709 = vpow2.f32 %v3438_v39 }
 0x7d8   : > { %13711 = vpow2.f32 %v3436_v36 }
 0x7de   : > { %v15759_v62 = vpop.eup %13707 }
 0x7df   : > { %v3357_v43 = vpop.xlane.xlu1 %3356  ;;  %v3490_v32 = vsel %vm2042_vm4, %v15759_v62, 0.0 }
 0x7e0   : > { %v3417_v45 = vsub.f32 %v15636_v44, %v3357_v43  ;;  %3491 = vadd.xlane.f32.xlu0 %v3490_v32  ;;  %v3351_v14 = vpop.xlane.xlu0 %3350 }
 0x7e1   : > { %v15764_v26 = vpop.eup %13709  ;;  %v3415_v47 = vsub.f32 %v15639_v54, %v3351_v14 }
 0x7e2   : > { %v15767_v37 = vpop.eup %13711  ;;  %v3446_v61 = vmul.f32 1.442695, %v3417_v45  ;;  %v3487_v36 = vsel %vm2042_vm4, %v15764_v26, 0.0 }
 0x7e3   : > { %v3442_v39 = vmul.f32 1.442695, %v3415_v47  ;;  %v3363_v50 = vpop.xlane.xlu1 %3362  ;;  %3488 = vadd.xlane.f32.xlu1 %v3487_v36  ;;  %v3484_v56 = vsel %vm2042_vm4, %v15767_v37, 0.0 }
 0x7e4   : > { %13713 = vpow2.f32 %v3446_v61  ;;  %v3419_v43 = vsub.f32 %v15649_v52, %v3363_v50  ;;  %3485 = vadd.xlane.f32.xlu0 %v3484_v56  ;;  %v3366_v32 = vpop.xlane.xlu0 %3365 }
 0x7e5   : > { %v3420_v44 = vsub.f32 %v15644_v20, %v3366_v32  ;;  %13715 = vpow2.f32 %v3442_v39 }
 0x7e6   : > { %v3450_v54 = vmul.f32 1.442695, %v3419_v43 }
 0x7e7   : > { %v3452_v58 = vmul.f32 1.442695, %v3420_v44 }
 0x7e8   : > { %v3354_v11 = vpop.xlane.xlu0 %3353 }
 0x7e9   : > { %13717 = vpow2.f32 %v3452_v58  ;;  %v3416_v45 = vsub.f32 %v15654_v16, %v3354_v11 }
 0x7ea   : > { %13719 = vpow2.f32 %v3450_v54 }
 0x7eb   : > { %v3444_v14 = vmul.f32 1.442695, %v3416_v45 }
 0x7ec   : > { %v3360_v47 = vpop.xlane.xlu0 %3359 }
 0x7ed   : > { %13721 = vpow2.f32 %v3444_v14  ;;  %v3418_v36 = vsub.f32 %v15659_v17, %v3360_v47 }
 0x7ee   : > { %v15777_v61 = vpop.eup %13713 }
 0x7ef   : > { %v3448_v52 = vmul.f32 1.442695, %v3418_v36  ;;  %v3375_v50 = vpop.xlane.xlu1 %3374  ;;  %v3499_v20 = vsel %vm2042_vm4, %v15777_v61, 0.0  ;;  %v15781_v39 = vpop.eup %13715 }
 0x7f0   : > { %v3423_v56 = vsub.f32 %v15666_v60, %v3375_v50  ;;  %3500 = vadd.xlane.f32.xlu1 %v3499_v20  ;;  %v3384_v43 = vpop.xlane.xlu0 %3383  ;;  %v3493_v54 = vsel %vm2042_vm4, %v15781_v39, 0.0 }
 0x7f1   : > { %13723 = vpow2.f32 %v3448_v52  ;;  %v3426_v32 = vsub.f32 %v15669_v55, %v3384_v43 }
 0x7f2   : > { %v3458_v16 = vmul.f32 1.442695, %v3423_v56 }
 0x7f3   : > { %v15785_v44 = vpop.eup %13717  ;;  %v3369_v17 = vpop.xlane.xlu1 %3368  ;;  %v3464_v55 = vmul.f32 1.442695, %v3426_v32 }
 0x7f4   : > { %v15789_v58 = vpop.eup %13719  ;;  %13725 = vpow2.f32 %v3458_v16  ;;  %v3421_v11 = vsub.f32 %v15672_v33, %v3369_v17  ;;  %3494 = vadd.xlane.f32.xlu1 %v3493_v54  ;;  %v3372_v45 = vpop.xlane.xlu0 %3371  ;;  %v3508_v60 = vsel %vm2042_vm4, %v15785_v44, 0.0 }
 0x7f5   : > { %v3422_v14 = vsub.f32 %v15677_v59, %v3372_v45  ;;  %3509 = vadd.xlane.f32.xlu0 %v3508_v60  ;;  %v3505_v20 = vsel %vm2042_vm4, %v15789_v58, 0.0 }
 0x7f6   : > { %v3454_v47 = vmul.f32 1.442695, %v3421_v11 }
 0x7f7   : > { %v15795_v36 = vpop.eup %13721  ;;  %v3456_v52 = vmul.f32 1.442695, %v3422_v14  ;;  %v3381_v50 = vpop.xlane.xlu1 %3380 }
 0x7f8   : > { %13727 = vpow2.f32 %v3454_v47  ;;  %3506 = vadd.xlane.f32.xlu1 %v3505_v20  ;;  %v3378_v33 = vpop.xlane.xlu0 %3377  ;;  %v3496_v56 = vsel %vm2042_vm4, %v15795_v36, 0.0  ;;  %v3425_v59 = vsub.f32 %v15682_v2, %v3381_v50 }
 0x7f9   : > { %13729 = vpow2.f32 %v3456_v52  ;;  %v3424_v43 = vsub.f32 %v15687_v8, %v3378_v33  ;;  %3497 = vadd.xlane.f32.xlu0 %v3496_v56 }
 0x7fa   : > { %13731 = vpow2.f32 %v3464_v55  ;;  %v3462_v11 = vmul.f32 1.442695, %v3425_v59 }
 0x7fb   : > { %v15803_v16 = vpop.eup %13723  ;;  %v3460_v32 = vmul.f32 1.442695, %v3424_v43 }
 0x7fc   : > { %v3502_v17 = vsel %vm2042_vm4, %v15803_v16, 0.0 }
 0x7fd   : > { %3503 = vadd.xlane.f32.xlu0 %v3502_v17  ;;  %13733 = vpow2.f32 %v3460_v32 }
 0x7fe   : > { %v15807_v54 = vpop.eup %13725  ;;  %13735 = vpow2.f32 %v3462_v11 }
 0x7ff   : > { %v3393_v45 = vpop.xlane.xlu1 %3392  ;;  %v3517_v60 = vsel %vm2042_vm4, %v15807_v54, 0.0 }
 0x800   : > { %v3429_v8 = vsub.f32 %v15696_v3, %v3393_v45  ;;  %3518 = vadd.xlane.f32.xlu1 %v3517_v60  ;;  %v3402_v14 = vpop.xlane.xlu0 %3401 }
 0x801   : > { %v3432_v47 = vsub.f32 %v15699_v31, %v3402_v14 }
 0x802   : > { %v15812_v2 = vpop.eup %13727  ;;  %v3470_v55 = vmul.f32 1.442695, %v3429_v8 }
 0x803   : > { %v15815_v52 = vpop.eup %13729  ;;  %v3387_v50 = vpop.xlane.xlu1 %3386  ;;  %v3511_v20 = vsel %vm2042_vm4, %v15812_v2, 0.0  ;;  %v3476_v31 = vmul.f32 1.442695, %v3432_v47 }
 0x804   : > { %v15819_v33 = vpop.eup %13731  ;;  %13737 = vpow2.f32 %v3470_v55  ;;  %v3427_v56 = vsub.f32 %v15702_v40, %v3387_v50  ;;  %3512 = vadd.xlane.f32.xlu1 %v3511_v20  ;;  %v3390_v3 = vpop.xlane.xlu0 %3389  ;;  %v3514_v43 = vsel %vm2042_vm4, %v15815_v52, 0.0 }
 0x805   : > { %v3428_v59 = vsub.f32 %v15707_v49, %v3390_v3  ;;  %3515 = vadd.xlane.f32.xlu0 %v3514_v43  ;;  %v3526_v45 = vsel %vm2042_vm4, %v15819_v33, 0.0 }
 0x806   : > { %v3466_v32 = vmul.f32 1.442695, %v3427_v56 }
 0x807   : > { %v3468_v17 = vmul.f32 1.442695, %v3428_v59  ;;  %v3399_v11 = vpop.xlane.xlu1 %3398  ;;  %v15827_v60 = vpop.eup %13733 }
 0x808   : > { %13739 = vpow2.f32 %v3466_v32  ;;  %v3431_v40 = vsub.f32 %v15712_v48, %v3399_v11  ;;  %3527 = vadd.xlane.f32.xlu1 %v3526_v45  ;;  %v3396_v8 = vpop.xlane.xlu0 %3395  ;;  %v3520_v47 = vsel %vm2042_vm4, %v15827_v60, 0.0  ;;  %v15833_v50 = vpop.eup %13735 }
 0x809   : > { %13741 = vpow2.f32 %v3468_v17  ;;  %v3430_v14 = vsub.f32 %v15717_v35, %v3396_v8  ;;  %v3523_v35 = vsel %vm2042_vm4, %v15833_v50, 0.0 }
 0x80a   : > { %13743 = vpow2.f32 %v3476_v31  ;;  %v3474_v49 = vmul.f32 1.442695, %v3431_v40 }
 0x80b   : > { %v3472_v55 = vmul.f32 1.442695, %v3430_v14 }
 0x80c   : > { %3521 = vadd.xlane.f32.xlu1 %v3520_v47 }
 0x80d   : > { %13745 = vpow2.f32 %v3472_v55 }
 0x80e   : > { %v15835_v20 = vpop.eup %13737  ;;  %13747 = vpow2.f32 %v3474_v49 }
 0x80f   : > { %v3411_v56 = vpop.xlane.xlu1 %3410  ;;  %v3535_v48 = vsel %vm2042_vm4, %v15835_v20, 0.0 }
 0x810   : > { %v3435_v3 = vsub.f32 %v15726_v12, %v3411_v56  ;;  %3536 = vadd.xlane.f32.xlu0 %v3535_v48  ;;  %3524 = vadd.xlane.f32.xlu1 %v3523_v35 }
 0x812   : > { %v15842_v43 = vpop.eup %13739  ;;  %v3482_v59 = vmul.f32 1.442695, %v3435_v3  ;;  %v3408_v31 = vpop.xlane.xlu0 %3407 }
 0x813   : > { %v15844_v32 = vpop.eup %13741  ;;  %v3434_v17 = vsub.f32 %v15734_v34, %v3408_v31  ;;  %v3405_v11 = vpop.xlane.xlu1 %3404  ;;  %v3529_v45 = vsel %vm2042_vm4, %v15842_v43, 0.0 }
 0x814   : > { %v15849_v40 = vpop.eup %13743  ;;  %13749 = vpow2.f32 %v3482_v59  ;;  %v3433_v8 = vsub.f32 %v15729_v27, %v3405_v11  ;;  %3530 = vadd.xlane.f32.xlu0 %v3529_v45  ;;  %v3532_v12 = vsel %vm2042_vm4, %v15844_v32, 0.0 }
 0x815   : > { %v3480_v14 = vmul.f32 1.442695, %v3434_v17  ;;  %3533 = vadd.xlane.f32.xlu1 %v3532_v12  ;;  %v3544_v34 = vsel %vm2042_vm4, %v15849_v40, 0.0 }
 0x816   : > { %v3478_v49 = vmul.f32 1.442695, %v3433_v8  ;;  %v15880_v11 = vpop.permute.xlu0 %4006 }
 0x817   : > { %v15854_v55 = vpop.eup %13745  ;;  %13751 = vpow2.f32 %v3480_v14  ;;  %v15882_v45 = vpop.permute.xlu1 %4008 }
 0x818   : > { %v15858_v47 = vpop.eup %13747  ;;  %13753 = vpow2.f32 %v3478_v49  ;;  %3545 = vadd.xlane.f32.xlu0 %v3544_v34  ;;  %v3538_v27 = vsel %vm2042_vm4, %v15854_v55, 0.0 }
 0x819   : > { %3539 = vadd.xlane.f32.xlu1 %v3538_v27  ;;  %v3541_v56 = vsel %vm2042_vm4, %v15858_v47, 0.0 }
 0x81c   : > { %3542 = vadd.xlane.f32.xlu0 %v3541_v56 }
 0x81e   : > { %v15864_v48 = vpop.eup %13749 }
 0x81f   : > { %v3553_v35 = vsel %vm2042_vm4, %v15864_v48, 0.0 }
 0x820   : > { %3554 = vadd.xlane.f32.xlu0 %v3553_v35 }
 0x821   : > { %v15868_v3 = vpop.eup %13751 }
 0x822   : > { %v15870_v59 = vpop.eup %13753  ;;  %v3550_v31 = vsel %vm2042_vm4, %v15868_v3, 0.0 }
 0x823   : > { %v3547_v17 = vsel %vm2042_vm4, %v15870_v59, 0.0 }
 0x824   : > { %3548 = vadd.xlane.f32.xlu1 %v3547_v17  ;;  %3551 = vadd.xlane.f32.xlu0 %v3550_v31 }
 0x835   : > { %4072 = vrot.lane.b32.xlu1 %v15429_v6, %s14249_s16 }
 0x83a   : > { %4070 = vrot.lane.b32.xlu0 %v15003_v7, %s14249_s16 }
 0x86d   : > { %v3492_v8 = vpop.xlane.xlu0 %3491 }
 0x86e   : > { %13755 = vrcp.f32 %v3492_v8 }
 0x870   : > { %v3489_v12 = vpop.xlane.xlu1 %3488 }
 0x871   : > { %13757 = vrcp.f32 %v3489_v12  ;;  %v3486_v14 = vpop.xlane.xlu0 %3485 }
 0x872   : > { %13759 = vrcp.f32 %v3486_v14 }
 0x878   : > { %v13756_v49 = vpop.eup %13755 }
 0x879   : > { %v3582_v6 = vmul.f32 %v13756_v49, %v15759_v62  ;;  %v3762_v62 = vsel %vm2329_vm2, %v15748_v1, 0 }
 0x87b   : > { %v13758_v34 = vpop.eup %13757  ;;  %v3605_v17 = vpack.c.bf16 %v3582_v6, %v3582_v6 }
 0x87c   : > { %v13760_v27 = vpop.eup %13759  ;;  %v3581_v56 = vmul.f32 %v13758_v34, %v15764_v26 }
 0x87d   : > { %v3501_v35 = vpop.xlane.xlu1 %3500  ;;  %v3580_v7 = vmul.f32 %v13760_v27, %v15767_v37 }
 0x87e   : > { %13761 = vrcp.f32 %v3501_v35 }
 0x87f   : > { %v3604_v31 = vpack.c.bf16 %v3581_v56, %v3580_v7 }
 0x881   : > { %v3495_v24 = vpop.xlane.xlu1 %3494  ;;  %12588 = vmatprep.mubr.msk.bf16.mxu0 %vm2042_vm4, %v3604_v31 }
 0x882   : > { %12589 = vmatmul.mubr.msk.bf16.vlgmr.msra.gmra.mrb[96].mxu0 %vm2042_vm4, %v3605_v17  ;;  %v3510_v8 = vpop.xlane.xlu0 %3509  ;;  %13763 = vrcp.f32 %v3495_v24 }
 0x883   : > { %12601 = vmatpush3.bf16.msra.mxu0 %v15547_v28 }
 0x884   : > { %13256 = vmatprep.subr.msk.bf16.mxu0 %vm2329_vm2, %v15748_v1 }
 0x885   : > { %v3507_v26 = vpop.xlane.xlu1 %3506 }
 0x886   : > { %v3498_v37 = vpop.xlane.xlu0 %3497 }
 0x887   : > { %12603 = vmatpush3.bf16.msra.mxu0 %v3762_v62  ;;  %13765 = vrcp.f32 %v3498_v37 }
 0x888   : > { %13767 = vrcp.f32 %v3510_v8  ;;  %12616 = vmatprep.subr.bf16.mxu0 %v15752_v13  ;;  %v13762_v28 = vpop.eup %13761 }
 0x889   : > { %13769 = vrcp.f32 %v3507_v26  ;;  %v3585_v24 = vmul.f32 %v13762_v28, %v15777_v61 }
 0x88a   : > { %v3504_v12 = vpop.xlane.xlu0 %3503 }
 0x88b   : > { %13771 = vrcp.f32 %v3504_v12  ;;  %v3607_v26 = vpack.c.bf16 %v3585_v24, %v3585_v24 }
 0x88c   : > { %v13764_v49 = vpop.eup %13763 }
 0x88d   : > { %v3519_v14 = vpop.xlane.xlu1 %3518  ;;  %v3583_v6 = vmul.f32 %v13764_v49, %v15781_v39 }
 0x88e   : > { %13773 = vrcp.f32 %v3519_v14 }
 0x891   : > { %v13766_v34 = vpop.eup %13765  ;;  %v3513_v27 = vpop.xlane.xlu1 %3512 }
 0x892   : > { %v13768_v56 = vpop.eup %13767  ;;  %13775 = vrcp.f32 %v3513_v27  ;;  %v3516_v1 = vpop.xlane.xlu0 %3515  ;;  %v3584_v35 = vmul.f32 %v13766_v34, %v15795_v36  ;;  %v3890_v27 = vsel %vm2329_vm2, %v15750_v41, 0 }
 0x893   : > { %v13770_v7 = vpop.eup %13769  ;;  %13777 = vrcp.f32 %v3516_v1  ;;  %v3588_v62 = vmul.f32 %v13768_v56, %v15785_v44  ;;  %v3826_v44 = vsel %vm2329_vm2, %v15744_v18, 0 }
 0x894   : > { %v3606_v31 = vpack.c.bf16 %v3584_v35, %v3583_v6  ;;  %v3587_v61 = vmul.f32 %v13770_v7, %v15789_v58  ;;  %v3954_v6 = vsel %vm2329_vm2, %v15754_v22, 0 }
 0x895   : > { %v13772_v17 = vpop.eup %13771  ;;  %v3528_v8 = vpop.xlane.xlu1 %3527  ;;  %v3609_v12 = vpack.c.bf16 %v3588_v62, %v3588_v62 }
 0x896   : > { %12596 = vmatprep.mubr.msk.bf16.mxu1 %vm2042_vm4, %v3606_v31  ;;  %v3586_v37 = vmul.f32 %v13772_v17, %v15803_v16  ;;  %13779 = vrcp.f32 %v3528_v8 }
 0x897   : > { %12597 = vmatmul.mubr.msk.bf16.vlgmr.msra.gmra.mrb[96].mxu1 %vm2042_vm4, %v3607_v26 }
 0x898   : > { %12609 = vmatpush3.bf16.msra.mxu1 %v15563_v25  ;;  %v3608_v39 = vpack.c.bf16 %v3587_v61, %v3586_v37  ;;  %v13774_v14 = vpop.eup %13773 }
 0x899   : > { %13257 = vmatprep.subr.msk.bf16.mxu1 %vm2329_vm2, %v15744_v18  ;;  %v3522_v36 = vpop.xlane.xlu1 %3521  ;;  %v3591_v34 = vmul.f32 %v13774_v14, %v15807_v54 }
 0x89a   : > { %12604 = vmatprep.mubr.msk.bf16.mxu0 %vm2042_vm4, %v3608_v39  ;;  %13781 = vrcp.f32 %v3522_v36 }
 0x89b   : > { %12605 = vmatmul.mubr.msk.bf16.vlgmr.msra.gmra.mrb[100].mxu0 %vm2042_vm4, %v3609_v12  ;;  %v3611_v56 = vpack.c.bf16 %v3591_v34, %v3591_v34 }
 0x89c   : > { %v13776_v58 = vpop.eup %13775  ;;  %12611 = vmatpush3.bf16.msra.mxu1 %v3826_v44  ;;  %12617 = vmatpush3.bf16.msra.mxu0 %v15752_v13 }
 0x89d   : > { %v13778_v25 = vpop.eup %13777  ;;  %13258 = vmatprep.subr.msk.bf16.mxu0 %vm2329_vm2, %v15750_v41  ;;  %12624 = vmatprep.subr.bf16.mxu1 %v15746_v23  ;;  %v3525_v16 = vpop.xlane.xlu1 %3524  ;;  %v3589_v49 = vmul.f32 %v13776_v58, %v15812_v2 }
 0x89e   : > { %v3537_v28 = vpop.xlane.xlu0 %3536  ;;  %13783 = vrcp.f32 %v3525_v16  ;;  %v3590_v18 = vmul.f32 %v13778_v25, %v15815_v52 }
 0x89f   : > { %13785 = vrcp.f32 %v3537_v28 }
 0x8a0   : > { %12619 = vmatpush3.bf16.msra.mxu0 %v3890_v27  ;;  %v3610_v13 = vpack.c.bf16 %v3590_v18, %v3589_v49  ;;  %v13780_v54 = vpop.eup %13779 }
 0x8a1   : > { %12632 = vmatprep.subr.bf16.mxu0 %v15880_v11  ;;  %v3594_v7 = vmul.f32 %v13780_v54, %v15819_v33 }
 0x8a2   : > { %v3531_v24 = vpop.xlane.xlu0 %3530  ;;  %v3534_v1 = vpop.xlane.xlu1 %3533  ;;  %12612 = vmatprep.mubr.msk.bf16.mxu1 %vm2042_vm4, %v3610_v13 }
 0x8a3   : > { %13787 = vrcp.f32 %v3531_v24  ;;  %12613 = vmatmul.mubr.msk.bf16.vlgmr.msra.gmra.mrb[100].mxu1 %vm2042_vm4, %v3611_v56  ;;  %v3613_v37 = vpack.c.bf16 %v3594_v7, %v3594_v7 }
 0x8a4   : > { %13789 = vrcp.f32 %v3534_v1  ;;  %12625 = vmatpush3.bf16.msra.mxu1 %v15746_v23  ;;  %v13782_v2 = vpop.eup %13781  ;;  %v13383_v1 = vld [vmem:[%s19315_s4 + $0x10] sm:$0xff]  }
 0x8a5   : > { %13259 = vmatprep.subr.msk.bf16.mxu1 %vm2329_vm2, %v15754_v22  ;;  %v3592_v17 = vmul.f32 %v13782_v2, %v15827_v60 }
 0x8a6   : > { %v3546_v41 = vpop.xlane.xlu0 %3545  ;;  %v3540_v52 = vpop.xlane.xlu1 %3539 }
 0x8a7   : > { %13791 = vrcp.f32 %v3546_v41 }
 0x8a8   : > { %v13784_v35 = vpop.eup %13783  ;;  %13793 = vrcp.f32 %v3540_v52  ;;  %12627 = vmatpush3.bf16.msra.mxu1 %v3954_v6 }
 0x8a9   : > { %v3593_v23 = vmul.f32 %v13784_v35, %v15833_v50  ;;  %v13786_v8 = vpop.eup %13785 }
 0x8aa   : > { %v3543_v31 = vpop.xlane.xlu0 %3542  ;;  %v3597_v36 = vmul.f32 %v13786_v8, %v15835_v20  ;;  %v4018_v20 = vsel %vm2329_vm2, %v15882_v45, 0 }
 0x8ab   : > { %13795 = vrcp.f32 %v3543_v31  ;;  %v3612_v26 = vpack.c.bf16 %v3593_v23, %v3592_v17  ;;  %v13386_v17 = vld [vmem:[%s19315_s4 + $0x8] sm:$0xff]  }
 0x8ac   : > { %v3615_v44 = vpack.c.bf16 %v3597_v36, %v3597_v36 }
 0x8ad   : > { %v13788_v62 = vpop.eup %13787  ;;  %12620 = vmatprep.mubr.msk.bf16.mxu0 %vm2042_vm4, %v3612_v26 }
 0x8ae   : > { %v13790_v61 = vpop.eup %13789  ;;  %v3555_v39 = vpop.xlane.xlu0 %3554  ;;  %v3595_v22 = vmul.f32 %v13788_v62, %v15842_v43  ;;  %12621 = vmatmul.mubr.msk.bf16.vlgmr.msra.gmra.mrb[104].mxu0 %vm2042_vm4, %v3613_v37 }
 0x8af   : > { %v3596_v33 = vmul.f32 %v13790_v61, %v15844_v32  ;;  %12633 = vmatpush3.bf16.msra.mxu0 %v15880_v11  ;;  %13797 = vrcp.f32 %v3555_v39 }
 0x8b0   : > { %13260 = vmatprep.subr.msk.bf16.mxu0 %vm2329_vm2, %v15882_v45 }
 0x8b1   : > { %v3614_v60 = vpack.c.bf16 %v3596_v33, %v3595_v22  ;;  %v13792_v50 = vpop.eup %13791  ;;  %v3549_v12 = vpop.xlane.xlu1 %3548 }
 0x8b2   : > { %v3552_v14 = vpop.xlane.xlu0 %3551  ;;  %v13794_v58 = vpop.eup %13793  ;;  %13799 = vrcp.f32 %v3549_v12  ;;  %v3600_v32 = vmul.f32 %v13792_v50, %v15849_v40 }
 0x8b3   : > { %12628 = vmatprep.mubr.msk.bf16.mxu1 %vm2042_vm4, %v3614_v60  ;;  %13801 = vrcp.f32 %v3552_v14  ;;  %12635 = vmatpush3.bf16.msra.mxu0 %v4018_v20  ;;  %v3598_v25 = vmul.f32 %v13794_v58, %v15854_v55 }
 0x8b4   : > { %12629 = vmatmul.mubr.msk.bf16.vlgmr.msra.gmra.mrb[104].mxu1 %vm2042_vm4, %v3615_v44  ;;  %v3617_v34 = vpack.c.bf16 %v3600_v32, %v3600_v32  ;;  %12648 = vmatprep.subr.bf16.mxu0 %v13383_v1 }
 0x8b5   : > { %v13796_v43 = vpop.eup %13795  ;;  %v4073_v28 = vpop.permute.xlu1 %4072 }
 0x8b6   : > { %v4071_v11 = vpop.permute.xlu0 %4070  ;;  %v3599_v16 = vmul.f32 %v13796_v43, %v15858_v47  ;;  %v4082_v18 = vsel %vm2329_vm2, %v4073_v28, 0 }
 0x8b7   : > { %12640 = vmatprep.subr.bf16.mxu1 %v4071_v11 }
 0x8b8   : > { %12641 = vmatpush3.bf16.msra.mxu1 %v4071_v11  ;;  %v3616_v49 = vpack.c.bf16 %v3599_v16, %v3598_v25 }
 0x8b9   : > { %13261 = vmatprep.subr.msk.bf16.mxu1 %vm2329_vm2, %v4073_v28  ;;  %v13798_v45 = vpop.eup %13797 }
 0x8ba   : > { %12636 = vmatprep.mubr.msk.bf16.mxu0 %vm2042_vm4, %v3616_v49  ;;  %v3603_v47 = vmul.f32 %v13798_v45, %v15864_v48  ;;  %v13385_v48 = vld [vmem:[%s19315_s4] sm:$0xff]  }
 0x8bb   : > { %12637 = vmatmul.mubr.msk.bf16.vlgmr.msra.gmra.mrb[108].mxu0 %vm2042_vm4, %v3617_v34 }
 0x8bc   : > { %12643 = vmatpush3.bf16.msra.mxu1 %v4082_v18  ;;  %v13800_v40 = vpop.eup %13799  ;;  %v3619_v56 = vpack.c.bf16 %v3603_v47, %v3603_v47  ;;  %12649 = vmatpush3.bf16.msra.mxu0 %v13383_v1 }
 0x8bd   : > { %v13802_v27 = vpop.eup %13801  ;;  %v3601_v55 = vmul.f32 %v13800_v40, %v15870_v59  ;;  %v13384_v59 = vld [vmem:[%s19315_s4 + $0x18] sm:$0xff]  }
 0x8be   : > { %v3602_v13 = vmul.f32 %v13802_v27, %v15868_v3  ;;  %12650 = vmatprep.subr.bf16.mxu0 %v13384_v59 }
 0x8c0   : > { %v3618_v24 = vpack.c.bf16 %v3602_v13, %v3601_v55  ;;  %12651 = vmatpush3.bf16.msra.mxu0 %v13384_v59  ;;  %v19480_v59 = vpack.c.bf16 %v15543_v30, %v15540_v10  ;;  %v19484_v10 = vpack.c.bf16 %v15576_v4, %v15566_v38  ;;  %v19486_v30 = vpack.c.bf16 %v15588_v53, %v15586_v42  ;;  %v19490_v38 = vld [vmem:[#allocation33_spill] sm:$0xff]  ;;  %v19494_v4 = vld [vmem:[#allocation32_spill] sm:$0xff]  ;;  %v19496_v42 = vld [vmem:[#allocation34_spill] sm:$0xff] }
 0x8c1   : > { %12676 = vmatprep.subr.bf16.mxu0 %v13385_v48  ;;  %v19497_v53 = vld [vmem:[#allocation35_spill] sm:$0xff] }
 0x8c2   : > { %12644 = vmatprep.mubr.msk.bf16.mxu1 %vm2042_vm4, %v3618_v24 }
 0x8c3   : > { %12645 = vmatmul.mubr.msk.bf16.vlgmr.msra.gmra.mrb[108].mxu1 %vm2042_vm4, %v3619_v56 }
 0x955   : > { %v12590_v3 = vpop.f32.mrb[96].mxu0 }
 0x956   : > { %v3670_v54 = vpop.f32.mrb[97].mxu0 }
 0x957   : > { %v12591_v41 = vpop.f32.mrb[98].mxu0 }
 0x958   : > { %v3673_v2 = vpop.f32.mrb[99].mxu0 }
 0x959   : > { %v4132_v52 = vpack.c.bf16 %v3673_v2, %v3670_v54  ;;  %v19483_v54 = vpack.c.bf16 %v15570_v0, %v15568_v9  ;;  %v19491_v9 = vld [vmem:[#allocation29_spill] sm:$0xff]  ;;  %v19500_v2 = vld [vmem:[#allocation27_spill] sm:$0xff] }
 0x95a   : > { %v19492_v0 = vpack.c.bf16 %v19490_v38, %v19491_v9 }
 0x95b   : > { %12652 = vmatprep.mubr.msk.bf16.mxu0 %vm1519_vm1, %v4132_v52 }
 0x96a   : > { %v12598_v6 = vpop.f32.mrb[96].mxu1 }
 0x96b   : > { %v3734_v35 = vpop.f32.mrb[97].mxu1 }
 0x96c   : > { %v4133_v7 = vpack.c.bf16 %v3734_v35, %v12590_v3  ;;  %v12599_v31 = vpop.f32.mrb[98].mxu1  ;;  %v19482_v3 = vpack.c.bf16 %v15551_v19, %v15558_v51  ;;  %v19487_v19 = vpack.c.bf16 %v15594_v57, %v15584_v21  ;;  %v19498_v21 = vpack.c.bf16 %v19496_v42, %v19497_v53  ;;  %v19501_v35 = vld [vmem:[#allocation4_spill] sm:$0xff] }
 0x96d   : > { %v3737_v23 = vpop.f32.mrb[99].mxu1  ;;  %v19499_v57 = vmov 0   ;;  %v19502_v31 = vld [vmem:[#allocation2_spill] sm:$0xff] }
 0x96e   : > { %v4134_v8 = vpack.c.bf16 %v12598_v6, %v3737_v23  ;;  %v12606_v26 = vpop.f32.mrb[100].mxu0  ;;  %12653 = vmatmul.mubr.msk.bf16.vlgmr.msra.gmra.mrb[112].mxu0 %vm1519_vm1, %v4133_v7 }
 0x96f   : > { %v3798_v62 = vpop.f32.mrb[101].mxu0  ;;  %12677 = vmatpush3.bf16.msra.mxu0 %v13385_v48  ;;  %v19481_v48 = vpack.c.bf16 %v15553_v29, %v15538_v46  ;;  %v19485_v46 = vpack.c.bf16 %v15574_v15, %v15580_v63  ;;  %v19488_v29 = vld [vmem:[#allocation31_spill] sm:$0xff]  ;;  %v19493_v15 = vld [vmem:[#allocation30_spill] sm:$0xff] }
 0x970   : > { %v12607_v37 = vpop.f32.mrb[102].mxu0  ;;  %12656 = vmatprep.mubr.msk.bf16.mxu0 %vm1519_vm1, %v4134_v8  ;;  %12678 = vmatprep.subr.bf16.mxu0 %v13386_v17  ;;  %v19489_v51 = vpack.c.bf16 %v15592_v5, %v19488_v29  ;;  %v19495_v63 = vpack.c.bf16 %v19493_v15, %v19494_v4  ;;  %v11668_v5 = vld [vmem:[%s19318_s7 + $0x3] ss:$8 sm:$0x3]  ;;  %v19512_v29 = vld [vmem:[#allocation12_spill] sm:$0xff] }
 0x971   : > { %v3801_v61 = vpop.f32.mrb[103].mxu0  ;;  %v16031_v52 = vrot.slane %v11668_v5, %v19500_v2 }
 0x972   : > { %v4135_v39 = vpack.c.bf16 %v3801_v61, %v3798_v62  ;;  %v19503_v62 = vld [vmem:[#allocation3_spill] sm:$0xff] }
 0x973   : > { %12679 = vmatpush3.bf16.msra.mxu0 %v13386_v17 }
 0x976   : > { %v12614_v22 = vpop.f32.mrb[100].mxu1  ;;  %12657 = vmatmul.mubr.msk.bf16.gmra.mrb[116].mxu0 %vm1519_vm1, %v4135_v39  ;;  %v19504_v39 = vld [vmem:[#allocation5_spill] sm:$0xff] }
 0x977   : > { %v3862_v36 = vpop.f32.mrb[101].mxu1 }
 0x978   : > { %v4136_v33 = vpack.c.bf16 %v3862_v36, %v12606_v26  ;;  %v12615_v60 = vpop.f32.mrb[102].mxu1 }
 0x979   : > { %v3865_v50 = vpop.f32.mrb[103].mxu1 }
 0x97a   : > { %v4137_v12 = vpack.c.bf16 %v12614_v22, %v3865_v50  ;;  %12660 = vmatprep.mubr.msk.bf16.mxu0 %vm1519_vm1, %v4136_v33 }
 0x97e   : > { %12661 = vmatmul.mubr.msk.bf16.gmra.mrb[120].mxu0 %vm1519_vm1, %v4137_v12 }
 0x981   : > { %v12622_v14 = vpop.f32.mrb[104].mxu0 }
 0x982   : > { %v3926_v44 = vpop.f32.mrb[105].mxu0 }
 0x983   : > { %v12623_v58 = vpop.f32.mrb[106].mxu0 }
 0x984   : > { %v3929_v20 = vpop.f32.mrb[107].mxu0 }
 0x985   : > { %v4138_v43 = vpack.c.bf16 %v3929_v20, %v3926_v44  ;;  %v19505_v44 = vld [vmem:[#allocation6_spill] sm:$0xff] }
 0x987   : > { %v12630_v32 = vpop.f32.mrb[104].mxu1  ;;  %12664 = vmatprep.mubr.msk.bf16.mxu0 %vm1519_vm1, %v4138_v43 }
 0x988   : > { %v3990_v11 = vpop.f32.mrb[105].mxu1 }
 0x989   : > { %v4139_v25 = vpack.c.bf16 %v3990_v11, %v12622_v14  ;;  %v12631_v16 = vpop.f32.mrb[106].mxu1  ;;  %v19506_v11 = vld [vmem:[#allocation9_spill] sm:$0xff] }
 0x98a   : > { %v3993_v28 = vpop.f32.mrb[107].mxu1  ;;  %v19507_v16 = vld [vmem:[#allocation7_spill] sm:$0xff] }
 0x98b   : > { %v4140_v49 = vpack.c.bf16 %v12630_v32, %v3993_v28  ;;  %12665 = vmatmul.mubr.msk.bf16.gmra.mrb[124].mxu0 %vm1519_vm1, %v4139_v25 }
 0x98d   : > { %12668 = vmatprep.mubr.msk.bf16.mxu0 %vm1519_vm1, %v4140_v49  ;;  %v19508_v49 = vld [vmem:[#allocation8_spill] sm:$0xff] }
 0x98e   : > { %v12638_v34 = vpop.f32.mrb[108].mxu0 }
 0x98f   : > { %v4054_v45 = vpop.f32.mrb[109].mxu0 }
 0x990   : > { %v12639_v18 = vpop.f32.mrb[110].mxu0 }
 0x991   : > { %v4057_v40 = vpop.f32.mrb[111].mxu0 }
 0x992   : > { %v4141_v27 = vpack.c.bf16 %v4057_v40, %v4054_v45 }
 0x994   : > { %12669 = vmatmul.mubr.msk.bf16.gmra.mrb[128].mxu0 %vm1519_vm1, %v4141_v27 }
 0x996   : > { %v12646_v55 = vpop.f32.mrb[108].mxu1 }
 0x997   : > { %v4118_v47 = vpop.f32.mrb[109].mxu1 }
 0x998   : > { %v4142_v13 = vpack.c.bf16 %v4118_v47, %v12638_v34  ;;  %v12647_v24 = vpop.f32.mrb[110].mxu1 }
 0x999   : > { %v4121_v56 = vpop.f32.mrb[111].mxu1 }
 0x99a   : > { %v4143_v1 = vpack.c.bf16 %v12646_v55, %v4121_v56  ;;  %12672 = vmatprep.mubr.msk.bf16.mxu0 %vm1519_vm1, %v4142_v13  ;;  %v19509_v56 = vld [vmem:[#allocation10_spill] sm:$0xff] }
 0x99c   : > { %12673 = vmatmul.mubr.msk.bf16.gmra.mrb[132].mxu0 %vm1519_vm1, %v4143_v1 }
 0x99d   : > { %12680 = vmatprep.mubr.msk.bf16.mxu0 %vm1519_vm1, %v19480_v59 }
 0x9a4   : > { %12681 = vmatmul.mubr.msk.bf16.vlgmr.msra.gmra.mrb[112].mxu0 %vm1519_vm1, %v19481_v48 }
 0x9a5   : > { %12684 = vmatprep.mubr.msk.bf16.mxu0 %vm1519_vm1, %v19482_v3 }
 0x9ac   : > { %12685 = vmatmul.mubr.msk.bf16.gmra.mrb[116].mxu0 %vm1519_vm1, %v19483_v54  ;;  %v19510_v54 = vld [vmem:[#allocation13_spill] sm:$0xff] }
 0x9ad   : > { %12688 = vmatprep.mubr.msk.bf16.mxu0 %vm1519_vm1, %v19484_v10 }
 0x9b4   : > { %12689 = vmatmul.mubr.msk.bf16.gmra.mrb[120].mxu0 %vm1519_vm1, %v19485_v46  ;;  %v19511_v46 = vld [vmem:[#allocation11_spill] sm:$0xff] }
 0x9b5   : > { %12692 = vmatprep.mubr.msk.bf16.mxu0 %vm1519_vm1, %v19486_v30 }
 0x9bc   : > { %12693 = vmatmul.mubr.msk.bf16.gmra.mrb[124].mxu0 %vm1519_vm1, %v19487_v19 }
 0x9bd   : > { %12696 = vmatprep.mubr.msk.bf16.mxu0 %vm1519_vm1, %v19489_v51 }
 0x9c4   : > { %12697 = vmatmul.mubr.msk.bf16.gmra.mrb[128].mxu0 %vm1519_vm1, %v19492_v0 }
 0x9c5   : > { %12700 = vmatprep.mubr.msk.bf16.mxu0 %vm1519_vm1, %v19495_v63 }
 0x9cc   : > { %12701 = vmatmul.mubr.msk.bf16.gmra.mrb[132].mxu0 %vm1519_vm1, %v19498_v21  ;;  %v19513_v21 = vld [vmem:[#allocation14_spill] sm:$0xff] }
 0x9cd   : > { %6147 = vmatprep.mubr.bf16.mxu0 %v19499_v57 }
 0xa77   : > { %v12682_v41 = vpop.f32.mrb[112].mxu0 }
 0xa78   : > { %v4408_v6 = vpop.f32.mrb[113].mxu0  ;;  %v4505_v7 = vadd.f32 %v12682_v41, %v19501_v35 }
 0xa79   : > { %v4503_v17 = vadd.f32 %v4408_v6, %v19502_v31  ;;  %v12683_v23 = vpop.f32.mrb[114].mxu0 }
 0xa7a   : > { %v4411_v8 = vpop.f32.mrb[115].mxu0  ;;  %v16040_v61 = vadd.f32 %v16031_v52, %v4505_v7  ;;  %v4506_v22 = vadd.f32 %v12683_v23, %v19504_v39  ;;  %v19514_v7 = vld [vmem:[#allocation17_spill] sm:$0xff] }
 0xa7b   : > { %v16036_v26 = vadd.f32 %v16031_v52, %v4503_v17  ;;  %v4504_v37 = vadd.f32 %v4411_v8, %v19503_v62  ;;  %v19515_v17 = vld [vmem:[#allocation15_spill] sm:$0xff]  ;;  %v19516_v62 = vld [vmem:[#allocation16_spill] sm:$0xff] }
 0xa7c   : > { %v16051_v14 = vadd.f32 %v16031_v52, %v4506_v22  ;;  %v4569_v43 = vsel %vm646_vm0, %v16040_v61, 0.0 }
 0xa7d   : > { %v16044_v36 = vadd.f32 %v16031_v52, %v4504_v37  ;;  %v4563_v33 = vsel %vm646_vm0, %v16036_v26, 0.0 }
 0xa7e   : > { %4564 = vadd.xlane.f32.xlu0 %v4563_v33  ;;  %v4572_v40 = vsel %vm646_vm0, %v16051_v14, 0.0 }
 0xa7f   : > { %v12686_v60 = vpop.f32.mrb[116].mxu0  ;;  %v4566_v50 = vsel %vm646_vm0, %v16044_v36, 0.0 }
 0xa80   : > { %4567 = vadd.xlane.f32.xlu1 %v4566_v50  ;;  %v4424_v12 = vpop.f32.mrb[117].mxu0  ;;  %v4509_v34 = vadd.f32 %v12686_v60, %v19508_v49  ;;  %v19519_v49 = vld [vmem:[#allocation19_spill] sm:$0xff] }
 0xa81   : > { %v4507_v58 = vadd.f32 %v4424_v12, %v19505_v44  ;;  %v12687_v20 = vpop.f32.mrb[118].mxu0 }
 0xa82   : > { %4570 = vadd.xlane.f32.xlu0 %v4569_v43  ;;  %v4427_v32 = vpop.f32.mrb[119].mxu0  ;;  %v4510_v25 = vadd.f32 %v12687_v20, %v19506_v11  ;;  %v16073_v24 = vadd.f32 %v16031_v52, %v4509_v34  ;;  %v19517_v20 = vld [vmem:[#allocation20_spill] sm:$0xff] }
 0xa83   : > { %v4508_v28 = vadd.f32 %v4427_v32, %v19507_v16  ;;  %v16060_v45 = vadd.f32 %v16031_v52, %v4507_v58 }
 0xa84   : > { %v16068_v27 = vadd.f32 %v16031_v52, %v4510_v25  ;;  %v4581_v0 = vsel %vm646_vm0, %v16073_v24, 0.0  ;;  %v19518_v25 = vld [vmem:[#allocation21_spill] sm:$0xff] }
 0xa85   : > { %v16063_v18 = vadd.f32 %v16031_v52, %v4508_v28  ;;  %v4575_v48 = vsel %vm646_vm0, %v16060_v45, 0.0 }
 0xa86   : > { %4573 = vadd.xlane.f32.xlu0 %v4572_v40  ;;  %v4584_v19 = vsel %vm646_vm0, %v16068_v27, 0.0 }
 0xa87   : > { %v12690_v55 = vpop.f32.mrb[120].mxu0  ;;  %v4578_v47 = vsel %vm646_vm0, %v16063_v18, 0.0 }
 0xa88   : > { %4579 = vadd.xlane.f32.xlu1 %v4578_v47  ;;  %v4440_v13 = vpop.f32.mrb[121].mxu0  ;;  %v4513_v51 = vadd.f32 %v12690_v55, %v19512_v29 }
 0xa89   : > { %v4511_v1 = vadd.f32 %v4440_v13, %v19509_v56  ;;  %v12691_v59 = vpop.f32.mrb[122].mxu0  ;;  %v19520_v13 = vld [vmem:[#allocation18_spill] sm:$0xff] }
 0xa8a   : > { %4576 = vadd.xlane.f32.xlu0 %v4575_v48  ;;  %v4443_v3 = vpop.f32.mrb[123].mxu0  ;;  %v4514_v10 = vadd.f32 %v12691_v59, %v19510_v54  ;;  %v16097_v53 = vadd.f32 %v16031_v52, %v4513_v51  ;;  %v19521_v54 = vld [vmem:[#allocation24_spill] sm:$0xff] }
 0xa8b   : > { %v4512_v30 = vadd.f32 %v4443_v3, %v19511_v46  ;;  %v16084_v38 = vadd.f32 %v16031_v52, %v4511_v1 }
 0xa8c   : > { %4585 = vadd.xlane.f32.xlu1 %v4584_v19  ;;  %v16092_v15 = vadd.f32 %v16031_v52, %v4514_v10  ;;  %v4593_v33 = vsel %vm646_vm0, %v16097_v53, 0.0  ;;  %v19522_v19 = vld [vmem:[#allocation22_spill] sm:$0xff] }
 0xa8d   : > { %v16087_v9 = vadd.f32 %v16031_v52, %v4512_v30  ;;  %v4587_v6 = vsel %vm646_vm0, %v16084_v38, 0.0 }
 0xa8e   : > { %4582 = vadd.xlane.f32.xlu0 %v4581_v0  ;;  %v4596_v8 = vsel %vm646_vm0, %v16092_v15, 0.0 }
 0xa8f   : > { %v12694_v4 = vpop.f32.mrb[124].mxu0  ;;  %v4590_v63 = vsel %vm646_vm0, %v16087_v9, 0.0 }
 0xa90   : > { %4591 = vadd.xlane.f32.xlu1 %v4590_v63  ;;  %v4456_v42 = vpop.f32.mrb[125].mxu0  ;;  %v4517_v37 = vadd.f32 %v12694_v4, %v19516_v62  ;;  %v19524_v63 = vld [vmem:[#allocation25_spill] sm:$0xff] }
 0xa91   : > { %v4515_v5 = vadd.f32 %v4456_v42, %v19513_v21  ;;  %v12695_v41 = vpop.f32.mrb[126].mxu0 }
 0xa92   : > { %4588 = vadd.xlane.f32.xlu0 %v4587_v6  ;;  %v4459_v35 = vpop.f32.mrb[127].mxu0  ;;  %v4518_v31 = vadd.f32 %v12695_v41, %v19514_v7  ;;  %v16121_v58 = vadd.f32 %v16031_v52, %v4517_v37  ;;  %v19526_v41 = vld [vmem:[#allocation23_spill] sm:$0xff] }
 0xa93   : > { %v4516_v23 = vadd.f32 %v4459_v35, %v19515_v17  ;;  %v16108_v39 = vadd.f32 %v16031_v52, %v4515_v5 }
 0xa94   : > { %4597 = vadd.xlane.f32.xlu1 %v4596_v8  ;;  %v16116_v60 = vadd.f32 %v16031_v52, %v4518_v31  ;;  %v4605_v1 = vsel %vm646_vm0, %v16121_v58, 0.0 }
 0xa95   : > { %v16111_v22 = vadd.f32 %v16031_v52, %v4516_v23  ;;  %v4599_v11 = vsel %vm646_vm0, %v16108_v39, 0.0 }
 0xa96   : > { %4594 = vadd.xlane.f32.xlu0 %v4593_v33  ;;  %v4608_v40 = vsel %vm646_vm0, %v16116_v60, 0.0 }
 0xa97   : > { %v12698_v50 = vpop.f32.mrb[128].mxu0  ;;  %v4602_v12 = vsel %vm646_vm0, %v16111_v22, 0.0 }
 0xa98   : > { %4603 = vadd.xlane.f32.xlu1 %v4602_v12  ;;  %v4472_v44 = vpop.f32.mrb[129].mxu0  ;;  %v4521_v43 = vadd.f32 %v12698_v50, %v19517_v20 }
 0xa99   : > { %v12699_v32 = vpop.f32.mrb[130].mxu0  ;;  %v4519_v56 = vadd.f32 %v4472_v44, %v19520_v13 }
 0xa9a   : > { %v4522_v16 = vadd.f32 %v12699_v32, %v19518_v25  ;;  %4600 = vadd.xlane.f32.xlu0 %v4599_v11  ;;  %v4475_v28 = vpop.f32.mrb[131].mxu0  ;;  %v16134_v47 = vadd.f32 %v16031_v52, %v4521_v43 }
 0xa9b   : > { %v4520_v34 = vadd.f32 %v4475_v28, %v19519_v49  ;;  %v16146_v30 = vadd.f32 %v16031_v52, %v4519_v56 }
 0xa9c   : > { %v16131_v55 = vadd.f32 %v16031_v52, %v4522_v16  ;;  %4609 = vadd.xlane.f32.xlu1 %v4608_v40  ;;  %v4617_v0 = vsel %vm646_vm0, %v16134_v47, 0.0 }
 0xa9d   : > { %v16142_v48 = vadd.f32 %v16031_v52, %v4520_v34  ;;  %v4611_v17 = vsel %vm646_vm0, %v16146_v30, 0.0 }
 0xa9e   : > { %4606 = vadd.xlane.f32.xlu0 %v4605_v1  ;;  %v4620_v59 = vsel %vm646_vm0, %v16131_v55, 0.0 }
 0xa9f   : > { %v12702_v3 = vpop.f32.mrb[132].mxu0  ;;  %v4614_v35 = vsel %vm646_vm0, %v16142_v48, 0.0 }
 0xaa0   : > { %v4525_v10 = vadd.f32 %v12702_v3, %v19521_v54  ;;  %4621 = vadd.xlane.f32.xlu1 %v4620_v59  ;;  %v4488_v46 = vpop.f32.mrb[133].mxu0 }
 0xaa1   : > { %v4523_v29 = vadd.f32 %v4488_v46, %v19522_v19  ;;  %v12703_v51 = vpop.f32.mrb[134].mxu0 }
 0xaa2   : > { %v16152_v4 = vadd.f32 %v16031_v52, %v4525_v10  ;;  %v4526_v42 = vadd.f32 %v12703_v51, %v19524_v63  ;;  %4618 = vadd.xlane.f32.xlu0 %v4617_v0  ;;  %v4491_v21 = vpop.f32.mrb[135].mxu0 }
 0xaa3   : > { %v16156_v5 = vadd.f32 %v16031_v52, %v4523_v29  ;;  %v4524_v6 = vadd.f32 %v4491_v21, %v19526_v41 }
 0xaa4   : > { %19523 = vst [vmem:[#allocation31_spill] sm:$0xff] %v16152_v4  ;;  %v16162_v7 = vadd.f32 %v16031_v52, %v4526_v42  ;;  %4615 = vadd.xlane.f32.xlu1 %v4614_v35  ;;  %v4629_v21 = vsel %vm646_vm0, %v16152_v4, 0.0 }
 0xaa5   : > { %19525 = vst [vmem:[#allocation33_spill] sm:$0xff] %v16156_v5  ;;  %v16165_v31 = vadd.f32 %v16031_v52, %v4524_v6  ;;  %v4623_v46 = vsel %vm646_vm0, %v16156_v5, 0.0 }
 0xaa6   : > { %19527 = vst [vmem:[#allocation29_spill] sm:$0xff] %v16162_v7  ;;  %4612 = vadd.xlane.f32.xlu0 %v4611_v17 }
 0xaa7   : > { %19528 = vst [vmem:[#allocation30_spill] sm:$0xff] %v16165_v31  ;;  %v4626_v41 = vsel %vm646_vm0, %v16165_v31, 0.0 }
 0xb0b   : > { %v4565_v23 = vpop.xlane.xlu0 %4564 }
 0xb0c   : > { %v4635_v8 = vmul.f32 0.015625, %v4565_v23 }
 0xb0d   : > { %v4568_v62 = vpop.xlane.xlu1 %4567 }
 0xb0e   : > { %v16170_v37 = vsub.f32 %v16036_v26, %v4635_v8  ;;  %v4636_v33 = vmul.f32 0.015625, %v4568_v62  ;;  %v4632_v62 = vsel %vm646_vm0, %v16162_v7, 0.0 }
 0xb0f   : > { %v4571_v50 = vpop.xlane.xlu0 %4570 }
 0xb10   : > { %v16173_v12 = vsub.f32 %v16044_v36, %v4636_v33  ;;  %v4637_v44 = vmul.f32 0.015625, %v4571_v50  ;;  %v4683_v52 = vmul.f32 %v16170_v37, %v16170_v37 }
 0xb12   : > { %v16178_v20 = vsub.f32 %v16040_v61, %v4637_v44  ;;  %v4707_v43 = vsel %vm646_vm0, %v4683_v52, 0.0  ;;  %v4684_v32 = vmul.f32 %v16173_v12, %v16173_v12 }
 0xb13   : > { %v4574_v11 = vpop.xlane.xlu0 %4573  ;;  %4708 = vadd.xlane.f32.xlu0 %v4707_v43 }
 0xb14   : > { %v4638_v25 = vmul.f32 0.015625, %v4574_v11  ;;  %v4710_v16 = vsel %vm646_vm0, %v4684_v32, 0.0  ;;  %v4685_v28 = vmul.f32 %v16178_v20, %v16178_v20 }
 0xb15   : > { %v4580_v49 = vpop.xlane.xlu1 %4579  ;;  %4711 = vadd.xlane.f32.xlu1 %v4710_v16 }
 0xb16   : > { %v16187_v34 = vsub.f32 %v16051_v14, %v4638_v25  ;;  %v4713_v40 = vsel %vm646_vm0, %v4685_v28, 0.0  ;;  %v4640_v59 = vmul.f32 0.015625, %v4580_v49 }
 0xb17   : > { %v4577_v13 = vpop.xlane.xlu0 %4576  ;;  %4714 = vadd.xlane.f32.xlu0 %v4713_v40 }
 0xb18   : > { %v4639_v56 = vmul.f32 0.015625, %v4577_v13  ;;  %v4686_v1 = vmul.f32 %v16187_v34, %v16187_v34  ;;  %v16199_v51 = vsub.f32 %v16063_v18, %v4640_v59 }
 0xb19   : > { %v4586_v3 = vpop.xlane.xlu1 %4585 }
 0xb1a   : > { %v16193_v54 = vsub.f32 %v16060_v45, %v4639_v56  ;;  %v4716_v10 = vsel %vm646_vm0, %v4686_v1, 0.0  ;;  %v4642_v0 = vmul.f32 0.015625, %v4586_v3  ;;  %v4688_v33 = vmul.f32 %v16199_v51, %v16199_v51 }
 0xb1b   : > { %v4583_v19 = vpop.xlane.xlu0 %4582  ;;  %4717 = vadd.xlane.f32.xlu1 %v4716_v10  ;;  %4624 = vadd.xlane.f32.xlu0 %v4623_v46 }
 0xb1c   : > { %v4641_v29 = vmul.f32 0.015625, %v4583_v19  ;;  %v4687_v6 = vmul.f32 %v16193_v54, %v16193_v54  ;;  %v16211_v23 = vsub.f32 %v16068_v27, %v4642_v0  ;;  %v4722_v28 = vsel %vm646_vm0, %v4688_v33, 0.0 }
 0xb1d   : > { %v4592_v63 = vpop.xlane.xlu1 %4591 }
 0xb1e   : > { %v16202_v42 = vsub.f32 %v16073_v24, %v4641_v29  ;;  %v4644_v50 = vmul.f32 0.015625, %v4592_v63  ;;  %v4719_v52 = vsel %vm646_vm0, %v4687_v6, 0.0  ;;  %v4690_v49 = vmul.f32 %v16211_v23, %v16211_v23 }
 0xb1f   : > { %v4589_v35 = vpop.xlane.xlu0 %4588  ;;  %4630 = vadd.xlane.f32.xlu0 %v4629_v21  ;;  %4627 = vadd.xlane.f32.xlu1 %v4626_v41 }
 0xb20   : > { %v4643_v17 = vmul.f32 0.015625, %v4589_v35  ;;  %v4689_v43 = vmul.f32 %v16202_v42, %v16202_v42  ;;  %v16227_v40 = vsub.f32 %v16087_v9, %v4644_v50  ;;  %v4728_v29 = vsel %vm646_vm0, %v4690_v49, 0.0 }
 0xb21   : > { %v4598_v8 = vpop.xlane.xlu1 %4597 }
 0xb22   : > { %v16218_v44 = vsub.f32 %v16084_v38, %v4643_v17  ;;  %v4646_v25 = vmul.f32 0.015625, %v4598_v8  ;;  %v4725_v56 = vsel %vm646_vm0, %v4689_v43, 0.0  ;;  %v4692_v41 = vmul.f32 %v16227_v40, %v16227_v40 }
 0xb23   : > { %v4595_v32 = vpop.xlane.xlu0 %4594  ;;  %4720 = vadd.xlane.f32.xlu0 %v4719_v52  ;;  %4633 = vadd.xlane.f32.xlu1 %v4632_v62 }
 0xb24   : > { %v4645_v11 = vmul.f32 0.015625, %v4595_v32  ;;  %v4691_v1 = vmul.f32 %v16218_v44, %v16218_v44  ;;  %v16236_v10 = vsub.f32 %v16092_v15, %v4646_v25  ;;  %v4734_v43 = vsel %vm646_vm0, %v4692_v41, 0.0 }
 0xb25   : > { %v4604_v16 = vpop.xlane.xlu1 %4603 }
 0xb26   : > { %v16230_v13 = vsub.f32 %v16097_v53, %v4645_v11  ;;  %v4648_v46 = vmul.f32 0.015625, %v4604_v16  ;;  %v4731_v63 = vsel %vm646_vm0, %v4691_v1, 0.0  ;;  %v4694_v33 = vmul.f32 %v16236_v10, %v16236_v10  ;;  %v13387_v11 = vld [vmem:[%s19316_s5] sm:$0xff]  }
 0xb27   : > { %v4601_v59 = vpop.xlane.xlu0 %4600  ;;  %4726 = vadd.xlane.f32.xlu0 %v4725_v56  ;;  %4723 = vadd.xlane.f32.xlu1 %v4722_v28 }
 0xb28   : > { %v4647_v3 = vmul.f32 0.015625, %v4601_v59  ;;  %v4693_v21 = vmul.f32 %v16230_v13, %v16230_v13  ;;  %v16248_v17 = vsub.f32 %v16111_v22, %v4648_v46  ;;  %12704 = vmatprep.subr.bf16.mxu1 %v13387_v11  ;;  %v4740_v49 = vsel %vm646_vm0, %v4694_v33, 0.0 }
 0xb29   : > { %v4610_v19 = vpop.xlane.xlu1 %4609  ;;  %12705 = vmatpush3.bf16.msra.mxu1 %v13387_v11 }
 0xb2a   : > { %v16240_v0 = vsub.f32 %v16108_v39, %v4647_v3  ;;  %v4650_v8 = vmul.f32 0.015625, %v4610_v19  ;;  %v4737_v52 = vsel %vm646_vm0, %v4693_v21, 0.0  ;;  %v4696_v56 = vmul.f32 %v16248_v17, %v16248_v17  ;;  %v13388_v19 = vld [vmem:[%s19316_s5 + $0x8] sm:$0xff]  }
 0xb2b   : > { %v4607_v6 = vpop.xlane.xlu0 %4606  ;;  %4732 = vadd.xlane.f32.xlu0 %v4731_v63  ;;  %4729 = vadd.xlane.f32.xlu1 %v4728_v29 }
 0xb2c   : > { %v4649_v35 = vmul.f32 0.015625, %v4607_v6  ;;  %v4695_v32 = vmul.f32 %v16240_v0, %v16240_v0  ;;  %v16263_v16 = vsub.f32 %v16116_v60, %v4650_v8  ;;  %12706 = vmatprep.subr.bf16.mxu1 %v13388_v19  ;;  %v4746_v41 = vsel %vm646_vm0, %v4696_v56, 0.0  ;;  %v13390_v56 = vld [vmem:[%s19316_s5 + $0x18] sm:$0xff]  }
 0xb2d   : > { %v4622_v62 = vpop.xlane.xlu1 %4621  ;;  %12707 = vmatpush3.bf16.msra.mxu1 %v13388_v19 }
 0xb2e   : > { %v16253_v50 = vsub.f32 %v16121_v58, %v4649_v35  ;;  %v4743_v3 = vsel %vm646_vm0, %v4695_v32, 0.0  ;;  %v4654_v21 = vmul.f32 0.015625, %v4622_v62  ;;  %v4698_v6 = vmul.f32 %v16263_v16, %v16263_v16  ;;  %v13389_v62 = vld [vmem:[%s19316_s5 + $0x10] sm:$0xff]  }
 0xb2f   : > { %v4619_v25 = vpop.xlane.xlu0 %4618  ;;  %4738 = vadd.xlane.f32.xlu0 %v4737_v52  ;;  %4735 = vadd.xlane.f32.xlu1 %v4734_v43 }
 0xb30   : > { %v4653_v1 = vmul.f32 0.015625, %v4619_v25  ;;  %v4697_v46 = vmul.f32 %v16253_v50, %v16253_v50  ;;  %v16293_v32 = vsub.f32 %v16131_v55, %v4654_v21  ;;  %12708 = vmatprep.subr.bf16.mxu1 %v13389_v62  ;;  %v4752_v25 = vsel %vm646_vm0, %v4698_v6, 0.0 }
 0xb31   : > { %v4616_v28 = vpop.xlane.xlu1 %4615  ;;  %12709 = vmatpush3.bf16.msra.mxu1 %v13389_v62 }
 0xb32   : > { %v4652_v59 = vmul.f32 0.015625, %v4616_v28  ;;  %v16278_v35 = vsub.f32 %v16134_v47, %v4653_v1  ;;  %v4749_v52 = vsel %vm646_vm0, %v4697_v46, 0.0  ;;  %12710 = vmatprep.subr.bf16.mxu1 %v13390_v56 }
 0xb33   : > { %v4613_v29 = vpop.xlane.xlu0 %4612  ;;  %4744 = vadd.xlane.f32.xlu0 %v4743_v3  ;;  %4741 = vadd.xlane.f32.xlu1 %v4740_v49  ;;  %v4702_v3 = vmul.f32 %v16293_v32, %v16293_v32 }
 0xb34   : > { %v4651_v63 = vmul.f32 0.015625, %v4613_v29  ;;  %v16281_v8 = vsub.f32 %v16142_v48, %v4652_v59  ;;  %v4701_v28 = vmul.f32 %v16278_v35, %v16278_v35 }
 0xb35   : > { %12711 = vmatpush3.bf16.msra.mxu1 %v13390_v56  ;;  %v4764_v46 = vsel %vm646_vm0, %v4702_v3, 0.0  ;;  %v11669_v56 = vld [vmem:[%s19318_s7 + $0x4] ss:$8 sm:$0x3] }
 0xb36   : > { %v16284_v33 = vsub.f32 %v16146_v30, %v4651_v63  ;;  %v4700_v49 = vmul.f32 %v16281_v8, %v16281_v8  ;;  %v4761_v1 = vsel %vm646_vm0, %v4701_v28, 0.0 }
 0xb37   : > { %4750 = vadd.xlane.f32.xlu0 %v4749_v52  ;;  %4747 = vadd.xlane.f32.xlu1 %v4746_v41 }
 0xb38   : > { %v4699_v43 = vmul.f32 %v16284_v33, %v16284_v33  ;;  %v4758_v59 = vsel %vm646_vm0, %v4700_v49, 0.0 }
 0xb3a   : > { %v4755_v11 = vsel %vm646_vm0, %v4699_v43, 0.0 }
 0xb3b   : > { %4756 = vadd.xlane.f32.xlu0 %v4755_v11  ;;  %4753 = vadd.xlane.f32.xlu1 %v4752_v25 }
 0xb3f   : > { %4762 = vadd.xlane.f32.xlu0 %v4761_v1  ;;  %4759 = vadd.xlane.f32.xlu1 %v4758_v59 }
 0xb43   : > { %4765 = vadd.xlane.f32.xlu1 %v4764_v46 }
 0xba0   : > { %v4709_v19 = vpop.xlane.xlu0 %4708 }
 0xba1   : > { %v4779_v29 = vmul.f32 0.015625, %v4709_v19 }
 0xba2   : > { %v4712_v63 = vpop.xlane.xlu1 %4711 }
 0xba3   : > { %v4803_v21 = vadd.f32 1e-12, %v4779_v29  ;;  %v4780_v41 = vmul.f32 0.015625, %v4712_v63 }
 0xba4   : > { %v4715_v6 = vpop.xlane.xlu0 %4714 }
 0xba5   : > { %13803 = vrsqrt.f32 %v4803_v21  ;;  %v4804_v52 = vadd.f32 1e-12, %v4780_v41  ;;  %v4781_v62 = vmul.f32 0.015625, %v4715_v6  ;;  %v16318_v21 = vrot.slane %v11669_v56, %v19500_v2 }
 0xba7   : > { %13805 = vrsqrt.f32 %v4804_v52  ;;  %v4805_v43 = vadd.f32 1e-12, %v4781_v62 }
 0xba8   : > { %v4718_v11 = vpop.xlane.xlu1 %4717  ;;  %v4625_v25 = vpop.xlane.xlu0 %4624 }
 0xba9   : > { %13807 = vrsqrt.f32 %v4805_v43  ;;  %v4782_v28 = vmul.f32 0.015625, %v4718_v11  ;;  %v4655_v49 = vmul.f32 0.015625, %v4625_v25  ;;  %v11670_v43 = vld [vmem:[%s19318_s7 + $0x5] ss:$8 sm:$0x3] }
 0xbab   : > { %v4806_v1 = vadd.f32 1e-12, %v4782_v28  ;;  %v16313_v59 = vsub.f32 %v16156_v5, %v4655_v49 }
 0xbac   : > { %v4631_v3 = vpop.xlane.xlu0 %4630  ;;  %v4628_v46 = vpop.xlane.xlu1 %4627 }
 0xbad   : > { %13809 = vrsqrt.f32 %v4806_v1  ;;  %v4657_v19 = vmul.f32 0.015625, %v4631_v3  ;;  %v4656_v29 = vmul.f32 0.015625, %v4628_v46  ;;  %v4703_v63 = vmul.f32 %v16313_v59, %v16313_v59 }
 0xbaf   : > { %v13804_v41 = vpop.eup %13803  ;;  %v16321_v6 = vsub.f32 %v16152_v4, %v4657_v19  ;;  %v16324_v52 = vsub.f32 %v16165_v31, %v4656_v29  ;;  %v4767_v62 = vsel %vm646_vm0, %v4703_v63, 0.0  ;;  %v16338_v63 = vrot.slane %v11670_v43, %v19500_v2 }
 0xbb0   : > { %4768 = vadd.xlane.f32.xlu0 %v4767_v62  ;;  %v4721_v11 = vpop.xlane.xlu0 %4720  ;;  %v4634_v25 = vpop.xlane.xlu1 %4633  ;;  %v4851_v28 = vmul.f32 %v13804_v41, %v16170_v37 }
 0xbb1   : > { %v13806_v49 = vpop.eup %13805  ;;  %v4783_v56 = vmul.f32 0.015625, %v4721_v11  ;;  %v4658_v1 = vmul.f32 0.015625, %v4634_v25  ;;  %v4705_v3 = vmul.f32 %v16321_v6, %v16321_v6  ;;  %v4704_v46 = vmul.f32 %v16324_v52, %v16324_v52 }
 0xbb2   : > { %v4852_v19 = vmul.f32 %v13806_v49, %v16173_v12  ;;  %v4881_v29 = vmul.f32 %v16318_v21, %v4851_v28 }
 0xbb3   : > { %v13808_v62 = vpop.eup %13807  ;;  %v4807_v57 = vadd.f32 1e-12, %v4783_v56  ;;  %v16341_v37 = vsub.f32 %v16162_v7, %v4658_v1  ;;  %v4773_v41 = vsel %vm646_vm0, %v4705_v3, 0.0  ;;  %v4770_v11 = vsel %vm646_vm0, %v4704_v46, 0.0 }
 0xbb4   : > { %v4853_v25 = vmul.f32 %v13808_v62, %v16178_v20  ;;  %4774 = vadd.xlane.f32.xlu0 %v4773_v41  ;;  %v4727_v4 = vpop.xlane.xlu0 %4726  ;;  %4771 = vadd.xlane.f32.xlu1 %v4770_v11  ;;  %v4724_v12 = vpop.xlane.xlu1 %4723  ;;  %v4882_v28 = vmul.f32 %v16318_v21, %v4852_v19  ;;  %v4911_v1 = vadd.f32 %v16338_v63, %v4881_v29 }
 0xbb5   : > { %13811 = vrsqrt.f32 %v4807_v57  ;;  %v4785_v43 = vmul.f32 0.015625, %v4727_v4  ;;  %v4784_v49 = vmul.f32 0.015625, %v4724_v12  ;;  %v4706_v56 = vmul.f32 %v16341_v37, %v16341_v37 }
 0xbb6   : > { %v4912_v3 = vadd.f32 %v16338_v63, %v4882_v28  ;;  %v4883_v62 = vmul.f32 %v16318_v21, %v4853_v25 }
 0xbb7   : > { %v13810_v7 = vpop.eup %13809  ;;  %v4809_v46 = vadd.f32 1e-12, %v4785_v43  ;;  %v4808_v31 = vadd.f32 1e-12, %v4784_v49  ;;  %v4776_v20 = vsel %vm646_vm0, %v4706_v56, 0.0 }
 0xbb8   : > { %v4854_v41 = vmul.f32 %v13810_v7, %v16187_v34  ;;  %v4733_v19 = vpop.xlane.xlu0 %4732  ;;  %4777 = vadd.xlane.f32.xlu1 %v4776_v20  ;;  %v4730_v57 = vpop.xlane.xlu1 %4729  ;;  %v4935_v4 = vpack.c.bf16 %v4912_v3, %v4911_v1  ;;  %v4913_v25 = vadd.f32 %v16338_v63, %v4883_v62 }
 0xbb9   : > { %13813 = vrsqrt.f32 %v4809_v46  ;;  %v4787_v11 = vmul.f32 0.015625, %v4733_v19  ;;  %v4786_v12 = vmul.f32 0.015625, %v4730_v57 }
 0xbba   : > { %v4884_v29 = vmul.f32 %v16318_v21, %v4854_v41  ;;  %13815 = vrsqrt.f32 %v4808_v31  ;;  %12712 = vmatprep.mubr.msk.bf16.mxu1 %vm646_vm0, %v4935_v4 }
 0xbbb   : > { %v4811_v28 = vadd.f32 1e-12, %v4787_v11  ;;  %v4810_v43 = vadd.f32 1e-12, %v4786_v12 }
 0xbbc   : > { %v4739_v49 = vpop.xlane.xlu0 %4738  ;;  %v4736_v56 = vpop.xlane.xlu1 %4735  ;;  %v4914_v7 = vadd.f32 %v16338_v63, %v4884_v29 }
 0xbbd   : > { %13817 = vrsqrt.f32 %v4811_v28  ;;  %v4789_v34 = vmul.f32 0.015625, %v4739_v49  ;;  %v4788_v20 = vmul.f32 0.015625, %v4736_v56 }
 0xbbe   : > { %13819 = vrsqrt.f32 %v4810_v43  ;;  %v4936_v1 = vpack.c.bf16 %v4914_v7, %v4913_v25 }
 0xbbf   : > { %v13812_v3 = vpop.eup %13811  ;;  %v4813_v46 = vadd.f32 1e-12, %v4789_v34  ;;  %v4812_v19 = vadd.f32 1e-12, %v4788_v20 }
 0xbc0   : > { %12713 = vmatmul.mubr.msk.bf16.vlgmr.msra.gmra.mrb[112].mxu1 %vm646_vm0, %v4936_v1  ;;  %v4745_v31 = vpop.xlane.xlu0 %4744  ;;  %v4742_v41 = vpop.xlane.xlu1 %4741  ;;  %v4855_v57 = vmul.f32 %v13812_v3, %v16193_v54 }
 0xbc1   : > { %13821 = vrsqrt.f32 %v4813_v46  ;;  %v4791_v4 = vmul.f32 0.015625, %v4745_v31  ;;  %v4790_v11 = vmul.f32 0.015625, %v4742_v41 }
 0xbc2   : > { %13823 = vrsqrt.f32 %v4812_v19  ;;  %v4885_v56 = vmul.f32 %v16318_v21, %v4855_v57 }
 0xbc3   : > { %v13814_v62 = vpop.eup %13813  ;;  %v4815_v12 = vadd.f32 1e-12, %v4791_v4  ;;  %v4814_v29 = vadd.f32 1e-12, %v4790_v11 }
 0xbc4   : > { %v13816_v28 = vpop.eup %13815  ;;  %v4751_v49 = vpop.xlane.xlu0 %4750  ;;  %v4857_v54 = vmul.f32 %v13814_v62, %v16202_v42  ;;  %v4915_v4 = vadd.f32 %v16338_v63, %v4885_v56 }
 0xbc5   : > { %v4748_v43 = vpop.xlane.xlu1 %4747  ;;  %13825 = vrsqrt.f32 %v4815_v12  ;;  %v4793_v25 = vmul.f32 0.015625, %v4751_v49  ;;  %v4856_v34 = vmul.f32 %v13816_v28, %v16199_v51 }
 0xbc6   : > { %v4792_v7 = vmul.f32 0.015625, %v4748_v43  ;;  %13827 = vrsqrt.f32 %v4814_v29  ;;  %v4887_v62 = vmul.f32 %v16318_v21, %v4857_v54 }
 0xbc7   : > { %v13818_v20 = vpop.eup %13817  ;;  %v4817_v1 = vadd.f32 1e-12, %v4793_v25  ;;  %v4886_v46 = vmul.f32 %v16318_v21, %v4856_v34 }
 0xbc8   : > { %v4816_v3 = vadd.f32 1e-12, %v4792_v7  ;;  %v13820_v19 = vpop.eup %13819  ;;  %v4757_v31 = vpop.xlane.xlu0 %4756  ;;  %v4859_v57 = vmul.f32 %v13818_v20, %v16218_v44 }
 0xbc9   : > { %v4754_v41 = vpop.xlane.xlu1 %4753  ;;  %13829 = vrsqrt.f32 %v4817_v1  ;;  %v4795_v11 = vmul.f32 0.015625, %v4757_v31  ;;  %v4916_v51 = vadd.f32 %v16338_v63, %v4886_v46  ;;  %v4858_v42 = vmul.f32 %v13820_v19, %v16211_v23 }
 0xbca   : > { %v4794_v12 = vmul.f32 0.015625, %v4754_v41  ;;  %13831 = vrsqrt.f32 %v4816_v3  ;;  %v4889_v44 = vmul.f32 %v16318_v21, %v4859_v57  ;;  %v4917_v3 = vadd.f32 %v16338_v63, %v4887_v62 }
 0xbcb   : > { %v13822_v29 = vpop.eup %13821  ;;  %v4819_v28 = vadd.f32 1e-12, %v4795_v11  ;;  %v4937_v43 = vpack.c.bf16 %v4916_v51, %v4915_v4  ;;  %v4888_v56 = vmul.f32 %v16318_v21, %v4858_v42 }
 0xbcc   : > { %v4818_v49 = vadd.f32 1e-12, %v4794_v12  ;;  %v13824_v25 = vpop.eup %13823  ;;  %v4763_v7 = vpop.xlane.xlu0 %4762  ;;  %v4861_v20 = vmul.f32 %v13822_v29, %v16230_v13  ;;  %v4919_v12 = vadd.f32 %v16338_v63, %v4889_v44 }
 0xbcd   : > { %v4760_v34 = vpop.xlane.xlu1 %4759  ;;  %13833 = vrsqrt.f32 %v4819_v28  ;;  %v4797_v1 = vmul.f32 0.015625, %v4763_v7  ;;  %12716 = vmatprep.mubr.msk.bf16.mxu1 %vm646_vm0, %v4937_v43  ;;  %v4860_v54 = vmul.f32 %v13824_v25, %v16227_v40  ;;  %v4918_v46 = vadd.f32 %v16338_v63, %v4888_v56 }
 0xbce   : > { %v4796_v23 = vmul.f32 0.015625, %v4760_v34  ;;  %13835 = vrsqrt.f32 %v4818_v49  ;;  %v4891_v51 = vmul.f32 %v16318_v21, %v4861_v20 }
 0xbcf   : > { %v13826_v19 = vpop.eup %13825  ;;  %v4821_v31 = vadd.f32 1e-12, %v4797_v1  ;;  %v4890_v4 = vmul.f32 %v16318_v21, %v4860_v54  ;;  %v4938_v11 = vpack.c.bf16 %v4918_v46, %v4917_v3 }
 0xbd0   : > { %v4820_v41 = vadd.f32 1e-12, %v4796_v23  ;;  %v13828_v57 = vpop.eup %13827  ;;  %v4863_v42 = vmul.f32 %v13826_v19, %v16240_v0  ;;  %v4921_v34 = vadd.f32 %v16338_v63, %v4891_v51 }
 0xbd1   : > { %v4766_v13 = vpop.xlane.xlu1 %4765  ;;  %13837 = vrsqrt.f32 %v4821_v31  ;;  %v4920_v62 = vadd.f32 %v16338_v63, %v4890_v4  ;;  %v4862_v29 = vmul.f32 %v13828_v57, %v16236_v10  ;;  %12717 = vmatmul.mubr.msk.bf16.gmra.mrb[116].mxu1 %vm646_vm0, %v4938_v11 }
 0xbd2   : > { %v4798_v40 = vmul.f32 0.015625, %v4766_v13  ;;  %13839 = vrsqrt.f32 %v4820_v41  ;;  %v4893_v56 = vmul.f32 %v16318_v21, %v4863_v42 }
 0xbd3   : > { %v13830_v28 = vpop.eup %13829  ;;  %v4939_v43 = vpack.c.bf16 %v4920_v62, %v4919_v12  ;;  %v4892_v25 = vmul.f32 %v16318_v21, %v4862_v29 }
 0xbd4   : > { %v4822_v49 = vadd.f32 1e-12, %v4798_v40  ;;  %v13832_v7 = vpop.eup %13831  ;;  %v4865_v44 = vmul.f32 %v13830_v28, %v16253_v50  ;;  %v4923_v3 = vadd.f32 %v16338_v63, %v4893_v56  ;;  %v13393_v56 = vld [vmem:[%s19317_s6 + $0x10] sm:$0xff]  }
 0xbd5   : > { %12720 = vmatprep.mubr.msk.bf16.mxu1 %vm646_vm0, %v4939_v43  ;;  %v4922_v0 = vadd.f32 %v16338_v63, %v4892_v25  ;;  %v4864_v10 = vmul.f32 %v13832_v7, %v16248_v17 }
 0xbd6   : > { %13841 = vrsqrt.f32 %v4822_v49  ;;  %v4895_v31 = vmul.f32 %v16318_v21, %v4865_v44  ;;  %v13396_v44 = vld [vmem:[%s19317_s6 + $0x28] sm:$0xff]  }
 0xbd7   : > { %v13834_v20 = vpop.eup %13833  ;;  %v4940_v1 = vpack.c.bf16 %v4922_v0, %v4921_v34  ;;  %v4894_v23 = vmul.f32 %v16318_v21, %v4864_v10  ;;  %v13392_v34 = vld [vmem:[%s19317_s6 + $0x8] sm:$0xff]   ;;  %v13394_v0 = vld [vmem:[%s19317_s6 + $0x18] sm:$0xff]   ;;  %v13395_v10 = vld [vmem:[%s19317_s6 + $0x20] sm:$0xff]  }
 0xbd8   : > { %v13836_v54 = vpop.eup %13835  ;;  %v4867_v41 = vmul.f32 %v13834_v20, %v16284_v33  ;;  %v4925_v13 = vadd.f32 %v16338_v63, %v4895_v31  ;;  %v13397_v20 = vld [vmem:[%s19317_s6 + $0x30] sm:$0xff]  }
 0xbd9   : > { %v4924_v46 = vadd.f32 %v16338_v63, %v4894_v23  ;;  %v4866_v19 = vmul.f32 %v13836_v54, %v16263_v16  ;;  %12721 = vmatmul.mubr.msk.bf16.gmra.mrb[120].mxu1 %vm646_vm0, %v4940_v1  ;;  %v13398_v1 = vld [vmem:[%s19317_s6 + $0x38] sm:$0xff]  }
 0xbda   : > { %v4897_v51 = vmul.f32 %v16318_v21, %v4867_v41 }
 0xbdb   : > { %v13838_v17 = vpop.eup %13837  ;;  %v4941_v4 = vpack.c.bf16 %v4924_v46, %v4923_v3  ;;  %v4896_v50 = vmul.f32 %v16318_v21, %v4866_v19 }
 0xbdc   : > { %v13840_v57 = vpop.eup %13839  ;;  %v4869_v11 = vmul.f32 %v13838_v17, %v16278_v35  ;;  %v4927_v35 = vadd.f32 %v16338_v63, %v4897_v51 }
 0xbdd   : > { %12724 = vmatprep.mubr.msk.bf16.mxu1 %vm646_vm0, %v4941_v4  ;;  %v4926_v12 = vadd.f32 %v16338_v63, %v4896_v50  ;;  %v4868_v16 = vmul.f32 %v13840_v57, %v16281_v8 }
 0xbde   : > { %v4899_v29 = vmul.f32 %v16318_v21, %v4869_v11 }
 0xbdf   : > { %v4942_v42 = vpack.c.bf16 %v4926_v12, %v4925_v13  ;;  %v4898_v40 = vmul.f32 %v16318_v21, %v4868_v16 }
 0xbe0   : > { %v13842_v33 = vpop.eup %13841  ;;  %v4929_v8 = vadd.f32 %v16338_v63, %v4899_v29 }
 0xbe1   : > { %v4870_v62 = vmul.f32 %v13842_v33, %v16293_v32  ;;  %v4928_v28 = vadd.f32 %v16338_v63, %v4898_v40  ;;  %12725 = vmatmul.mubr.msk.bf16.gmra.mrb[124].mxu1 %vm646_vm0, %v4942_v42  ;;  %v13391_v32 = vld [vmem:[%s19317_s6] sm:$0xff]  }
 0xbe2   : > { %12736 = vmatprep.subr.bf16.mxu1 %v13391_v32 }
 0xbe3   : > { %v4900_v49 = vmul.f32 %v16318_v21, %v4870_v62  ;;  %v4943_v43 = vpack.c.bf16 %v4928_v28, %v4927_v35  ;;  %12737 = vmatpush3.bf16.msra.mxu1 %v13391_v32 }
 0xbe4   : > { %12738 = vmatprep.subr.bf16.mxu1 %v13392_v34 }
 0xbe5   : > { %v4930_v25 = vadd.f32 %v16338_v63, %v4900_v49  ;;  %12728 = vmatprep.mubr.msk.bf16.mxu1 %vm646_vm0, %v4943_v43 }
 0xbe7   : > { %v4944_v7 = vpack.c.bf16 %v4930_v25, %v4929_v8  ;;  %12739 = vmatpush3.bf16.msra.mxu1 %v13392_v34 }
 0xbe8   : > { %12740 = vmatprep.subr.bf16.mxu1 %v13393_v56 }
 0xbe9   : > { %12729 = vmatmul.mubr.msk.bf16.gmra.mrb[128].mxu1 %vm646_vm0, %v4944_v7 }
 0xbeb   : > { %12741 = vmatpush3.bf16.msra.mxu1 %v13393_v56 }
 0xbec   : > { %12742 = vmatprep.subr.bf16.mxu1 %v13394_v0 }
 0xbef   : > { %12743 = vmatpush3.bf16.msra.mxu1 %v13394_v0 }
 0xbf0   : > { %12744 = vmatprep.subr.bf16.mxu1 %v13395_v10 }
 0xbf3   : > { %12745 = vmatpush3.bf16.msra.mxu1 %v13395_v10 }
 0xbf4   : > { %12746 = vmatprep.subr.bf16.mxu1 %v13396_v44 }
 0xbf7   : > { %12747 = vmatpush3.bf16.msra.mxu1 %v13396_v44 }
 0xbf8   : > { %12748 = vmatprep.subr.bf16.mxu1 %v13397_v20 }
 0xbfb   : > { %12749 = vmatpush3.bf16.msra.mxu1 %v13397_v20 }
 0xbfc   : > { %12750 = vmatprep.subr.bf16.mxu1 %v13398_v1 }
 0xbff   : > { %12751 = vmatpush3.bf16.msra.mxu1 %v13398_v1 }
 0xc3d   : > { %v4769_v23 = vpop.xlane.xlu0 %4768 }
 0xc3e   : > { %v4799_v54 = vmul.f32 0.015625, %v4769_v23 }
 0xc40   : > { %v4823_v3 = vadd.f32 1e-12, %v4799_v54 }
 0xc41   : > { %v4775_v46 = vpop.xlane.xlu0 %4774  ;;  %v4772_v19 = vpop.xlane.xlu1 %4771 }
 0xc42   : > { %13843 = vrsqrt.f32 %v4823_v3  ;;  %v4801_v31 = vmul.f32 0.015625, %v4775_v46  ;;  %v4800_v41 = vmul.f32 0.015625, %v4772_v19 }
 0xc44   : > { %v4825_v17 = vadd.f32 1e-12, %v4801_v31  ;;  %v4824_v4 = vadd.f32 1e-12, %v4800_v41 }
 0xc45   : > { %v4778_v50 = vpop.xlane.xlu1 %4777 }
 0xc46   : > { %13845 = vrsqrt.f32 %v4825_v17  ;;  %v4802_v57 = vmul.f32 0.015625, %v4778_v50 }
 0xc47   : > { %13847 = vrsqrt.f32 %v4824_v4 }
 0xc48   : > { %v4826_v11 = vadd.f32 1e-12, %v4802_v57 }
 0xc4a   : > { %13849 = vrsqrt.f32 %v4826_v11 }
 0xc4c   : > { %v13844_v13 = vpop.eup %13843 }
 0xc4d   : > { %v4871_v12 = vmul.f32 %v13844_v13, %v16313_v59 }
 0xc4f   : > { %v4901_v40 = vmul.f32 %v16318_v21, %v4871_v12 }
 0xc50   : > { %v13846_v16 = vpop.eup %13845 }
 0xc51   : > { %v13848_v51 = vpop.eup %13847  ;;  %v4873_v33 = vmul.f32 %v13846_v16, %v16321_v6  ;;  %v4931_v49 = vadd.f32 %v16338_v63, %v4901_v40 }
 0xc52   : > { %v4872_v42 = vmul.f32 %v13848_v51, %v16324_v52 }
 0xc53   : > { %v4903_v28 = vmul.f32 %v16318_v21, %v4873_v33 }
 0xc54   : > { %v13850_v62 = vpop.eup %13849  ;;  %v4902_v29 = vmul.f32 %v16318_v21, %v4872_v42 }
 0xc55   : > { %v4874_v35 = vmul.f32 %v13850_v62, %v16341_v37  ;;  %v4933_v6 = vadd.f32 %v16338_v63, %v4903_v28  ;;  %v11671_v37 = vld [vmem:[%s19318_s7 + $0x6] ss:$8 sm:$0x3] }
 0xc56   : > { %v4932_v43 = vadd.f32 %v16338_v63, %v4902_v29  ;;  %v16457_v7 = vrot.slane %v11671_v37, %v19500_v2 }
 0xc57   : > { %v4904_v59 = vmul.f32 %v16318_v21, %v4874_v35 }
 0xc58   : > { %v4945_v8 = vpack.c.bf16 %v4932_v43, %v4931_v49 }
 0xc59   : > { %v4934_v52 = vadd.f32 %v16338_v63, %v4904_v59 }
 0xc5a   : > { %12732 = vmatprep.mubr.msk.bf16.mxu1 %vm646_vm0, %v4945_v8 }
 0xc5b   : > { %v4946_v25 = vpack.c.bf16 %v4934_v52, %v4933_v6 }
 0xc5d   : > { %12733 = vmatmul.mubr.msk.bf16.gmra.mrb[132].mxu1 %vm646_vm0, %v4946_v25 }
 0xc93   : > { %v12714_v32 = vpop.f32.mrb[112].mxu1 }
 0xc94   : > { %v16460_v21 = vadd.f32 %v12714_v32, %v16457_v7  ;;  %v5057_v34 = vpop.f32.mrb[113].mxu1 }
 0xc95   : > { %v16463_v56 = vadd.f32 %v5057_v34, %v16457_v7  ;;  %v12715_v63 = vpop.f32.mrb[114].mxu1 }
 0xc96   : > { %v5154_v0 = vmul.f32 %v16460_v21, %v16460_v21  ;;  %v16468_v10 = vadd.f32 %v12715_v63, %v16457_v7  ;;  %v5060_v44 = vpop.f32.mrb[115].mxu1 }
 0xc97   : > { %v5152_v20 = vmul.f32 %v16463_v56, %v16463_v56  ;;  %v16473_v1 = vadd.f32 %v5060_v44, %v16457_v7 }
 0xc98   : > { %v5178_v23 = vmul.f32 %v5154_v0, %v16460_v21  ;;  %v5155_v54 = vmul.f32 %v16468_v10, %v16468_v10 }
 0xc99   : > { %v5176_v3 = vmul.f32 %v5152_v20, %v16463_v56  ;;  %v5153_v46 = vmul.f32 %v16473_v1, %v16473_v1 }
 0xc9a   : > { %v5202_v19 = vmul.f32 0.044715, %v5178_v23  ;;  %v5179_v31 = vmul.f32 %v5155_v54, %v16468_v10 }
 0xc9b   : > { %v5200_v41 = vmul.f32 0.044715, %v5176_v3  ;;  %v5177_v17 = vmul.f32 %v5153_v46, %v16473_v1 }
 0xc9c   : > { %v5226_v4 = vadd.f32 %v5202_v19, %v16460_v21  ;;  %v5203_v50 = vmul.f32 0.044715, %v5179_v31 }
 0xc9d   : > { %v5224_v57 = vadd.f32 %v5200_v41, %v16463_v56  ;;  %v5201_v11 = vmul.f32 0.044715, %v5177_v17 }
 0xc9e   : > { %v5250_v13 = vmul.f32 0.7978846, %v5226_v4  ;;  %v5227_v12 = vadd.f32 %v5203_v50, %v16468_v10 }
 0xc9f   : > { %v5248_v16 = vmul.f32 0.7978846, %v5224_v57  ;;  %v5225_v51 = vadd.f32 %v5201_v11, %v16473_v1 }
 0xca0   : > { %13851 = vtanh.f32 %v5250_v13  ;;  %v5251_v33 = vmul.f32 0.7978846, %v5227_v12 }
 0xca1   : > { %13853 = vtanh.f32 %v5248_v16  ;;  %v5249_v42 = vmul.f32 0.7978846, %v5225_v51 }
 0xca2   : > { %13855 = vtanh.f32 %v5251_v33 }
 0xca3   : > { %13857 = vtanh.f32 %v5249_v42 }
 0xca4   : > { %v12718_v40 = vpop.f32.mrb[116].mxu1 }
 0xca5   : > { %v16488_v62 = vadd.f32 %v12718_v40, %v16457_v7  ;;  %v5073_v29 = vpop.f32.mrb[117].mxu1 }
 0xca6   : > { %v16491_v35 = vadd.f32 %v5073_v29, %v16457_v7  ;;  %v12719_v28 = vpop.f32.mrb[118].mxu1 }
 0xca7   : > { %v5158_v49 = vmul.f32 %v16488_v62, %v16488_v62  ;;  %v16496_v43 = vadd.f32 %v12719_v28, %v16457_v7  ;;  %v5076_v59 = vpop.f32.mrb[119].mxu1 }
 0xca8   : > { %v5156_v8 = vmul.f32 %v16491_v35, %v16491_v35  ;;  %v16501_v6 = vadd.f32 %v5076_v59, %v16457_v7 }
 0xca9   : > { %v5182_v25 = vmul.f32 %v5158_v49, %v16488_v62  ;;  %v5159_v37 = vmul.f32 %v16496_v43, %v16496_v43 }
 0xcaa   : > { %v13852_v52 = vpop.eup %13851  ;;  %v5180_v63 = vmul.f32 %v5156_v8, %v16491_v35  ;;  %v5157_v0 = vmul.f32 %v16501_v6, %v16501_v6 }
 0xcab   : > { %v13854_v32 = vpop.eup %13853  ;;  %v5298_v34 = vadd.f32 1.0, %v13852_v52  ;;  %v5206_v20 = vmul.f32 0.044715, %v5182_v25  ;;  %v5183_v23 = vmul.f32 %v5159_v37, %v16496_v43 }
 0xcac   : > { %v13856_v44 = vpop.eup %13855  ;;  %v5296_v54 = vadd.f32 1.0, %v13854_v32  ;;  %v5204_v31 = vmul.f32 0.044715, %v5180_v63  ;;  %v5181_v41 = vmul.f32 %v5157_v0, %v16501_v6  ;;  %v12722_v17 = vpop.f32.mrb[120].mxu1 }
 0xcad   : > { %v13858_v3 = vpop.eup %13857  ;;  %v5322_v46 = vmul.f32 0.5, %v5298_v34  ;;  %v5299_v19 = vadd.f32 1.0, %v13856_v44  ;;  %v5230_v4 = vadd.f32 %v5206_v20, %v16488_v62  ;;  %v5207_v50 = vmul.f32 0.044715, %v5183_v23  ;;  %v5089_v11 = vpop.f32.mrb[121].mxu1 }
 0xcae   : > { %v16513_v57 = vadd.f32 %v12722_v17, %v16457_v7  ;;  %v5297_v13 = vadd.f32 1.0, %v13858_v3  ;;  %v5228_v51 = vadd.f32 %v5204_v31, %v16491_v35  ;;  %v5205_v33 = vmul.f32 0.044715, %v5181_v41  ;;  %v12723_v42 = vpop.f32.mrb[122].mxu1 }
 0xcaf   : > { %v16516_v12 = vmul.f32 %v5322_v46, %v16460_v21  ;;  %v5323_v16 = vmul.f32 0.5, %v5299_v19  ;;  %v5254_v40 = vmul.f32 0.7978846, %v5230_v4  ;;  %v5231_v29 = vadd.f32 %v5207_v50, %v16496_v43  ;;  %v5092_v59 = vpop.f32.mrb[123].mxu1 }
 0xcb0   : > { %v5162_v28 = vmul.f32 %v16513_v57, %v16513_v57  ;;  %v16523_v49 = vadd.f32 %v5089_v11, %v16457_v7  ;;  %v5252_v21 = vmul.f32 0.7978846, %v5228_v51  ;;  %v5229_v52 = vadd.f32 %v5205_v33, %v16501_v6 }
 0xcb1   : > { %v16526_v8 = vmul.f32 %v5323_v16, %v16468_v10  ;;  %v16530_v25 = vadd.f32 %v12723_v42, %v16457_v7  ;;  %13859 = vtanh.f32 %v5254_v40  ;;  %v5255_v37 = vmul.f32 0.7978846, %v5231_v29 }
 0xcb2   : > { %v5186_v32 = vmul.f32 %v5162_v28, %v16513_v57  ;;  %v5160_v34 = vmul.f32 %v16523_v49, %v16523_v49  ;;  %13861 = vtanh.f32 %v5252_v21  ;;  %v5253_v0 = vmul.f32 0.7978846, %v5229_v52 }
 0xcb3   : > { %v5369_v63 = vpack.c.bf16 %v16526_v8, %v16516_v12  ;;  %v5163_v10 = vmul.f32 %v16530_v25, %v16530_v25  ;;  %13863 = vtanh.f32 %v5255_v37  ;;  %v16541_v23 = vadd.f32 %v5092_v59, %v16457_v7 }
 0xcb4   : > { %v5210_v44 = vmul.f32 0.044715, %v5186_v32  ;;  %v5184_v20 = vmul.f32 %v5160_v34, %v16523_v49  ;;  %13865 = vtanh.f32 %v5253_v0  ;;  %v12726_v46 = vpop.f32.mrb[124].mxu1  ;;  %v5320_v19 = vmul.f32 0.5, %v5296_v54 }
 0xcb5   : > { %v5187_v3 = vmul.f32 %v5163_v10, %v16530_v25  ;;  %v5321_v31 = vmul.f32 0.5, %v5297_v13  ;;  %v5161_v4 = vmul.f32 %v16541_v23, %v16541_v23  ;;  %v16548_v50 = vadd.f32 %v12726_v46, %v16457_v7  ;;  %v5105_v11 = vpop.f32.mrb[125].mxu1 }
 0xcb6   : > { %v5234_v41 = vadd.f32 %v5210_v44, %v16513_v57  ;;  %v5208_v17 = vmul.f32 0.044715, %v5184_v20  ;;  %v16551_v16 = vadd.f32 %v5105_v11, %v16457_v7  ;;  %v12727_v51 = vpop.f32.mrb[126].mxu1  ;;  %v5344_v33 = vmul.f32 %v5320_v19, %v16463_v56 }
 0xcb7   : > { %v5211_v12 = vmul.f32 0.044715, %v5187_v3  ;;  %v5345_v54 = vmul.f32 %v5321_v31, %v16473_v1  ;;  %v5185_v40 = vmul.f32 %v5161_v4, %v16541_v23  ;;  %v5166_v29 = vmul.f32 %v16548_v50, %v16548_v50  ;;  %v5108_v28 = vpop.f32.mrb[127].mxu1 }
 0xcb8   : > { %v5258_v13 = vmul.f32 0.7978846, %v5234_v41  ;;  %v5232_v42 = vadd.f32 %v5208_v17, %v16523_v49  ;;  %v5164_v8 = vmul.f32 %v16551_v16, %v16551_v16  ;;  %v16563_v21 = vadd.f32 %v12727_v51, %v16457_v7 }
 0xcb9   : > { %v5235_v59 = vadd.f32 %v5211_v12, %v16530_v25  ;;  %v16566_v56 = vadd.f32 %v5108_v28, %v16457_v7  ;;  %v5209_v52 = vmul.f32 0.044715, %v5185_v40  ;;  %v5190_v37 = vmul.f32 %v5166_v29, %v16548_v50 }
 0xcba   : > { %13867 = vtanh.f32 %v5258_v13  ;;  %v5256_v1 = vmul.f32 0.7978846, %v5232_v42  ;;  %v5188_v34 = vmul.f32 %v5164_v8, %v16551_v16  ;;  %v5167_v0 = vmul.f32 %v16563_v21, %v16563_v21 }
 0xcbb   : > { %v5259_v32 = vmul.f32 0.7978846, %v5235_v59  ;;  %v5165_v10 = vmul.f32 %v16566_v56, %v16566_v56  ;;  %v13860_v44 = vpop.eup %13859  ;;  %v5233_v20 = vadd.f32 %v5209_v52, %v16541_v23  ;;  %v5214_v3 = vmul.f32 0.044715, %v5190_v37 }
 0xcbc   : > { %13869 = vtanh.f32 %v5256_v1  ;;  %v5368_v46 = vpack.c.bf16 %v5345_v54, %v5344_v33  ;;  %v13862_v19 = vpop.eup %13861  ;;  %v5212_v31 = vmul.f32 0.044715, %v5188_v34  ;;  %v5191_v41 = vmul.f32 %v5167_v0, %v16563_v21  ;;  %v12730_v4 = vpop.f32.mrb[128].mxu1 }
 0xcbd   : > { %13871 = vtanh.f32 %v5259_v32  ;;  %v5189_v17 = vmul.f32 %v5165_v10, %v16566_v56  ;;  %v13864_v11 = vpop.eup %13863  ;;  %v5257_v12 = vmul.f32 0.7978846, %v5233_v20  ;;  %v5238_v51 = vadd.f32 %v5214_v3, %v16548_v50  ;;  %v5121_v42 = vpop.f32.mrb[129].mxu1 }
 0xcbe   : > { %12752 = vmatprep.mubr.bf16.mxu1 %v5368_v46  ;;  %v16579_v13 = vadd.f32 %v12730_v4, %v16457_v7  ;;  %v5300_v40 = vadd.f32 1.0, %v13862_v19  ;;  %v13866_v29 = vpop.eup %13865  ;;  %v5236_v33 = vadd.f32 %v5212_v31, %v16551_v16  ;;  %v5215_v54 = vmul.f32 0.044715, %v5191_v41  ;;  %v12731_v8 = vpop.f32.mrb[130].mxu1 }
 0xcbf   : > { %v5213_v28 = vmul.f32 0.044715, %v5189_v17  ;;  %12753 = vmatmul.mubr.bf16.vlgmr.msra.gmra.mrb[136].mxu1 %v5369_v63  ;;  %v16583_v59 = vadd.f32 %v5121_v42, %v16457_v7  ;;  %13873 = vtanh.f32 %v5257_v12  ;;  %v5262_v1 = vmul.f32 0.7978846, %v5238_v51  ;;  %v5124_v32 = vpop.f32.mrb[131].mxu1 }
 0xcc0   : > { %v5170_v52 = vmul.f32 %v16579_v13, %v16579_v13  ;;  %v16588_v37 = vadd.f32 %v12731_v8, %v16457_v7  ;;  %v5260_v34 = vmul.f32 0.7978846, %v5236_v33  ;;  %v5239_v0 = vadd.f32 %v5215_v54, %v16563_v21 }
 0xcc1   : > { %v5237_v10 = vadd.f32 %v5213_v28, %v16566_v56  ;;  %v5168_v63 = vmul.f32 %v16583_v59, %v16583_v59  ;;  %13875 = vtanh.f32 %v5262_v1  ;;  %v16598_v46 = vadd.f32 %v5124_v32, %v16457_v7 }
 0xcc2   : > { %v5194_v20 = vmul.f32 %v5170_v52, %v16579_v13  ;;  %v5171_v3 = vmul.f32 %v16588_v37, %v16588_v37  ;;  %13877 = vtanh.f32 %v5260_v34  ;;  %v5263_v19 = vmul.f32 0.7978846, %v5239_v0 }
 0xcc3   : > { %v5261_v31 = vmul.f32 0.7978846, %v5237_v10  ;;  %v5192_v41 = vmul.f32 %v5168_v63, %v16583_v59  ;;  %v5169_v51 = vmul.f32 %v16598_v46, %v16598_v46  ;;  %v5301_v42 = vadd.f32 1.0, %v13866_v29 }
 0xcc4   : > { %v13868_v17 = vpop.eup %13867  ;;  %v5218_v4 = vmul.f32 0.044715, %v5194_v20  ;;  %v5195_v12 = vmul.f32 %v5171_v3, %v16588_v37  ;;  %13879 = vtanh.f32 %v5263_v19  ;;  %v5324_v54 = vmul.f32 0.5, %v5300_v40 }
 0xcc5   : > { %v5216_v33 = vmul.f32 0.044715, %v5192_v41  ;;  %v5302_v28 = vadd.f32 1.0, %v13860_v44  ;;  %13881 = vtanh.f32 %v5261_v31  ;;  %v5193_v32 = vmul.f32 %v5169_v51, %v16598_v46 }
 0xcc6   : > { %v13870_v8 = vpop.eup %13869  ;;  %v5242_v1 = vadd.f32 %v5218_v4, %v16579_v13  ;;  %v5219_v52 = vmul.f32 0.044715, %v5195_v12  ;;  %v5325_v10 = vmul.f32 0.5, %v5301_v42  ;;  %v5348_v63 = vmul.f32 %v5324_v54, %v16491_v35 }
 0xcc7   : > { %v13872_v34 = vpop.eup %13871  ;;  %v5240_v0 = vadd.f32 %v5216_v33, %v16583_v59  ;;  %v5303_v20 = vadd.f32 1.0, %v13864_v11  ;;  %v5217_v19 = vmul.f32 0.044715, %v5193_v32  ;;  %v5326_v40 = vmul.f32 0.5, %v5302_v28 }
 0xcc8   : > { %v5266_v3 = vmul.f32 0.7978846, %v5242_v1  ;;  %v5243_v29 = vadd.f32 %v5219_v52, %v16588_v37  ;;  %v5349_v31 = vmul.f32 %v5325_v10, %v16501_v6  ;;  %v5304_v4 = vadd.f32 1.0, %v13870_v8 }
 0xcc9   : > { %v5264_v44 = vmul.f32 0.7978846, %v5240_v0  ;;  %v5327_v41 = vmul.f32 0.5, %v5303_v20  ;;  %v13874_v12 = vpop.eup %13873  ;;  %v5241_v5 = vadd.f32 %v5217_v19, %v16598_v46  ;;  %v5350_v42 = vmul.f32 %v5326_v40, %v16488_v62 }
 0xcca   : > { %13883 = vtanh.f32 %v5266_v3  ;;  %v5267_v51 = vmul.f32 0.7978846, %v5243_v29  ;;  %v5370_v35 = vpack.c.bf16 %v5349_v31, %v5348_v63  ;;  %v5305_v33 = vadd.f32 1.0, %v13874_v12 }
 0xccb   : > { %13885 = vtanh.f32 %v5264_v44  ;;  %v5351_v11 = vmul.f32 %v5327_v41, %v16496_v43  ;;  %v13876_v54 = vpop.eup %13875  ;;  %v5265_v28 = vmul.f32 0.7978846, %v5241_v5  ;;  %v5328_v1 = vmul.f32 0.5, %v5304_v4 }
 0xccc   : > { %13887 = vtanh.f32 %v5267_v51  ;;  %v5306_v52 = vadd.f32 1.0, %v13868_v17  ;;  %v13878_v6 = vpop.eup %13877  ;;  %12756 = vmatprep.mubr.bf16.mxu1 %v5370_v35  ;;  %v5329_v32 = vmul.f32 0.5, %v5305_v33  ;;  %v5307_v0 = vadd.f32 1.0, %v13872_v34 }
 0xccd   : > { %v5371_v8 = vpack.c.bf16 %v5351_v11, %v5350_v42  ;;  %v5310_v10 = vadd.f32 1.0, %v13876_v54  ;;  %13889 = vtanh.f32 %v5265_v28  ;;  %v5308_v3 = vadd.f32 1.0, %v13878_v6 }
 0xcce   : > { %v5330_v20 = vmul.f32 0.5, %v5306_v52  ;;  %v13880_v62 = vpop.eup %13879  ;;  %v5352_v63 = vmul.f32 %v5328_v1, %v16523_v49  ;;  %v5353_v43 = vmul.f32 %v5329_v32, %v16541_v23  ;;  %v5331_v29 = vmul.f32 0.5, %v5307_v0 }
 0xccf   : > { %12757 = vmatmul.mubr.bf16.gmra.mrb[140].mxu1 %v5371_v8  ;;  %v13882_v19 = vpop.eup %13881  ;;  %v5311_v17 = vadd.f32 1.0, %v13880_v62  ;;  %v5334_v40 = vmul.f32 0.5, %v5310_v10  ;;  %v5332_v41 = vmul.f32 0.5, %v5308_v3 }
 0xcd0   : > { %v5354_v5 = vmul.f32 %v5330_v20, %v16513_v57  ;;  %v5372_v44 = vpack.c.bf16 %v5353_v43, %v5352_v63  ;;  %v5355_v31 = vmul.f32 %v5331_v29, %v16530_v25  ;;  %v5309_v34 = vadd.f32 1.0, %v13882_v19 }
 0xcd1   : > { %v5335_v4 = vmul.f32 0.5, %v5311_v17  ;;  %v5358_v49 = vmul.f32 %v5334_v40, %v16548_v50  ;;  %v5356_v11 = vmul.f32 %v5332_v41, %v16551_v16 }
 0xcd2   : > { %12760 = vmatprep.mubr.bf16.mxu1 %v5372_v44  ;;  %v5373_v12 = vpack.c.bf16 %v5355_v31, %v5354_v5  ;;  %v5333_v51 = vmul.f32 0.5, %v5309_v34 }
 0xcd3   : > { %v5359_v23 = vmul.f32 %v5335_v4, %v16563_v21 }
 0xcd4   : > { %v13884_v42 = vpop.eup %13883  ;;  %v5357_v57 = vmul.f32 %v5333_v51, %v16566_v56 }
 0xcd5   : > { %v13886_v35 = vpop.eup %13885  ;;  %v5314_v33 = vadd.f32 1.0, %v13884_v42  ;;  %v5375_v28 = vpack.c.bf16 %v5359_v23, %v5358_v49 }
 0xcd6   : > { %v13888_v54 = vpop.eup %13887  ;;  %v5312_v25 = vadd.f32 1.0, %v13886_v35  ;;  %v5374_v1 = vpack.c.bf16 %v5357_v57, %v5356_v11 }
 0xcd7   : > { %12761 = vmatmul.mubr.bf16.gmra.mrb[144].mxu1 %v5373_v12  ;;  %v5315_v52 = vadd.f32 1.0, %v13888_v54  ;;  %v5338_v6 = vmul.f32 0.5, %v5314_v33  ;;  %v13890_v8 = vpop.eup %13889 }
 0xcd8   : > { %12764 = vmatprep.mubr.bf16.mxu1 %v5374_v1  ;;  %v5313_v32 = vadd.f32 1.0, %v13890_v8  ;;  %v5336_v0 = vmul.f32 0.5, %v5312_v25 }
 0xcd9   : > { %v5339_v50 = vmul.f32 0.5, %v5315_v52  ;;  %v5362_v21 = vmul.f32 %v5338_v6, %v16579_v13 }
 0xcda   : > { %v5337_v10 = vmul.f32 0.5, %v5313_v32  ;;  %v5360_v56 = vmul.f32 %v5336_v0, %v16583_v59 }
 0xcdb   : > { %v5363_v16 = vmul.f32 %v5339_v50, %v16588_v37 }
 0xcdc   : > { %v5361_v20 = vmul.f32 %v5337_v10, %v16598_v46 }
 0xcdd   : > { %v5377_v3 = vpack.c.bf16 %v5363_v16, %v5362_v21 }
 0xcde   : > { %v5376_v62 = vpack.c.bf16 %v5361_v20, %v5360_v56 }
 0xcdf   : > { %12765 = vmatmul.mubr.bf16.gmra.mrb[148].mxu1 %v5375_v28 }
 0xce0   : > { %12768 = vmatprep.mubr.bf16.mxu1 %v5376_v62 }
 0xce7   : > { %12769 = vmatmul.mubr.bf16.gmra.mrb[152].mxu1 %v5377_v3 }
 0xd30   : > { %v12734_v63 = vpop.f32.mrb[132].mxu1 }
 0xd31   : > { %v5146_v43 = vadd.f32 %v12734_v63, %v16457_v7  ;;  %v5137_v29 = vpop.f32.mrb[133].mxu1 }
 0xd32   : > { %v5138_v19 = vadd.f32 %v5137_v29, %v16457_v7  ;;  %v12735_v5 = vpop.f32.mrb[134].mxu1 }
 0xd33   : > { %v5174_v17 = vmul.f32 %v5146_v43, %v5146_v43  ;;  %v5149_v13 = vadd.f32 %v12735_v5, %v16457_v7  ;;  %v5140_v37 = vpop.f32.mrb[135].mxu1 }
 0xd34   : > { %v5172_v40 = vmul.f32 %v5138_v19, %v5138_v19  ;;  %v5141_v59 = vadd.f32 %v5140_v37, %v16457_v7 }
 0xd35   : > { %v5198_v46 = vmul.f32 %v5174_v17, %v5146_v43  ;;  %v5175_v44 = vmul.f32 %v5149_v13, %v5149_v13  ;;  %v11696_v17 = vld [vmem:[%s19318_s7 + $0x7] ss:$8 sm:$0x3] }
 0xd36   : > { %v5196_v31 = vmul.f32 %v5172_v40, %v5138_v19  ;;  %v5173_v34 = vmul.f32 %v5141_v59, %v5141_v59  ;;  %v16633_v40 = vrot.slane %v11696_v17, %v19500_v2 }
 0xd37   : > { %v5222_v41 = vmul.f32 0.044715, %v5198_v46  ;;  %v5199_v4 = vmul.f32 %v5175_v44, %v5149_v13 }
 0xd38   : > { %v5220_v12 = vmul.f32 0.044715, %v5196_v31  ;;  %v5197_v51 = vmul.f32 %v5173_v34, %v5141_v59 }
 0xd39   : > { %v5246_v42 = vadd.f32 %v5222_v41, %v5146_v43  ;;  %v5223_v49 = vmul.f32 0.044715, %v5199_v4 }
 0xd3a   : > { %v5244_v23 = vadd.f32 %v5220_v12, %v5138_v19  ;;  %v5221_v35 = vmul.f32 0.044715, %v5197_v51 }
 0xd3b   : > { %v5270_v11 = vmul.f32 0.7978846, %v5246_v42  ;;  %v5247_v57 = vadd.f32 %v5223_v49, %v5149_v13 }
 0xd3c   : > { %v5268_v33 = vmul.f32 0.7978846, %v5244_v23  ;;  %v5245_v54 = vadd.f32 %v5221_v35, %v5141_v59 }
 0xd3d   : > { %13891 = vtanh.f32 %v5270_v11  ;;  %v5271_v28 = vmul.f32 0.7978846, %v5247_v57 }
 0xd3e   : > { %13893 = vtanh.f32 %v5268_v33  ;;  %v5269_v7 = vmul.f32 0.7978846, %v5245_v54 }
 0xd3f   : > { %13895 = vtanh.f32 %v5271_v28 }
 0xd40   : > { %13897 = vtanh.f32 %v5269_v7 }
 0xd47   : > { %v13892_v25 = vpop.eup %13891 }
 0xd48   : > { %v13894_v1 = vpop.eup %13893  ;;  %v5318_v52 = vadd.f32 1.0, %v13892_v25 }
 0xd49   : > { %v13896_v6 = vpop.eup %13895  ;;  %v5316_v8 = vadd.f32 1.0, %v13894_v1 }
 0xd4a   : > { %v13898_v32 = vpop.eup %13897  ;;  %v5319_v0 = vadd.f32 1.0, %v13896_v6  ;;  %v5342_v50 = vmul.f32 0.5, %v5318_v52 }
 0xd4b   : > { %v5317_v10 = vadd.f32 1.0, %v13898_v32  ;;  %v5340_v21 = vmul.f32 0.5, %v5316_v8 }
 0xd4c   : > { %v5343_v16 = vmul.f32 0.5, %v5319_v0  ;;  %v5366_v20 = vmul.f32 %v5342_v50, %v5146_v43 }
 0xd4d   : > { %v5341_v56 = vmul.f32 0.5, %v5317_v10  ;;  %v5364_v62 = vmul.f32 %v5340_v21, %v5138_v19 }
 0xd4e   : > { %v5367_v3 = vmul.f32 %v5343_v16, %v5149_v13 }
 0xd4f   : > { %v5365_v63 = vmul.f32 %v5341_v56, %v5141_v59 }
 0xd50   : > { %v5379_v29 = vpack.c.bf16 %v5367_v3, %v5366_v20 }
 0xd51   : > { %v5378_v5 = vpack.c.bf16 %v5365_v63, %v5364_v62 }
 0xd53   : > { %12772 = vmatprep.mubr.bf16.mxu1 %v5378_v5 }
 0xd54   : > { %12773 = vmatmul.mubr.bf16.gmra.mrb[156].mxu1 %v5379_v29 }
 0xd92   : > { %v12754_v37 = vpop.f32.mrb[136].mxu1 }
 0xd93   : > { %v5478_v46 = vpop.f32.mrb[137].mxu1  ;;  %v5575_v44 = vadd.f32 %v12754_v37, %v16040_v61 }
 0xd94   : > { %v5573_v43 = vadd.f32 %v5478_v46, %v16036_v26  ;;  %v12755_v13 = vpop.f32.mrb[138].mxu1 }
 0xd95   : > { %v5481_v19 = vpop.f32.mrb[139].mxu1  ;;  %v5576_v31 = vadd.f32 %v12755_v13, %v16051_v14  ;;  %v16643_v41 = vadd.f32 %v16633_v40, %v5575_v44 }
 0xd96   : > { %v16638_v59 = vadd.f32 %v16633_v40, %v5573_v43  ;;  %v5574_v34 = vadd.f32 %v5481_v19, %v16044_v36 }
 0xd97   : > { %19530 = vst [vmem:[#allocation34_spill] sm:$0xff] %v16643_v41  ;;  %v16651_v26 = vadd.f32 %v16633_v40, %v5576_v31  ;;  %v5639_v36 = vsel %vm646_vm0, %v16643_v41, 0.0 }
 0xd98   : > { %19529 = vst [vmem:[#allocation32_spill] sm:$0xff] %v16638_v59  ;;  %v16646_v4 = vadd.f32 %v16633_v40, %v5574_v34  ;;  %v5633_v61 = vsel %vm646_vm0, %v16638_v59, 0.0 }
 0xd99   : > { %5634 = vadd.xlane.f32.xlu0 %v5633_v61  ;;  %19532 = vst [vmem:[#allocation4_spill] sm:$0xff] %v16651_v26  ;;  %v5642_v14 = vsel %vm646_vm0, %v16651_v26, 0.0 }
 0xd9a   : > { %19531 = vst [vmem:[#allocation35_spill] sm:$0xff] %v16646_v4  ;;  %v5636_v12 = vsel %vm646_vm0, %v16646_v4, 0.0 }
 0xd9b   : > { %5637 = vadd.xlane.f32.xlu1 %v5636_v12 }
 0xd9d   : > { %5640 = vadd.xlane.f32.xlu0 %v5639_v36 }
 0xd9f   : > { %5643 = vadd.xlane.f32.xlu1 %v5642_v14 }
 0xda2   : > { %v12758_v51 = vpop.f32.mrb[140].mxu1 }
 0xda3   : > { %v5494_v42 = vpop.f32.mrb[141].mxu1  ;;  %v5579_v49 = vadd.f32 %v12758_v51, %v16073_v24 }
 0xda4   : > { %v5577_v23 = vadd.f32 %v5494_v42, %v16060_v45  ;;  %v12759_v35 = vpop.f32.mrb[142].mxu1 }
 0xda5   : > { %v5497_v11 = vpop.f32.mrb[143].mxu1  ;;  %v5580_v33 = vadd.f32 %v12759_v35, %v16068_v27  ;;  %v16667_v28 = vadd.f32 %v16633_v40, %v5579_v49 }
 0xda6   : > { %v16662_v57 = vadd.f32 %v16633_v40, %v5577_v23  ;;  %v5578_v54 = vadd.f32 %v5497_v11, %v16063_v18 }
 0xda7   : > { %19534 = vst [vmem:[#allocation3_spill] sm:$0xff] %v16667_v28  ;;  %v16675_v45 = vadd.f32 %v16633_v40, %v5580_v33  ;;  %v5651_v8 = vsel %vm646_vm0, %v16667_v28, 0.0 }
 0xda8   : > { %19533 = vst [vmem:[#allocation2_spill] sm:$0xff] %v16662_v57  ;;  %v16670_v7 = vadd.f32 %v16633_v40, %v5578_v54  ;;  %v5645_v24 = vsel %vm646_vm0, %v16662_v57, 0.0 }
 0xda9   : > { %5646 = vadd.xlane.f32.xlu0 %v5645_v24  ;;  %19536 = vst [vmem:[#allocation6_spill] sm:$0xff] %v16675_v45  ;;  %v5654_v21 = vsel %vm646_vm0, %v16675_v45, 0.0 }
 0xdaa   : > { %19535 = vst [vmem:[#allocation5_spill] sm:$0xff] %v16670_v7  ;;  %v12762_v25 = vpop.f32.mrb[144].mxu1  ;;  %v5648_v1 = vsel %vm646_vm0, %v16670_v7, 0.0 }
 0xdab   : > { %5649 = vadd.xlane.f32.xlu1 %v5648_v1  ;;  %v5510_v27 = vpop.f32.mrb[145].mxu1  ;;  %v5583_v18 = vadd.f32 %v12762_v25, %v16097_v53 }
 0xdac   : > { %v5581_v52 = vadd.f32 %v5510_v27, %v16084_v38  ;;  %v12763_v6 = vpop.f32.mrb[146].mxu1 }
 0xdad   : > { %5652 = vadd.xlane.f32.xlu0 %v5651_v8  ;;  %v5513_v32 = vpop.f32.mrb[147].mxu1  ;;  %v5584_v50 = vadd.f32 %v12763_v6, %v16092_v15  ;;  %v16691_v53 = vadd.f32 %v16633_v40, %v5583_v18 }
 0xdae   : > { %v16684_v0 = vadd.f32 %v16633_v40, %v5581_v52  ;;  %v5582_v10 = vadd.f32 %v5513_v32, %v16087_v9 }
 0xdaf   : > { %5655 = vadd.xlane.f32.xlu1 %v5654_v21  ;;  %19538 = vst [vmem:[#allocation7_spill] sm:$0xff] %v16691_v53  ;;  %v16699_v56 = vadd.f32 %v16633_v40, %v5584_v50  ;;  %v5663_v29 = vsel %vm646_vm0, %v16691_v53, 0.0 }
 0xdb0   : > { %19537 = vst [vmem:[#allocation9_spill] sm:$0xff] %v16684_v0  ;;  %v16694_v38 = vadd.f32 %v16633_v40, %v5582_v10  ;;  %v5657_v16 = vsel %vm646_vm0, %v16684_v0, 0.0 }
 0xdb1   : > { %5658 = vadd.xlane.f32.xlu0 %v5657_v16  ;;  %19540 = vst [vmem:[#allocation10_spill] sm:$0xff] %v16699_v56  ;;  %v5666_v44 = vsel %vm646_vm0, %v16699_v56, 0.0 }
 0xdb2   : > { %19539 = vst [vmem:[#allocation8_spill] sm:$0xff] %v16694_v38  ;;  %v12766_v15 = vpop.f32.mrb[148].mxu1  ;;  %v5660_v9 = vsel %vm646_vm0, %v16694_v38, 0.0 }
 0xdb3   : > { %5661 = vadd.xlane.f32.xlu1 %v5660_v9  ;;  %v5526_v20 = vpop.f32.mrb[149].mxu1  ;;  %v5587_v3 = vadd.f32 %v12766_v15, %v16121_v58 }
 0xdb4   : > { %v5585_v62 = vadd.f32 %v5526_v20, %v16108_v39  ;;  %v12767_v63 = vpop.f32.mrb[150].mxu1 }
 0xdb5   : > { %5664 = vadd.xlane.f32.xlu0 %v5663_v29  ;;  %v5529_v5 = vpop.f32.mrb[151].mxu1  ;;  %v5588_v37 = vadd.f32 %v12767_v63, %v16116_v60  ;;  %v16715_v58 = vadd.f32 %v16633_v40, %v5587_v3  ;;  %v19549_v3 = vld [vmem:[#allocation33_spill] sm:$0xff] }
 0xdb6   : > { %v16708_v17 = vadd.f32 %v16633_v40, %v5585_v62  ;;  %v5586_v46 = vadd.f32 %v5529_v5, %v16111_v22  ;;  %v19550_v5 = vld [vmem:[#allocation30_spill] sm:$0xff] }
 0xdb7   : > { %5667 = vadd.xlane.f32.xlu1 %v5666_v44  ;;  %19542 = vst [vmem:[#allocation11_spill] sm:$0xff] %v16715_v58  ;;  %v16723_v13 = vadd.f32 %v16633_v40, %v5588_v37  ;;  %v5675_v61 = vsel %vm646_vm0, %v16715_v58, 0.0 }
 0xdb8   : > { %19541 = vst [vmem:[#allocation13_spill] sm:$0xff] %v16708_v17  ;;  %v16718_v39 = vadd.f32 %v16633_v40, %v5586_v46  ;;  %v5669_v43 = vsel %vm646_vm0, %v16708_v17, 0.0 }
 0xdb9   : > { %5670 = vadd.xlane.f32.xlu0 %v5669_v43  ;;  %19544 = vst [vmem:[#allocation14_spill] sm:$0xff] %v16723_v13  ;;  %v5678_v51 = vsel %vm646_vm0, %v16723_v13, 0.0 }
 0xdba   : > { %19543 = vst [vmem:[#allocation12_spill] sm:$0xff] %v16718_v39  ;;  %v12770_v60 = vpop.f32.mrb[152].mxu1  ;;  %v5672_v22 = vsel %vm646_vm0, %v16718_v39, 0.0 }
 0xdbb   : > { %5673 = vadd.xlane.f32.xlu1 %v5672_v22  ;;  %v5542_v19 = vpop.f32.mrb[153].mxu1 }
 0xdbc   : > { %v5589_v31 = vadd.f32 %v5542_v19, %v16146_v30  ;;  %v12771_v34 = vpop.f32.mrb[154].mxu1 }
 0xdbd   : > { %5676 = vadd.xlane.f32.xlu0 %v5675_v61  ;;  %v5545_v12 = vpop.f32.mrb[155].mxu1  ;;  %v5592_v52 = vadd.f32 %v12771_v34, %v16131_v55  ;;  %v19553_v61 = vld [vmem:[#allocation31_spill] sm:$0xff] }
 0xdbe   : > { %v16731_v36 = vadd.f32 %v16633_v40, %v5589_v31  ;;  %v5590_v14 = vadd.f32 %v5545_v12, %v16142_v48  ;;  %v5591_v48 = vadd.f32 %v12770_v60, %v16134_v47 }
 0xdbf   : > { %5679 = vadd.xlane.f32.xlu1 %v5678_v51  ;;  %v16763_v15 = vadd.f32 %v16633_v40, %v5592_v52 }
 0xdc0   : > { %19545 = vst [vmem:[#allocation17_spill] sm:$0xff] %v16731_v36  ;;  %v16737_v42 = vadd.f32 %v16633_v40, %v5590_v14  ;;  %v5681_v30 = vsel %vm646_vm0, %v16731_v36, 0.0  ;;  %v16754_v47 = vadd.f32 %v16633_v40, %v5591_v48 }
 0xdc1   : > { %5682 = vadd.xlane.f32.xlu0 %v5681_v30  ;;  %19548 = vst [vmem:[#allocation20_spill] sm:$0xff] %v16763_v15  ;;  %v5690_v46 = vsel %vm646_vm0, %v16763_v15, 0.0 }
 0xdc2   : > { %19546 = vst [vmem:[#allocation15_spill] sm:$0xff] %v16737_v42  ;;  %v5684_v49 = vsel %vm646_vm0, %v16737_v42, 0.0  ;;  %19547 = vst [vmem:[#allocation16_spill] sm:$0xff] %v16754_v47  ;;  %v5687_v63 = vsel %vm646_vm0, %v16754_v47, 0.0 }
 0xdc3   : > { %5685 = vadd.xlane.f32.xlu1 %v5684_v49 }
 0xe26   : > { %v5635_v23 = vpop.xlane.xlu0 %5634 }
 0xe27   : > { %v5705_v35 = vmul.f32 0.015625, %v5635_v23  ;;  %v12774_v11 = vpop.f32.mrb[156].mxu1  ;;  %v19554_v23 = vld [vmem:[#allocation29_spill] sm:$0xff] }
 0xe28   : > { %v5638_v33 = vpop.xlane.xlu1 %5637  ;;  %v5558_v54 = vpop.f32.mrb[157].mxu1  ;;  %v5595_v12 = vadd.f32 %v12774_v11, %v19553_v61 }
 0xe29   : > { %v16745_v24 = vsub.f32 %v16638_v59, %v5705_v35  ;;  %v5706_v25 = vmul.f32 0.015625, %v5638_v33  ;;  %v12775_v1 = vpop.f32.mrb[158].mxu1  ;;  %v5593_v62 = vadd.f32 %v5558_v54, %v19549_v3 }
 0xe2a   : > { %v5641_v27 = vpop.xlane.xlu0 %5640  ;;  %v5561_v18 = vpop.f32.mrb[159].mxu1  ;;  %v5596_v35 = vadd.f32 %v12775_v1, %v19554_v23 }
 0xe2b   : > { %v16749_v6 = vsub.f32 %v16646_v4, %v5706_v25  ;;  %v5707_v8 = vmul.f32 0.015625, %v5641_v27  ;;  %v5753_v32 = vmul.f32 %v16745_v24, %v16745_v24  ;;  %v5594_v37 = vadd.f32 %v5561_v18, %v19550_v5 }
 0xe2c   : > { %v5644_v50 = vpop.xlane.xlu1 %5643  ;;  %v16780_v43 = vadd.f32 %v16633_v40, %v5593_v62  ;;  %v16802_v27 = vadd.f32 %v16633_v40, %v5595_v12 }
 0xe2d   : > { %v16757_v10 = vsub.f32 %v16643_v41, %v5707_v8  ;;  %v5708_v21 = vmul.f32 0.015625, %v5644_v50  ;;  %v5777_v16 = vsel %vm646_vm0, %v5753_v32, 0.0  ;;  %v5754_v55 = vmul.f32 %v16749_v6, %v16749_v6 }
 0xe2e   : > { %5778 = vadd.xlane.f32.xlu0 %v5777_v16  ;;  %19551 = vst [vmem:[#allocation21_spill] sm:$0xff] %v16780_v43  ;;  %v16784_v19 = vadd.f32 %v16633_v40, %v5594_v37  ;;  %v5693_v49 = vsel %vm646_vm0, %v16780_v43, 0.0  ;;  %19555 = vst [vmem:[#allocation18_spill] sm:$0xff] %v16802_v27 }
 0xe2f   : > { %v16766_v9 = vsub.f32 %v16651_v26, %v5708_v21  ;;  %v5780_v20 = vsel %vm646_vm0, %v5754_v55, 0.0  ;;  %v5755_v29 = vmul.f32 %v16757_v10, %v16757_v10  ;;  %v16811_v21 = vadd.f32 %v16633_v40, %v5596_v35 }
 0xe30   : > { %5781 = vadd.xlane.f32.xlu1 %v5780_v20  ;;  %19552 = vst [vmem:[#allocation19_spill] sm:$0xff] %v16784_v19  ;;  %v5696_v11 = vsel %vm646_vm0, %v16784_v19, 0.0 }
 0xe31   : > { %v5756_v44 = vmul.f32 %v16766_v9, %v16766_v9  ;;  %v5783_v60 = vsel %vm646_vm0, %v5755_v29, 0.0  ;;  %19556 = vst [vmem:[#allocation24_spill] sm:$0xff] %v16811_v21  ;;  %v5699_v29 = vsel %vm646_vm0, %v16802_v27, 0.0 }
 0xe32   : > { %5688 = vadd.xlane.f32.xlu0 %v5687_v63 }
 0xe33   : > { %v5786_v34 = vsel %vm646_vm0, %v5756_v44, 0.0  ;;  %v5702_v44 = vsel %vm646_vm0, %v16811_v21, 0.0 }
 0xe34   : > { %5691 = vadd.xlane.f32.xlu1 %v5690_v46 }
 0xe36   : > { %v5647_v22 = vpop.xlane.xlu0 %5646  ;;  %5784 = vadd.xlane.f32.xlu0 %v5783_v60 }
 0xe37   : > { %v5709_v31 = vmul.f32 0.015625, %v5647_v22 }
 0xe38   : > { %v5650_v14 = vpop.xlane.xlu1 %5649  ;;  %5787 = vadd.xlane.f32.xlu1 %v5786_v34 }
 0xe39   : > { %v16789_v51 = vsub.f32 %v16662_v57, %v5709_v31  ;;  %v5710_v30 = vmul.f32 0.015625, %v5650_v14 }
 0xe3a   : > { %v5653_v48 = vpop.xlane.xlu0 %5652  ;;  %5694 = vadd.xlane.f32.xlu0 %v5693_v49 }
 0xe3b   : > { %v16795_v33 = vsub.f32 %v16670_v7, %v5710_v30  ;;  %v5711_v54 = vmul.f32 0.015625, %v5653_v48  ;;  %v5757_v25 = vmul.f32 %v16789_v51, %v16789_v51  ;;  %v13401_v30 = vld [vmem:[%s19314_s3 + $0x44] ss:$8 sps:$4 sm:$0xff]  }
 0xe3c   : > { %v5656_v18 = vpop.xlane.xlu1 %5655  ;;  %5697 = vadd.xlane.f32.xlu1 %v5696_v11  ;;  %6115 = vmatprep.subr.bf16.mxu0 %v13401_v30 }
 0xe3d   : > { %v16805_v52 = vsub.f32 %v16667_v28, %v5711_v54  ;;  %v5712_v1 = vmul.f32 0.015625, %v5656_v18  ;;  %v5789_v8 = vsel %vm646_vm0, %v5757_v25, 0.0  ;;  %v5758_v32 = vmul.f32 %v16795_v33, %v16795_v33  ;;  %v13399_v54 = vld [vmem:[%s19314_s3 + $0x40] ss:$8 sps:$4 sm:$0xff]  }
 0xe3e   : > { %v5659_v50 = vpop.xlane.xlu0 %5658  ;;  %5790 = vadd.xlane.f32.xlu0 %v5789_v8  ;;  %6116 = vmatpush1.bf16.msra.mxu0 %v13399_v54 }
 0xe3f   : > { %v16814_v16 = vsub.f32 %v16675_v45, %v5712_v1  ;;  %v5713_v55 = vmul.f32 0.015625, %v5659_v50  ;;  %v5792_v20 = vsel %vm646_vm0, %v5758_v32, 0.0  ;;  %v5759_v5 = vmul.f32 %v16805_v52, %v16805_v52  ;;  %v13404_v50 = vld [vmem:[%s19314_s3 + $0x54] ss:$8 sps:$4 sm:$0xff]  }
 0xe40   : > { %v5662_v3 = vpop.xlane.xlu1 %5661  ;;  %5793 = vadd.xlane.f32.xlu1 %v5792_v20  ;;  %6117 = vmatprep.subr.bf16.mxu0 %v13404_v50 }
 0xe41   : > { %v16818_v62 = vsub.f32 %v16684_v0, %v5713_v55  ;;  %v5714_v63 = vmul.f32 0.015625, %v5662_v3  ;;  %v5760_v60 = vmul.f32 %v16814_v16, %v16814_v16  ;;  %v5795_v61 = vsel %vm646_vm0, %v5759_v5, 0.0 }
 0xe42   : > { %v5665_v40 = vpop.xlane.xlu0 %5664  ;;  %5700 = vadd.xlane.f32.xlu0 %v5699_v29  ;;  %v13402_v29 = vld [vmem:[%s19314_s3 + $0x50] ss:$8 sps:$4 sm:$0xff]  }
 0xe43   : > { %v16825_v37 = vsub.f32 %v16694_v38, %v5714_v63  ;;  %v5715_v46 = vmul.f32 0.015625, %v5665_v40  ;;  %v5761_v12 = vmul.f32 %v16818_v62, %v16818_v62  ;;  %v5798_v35 = vsel %vm646_vm0, %v5760_v60, 0.0  ;;  %6118 = vmatpush1.bf16.msra.mxu0 %v13402_v29 }
 0xe44   : > { %v5668_v22 = vpop.xlane.xlu1 %5667  ;;  %5703 = vadd.xlane.f32.xlu1 %v5702_v44 }
 0xe45   : > { %v16832_v31 = vsub.f32 %v16691_v53, %v5715_v46  ;;  %v5716_v34 = vmul.f32 0.015625, %v5668_v22  ;;  %v5762_v48 = vmul.f32 %v16825_v37, %v16825_v37  ;;  %v5801_v1 = vsel %vm646_vm0, %v5761_v12, 0.0 }
 0xe46   : > { %v5671_v14 = vpop.xlane.xlu0 %5670  ;;  %5796 = vadd.xlane.f32.xlu0 %v5795_v61 }
 0xe47   : > { %v16841_v49 = vsub.f32 %v16699_v56, %v5716_v34  ;;  %v5717_v23 = vmul.f32 0.015625, %v5671_v14  ;;  %v5763_v8 = vmul.f32 %v16832_v31, %v16832_v31  ;;  %v5804_v3 = vsel %vm646_vm0, %v5762_v48, 0.0  ;;  %v13407_v34 = vld [vmem:[%s19314_s3 + $0x64] ss:$8 sps:$4 sm:$0xff]  }
 0xe48   : > { %v5674_v11 = vpop.xlane.xlu1 %5673  ;;  %5799 = vadd.xlane.f32.xlu1 %v5798_v35  ;;  %6119 = vmatprep.subr.bf16.mxu0 %v13407_v34 }
 0xe49   : > { %v16850_v25 = vsub.f32 %v16708_v17, %v5717_v23  ;;  %v5718_v18 = vmul.f32 0.015625, %v5674_v11  ;;  %v5764_v63 = vmul.f32 %v16841_v49, %v16841_v49  ;;  %v5807_v44 = vsel %vm646_vm0, %v5763_v8, 0.0  ;;  %v13405_v23 = vld [vmem:[%s19314_s3 + $0x60] ss:$8 sps:$4 sm:$0xff]   ;;  %v13410_v8 = vld [vmem:[%s19314_s3 + $0x74] ss:$8 sps:$4 sm:$0xff]  }
 0xe4a   : > { %v5677_v32 = vpop.xlane.xlu0 %5676  ;;  %5802 = vadd.xlane.f32.xlu0 %v5801_v1  ;;  %6120 = vmatpush1.bf16.msra.mxu0 %v13405_v23  ;;  %v13408_v1 = vld [vmem:[%s19314_s3 + $0x70] ss:$8 sps:$4 sm:$0xff]  }
 0xe4b   : > { %v16859_v55 = vsub.f32 %v16718_v39, %v5718_v18  ;;  %v5719_v20 = vmul.f32 0.015625, %v5677_v32  ;;  %v5765_v60 = vmul.f32 %v16850_v25, %v16850_v25  ;;  %v5810_v14 = vsel %vm646_vm0, %v5764_v63, 0.0  ;;  %6121 = vmatprep.subr.bf16.mxu0 %v13410_v8 }
 0xe4c   : > { %v5680_v5 = vpop.xlane.xlu1 %5679  ;;  %5805 = vadd.xlane.f32.xlu1 %v5804_v3 }
 0xe4d   : > { %v16868_v40 = vsub.f32 %v16715_v58, %v5719_v20  ;;  %v5720_v46 = vmul.f32 0.015625, %v5680_v5  ;;  %v5766_v30 = vmul.f32 %v16859_v55, %v16859_v55  ;;  %v5813_v11 = vsel %vm646_vm0, %v5765_v60, 0.0 }
 0xe4e   : > { %v5683_v22 = vpop.xlane.xlu0 %5682  ;;  %5808 = vadd.xlane.f32.xlu0 %v5807_v44  ;;  %6122 = vmatpush1.bf16.msra.mxu0 %v13408_v1 }
 0xe4f   : > { %v16877_v61 = vsub.f32 %v16723_v13, %v5720_v46  ;;  %v5721_v12 = vmul.f32 0.015625, %v5683_v22  ;;  %v5767_v18 = vmul.f32 %v16868_v40, %v16868_v40  ;;  %v5816_v50 = vsel %vm646_vm0, %v5766_v30, 0.0 }
 0xe50   : > { %v5686_v35 = vpop.xlane.xlu1 %5685  ;;  %5811 = vadd.xlane.f32.xlu1 %v5810_v14 }
 0xe51   : > { %v16886_v48 = vsub.f32 %v16731_v36, %v5721_v12  ;;  %v5722_v54 = vmul.f32 0.015625, %v5686_v35  ;;  %v5768_v20 = vmul.f32 %v16877_v61, %v16877_v61  ;;  %v5819_v3 = vsel %vm646_vm0, %v5767_v18, 0.0 }
 0xe52   : > { %5814 = vadd.xlane.f32.xlu0 %v5813_v11 }
 0xe53   : > { %v16898_v32 = vsub.f32 %v16737_v42, %v5722_v54  ;;  %v5769_v63 = vmul.f32 %v16886_v48, %v16886_v48  ;;  %v5822_v29 = vsel %vm646_vm0, %v5768_v20, 0.0 }
 0xe54   : > { %5817 = vadd.xlane.f32.xlu1 %v5816_v50 }
 0xe55   : > { %v5770_v5 = vmul.f32 %v16898_v32, %v16898_v32  ;;  %v5825_v46 = vsel %vm646_vm0, %v5769_v63, 0.0 }
 0xe56   : > { %5820 = vadd.xlane.f32.xlu0 %v5819_v3  ;;  %v11697_v3 = vld [vmem:[%s19318_s7 + $0x10] ss:$8 sm:$0x3] }
 0xe57   : > { %v5828_v44 = vsel %vm646_vm0, %v5770_v5, 0.0 }
 0xe58   : > { %5823 = vadd.xlane.f32.xlu1 %v5822_v29 }
 0xe5a   : > { %5826 = vadd.xlane.f32.xlu0 %v5825_v46 }
 0xe5c   : > { %5829 = vadd.xlane.f32.xlu1 %v5828_v44 }
 0xebb   : > { %v5779_v60 = vpop.xlane.xlu0 %5778 }
 0xebc   : > { %v5849_v22 = vmul.f32 0.015625, %v5779_v60 }
 0xebd   : > { %v5782_v34 = vpop.xlane.xlu1 %5781 }
 0xebe   : > { %v5873_v12 = vadd.f32 1e-12, %v5849_v22  ;;  %v5850_v14 = vmul.f32 0.015625, %v5782_v34 }
 0xebf   : > { %v5689_v30 = vpop.xlane.xlu0 %5688 }
 0xec0   : > { %13899 = vrsqrt.f32 %v5873_v12  ;;  %v5874_v23 = vadd.f32 1e-12, %v5850_v14  ;;  %v5723_v35 = vmul.f32 0.015625, %v5689_v30  ;;  %v16927_v14 = vrot.slane %v11697_v3, %v19500_v2 }
 0xec1   : > { %v5692_v54 = vpop.xlane.xlu1 %5691 }
 0xec2   : > { %13901 = vrsqrt.f32 %v5874_v23  ;;  %v16912_v11 = vsub.f32 %v16754_v47, %v5723_v35  ;;  %v5724_v18 = vmul.f32 0.015625, %v5692_v54  ;;  %v11698_v35 = vld [vmem:[%s19318_s7 + $0x11] ss:$8 sm:$0x3] }
 0xec3   : > { %v5785_v1 = vpop.xlane.xlu0 %5784 }
 0xec4   : > { %v16915_v8 = vsub.f32 %v16763_v15, %v5724_v18  ;;  %v5851_v50 = vmul.f32 0.015625, %v5785_v1  ;;  %v5771_v20 = vmul.f32 %v16912_v11, %v16912_v11 }
 0xec5   : > { %v5788_v63 = vpop.xlane.xlu1 %5787 }
 0xec6   : > { %v5875_v29 = vadd.f32 1e-12, %v5851_v50  ;;  %v5852_v5 = vmul.f32 0.015625, %v5788_v63  ;;  %v5831_v46 = vsel %vm646_vm0, %v5771_v20, 0.0  ;;  %v5772_v44 = vmul.f32 %v16915_v8, %v16915_v8 }
 0xec7   : > { %5832 = vadd.xlane.f32.xlu0 %v5831_v46  ;;  %v5695_v60 = vpop.xlane.xlu0 %5694 }
 0xec8   : > { %13903 = vrsqrt.f32 %v5875_v29  ;;  %v5876_v22 = vadd.f32 1e-12, %v5852_v5  ;;  %v5725_v34 = vmul.f32 0.015625, %v5695_v60  ;;  %v5834_v12 = vsel %vm646_vm0, %v5772_v44, 0.0 }
 0xec9   : > { %5835 = vadd.xlane.f32.xlu1 %v5834_v12  ;;  %v5698_v30 = vpop.xlane.xlu1 %5697  ;;  %v16942_v5 = vrot.slane %v11698_v35, %v19500_v2 }
 0xeca   : > { %v13900_v23 = vpop.eup %13899  ;;  %13905 = vrsqrt.f32 %v5876_v22  ;;  %v16933_v54 = vsub.f32 %v16780_v43, %v5725_v34  ;;  %v5726_v18 = vmul.f32 0.015625, %v5698_v30 }
 0xecb   : > { %v5921_v1 = vmul.f32 %v13900_v23, %v16745_v24  ;;  %v5791_v50 = vpop.xlane.xlu0 %5790 }
 0xecc   : > { %v13902_v20 = vpop.eup %13901  ;;  %v16937_v63 = vsub.f32 %v16784_v19, %v5726_v18  ;;  %v5853_v3 = vmul.f32 0.015625, %v5791_v50  ;;  %v5773_v29 = vmul.f32 %v16933_v54, %v16933_v54 }
 0xecd   : > { %v5951_v46 = vmul.f32 %v16927_v14, %v5921_v1  ;;  %v5922_v44 = vmul.f32 %v13902_v20, %v16749_v6  ;;  %v5794_v60 = vpop.xlane.xlu1 %5793 }
 0xece   : > { %v5877_v22 = vadd.f32 1e-12, %v5853_v3  ;;  %v5854_v34 = vmul.f32 0.015625, %v5794_v60  ;;  %v5837_v24 = vsel %vm646_vm0, %v5773_v29, 0.0  ;;  %v5774_v12 = vmul.f32 %v16937_v63, %v16937_v63 }
 0xecf   : > { %v5952_v30 = vmul.f32 %v16927_v14, %v5922_v44  ;;  %5838 = vadd.xlane.f32.xlu0 %v5837_v24  ;;  %v5701_v23 = vpop.xlane.xlu0 %5700  ;;  %v5981_v1 = vadd.f32 %v16942_v5, %v5951_v46 }
 0xed0   : > { %13907 = vrsqrt.f32 %v5877_v22  ;;  %v5878_v18 = vadd.f32 1e-12, %v5854_v34  ;;  %v5727_v35 = vmul.f32 0.015625, %v5701_v23  ;;  %v5840_v50 = vsel %vm646_vm0, %v5774_v12, 0.0 }
 0xed1   : > { %v5982_v6 = vadd.f32 %v16942_v5, %v5952_v30  ;;  %5841 = vadd.xlane.f32.xlu1 %v5840_v50  ;;  %v5704_v20 = vpop.xlane.xlu1 %5703 }
 0xed2   : > { %v13904_v3 = vpop.eup %13903  ;;  %13909 = vrsqrt.f32 %v5878_v18  ;;  %v16954_v29 = vsub.f32 %v16802_v27, %v5727_v35  ;;  %v5728_v60 = vmul.f32 0.015625, %v5704_v20 }
 0xed3   : > { %v5797_v44 = vpop.xlane.xlu0 %5796  ;;  %v6005_v24 = vpack.c.bf16 %v5982_v6, %v5981_v1  ;;  %v5923_v22 = vmul.f32 %v13904_v3, %v16757_v10  ;;  %v19557_v6 = vmov 0  }
 0xed4   : > { %v13906_v34 = vpop.eup %13905  ;;  %v16958_v23 = vsub.f32 %v16811_v21, %v5728_v60  ;;  %v5855_v12 = vmul.f32 0.015625, %v5797_v44  ;;  %v5775_v46 = vmul.f32 %v16954_v29, %v16954_v29 }
 0xed5   : > { %11716 = vmatmul.mubr.msk.bf16.vlgmr.msra.gmra.mrb[136].mxu0 %vm646_vm0, %v6005_v24  ;;  %v5800_v30 = vpop.xlane.xlu1 %5799  ;;  %v5924_v18 = vmul.f32 %v13906_v34, %v16766_v9  ;;  %v5953_v35 = vmul.f32 %v16927_v14, %v5923_v22 }
 0xed6   : > { %v5879_v50 = vadd.f32 1e-12, %v5855_v12  ;;  %v5856_v20 = vmul.f32 0.015625, %v5800_v30  ;;  %v5843_v1 = vsel %vm646_vm0, %v5775_v46, 0.0  ;;  %v5776_v10 = vmul.f32 %v16958_v23, %v16958_v23  ;;  %6157 = vmatprep.mubr.bf16.mxu0 %v19557_v6 }
 0xed7   : > { %5844 = vadd.xlane.f32.xlu0 %v5843_v1  ;;  %v5803_v3 = vpop.xlane.xlu0 %5802  ;;  %v5954_v60 = vmul.f32 %v16927_v14, %v5924_v18  ;;  %v5983_v34 = vadd.f32 %v16942_v5, %v5953_v35 }
 0xed8   : > { %13911 = vrsqrt.f32 %v5879_v50  ;;  %v5880_v44 = vadd.f32 1e-12, %v5856_v20  ;;  %v5857_v24 = vmul.f32 0.015625, %v5803_v3  ;;  %v5846_v9 = vsel %vm646_vm0, %v5776_v10, 0.0 }
 0xed9   : > { %5847 = vadd.xlane.f32.xlu1 %v5846_v9  ;;  %v5806_v22 = vpop.xlane.xlu1 %5805  ;;  %v5984_v12 = vadd.f32 %v16942_v5, %v5954_v60 }
 0xeda   : > { %v13908_v46 = vpop.eup %13907  ;;  %13913 = vrsqrt.f32 %v5880_v44  ;;  %v5881_v30 = vadd.f32 1e-12, %v5857_v24  ;;  %v5858_v27 = vmul.f32 0.015625, %v5806_v22 }
 0xedb   : > { %v5809_v19 = vpop.xlane.xlu0 %5808  ;;  %v6006_v1 = vpack.c.bf16 %v5984_v12, %v5983_v34  ;;  %v5925_v21 = vmul.f32 %v13908_v46, %v16789_v51 }
 0xedc   : > { %v13910_v18 = vpop.eup %13909  ;;  %13915 = vrsqrt.f32 %v5881_v30  ;;  %v5882_v50 = vadd.f32 1e-12, %v5858_v27  ;;  %v5859_v20 = vmul.f32 0.015625, %v5809_v19 }
 0xedd   : > { %11717 = vmatmul.mubr.msk.bf16.gmra.mrb[140].mxu0 %vm646_vm0, %v6006_v1  ;;  %v5812_v10 = vpop.xlane.xlu1 %5811  ;;  %v5926_v3 = vmul.f32 %v13910_v18, %v16795_v33  ;;  %v5955_v35 = vmul.f32 %v16927_v14, %v5925_v21 }
 0xede   : > { %13917 = vrsqrt.f32 %v5882_v50  ;;  %v5860_v60 = vmul.f32 0.015625, %v5812_v10  ;;  %6167 = vmatprep.mubr.bf16.mxu0 %v19557_v6  ;;  %v5883_v24 = vadd.f32 1e-12, %v5859_v20 }
 0xedf   : > { %v5956_v44 = vmul.f32 %v16927_v14, %v5926_v3  ;;  %v5815_v51 = vpop.xlane.xlu0 %5814  ;;  %v5985_v27 = vadd.f32 %v16942_v5, %v5955_v35 }
 0xee0   : > { %v5884_v9 = vadd.f32 1e-12, %v5860_v60  ;;  %v5861_v30 = vmul.f32 0.015625, %v5815_v51 }
 0xee1   : > { %v5818_v22 = vpop.xlane.xlu1 %5817  ;;  %v5986_v19 = vadd.f32 %v16942_v5, %v5956_v44 }
 0xee2   : > { %v13912_v34 = vpop.eup %13911  ;;  %13919 = vrsqrt.f32 %v5884_v9  ;;  %v5862_v12 = vmul.f32 0.015625, %v5818_v22  ;;  %v5885_v60 = vadd.f32 1e-12, %v5861_v30 }
 0xee3   : > { %v6007_v33 = vpack.c.bf16 %v5986_v19, %v5985_v27  ;;  %v5927_v21 = vmul.f32 %v13912_v34, %v16805_v52  ;;  %13921 = vrsqrt.f32 %v5883_v24  ;;  %v5821_v44 = vpop.xlane.xlu0 %5820 }
 0xee4   : > { %v13914_v46 = vpop.eup %13913  ;;  %v5886_v20 = vadd.f32 1e-12, %v5862_v12  ;;  %v5863_v34 = vmul.f32 0.015625, %v5821_v44 }
 0xee5   : > { %11718 = vmatmul.mubr.msk.bf16.gmra.mrb[144].mxu0 %vm646_vm0, %v6007_v33  ;;  %v5928_v1 = vmul.f32 %v13914_v46, %v16814_v16  ;;  %v5957_v18 = vmul.f32 %v16927_v14, %v5927_v21  ;;  %v5824_v10 = vpop.xlane.xlu1 %5823 }
 0xee6   : > { %v13916_v50 = vpop.eup %13915  ;;  %6177 = vmatprep.mubr.bf16.mxu0 %v19557_v6  ;;  %13923 = vrsqrt.f32 %v5886_v20  ;;  %v5864_v51 = vmul.f32 0.015625, %v5824_v10  ;;  %v5887_v30 = vadd.f32 1e-12, %v5863_v34 }
 0xee7   : > { %v5958_v3 = vmul.f32 %v16927_v14, %v5928_v1  ;;  %v5987_v52 = vadd.f32 %v16942_v5, %v5957_v18  ;;  %v5929_v9 = vmul.f32 %v13916_v50, %v16818_v62  ;;  %13925 = vrsqrt.f32 %v5885_v60  ;;  %v5827_v1 = vpop.xlane.xlu0 %5826 }
 0xee8   : > { %v13918_v35 = vpop.eup %13917  ;;  %v5888_v21 = vadd.f32 1e-12, %v5864_v51  ;;  %v5865_v60 = vmul.f32 0.015625, %v5827_v1 }
 0xee9   : > { %v5988_v24 = vadd.f32 %v16942_v5, %v5958_v3  ;;  %v5930_v16 = vmul.f32 %v13918_v35, %v16825_v37  ;;  %v5959_v12 = vmul.f32 %v16927_v14, %v5929_v9  ;;  %v5830_v46 = vpop.xlane.xlu1 %5829 }
 0xeea   : > { %13927 = vrsqrt.f32 %v5888_v21  ;;  %v5866_v20 = vmul.f32 0.015625, %v5830_v46  ;;  %v5889_v9 = vadd.f32 1e-12, %v5865_v60 }
 0xeeb   : > { %v6008_v22 = vpack.c.bf16 %v5988_v24, %v5987_v52  ;;  %v5960_v27 = vmul.f32 %v16927_v14, %v5930_v16  ;;  %v5989_v18 = vadd.f32 %v16942_v5, %v5959_v12  ;;  %13929 = vrsqrt.f32 %v5887_v30 }
 0xeec   : > { %v13920_v19 = vpop.eup %13919 }
 0xeed   : > { %11719 = vmatmul.mubr.msk.bf16.gmra.mrb[148].mxu0 %vm646_vm0, %v6008_v22  ;;  %v13922_v33 = vpop.eup %13921  ;;  %v5990_v62 = vadd.f32 %v16942_v5, %v5960_v27  ;;  %v5932_v37 = vmul.f32 %v13920_v19, %v16841_v49  ;;  %v5890_v49 = vadd.f32 1e-12, %v5866_v20 }
 0xeee   : > { %6187 = vmatprep.mubr.bf16.mxu0 %v19557_v6  ;;  %v5931_v50 = vmul.f32 %v13922_v33, %v16832_v31 }
 0xeef   : > { %v6009_v10 = vpack.c.bf16 %v5990_v62, %v5989_v18  ;;  %v5962_v3 = vmul.f32 %v16927_v14, %v5932_v37  ;;  %13931 = vrsqrt.f32 %v5890_v49 }
 0xef0   : > { %v13924_v35 = vpop.eup %13923  ;;  %v5961_v44 = vmul.f32 %v16927_v14, %v5931_v50  ;;  %13933 = vrsqrt.f32 %v5889_v9 }
 0xef1   : > { %v13926_v52 = vpop.eup %13925  ;;  %v5992_v24 = vadd.f32 %v16942_v5, %v5962_v3  ;;  %v5934_v31 = vmul.f32 %v13924_v35, %v16859_v55 }
 0xef2   : > { %v5991_v16 = vadd.f32 %v16942_v5, %v5961_v44  ;;  %v5933_v51 = vmul.f32 %v13926_v52, %v16850_v25 }
 0xef3   : > { %v5964_v27 = vmul.f32 %v16927_v14, %v5934_v31 }
 0xef4   : > { %v6010_v22 = vpack.c.bf16 %v5992_v24, %v5991_v16  ;;  %v13928_v19 = vpop.eup %13927  ;;  %v5963_v34 = vmul.f32 %v16927_v14, %v5933_v51 }
 0xef5   : > { %11720 = vmatmul.mubr.msk.bf16.gmra.mrb[152].mxu0 %vm646_vm0, %v6009_v10  ;;  %v13930_v12 = vpop.eup %13929  ;;  %v5994_v55 = vadd.f32 %v16942_v5, %v5964_v27  ;;  %v5936_v33 = vmul.f32 %v13928_v19, %v16877_v61 }
 0xef6   : > { %6197 = vmatprep.mubr.bf16.mxu0 %v19557_v6  ;;  %v5993_v21 = vadd.f32 %v16942_v5, %v5963_v34  ;;  %v5935_v25 = vmul.f32 %v13930_v12, %v16868_v40 }
 0xef7   : > { %v5966_v62 = vmul.f32 %v16927_v14, %v5936_v33 }
 0xef8   : > { %v6011_v46 = vpack.c.bf16 %v5994_v55, %v5993_v21  ;;  %v5965_v30 = vmul.f32 %v16927_v14, %v5935_v25 }
 0xef9   : > { %v13932_v37 = vpop.eup %13931  ;;  %v5996_v18 = vadd.f32 %v16942_v5, %v5966_v62 }
 0xefa   : > { %v13934_v1 = vpop.eup %13933  ;;  %v5938_v50 = vmul.f32 %v13932_v37, %v16898_v32  ;;  %v5995_v61 = vadd.f32 %v16942_v5, %v5965_v30 }
 0xefb   : > { %v5937_v20 = vmul.f32 %v13934_v1, %v16886_v48 }
 0xefc   : > { %v6012_v40 = vpack.c.bf16 %v5996_v18, %v5995_v61  ;;  %v5968_v10 = vmul.f32 %v16927_v14, %v5938_v50 }
 0xefd   : > { %11721 = vmatmul.mubr.msk.bf16.gmra.mrb[156].mxu0 %vm646_vm0, %v6010_v22  ;;  %v5967_v3 = vmul.f32 %v16927_v14, %v5937_v20 }
 0xefe   : > { %6207 = vmatprep.mubr.bf16.mxu0 %v19557_v6  ;;  %v5998_v35 = vadd.f32 %v16942_v5, %v5968_v10 }
 0xeff   : > { %v5997_v60 = vadd.f32 %v16942_v5, %v5967_v3 }
 0xf01   : > { %v6013_v44 = vpack.c.bf16 %v5998_v35, %v5997_v60 }
 0xf05   : > { %11722 = vmatmul.mubr.msk.bf16.gmra.mrb[160].mxu0 %vm646_vm0, %v6011_v46 }
 0xf06   : > { %6217 = vmatprep.mubr.bf16.mxu0 %v19557_v6 }
 0xf0d   : > { %11723 = vmatmul.mubr.msk.bf16.gmra.mrb[164].mxu0 %vm646_vm0, %v6012_v40 }
 0xf0e   : > { %6227 = vmatprep.mubr.bf16.mxu0 %v19557_v6 }
 0xf15   : > { %11724 = vmatmul.mubr.msk.bf16.gmra.mrb[168].mxu0 %vm646_vm0, %v6013_v44 }
 0xf16   : > { %6237 = vmatprep.mubr.bf16.mxu0 %v19557_v6 }
 0xf54   : > { %v5833_v32 = vpop.xlane.xlu0 %5832 }
 0xf55   : > { %v5867_v48 = vmul.f32 0.015625, %v5833_v32 }
 0xf56   : > { %v5836_v52 = vpop.xlane.xlu1 %5835 }
 0xf57   : > { %v5891_v49 = vadd.f32 1e-12, %v5867_v48  ;;  %v5868_v24 = vmul.f32 0.015625, %v5836_v52 }
 0xf59   : > { %13935 = vrsqrt.f32 %v5891_v49  ;;  %v5892_v31 = vadd.f32 1e-12, %v5868_v24 }
 0xf5b   : > { %13937 = vrsqrt.f32 %v5892_v31 }
 0xf5c   : > { %v5839_v9 = vpop.xlane.xlu0 %5838 }
 0xf5d   : > { %v5869_v16 = vmul.f32 0.015625, %v5839_v9 }
 0xf5e   : > { %v5842_v51 = vpop.xlane.xlu1 %5841 }
 0xf5f   : > { %v5893_v22 = vadd.f32 1e-12, %v5869_v16  ;;  %v5870_v27 = vmul.f32 0.015625, %v5842_v51 }
 0xf61   : > { %13939 = vrsqrt.f32 %v5893_v22  ;;  %v5894_v19 = vadd.f32 1e-12, %v5870_v27  ;;  %v19558_v22 = vld [vmem:[#allocation28_spill] sm:$0xff] }
 0xf63   : > { %v13936_v34 = vpop.eup %13935  ;;  %13941 = vrsqrt.f32 %v5894_v19 }
 0xf64   : > { %v5845_v12 = vpop.xlane.xlu0 %5844  ;;  %v5939_v55 = vmul.f32 %v13936_v34, %v16912_v11 }
 0xf65   : > { %v13938_v33 = vpop.eup %13937  ;;  %v5871_v21 = vmul.f32 0.015625, %v5845_v12 }
 0xf66   : > { %v5848_v25 = vpop.xlane.xlu1 %5847  ;;  %v5940_v46 = vmul.f32 %v13938_v33, %v16915_v8  ;;  %v5969_v62 = vmul.f32 %v16927_v14, %v5939_v55 }
 0xf67   : > { %v5895_v37 = vadd.f32 1e-12, %v5871_v21  ;;  %v5872_v30 = vmul.f32 0.015625, %v5848_v25 }
 0xf68   : > { %v5970_v1 = vmul.f32 %v16927_v14, %v5940_v46  ;;  %v5999_v50 = vadd.f32 %v16942_v5, %v5969_v62 }
 0xf69   : > { %13943 = vrsqrt.f32 %v5895_v37  ;;  %v5896_v18 = vadd.f32 1e-12, %v5872_v30 }
 0xf6a   : > { %v6000_v61 = vadd.f32 %v16942_v5, %v5970_v1 }
 0xf6b   : > { %v13940_v20 = vpop.eup %13939  ;;  %13945 = vrsqrt.f32 %v5896_v18 }
 0xf6c   : > { %v6014_v11 = vpack.c.bf16 %v6000_v61, %v5999_v50  ;;  %v5941_v40 = vmul.f32 %v13940_v20, %v16933_v54 }
 0xf6d   : > { %v13942_v10 = vpop.eup %13941 }
 0xf6e   : > { %11725 = vmatmul.mubr.msk.bf16.gmra.mrb[172].mxu0 %vm646_vm0, %v6014_v11  ;;  %v5942_v8 = vmul.f32 %v13942_v10, %v16937_v63  ;;  %v5971_v3 = vmul.f32 %v16927_v14, %v5941_v40 }
 0xf6f   : > { %6247 = vmatprep.mubr.bf16.mxu0 %v19557_v6 }
 0xf70   : > { %v5972_v35 = vmul.f32 %v16927_v14, %v5942_v8  ;;  %v6001_v60 = vadd.f32 %v16942_v5, %v5971_v3 }
 0xf72   : > { %v6002_v44 = vadd.f32 %v16942_v5, %v5972_v35 }
 0xf73   : > { %v13944_v32 = vpop.eup %13943 }
 0xf74   : > { %v6015_v48 = vpack.c.bf16 %v6002_v44, %v6001_v60  ;;  %v5943_v52 = vmul.f32 %v13944_v32, %v16954_v29  ;;  %v11707_v29 = vld [vmem:[%s19318_s7 + $0x12] ss:$8 sm:$0x3] }
 0xf75   : > { %v13946_v54 = vpop.eup %13945  ;;  %v17058_v51 = vrot.slane %v11707_v29, %v19500_v2  ;;  %v17061_v27 = vrot.slane %v11707_v29, %v19558_v22 }
 0xf76   : > { %11726 = vmatmul.mubr.msk.bf16.gmra.mrb[176].mxu0 %vm646_vm0, %v6015_v48  ;;  %v5944_v49 = vmul.f32 %v13946_v54, %v16958_v23  ;;  %v5973_v63 = vmul.f32 %v16927_v14, %v5943_v52 }
 0xf77   : > { %6257 = vmatprep.mubr.bf16.mxu0 %v19557_v6 }
 0xf78   : > { %v5974_v24 = vmul.f32 %v16927_v14, %v5944_v49  ;;  %v6003_v31 = vadd.f32 %v16942_v5, %v5973_v63 }
 0xf7a   : > { %v6004_v9 = vadd.f32 %v16942_v5, %v5974_v24 }
 0xf7c   : > { %v6016_v16 = vpack.c.bf16 %v6004_v9, %v6003_v31 }
 0xf7e   : > { %11727 = vmatmul.mubr.msk.bf16.gmra.mrb[180].mxu0 %vm646_vm0, %v6016_v16 }
 0xfa8   : > { %v6149_v23 = vpop.f32.mrb[136].mxu0 }
 0xfa9   : > { %v6151_v19 = vpop.f32.mrb[137].mxu0  ;;  %v6150_v34 = vadd.f32 %v6149_v23, %v17058_v51 }
 0xfaa   : > { %v6153_v14 = vpop.f32.mrb[138].mxu0  ;;  %v6152_v55 = vadd.f32 %v6151_v19, %v17061_v27 }
 0xfab   : > { %v6154_v5 = vadd.f32 %v6153_v14, %v17058_v51  ;;  %v6155_v12 = vpop.f32.mrb[139].mxu0 }
 0xfac   : > { %v6156_v33 = vadd.f32 %v6155_v12, %v17061_v27 }
 0xfad   : > { %v17067_v21 = vpack.c.bf16 %v6154_v5, %v6150_v34 }
 0xfae   : > { %v17069_v25 = vpack.c.bf16 %v6156_v33, %v6152_v55 }
 0xfaf   : > { %12780 = vmatprep.mubr.msk.bf16.mxu1 %vm1519_vm1, %v17067_v21  ;;  %6302 = vrot.lane.b32.xlu0 %v17067_v21, %s14246_s14 }
 0xfb0   : > { %19559 = vst [vmem:[#allocation22_spill] sm:$0xff] %v17069_v25  ;;  %v6159_v46 = vpop.f32.mrb[140].mxu0 }
 0xfb1   : > { %v6160_v62 = vadd.f32 %v6159_v46, %v17058_v51  ;;  %v17076_v37 = vpop.f32.mrb[141].mxu0 }
 0xfb2   : > { %v6163_v30 = vpop.f32.mrb[142].mxu0 }
 0xfb3   : > { %v17078_v1 = vpack.c.bf16 %v6160_v62, %v6160_v62  ;;  %v6165_v18 = vpop.f32.mrb[143].mxu0  ;;  %v6164_v61 = vadd.f32 %v6163_v30, %v17058_v51 }
 0xfb4   : > { %v6166_v40 = vadd.f32 %v6165_v18, %v17061_v27 }
 0xfb5   : > { %6304 = vrot.lane.b32.xlu1 %v17078_v1, %s14246_s14 }
 0xfb8   : > { %v6169_v50 = vpop.f32.mrb[144].mxu0 }
 0xfb9   : > { %v6170_v20 = vadd.f32 %v6169_v50, %v17058_v51  ;;  %v6171_v11 = vpop.f32.mrb[145].mxu0 }
 0xfba   : > { %v6172_v10 = vadd.f32 %v6171_v11, %v17061_v27  ;;  %v6173_v8 = vpop.f32.mrb[146].mxu0 }
 0xfbb   : > { %v17086_v3 = vpack.c.bf16 %v6170_v20, %v6164_v61  ;;  %v6174_v35 = vadd.f32 %v6173_v8, %v17058_v51  ;;  %v17089_v60 = vpop.f32.mrb[147].mxu0 }
 0xfbc   : > { %v17091_v44 = vpack.c.bf16 %v6172_v10, %v6166_v40 }
 0xfbd   : > { %6368 = vrot.lane.b32.xlu1 %v17086_v3, %s14246_s14  ;;  %v17095_v32 = vpack.c.bf16 %v6174_v35, %v6174_v35 }
 0xfc0   : > { %v6179_v48 = vpop.f32.mrb[148].mxu0 }
 0xfc1   : > { %6370 = vrot.lane.b32.xlu1 %v17095_v32, %s14246_s14  ;;  %v6181_v52 = vpop.f32.mrb[149].mxu0  ;;  %v6180_v49 = vadd.f32 %v6179_v48, %v17058_v51 }
 0xfc2   : > { %v6183_v54 = vpop.f32.mrb[150].mxu0  ;;  %v6182_v31 = vadd.f32 %v6181_v52, %v17061_v27 }
 0xfc3   : > { %v6184_v63 = vadd.f32 %v6183_v54, %v17058_v51  ;;  %v6185_v24 = vpop.f32.mrb[151].mxu0 }
 0xfc4   : > { %v6186_v9 = vadd.f32 %v6185_v24, %v17061_v27 }
 0xfc5   : > { %v17103_v16 = vpack.c.bf16 %v6184_v63, %v6180_v49 }
 0xfc6   : > { %v17105_v29 = vpack.c.bf16 %v6186_v9, %v6182_v31 }
 0xfc7   : > { %6434 = vrot.lane.b32.xlu0 %v17103_v16, %s14246_s14 }
 0xfc8   : > { %19560 = vst [vmem:[#allocation25_spill] sm:$0xff] %v17105_v29  ;;  %v6189_v23 = vpop.f32.mrb[152].mxu0 }
 0xfc9   : > { %v6190_v19 = vadd.f32 %v6189_v23, %v17058_v51  ;;  %v17110_v14 = vpop.f32.mrb[153].mxu0 }
 0xfca   : > { %v6193_v34 = vpop.f32.mrb[154].mxu0 }
 0xfcb   : > { %v17112_v5 = vpack.c.bf16 %v6190_v19, %v6190_v19  ;;  %v6195_v12 = vpop.f32.mrb[155].mxu0  ;;  %v6194_v33 = vadd.f32 %v6193_v34, %v17058_v51 }
 0xfcc   : > { %v6196_v30 = vadd.f32 %v6195_v12, %v17061_v27 }
 0xfcd   : > { %6436 = vrot.lane.b32.xlu1 %v17112_v5, %s14246_s14 }
 0xfd0   : > { %v6199_v55 = vpop.f32.mrb[156].mxu0 }
 0xfd1   : > { %v6200_v46 = vadd.f32 %v6199_v55, %v17058_v51  ;;  %v6201_v62 = vpop.f32.mrb[157].mxu0 }
 0xfd2   : > { %v6202_v18 = vadd.f32 %v6201_v62, %v17061_v27  ;;  %v6203_v50 = vpop.f32.mrb[158].mxu0 }
 0xfd3   : > { %v17120_v61 = vpack.c.bf16 %v6200_v46, %v6194_v33  ;;  %v6204_v20 = vadd.f32 %v6203_v50, %v17058_v51  ;;  %v17123_v11 = vpop.f32.mrb[159].mxu0 }
 0xfd4   : > { %v17125_v40 = vpack.c.bf16 %v6202_v18, %v6196_v30 }
 0xfd5   : > { %v17127_v10 = vpack.c.bf16 %v6204_v20, %v6204_v20  ;;  %6500 = vrot.lane.b32.xlu0 %v17120_v61, %s14246_s14 }
 0xfd7   : > { %6502 = vrot.lane.b32.xlu1 %v17127_v10, %s14246_s14 }
 0xfd8   : > { %v6209_v8 = vpop.f32.mrb[160].mxu0 }
 0xfd9   : > { %v6211_v35 = vpop.f32.mrb[161].mxu0  ;;  %v6210_v52 = vadd.f32 %v6209_v8, %v17058_v51 }
 0xfda   : > { %v6213_v48 = vpop.f32.mrb[162].mxu0  ;;  %v6212_v63 = vadd.f32 %v6211_v35, %v17061_v27 }
 0xfdb   : > { %v6214_v54 = vadd.f32 %v6213_v48, %v17058_v51  ;;  %v6215_v49 = vpop.f32.mrb[163].mxu0 }
 0xfdc   : > { %v6216_v24 = vadd.f32 %v6215_v49, %v17061_v27 }
 0xfdd   : > { %v17137_v31 = vpack.c.bf16 %v6214_v54, %v6210_v52 }
 0xfde   : > { %v17139_v9 = vpack.c.bf16 %v6216_v24, %v6212_v63 }
 0xfdf   : > { %6566 = vrot.lane.b32.xlu0 %v17137_v31, %s14246_s14 }
 0xfe0   : > { %v6219_v23 = vpop.f32.mrb[164].mxu0 }
 0xfe1   : > { %v6220_v19 = vadd.f32 %v6219_v23, %v17058_v51  ;;  %v17144_v34 = vpop.f32.mrb[165].mxu0 }
 0xfe2   : > { %v6223_v12 = vpop.f32.mrb[166].mxu0 }
 0xfe3   : > { %v17146_v55 = vpack.c.bf16 %v6220_v19, %v6220_v19  ;;  %v6225_v33 = vpop.f32.mrb[167].mxu0  ;;  %v6224_v62 = vadd.f32 %v6223_v12, %v17058_v51 }
 0xfe4   : > { %v6226_v50 = vadd.f32 %v6225_v33, %v17061_v27 }
 0xfe5   : > { %6568 = vrot.lane.b32.xlu1 %v17146_v55, %s14246_s14 }
 0xfe8   : > { %v6229_v46 = vpop.f32.mrb[168].mxu0 }
 0xfe9   : > { %v6230_v30 = vadd.f32 %v6229_v46, %v17058_v51  ;;  %v6231_v18 = vpop.f32.mrb[169].mxu0 }
 0xfea   : > { %v6232_v20 = vadd.f32 %v6231_v18, %v17061_v27  ;;  %v6233_v8 = vpop.f32.mrb[170].mxu0 }
 0xfeb   : > { %v17154_v35 = vpack.c.bf16 %v6230_v30, %v6224_v62  ;;  %v6234_v48 = vadd.f32 %v6233_v8, %v17058_v51  ;;  %v17157_v52 = vpop.f32.mrb[171].mxu0 }
 0xfec   : > { %v17159_v54 = vpack.c.bf16 %v6232_v20, %v6226_v50 }
 0xfed   : > { %v17161_v49 = vpack.c.bf16 %v6234_v48, %v6234_v48  ;;  %6632 = vrot.lane.b32.xlu0 %v17154_v35, %s14246_s14 }
 0xfef   : > { %6634 = vrot.lane.b32.xlu1 %v17161_v49, %s14246_s14 }
0x1021   : > { %v6303_v63 = vpop.permute.xlu0 %6302 }
0x1022   : > { %13262 = vmatprep.subr.msk.bf16.mxu1 %vm1519_vm1, %v6303_v63  ;;  %v6313_v24 = vsel %vm1519_vm1, %v6303_v63, 0 }
0x1023   : > { %12777 = vmatpush3.bf16.xpose.msra.mxu1 %v6313_v24 }
0x1027   : > { %v6305_v23 = vpop.permute.xlu1 %6304 }
0x1028   : > { %13263 = vmatprep.subr.msk.bf16.mxu1 %vm1519_vm1, %v6305_v23  ;;  %v6316_v19 = vsel %vm1519_vm1, %v6305_v23, 0 }
0x102b   : > { %12779 = vmatpush3.bf16.xpose.msra.mxu1 %v6316_v19 }
0x102f   : > { %v6369_v12 = vpop.permute.xlu1 %6368 }
0x1030   : > { %13264 = vmatprep.subr.msk.bf16.mxu1 %vm1519_vm1, %v6369_v12  ;;  %v6379_v33 = vsel %vm1519_vm1, %v6369_v12, 0 }
0x1032   : > { %12781 = vmatmul.mubr.msk.bf16.vlgmr.msra.gmra.mrb[160].mxu1 %vm1519_vm1, %v17078_v1 }
0x1033   : > { %12785 = vmatpush3.bf16.xpose.msra.mxu1 %v6379_v33  ;;  %12788 = vmatprep.mubr.msk.bf16.mxu1 %vm1519_vm1, %v17086_v3  ;;  %v6371_v46 = vpop.permute.xlu1 %6370 }
0x1034   : > { %13265 = vmatprep.subr.msk.bf16.mxu1 %vm1519_vm1, %v6371_v46  ;;  %v6382_v62 = vsel %vm1519_vm1, %v6371_v46, 0 }
0x1039   : > { %v6435_v30 = vpop.permute.xlu0 %6434 }
0x103a   : > { %v6445_v20 = vsel %vm1519_vm1, %v6435_v30, 0 }
0x103b   : > { %12787 = vmatpush3.bf16.xpose.msra.mxu1 %v6382_v62 }
0x103c   : > { %13266 = vmatprep.subr.msk.bf16.mxu1 %vm1519_vm1, %v6435_v30 }
0x103f   : > { %v6437_v8 = vpop.permute.xlu1 %6436 }
0x1041   : > { %v6239_v18 = vpop.f32.mrb[172].mxu0 }
0x1042   : > { %v6241_v50 = vpop.f32.mrb[173].mxu0  ;;  %12789 = vmatmul.mubr.msk.bf16.vlgmr.msra.gmra.mrb[164].mxu1 %vm1519_vm1, %v17095_v32  ;;  %v6240_v63 = vadd.f32 %v6239_v18, %v17058_v51 }
0x1043   : > { %v6243_v48 = vpop.f32.mrb[174].mxu0  ;;  %12793 = vmatpush3.bf16.xpose.msra.mxu1 %v6445_v20  ;;  %12796 = vmatprep.mubr.msk.bf16.mxu1 %vm1519_vm1, %v17103_v16  ;;  %v6242_v19 = vadd.f32 %v6241_v50, %v17061_v27  ;;  %v6448_v20 = vsel %vm1519_vm1, %v6437_v8, 0 }
0x1044   : > { %v6244_v24 = vadd.f32 %v6243_v48, %v17058_v51  ;;  %v6245_v23 = vpop.f32.mrb[175].mxu0  ;;  %13267 = vmatprep.subr.msk.bf16.mxu1 %vm1519_vm1, %v6437_v8 }
0x1045   : > { %v6246_v12 = vadd.f32 %v6245_v23, %v17061_v27 }
0x1046   : > { %v17190_v33 = vpack.c.bf16 %v6244_v24, %v6240_v63 }
0x1047   : > { %v17192_v46 = vpack.c.bf16 %v6246_v12, %v6242_v19  ;;  %v6501_v50 = vpop.permute.xlu0 %6500 }
0x1048   : > { %19561 = vst [vmem:[#allocation23_spill] sm:$0xff] %v17190_v33  ;;  %6698 = vrot.lane.b32.xlu0 %v17190_v33, %s14246_s14  ;;  %12828 = vmatprep.mubr.msk.bf16.mxu0 %vm1519_vm1, %v17190_v33  ;;  %v6511_v8 = vsel %vm1519_vm1, %v6501_v50, 0 }
0x1049   : > { %v6249_v62 = vpop.f32.mrb[176].mxu0 }
0x104a   : > { %v6250_v30 = vadd.f32 %v6249_v62, %v17058_v51  ;;  %v17199_v18 = vpop.f32.mrb[177].mxu0 }
0x104b   : > { %v6253_v48 = vpop.f32.mrb[178].mxu0  ;;  %12795 = vmatpush3.bf16.xpose.msra.mxu1 %v6448_v20  ;;  %v6503_v20 = vpop.permute.xlu1 %6502 }
0x104c   : > { %v17202_v63 = vpack.c.bf16 %v6250_v30, %v6250_v30  ;;  %v6255_v24 = vpop.f32.mrb[179].mxu0  ;;  %13268 = vmatprep.subr.msk.bf16.mxu1 %vm1519_vm1, %v6501_v50  ;;  %v6254_v19 = vadd.f32 %v6253_v48, %v17058_v51 }
0x104d   : > { %v6256_v30 = vadd.f32 %v6255_v24, %v17061_v27  ;;  %v6514_v24 = vsel %vm1519_vm1, %v6503_v20, 0 }
0x104e   : > { %6700 = vrot.lane.b32.xlu1 %v17202_v63, %s14246_s14 }
0x1051   : > { %v6259_v23 = vpop.f32.mrb[180].mxu0 }
0x1052   : > { %v6260_v12 = vadd.f32 %v6259_v23, %v17058_v51  ;;  %v6261_v62 = vpop.f32.mrb[181].mxu0  ;;  %12797 = vmatmul.mubr.msk.bf16.vlgmr.msra.gmra.mrb[168].mxu1 %vm1519_vm1, %v17112_v5 }
0x1053   : > { %v6262_v22 = vadd.f32 %v6261_v62, %v17061_v27  ;;  %v6263_v6 = vpop.f32.mrb[182].mxu0  ;;  %12801 = vmatpush3.bf16.xpose.msra.mxu1 %v6511_v8  ;;  %12804 = vmatprep.mubr.msk.bf16.mxu1 %vm1519_vm1, %v17120_v61 }
0x1054   : > { %v17216_v43 = vpack.c.bf16 %v6260_v12, %v6254_v19  ;;  %v6264_v48 = vadd.f32 %v6263_v6, %v17058_v51  ;;  %v17219_v23 = vpop.f32.mrb[183].mxu0  ;;  %13269 = vmatprep.subr.msk.bf16.mxu1 %vm1519_vm1, %v6503_v20  ;;  %v6567_v19 = vpop.permute.xlu0 %6566 }
0x1055   : > { %19563 = vst [vmem:[#allocation30_spill] sm:$0xff] %v17219_v23  ;;  %v17222_v47 = vpack.c.bf16 %v6262_v22, %v6256_v30  ;;  %v6577_v6 = vsel %vm1519_vm1, %v6567_v19, 0 }
0x1056   : > { %19562 = vst [vmem:[#allocation33_spill] sm:$0xff] %v17216_v43  ;;  %v17224_v50 = vpack.c.bf16 %v6264_v48, %v6264_v48  ;;  %6764 = vrot.lane.b32.xlu0 %v17216_v43, %s14246_s14 }
0x1057   : > { %19564 = vst [vmem:[#allocation31_spill] sm:$0xff] %v17222_v47  ;;  %v6569_v51 = vpop.permute.xlu1 %6568 }
0x1058   : > { %19565 = vst [vmem:[#allocation29_spill] sm:$0xff] %v17224_v50  ;;  %6766 = vrot.lane.b32.xlu1 %v17224_v50, %s14246_s14  ;;  %v6580_v22 = vsel %vm1519_vm1, %v6569_v51, 0 }
0x105b   : > { %12803 = vmatpush3.bf16.xpose.msra.mxu1 %v6514_v24 }
0x105c   : > { %13270 = vmatprep.subr.msk.bf16.mxu1 %vm1519_vm1, %v6567_v19 }
0x105f   : > { %v6633_v12 = vpop.permute.xlu0 %6632 }
0x1060   : > { %v6643_v62 = vsel %vm1519_vm1, %v6633_v12, 0 }
0x1061   : > { %v6635_v8 = vpop.permute.xlu1 %6634 }
0x1062   : > { %12805 = vmatmul.mubr.msk.bf16.vlgmr.msra.gmra.mrb[172].mxu1 %vm1519_vm1, %v17127_v10  ;;  %v6646_v20 = vsel %vm1519_vm1, %v6635_v8, 0 }
0x1063   : > { %12809 = vmatpush3.bf16.xpose.msra.mxu1 %v6577_v6  ;;  %12812 = vmatprep.mubr.msk.bf16.mxu1 %vm1519_vm1, %v17137_v31  ;;  %v6162_v6 = vadd.f32 %v17076_v37, %v17061_v27 }
0x1064   : > { %13271 = vmatprep.subr.msk.bf16.mxu1 %vm1519_vm1, %v6569_v51 }
0x106b   : > { %12811 = vmatpush3.bf16.xpose.msra.mxu1 %v6580_v22 }
0x106c   : > { %13272 = vmatprep.subr.msk.bf16.mxu1 %vm1519_vm1, %v6633_v12 }
0x1072   : > { %12813 = vmatmul.mubr.msk.bf16.vlgmr.msra.gmra.mrb[176].mxu1 %vm1519_vm1, %v17146_v55 }
0x1073   : > { %12817 = vmatpush3.bf16.xpose.msra.mxu1 %v6643_v62  ;;  %12820 = vmatprep.mubr.msk.bf16.mxu1 %vm1519_vm1, %v17154_v35  ;;  %v17260_v62 = vpack.c.bf16 %v6162_v6, %v6162_v6 }
0x1074   : > { %13273 = vmatprep.subr.msk.bf16.mxu1 %vm1519_vm1, %v6635_v8 }
0x1075   : > { %19566 = vst [vmem:[#allocation37_spill] sm:$0xff] %v17260_v62  ;;  %v7115_v37 = vsel %vm2329_vm2, %v17260_v62, 0 }
0x107b   : > { %12819 = vmatpush3.bf16.xpose.msra.mxu1 %v6646_v20  ;;  %v6192_v20 = vadd.f32 %v17110_v14, %v17061_v27 }
0x1082   : > { %12821 = vmatmul.mubr.msk.bf16.vlgmr.msra.gmra.mrb[180].mxu1 %vm1519_vm1, %v17161_v49 }
0x1083   : > { %12836 = vmatprep.mubr.msk.bf16.mxu1 %vm1519_vm1, %v17216_v43 }
0x10ba   : > { %v6699_v30 = vpop.permute.xlu0 %6698 }
0x10bb   : > { %13274 = vmatprep.subr.msk.bf16.mxu0 %vm1519_vm1, %v6699_v30  ;;  %v6709_v48 = vsel %vm1519_vm1, %v6699_v30, 0  ;;  %v17275_v30 = vpack.c.bf16 %v6192_v20, %v6192_v20 }
0x10bc   : > { %12825 = vmatpush3.bf16.xpose.msra.mxu0 %v6709_v48 }
0x10bd   : > { %19567 = vst [vmem:[#allocation38_spill] sm:$0xff] %v17275_v30  ;;  %v7229_v48 = vsel %vm2329_vm2, %v17275_v30, 0 }
0x10c0   : > { %v6701_v24 = vpop.permute.xlu1 %6700 }
0x10c1   : > { %13275 = vmatprep.subr.msk.bf16.mxu0 %vm1519_vm1, %v6701_v24  ;;  %v6712_v19 = vsel %vm1519_vm1, %v6701_v24, 0 }
0x10c4   : > { %12827 = vmatpush3.bf16.xpose.msra.mxu0 %v6712_v19  ;;  %v19568_v19 = vld [vmem:[#allocation36_spill] sm:$0xff] }
0x10c5   : > { %12840 = vmatprep.subr.bf16.mxu0 %v17069_v25 }
0x10c8   : > { %v6765_v51 = vpop.permute.xlu0 %6764 }
0x10c9   : > { %13276 = vmatprep.subr.msk.bf16.mxu1 %vm1519_vm1, %v6765_v51  ;;  %v6775_v22 = vsel %vm1519_vm1, %v6765_v51, 0 }
0x10ca   : > { %12833 = vmatpush3.bf16.xpose.msra.mxu1 %v6775_v22  ;;  %v6767_v12 = vpop.permute.xlu1 %6766 }
0x10cb   : > { %12829 = vmatmul.mubr.msk.bf16.vlgmr.msra.gmra.mrb[184].mxu0 %vm1519_vm1, %v17202_v63  ;;  %13277 = vmatprep.subr.msk.bf16.mxu1 %vm1519_vm1, %v6767_v12  ;;  %v6778_v8 = vsel %vm1519_vm1, %v6767_v12, 0 }
0x10cc   : > { %12841 = vmatpush3.bf16.msra.mxu0 %v17069_v25 }
0x10cd   : > { %13278 = vmatprep.subr.msk.bf16.mxu0 %vm2329_vm2, %v17260_v62 }
0x10d0   : > { %12843 = vmatpush3.bf16.msra.mxu0 %v7115_v37 }
0x10d1   : > { %12848 = vmatprep.subr.bf16.mxu0 %v17091_v44 }
0x10d2   : > { %12835 = vmatpush3.bf16.xpose.msra.mxu1 %v6778_v8 }
0x10d3   : > { %12856 = vmatprep.subr.bf16.mxu1 %v17105_v29 }
0x10d9   : > { %12837 = vmatmul.mubr.msk.bf16.vlgmr.msra.gmra.mrb[184].mxu1 %vm1519_vm1, %v17224_v50 }
0x10da   : > { %12857 = vmatpush3.bf16.msra.mxu1 %v17105_v29 }
0x10db   : > { %13280 = vmatprep.subr.msk.bf16.mxu1 %vm2329_vm2, %v17275_v30 }
0x10de   : > { %12859 = vmatpush3.bf16.msra.mxu1 %v7229_v48 }
0x10df   : > { %12872 = vmatprep.subr.bf16.mxu1 %v17139_v9 }
0x1105   : > { %v12782_v24 = vpop.f32.mrb[160].mxu1 }
0x1106   : > { %v17286_v6 = vadd.f32 %v12782_v24, %v19568_v19  ;;  %v6352_v14 = vpop.f32.mrb[161].mxu1 }
0x1107   : > { %v12783_v51 = vpop.f32.mrb[162].mxu1  ;;  %v17289_v22 = vadd.f32 %v6352_v14, %v19568_v19 }
0x1108   : > { %v6355_v12 = vpop.f32.mrb[163].mxu1  ;;  %v6834_v37 = vsel %vm2042_vm4, %v17286_v6, -inf }
0x1109   : > { %v17294_v8 = vadd.f32 %v6355_v12, %v19568_v19  ;;  %6835 = vmax.xlane.f32.xlu0 %v6834_v37  ;;  %v6828_v48 = vsel %vm2042_vm4, %v17289_v22, -inf }
0x110b   : > { %v6831_v20 = vsel %vm2042_vm4, %v17294_v8, -inf }
0x110c   : > { %6832 = vmax.xlane.f32.xlu1 %v6831_v20 }
0x110d   : > { %6829 = vmax.xlane.f32.xlu0 %v6828_v48 }
0x1115   : > { %v12790_v24 = vpop.f32.mrb[164].mxu1 }
0x1116   : > { %v17301_v14 = vadd.f32 %v12790_v24, %v19568_v19  ;;  %v6418_v51 = vpop.f32.mrb[165].mxu1 }
0x1117   : > { %v17304_v42 = vadd.f32 %v6418_v51, %v19568_v19  ;;  %v12791_v15 = vpop.f32.mrb[166].mxu1 }
0x1118   : > { %v6421_v12 = vpop.f32.mrb[167].mxu1  ;;  %v6843_v37 = vsel %vm2042_vm4, %v17301_v14, -inf }
0x1119   : > { %v17309_v36 = vadd.f32 %v6421_v12, %v19568_v19  ;;  %6844 = vmax.xlane.f32.xlu1 %v6843_v37  ;;  %v6837_v20 = vsel %vm2042_vm4, %v17304_v42, -inf }
0x111a   : > { %6838 = vmax.xlane.f32.xlu0 %v6837_v20 }
0x111b   : > { %v6840_v48 = vsel %vm2042_vm4, %v17309_v36, -inf }
0x111e   : > { %6841 = vmax.xlane.f32.xlu0 %v6840_v48 }
0x1125   : > { %v12798_v24 = vpop.f32.mrb[168].mxu1 }
0x1126   : > { %v17316_v51 = vadd.f32 %v12798_v24, %v19568_v19  ;;  %v6484_v15 = vpop.f32.mrb[169].mxu1 }
0x1127   : > { %v17319_v58 = vadd.f32 %v6484_v15, %v19568_v19  ;;  %v12799_v39 = vpop.f32.mrb[170].mxu1 }
0x1128   : > { %v6487_v12 = vpop.f32.mrb[171].mxu1  ;;  %v6852_v37 = vsel %vm2042_vm4, %v17316_v51, -inf }
0x1129   : > { %v17324_v13 = vadd.f32 %v6487_v12, %v19568_v19  ;;  %6853 = vmax.xlane.f32.xlu0 %v6852_v37  ;;  %v6846_v20 = vsel %vm2042_vm4, %v17319_v58, -inf }
0x112a   : > { %6847 = vmax.xlane.f32.xlu1 %v6846_v20 }
0x112b   : > { %v6849_v48 = vsel %vm2042_vm4, %v17324_v13, -inf }
0x112d   : > { %6850 = vmax.xlane.f32.xlu0 %v6849_v48 }
0x1135   : > { %v12806_v24 = vpop.f32.mrb[172].mxu1 }
0x1136   : > { %v6550_v15 = vpop.f32.mrb[173].mxu1 }
0x1137   : > { %v17331_v39 = vadd.f32 %v6550_v15, %v19568_v19  ;;  %v12807_v17 = vpop.f32.mrb[174].mxu1 }
0x1138   : > { %v6553_v53 = vpop.f32.mrb[175].mxu1  ;;  %v17344_v17 = vadd.f32 %v12806_v24, %v19568_v19 }
0x1139   : > { %v17334_v38 = vadd.f32 %v6553_v53, %v19568_v19  ;;  %v6855_v12 = vsel %vm2042_vm4, %v17331_v39, -inf }
0x113a   : > { %6856 = vmax.xlane.f32.xlu1 %v6855_v12 }
0x113b   : > { %v6858_v37 = vsel %vm2042_vm4, %v17334_v38, -inf }
0x113c   : > { %6859 = vmax.xlane.f32.xlu0 %v6858_v37 }
0x1145   : > { %v12814_v20 = vpop.f32.mrb[176].mxu1 }
0x1146   : > { %v6616_v48 = vpop.f32.mrb[177].mxu1  ;;  %v17352_v28 = vadd.f32 %v12814_v20, %v19568_v19 }
0x1147   : > { %v17341_v56 = vadd.f32 %v6616_v48, %v19568_v19  ;;  %v12815_v15 = vpop.f32.mrb[178].mxu1  ;;  %v6861_v48 = vsel %vm2042_vm4, %v17344_v17, -inf }
0x1148   : > { %v6619_v0 = vpop.f32.mrb[179].mxu1  ;;  %v6870_v24 = vsel %vm2042_vm4, %v17352_v28, -inf }
0x1149   : > { %v17347_v53 = vadd.f32 %v6619_v0, %v19568_v19  ;;  %v6864_v12 = vsel %vm2042_vm4, %v17341_v56, -inf }
0x114a   : > { %6865 = vmax.xlane.f32.xlu1 %v6864_v12 }
0x114b   : > { %v6867_v37 = vsel %vm2042_vm4, %v17347_v53, -inf }
0x114c   : > { %6868 = vmax.xlane.f32.xlu0 %v6867_v37 }
0x114e   : > { %6862 = vmax.xlane.f32.xlu1 %v6861_v48 }
0x1150   : > { %6871 = vmax.xlane.f32.xlu0 %v6870_v24 }
0x1155   : > { %v12822_v0 = vpop.f32.mrb[180].mxu1 }
0x1156   : > { %v6682_v15 = vpop.f32.mrb[181].mxu1  ;;  %v17364_v45 = vadd.f32 %v12822_v0, %v19568_v19 }
0x1157   : > { %v17361_v7 = vadd.f32 %v6682_v15, %v19568_v19  ;;  %v12823_v12 = vpop.f32.mrb[182].mxu1 }
0x1158   : > { %v6685_v20 = vpop.f32.mrb[183].mxu1  ;;  %v6879_v15 = vsel %vm2042_vm4, %v17364_v45, -inf }
0x1159   : > { %v17367_v37 = vadd.f32 %v6685_v20, %v19568_v19  ;;  %v6873_v48 = vsel %vm2042_vm4, %v17361_v7, -inf }
0x115a   : > { %6874 = vmax.xlane.f32.xlu1 %v6873_v48 }
0x115b   : > { %v6876_v24 = vsel %vm2042_vm4, %v17367_v37, -inf }
0x115c   : > { %6877 = vmax.xlane.f32.xlu0 %v6876_v24 }
0x115e   : > { %6880 = vmax.xlane.f32.xlu1 %v6879_v15 }
0x1196   : > { %v6836_v12 = vpop.xlane.xlu0 %6835 }
0x1197   : > { %v6902_v59 = vsub.f32 %v17286_v6, %v6836_v12 }
0x1199   : > { %v6833_v0 = vpop.xlane.xlu1 %6832 }
0x119a   : > { %v6830_v48 = vpop.xlane.xlu0 %6829  ;;  %v6901_v23 = vsub.f32 %v17294_v8, %v6833_v0 }
0x119b   : > { %v6900_v6 = vsub.f32 %v17289_v22, %v6830_v48 }
0x119c   : > { %v6926_v29 = vmul.f32 1.442695, %v6901_v23 }
0x119d   : > { %v6924_v62 = vmul.f32 1.442695, %v6900_v6 }
0x119e   : > { %v12830_v57 = vpop.f32.mrb[184].mxu0 }
0x119f   : > { %v6748_v26 = vpop.f32.mrb[185].mxu0  ;;  %v17380_v2 = vadd.f32 %v12830_v57, %v19568_v19 }
0x11a0   : > { %v17376_v4 = vadd.f32 %v6748_v26, %v19568_v19  ;;  %v12831_v20 = vpop.f32.mrb[186].mxu0 }
0x11a1   : > { %v6751_v41 = vpop.f32.mrb[187].mxu0  ;;  %v6928_v20 = vmul.f32 1.442695, %v6902_v59  ;;  %v6888_v57 = vsel %vm2042_vm4, %v17380_v2, -inf }
0x11a2   : > { %v17383_v24 = vadd.f32 %v6751_v41, %v19568_v19  ;;  %v6882_v15 = vsel %vm2042_vm4, %v17376_v4, -inf }
0x11a3   : > { %6883 = vmax.xlane.f32.xlu0 %v6882_v15  ;;  %13947 = vpow2.f32 %v6928_v20 }
0x11a4   : > { %v6885_v26 = vsel %vm2042_vm4, %v17383_v24, -inf  ;;  %13949 = vpow2.f32 %v6926_v29 }
0x11a5   : > { %6886 = vmax.xlane.f32.xlu1 %v6885_v26  ;;  %13951 = vpow2.f32 %v6924_v62 }
0x11a6   : > { %v6845_v12 = vpop.xlane.xlu1 %6844 }
0x11a7   : > { %v6905_v41 = vsub.f32 %v17301_v14, %v6845_v12  ;;  %v6839_v30 = vpop.xlane.xlu0 %6838  ;;  %6889 = vmax.xlane.f32.xlu0 %v6888_v57 }
0x11a8   : > { %v6903_v0 = vsub.f32 %v17304_v42, %v6839_v30 }
0x11a9   : > { %v6934_v8 = vmul.f32 1.442695, %v6905_v41 }
0x11aa   : > { %v6930_v14 = vmul.f32 1.442695, %v6903_v0 }
0x11ab   : > { %v6842_v15 = vpop.xlane.xlu0 %6841  ;;  %13953 = vpow2.f32 %v6934_v8 }
0x11ac   : > { %v6904_v59 = vsub.f32 %v17309_v36, %v6842_v15  ;;  %v12838_v22 = vpop.f32.mrb[184].mxu1 }
0x11ad   : > { %v6814_v48 = vpop.f32.mrb[185].mxu1  ;;  %v17400_v20 = vadd.f32 %v12838_v22, %v19568_v19  ;;  %v17409_v62 = vpop.eup %13947 }
0x11ae   : > { %v6932_v26 = vmul.f32 1.442695, %v6904_v59  ;;  %v17397_v50 = vadd.f32 %v6814_v48, %v19568_v19  ;;  %v12839_v23 = vpop.f32.mrb[186].mxu1  ;;  %v17413_v6 = vpop.eup %13949  ;;  %v6978_v41 = vsel %vm2042_vm4, %v17409_v62, 0.0 }
0x11af   : > { %v6817_v12 = vpop.f32.mrb[187].mxu1  ;;  %v6897_v30 = vsel %vm2042_vm4, %v17400_v20, -inf  ;;  %v17417_v8 = vpop.eup %13951  ;;  %v6975_v22 = vsel %vm2042_vm4, %v17413_v6, 0.0 }
0x11b0   : > { %v17403_v29 = vadd.f32 %v6817_v12, %v19568_v19  ;;  %v6891_v36 = vsel %vm2042_vm4, %v17397_v50, -inf  ;;  %13955 = vpow2.f32 %v6932_v26  ;;  %v6972_v12 = vsel %vm2042_vm4, %v17417_v8, 0.0 }
0x11b1   : > { %6892 = vmax.xlane.f32.xlu1 %v6891_v36  ;;  %13957 = vpow2.f32 %v6930_v14 }
0x11b2   : > { %v6894_v42 = vsel %vm2042_vm4, %v17403_v29, -inf }
0x11b3   : > { %6895 = vmax.xlane.f32.xlu0 %v6894_v42 }
0x11b5   : > { %6898 = vmax.xlane.f32.xlu1 %v6897_v30  ;;  %v17423_v48 = vpop.eup %13953 }
0x11b6   : > { %v6854_v57 = vpop.xlane.xlu0 %6853 }
0x11b7   : > { %v6908_v0 = vsub.f32 %v17316_v51, %v6854_v57  ;;  %6979 = vadd.xlane.f32.xlu0 %v6978_v41  ;;  %v6848_v15 = vpop.xlane.xlu1 %6847 }
0x11b8   : > { %v6906_v59 = vsub.f32 %v17319_v58, %v6848_v15  ;;  %v6987_v58 = vsel %vm2042_vm4, %v17423_v48, 0.0 }
0x11b9   : > { %v6940_v26 = vmul.f32 1.442695, %v6908_v0  ;;  %6976 = vadd.xlane.f32.xlu1 %v6975_v22 }
0x11ba   : > { %v6936_v23 = vmul.f32 1.442695, %v6906_v59  ;;  %v6851_v14 = vpop.xlane.xlu0 %6850  ;;  %v17427_v36 = vpop.eup %13955 }
0x11bb   : > { %13959 = vpow2.f32 %v6940_v26  ;;  %v6907_v51 = vsub.f32 %v17324_v13, %v6851_v14  ;;  %6973 = vadd.xlane.f32.xlu0 %v6972_v12  ;;  %v17432_v42 = vpop.eup %13957  ;;  %v6984_v57 = vsel %vm2042_vm4, %v17427_v36, 0.0 }
0x11bc   : > { %13961 = vpow2.f32 %v6936_v23  ;;  %v6981_v41 = vsel %vm2042_vm4, %v17432_v42, 0.0 }
0x11bd   : > { %v6938_v30 = vmul.f32 1.442695, %v6907_v51  ;;  %6988 = vadd.xlane.f32.xlu1 %v6987_v58 }
0x11bf   : > { %13963 = vpow2.f32 %v6938_v30  ;;  %6985 = vadd.xlane.f32.xlu0 %v6984_v57 }
0x11c1   : > { %6982 = vadd.xlane.f32.xlu1 %v6981_v41 }
0x11c5   : > { %v17438_v0 = vpop.eup %13959 }
0x11c6   : > { %v17440_v13 = vpop.eup %13961  ;;  %v6996_v15 = vsel %vm2042_vm4, %v17438_v0, 0.0 }
0x11c7   : > { %6997 = vadd.xlane.f32.xlu0 %v6996_v15  ;;  %v6990_v59 = vsel %vm2042_vm4, %v17440_v13, 0.0  ;;  %v6857_v51 = vpop.xlane.xlu1 %6856 }
0x11c8   : > { %6991 = vadd.xlane.f32.xlu1 %v6990_v59  ;;  %v6909_v57 = vsub.f32 %v17331_v39, %v6857_v51 }
0x11c9   : > { %v17446_v22 = vpop.eup %13963  ;;  %v6860_v26 = vpop.xlane.xlu0 %6859 }
0x11ca   : > { %v6910_v23 = vsub.f32 %v17334_v38, %v6860_v26  ;;  %v6993_v14 = vsel %vm2042_vm4, %v17446_v22, 0.0  ;;  %v6942_v19 = vmul.f32 1.442695, %v6909_v57 }
0x11cb   : > { %6994 = vadd.xlane.f32.xlu0 %v6993_v14 }
0x11cc   : > { %v6944_v12 = vmul.f32 1.442695, %v6910_v23 }
0x11ce   : > { %13965 = vpow2.f32 %v6944_v12 }
0x11d7   : > { %v6866_v58 = vpop.xlane.xlu1 %6865 }
0x11d8   : > { %v17451_v30 = vpop.eup %13965  ;;  %v6912_v23 = vsub.f32 %v17341_v56, %v6866_v58 }
0x11d9   : > { %v6869_v41 = vpop.xlane.xlu0 %6868  ;;  %v7002_v15 = vsel %vm2042_vm4, %v17451_v30, 0.0 }
0x11da   : > { %7003 = vadd.xlane.f32.xlu0 %v7002_v15  ;;  %v6913_v38 = vsub.f32 %v17347_v53, %v6869_v41  ;;  %v6948_v51 = vmul.f32 1.442695, %v6912_v23 }
0x11db   : > { %v6863_v59 = vpop.xlane.xlu1 %6862 }
0x11dc   : > { %v6911_v26 = vsub.f32 %v17344_v17, %v6863_v59  ;;  %v6950_v43 = vmul.f32 1.442695, %v6913_v38 }
0x11dd   : > { %v6872_v14 = vpop.xlane.xlu0 %6871 }
0x11de   : > { %v6946_v12 = vmul.f32 1.442695, %v6911_v26  ;;  %v6914_v25 = vsub.f32 %v17352_v28, %v6872_v14 }
0x11e0   : > { %13967 = vpow2.f32 %v6946_v12  ;;  %v6952_v39 = vmul.f32 1.442695, %v6914_v25 }
0x11e1   : > { %13969 = vpow2.f32 %v6942_v19 }
0x11e2   : > { %13971 = vpow2.f32 %v6952_v39 }
0x11e3   : > { %13973 = vpow2.f32 %v6950_v43 }
0x11e4   : > { %13975 = vpow2.f32 %v6948_v51 }
0x11e7   : > { %v6875_v41 = vpop.xlane.xlu1 %6874 }
0x11e9   : > { %v6878_v59 = vpop.xlane.xlu0 %6877 }
0x11ea   : > { %v17460_v15 = vpop.eup %13967 }
0x11eb   : > { %v17462_v53 = vpop.eup %13969  ;;  %v7005_v17 = vsel %vm2042_vm4, %v17460_v15, 0.0  ;;  %v6881_v38 = vpop.xlane.xlu1 %6880 }
0x11ec   : > { %v17466_v57 = vpop.eup %13971  ;;  %7006 = vadd.xlane.f32.xlu1 %v7005_v17  ;;  %v6999_v43 = vsel %vm2042_vm4, %v17462_v53, 0.0  ;;  %v6917_v26 = vsub.f32 %v17364_v45, %v6881_v38 }
0x11ed   : > { %v7014_v28 = vsel %vm2042_vm4, %v17466_v57, 0.0  ;;  %v17470_v56 = vpop.eup %13973 }
0x11ee   : > { %7015 = vadd.xlane.f32.xlu0 %v7014_v28  ;;  %v17474_v25 = vpop.eup %13975  ;;  %v7011_v19 = vsel %vm2042_vm4, %v17470_v56, 0.0  ;;  %v6958_v51 = vmul.f32 1.442695, %v6917_v26  ;;  %v6915_v28 = vsub.f32 %v17361_v7, %v6875_v41 }
0x11ef   : > { %v7008_v58 = vsel %vm2042_vm4, %v17474_v25, 0.0 }
0x11f0   : > { %7000 = vadd.xlane.f32.xlu1 %v6999_v43  ;;  %v6954_v45 = vmul.f32 1.442695, %v6915_v28 }
0x11f2   : > { %7012 = vadd.xlane.f32.xlu0 %v7011_v19 }
0x11f4   : > { %7009 = vadd.xlane.f32.xlu1 %v7008_v58  ;;  %v6916_v58 = vsub.f32 %v17367_v37, %v6878_v59 }
0x11f6   : > { %v6956_v38 = vmul.f32 1.442695, %v6916_v58 }
0x1230   : > { %v6884_v14 = vpop.xlane.xlu0 %6883 }
0x1231   : > { %v6918_v12 = vsub.f32 %v17376_v4, %v6884_v14 }
0x1232   : > { %v6887_v23 = vpop.xlane.xlu1 %6886 }
0x1233   : > { %v6919_v39 = vsub.f32 %v17383_v24, %v6887_v23  ;;  %v6960_v33 = vmul.f32 1.442695, %v6918_v12 }
0x1234   : > { %v6890_v17 = vpop.xlane.xlu0 %6889 }
0x1235   : > { %v6962_v43 = vmul.f32 1.442695, %v6919_v39  ;;  %v6920_v19 = vsub.f32 %v17380_v2, %v6890_v17 }
0x1237   : > { %13977 = vpow2.f32 %v6962_v43  ;;  %v6964_v47 = vmul.f32 1.442695, %v6920_v19 }
0x1238   : > { %13979 = vpow2.f32 %v6958_v51 }
0x1239   : > { %13981 = vpow2.f32 %v6964_v47 }
0x123a   : > { %13983 = vpow2.f32 %v6960_v33 }
0x123b   : > { %13985 = vpow2.f32 %v6954_v45 }
0x123c   : > { %13987 = vpow2.f32 %v6956_v38 }
0x123e   : > { %v6893_v4 = vpop.xlane.xlu1 %6892 }
0x123f   : > { %v6921_v24 = vsub.f32 %v17397_v50, %v6893_v4 }
0x1240   : > { %v6896_v26 = vpop.xlane.xlu0 %6895 }
0x1241   : > { %v17487_v7 = vpop.eup %13977  ;;  %v6966_v41 = vmul.f32 1.442695, %v6921_v24  ;;  %v6922_v2 = vsub.f32 %v17403_v29, %v6896_v26 }
0x1242   : > { %v17490_v37 = vpop.eup %13979  ;;  %v6899_v59 = vpop.xlane.xlu1 %6898  ;;  %v7029_v14 = vsel %vm2042_vm4, %v17487_v7, 0.0 }
0x1243   : > { %v17494_v47 = vpop.eup %13981  ;;  %v6968_v33 = vmul.f32 1.442695, %v6922_v2  ;;  %v6923_v23 = vsub.f32 %v17400_v20, %v6899_v59  ;;  %7030 = vadd.xlane.f32.xlu1 %v7029_v14  ;;  %13989 = vpow2.f32 %v6966_v41  ;;  %v7023_v17 = vsel %vm2042_vm4, %v17490_v37, 0.0 }
0x1244   : > { %v6980_v50 = vpop.xlane.xlu0 %6979  ;;  %v7032_v12 = vsel %vm2042_vm4, %v17494_v47, 0.0  ;;  %v17499_v39 = vpop.eup %13983 }
0x1245   : > { %13991 = vpow2.f32 %v6968_v33  ;;  %v6970_v29 = vmul.f32 1.442695, %v6923_v23  ;;  %7033 = vadd.xlane.f32.xlu0 %v7032_v12  ;;  %v17503_v28 = vpop.eup %13985  ;;  %v7026_v43 = vsel %vm2042_vm4, %v17499_v39, 0.0 }
0x1246   : > { %13993 = vrcp.f32 %v6980_v50  ;;  %v6977_v51 = vpop.xlane.xlu1 %6976  ;;  %v17507_v19 = vpop.eup %13987  ;;  %v7017_v45 = vsel %vm2042_vm4, %v17503_v28, 0.0 }
0x1247   : > { %13995 = vpow2.f32 %v6970_v29  ;;  %7024 = vadd.xlane.f32.xlu1 %v7023_v17  ;;  %v7020_v4 = vsel %vm2042_vm4, %v17507_v19, 0.0 }
0x1248   : > { %13997 = vrcp.f32 %v6977_v51  ;;  %v6974_v20 = vpop.xlane.xlu0 %6973 }
0x1249   : > { %13999 = vrcp.f32 %v6974_v20  ;;  %7027 = vadd.xlane.f32.xlu0 %v7026_v43  ;;  %v6176_v20 = vadd.f32 %v17089_v60, %v17061_v27 }
0x124a   : > { %v6989_v58 = vpop.xlane.xlu1 %6988 }
0x124b   : > { %7018 = vadd.xlane.f32.xlu1 %v7017_v45 }
0x124c   : > { %v6986_v38 = vpop.xlane.xlu0 %6985 }
0x124d   : > { %14001 = vrcp.f32 %v6986_v38  ;;  %7021 = vadd.xlane.f32.xlu0 %v7020_v4  ;;  %v17513_v24 = vpop.eup %13989 }
0x124e   : > { %14003 = vrcp.f32 %v6989_v58  ;;  %v6983_v26 = vpop.xlane.xlu1 %6982  ;;  %v7035_v58 = vsel %vm2042_vm4, %v17513_v24, 0.0 }
0x124f   : > { %v17515_v41 = vpop.eup %13991  ;;  %14005 = vrcp.f32 %v6983_v26 }
0x1250   : > { %v13994_v2 = vpop.eup %13993  ;;  %v7038_v59 = vsel %vm2042_vm4, %v17515_v41, 0.0 }
0x1251   : > { %v17519_v14 = vpop.eup %13995  ;;  %7039 = vadd.xlane.f32.xlu0 %v7038_v59  ;;  %v7070_v12 = vmul.f32 %v13994_v2, %v17409_v62  ;;  %v17531_v2 = vpack.c.bf16 %v6176_v20, %v6176_v20  ;;  %v6222_v20 = vadd.f32 %v17144_v34, %v17061_v27 }
0x1252   : > { %v13998_v33 = vpop.eup %13997  ;;  %v7041_v23 = vsel %vm2042_vm4, %v17519_v14, 0.0 }
0x1253   : > { %v14000_v50 = vpop.eup %13999  ;;  %7042 = vadd.xlane.f32.xlu1 %v7041_v23  ;;  %v7069_v17 = vmul.f32 %v13998_v33, %v17413_v6  ;;  %v7093_v4 = vpack.c.bf16 %v7070_v12, %v7070_v12  ;;  %v6206_v23 = vadd.f32 %v17123_v11, %v17061_v27 }
0x1254   : > { %v6998_v29 = vpop.xlane.xlu0 %6997  ;;  %v7068_v51 = vmul.f32 %v14000_v50, %v17417_v8  ;;  %v7172_v50 = vsel %vm2329_vm2, %v17531_v2, 0 }
0x1255   : > { %v6992_v43 = vpop.xlane.xlu1 %6991  ;;  %14007 = vrcp.f32 %v6998_v29  ;;  %v17546_v29 = vpack.c.bf16 %v6206_v23, %v6206_v23 }
0x1256   : > { %v7092_v45 = vpack.c.bf16 %v7069_v17, %v7068_v51  ;;  %14009 = vrcp.f32 %v6992_v43 }
0x1257   : > { %v14002_v38 = vpop.eup %14001  ;;  %7036 = vadd.xlane.f32.xlu1 %v7035_v58  ;;  %v7286_v43 = vsel %vm2329_vm2, %v17546_v29, 0 }
0x1258   : > { %v14004_v26 = vpop.eup %14003  ;;  %v6995_v62 = vpop.xlane.xlu0 %6994  ;;  %12844 = vmatprep.mubr.msk.bf16.mxu0 %vm2042_vm4, %v7092_v45  ;;  %v7072_v6 = vmul.f32 %v14002_v38, %v17427_v36 }
0x1259   : > { %v14006_v8 = vpop.eup %14005  ;;  %14011 = vrcp.f32 %v6995_v62  ;;  %12845 = vmatmul.mubr.msk.bf16.vlgmr.msra.gmra.mrb[188].mxu0 %vm2042_vm4, %v7093_v4  ;;  %v7073_v59 = vmul.f32 %v14004_v26, %v17423_v48 }
0x125a   : > { %12849 = vmatpush3.bf16.msra.mxu0 %v17091_v44  ;;  %v7071_v60 = vmul.f32 %v14006_v8, %v17432_v42 }
0x125b   : > { %13279 = vmatprep.subr.msk.bf16.mxu0 %vm2329_vm2, %v17531_v2  ;;  %v7095_v42 = vpack.c.bf16 %v7073_v59, %v7073_v59 }
0x125c   : > { %v7094_v33 = vpack.c.bf16 %v7072_v6, %v7071_v60  ;;  %v6236_v6 = vadd.f32 %v17157_v52, %v17061_v27  ;;  %v6252_v52 = vadd.f32 %v17199_v18, %v17061_v27 }
0x125e   : > { %12851 = vmatpush3.bf16.msra.mxu0 %v7172_v50  ;;  %12852 = vmatprep.mubr.msk.bf16.mxu0 %vm2042_vm4, %v7094_v33  ;;  %v6291_v33 = vpack.c.bf16 %v6236_v6, %v6236_v6  ;;  %v19571_v50 = vld [vmem:[#allocation33_spill] sm:$0xff] }
0x125f   : > { %12864 = vmatprep.subr.bf16.mxu0 %v17125_v40  ;;  %v14008_v12 = vpop.eup %14007 }
0x1260   : > { %v14010_v36 = vpop.eup %14009  ;;  %v7076_v11 = vmul.f32 %v14008_v12, %v17438_v0  ;;  %v17565_v0 = vpack.c.bf16 %v6222_v20, %v6222_v20  ;;  %v7400_v18 = vsel %vm2329_vm2, %v6291_v33, 0  ;;  %v19576_v12 = vld [vmem:[#allocation25_spill] sm:$0xff] }
0x1261   : > { %12853 = vmatmul.mubr.msk.bf16.vlgmr.msra.gmra.mrb[192].mxu0 %vm2042_vm4, %v7095_v42  ;;  %v7074_v51 = vmul.f32 %v14010_v36, %v17440_v13  ;;  %v19572_v42 = vld [vmem:[#allocation22_spill] sm:$0xff] }
0x1262   : > { %12865 = vmatpush3.bf16.msra.mxu0 %v17125_v40  ;;  %v7097_v45 = vpack.c.bf16 %v7076_v11, %v7076_v11  ;;  %v7343_v34 = vsel %vm2329_vm2, %v17565_v0, 0 }
0x1263   : > { %v14012_v48 = vpop.eup %14011  ;;  %13281 = vmatprep.subr.msk.bf16.mxu0 %vm2329_vm2, %v17546_v29 }
0x1264   : > { %v7075_v17 = vmul.f32 %v14012_v48, %v17446_v22 }
0x1266   : > { %12867 = vmatpush3.bf16.msra.mxu0 %v7286_v43  ;;  %v7096_v58 = vpack.c.bf16 %v7075_v17, %v7074_v51 }
0x1267   : > { %12880 = vmatprep.subr.bf16.mxu0 %v17159_v54  ;;  %7585 = vrot.lane.b32.xlu0 %v17067_v21, %s14248_s15  ;;  %v7004_v13 = vpop.xlane.xlu0 %7003 }
0x1268   : > { %7587 = vrot.lane.b32.xlu1 %v17078_v1, %s14248_s15  ;;  %12860 = vmatprep.mubr.msk.bf16.mxu1 %vm2042_vm4, %v7096_v58 }
0x1269   : > { %12861 = vmatmul.mubr.msk.bf16.vlgmr.msra.gmra.mrb[188].mxu1 %vm2042_vm4, %v7097_v45 }
0x126a   : > { %12873 = vmatpush3.bf16.msra.mxu1 %v17139_v9 }
0x126b   : > { %13282 = vmatprep.subr.msk.bf16.mxu1 %vm2329_vm2, %v17565_v0  ;;  %7655 = vrot.lane.b32.xlu0 %v17095_v32, %s14248_s15 }
0x126c   : > { %7653 = vrot.lane.b32.xlu1 %v17086_v3, %s14248_s15 }
0x126e   : > { %12875 = vmatpush3.bf16.msra.mxu1 %v7343_v34 }
0x126f   : > { %12888 = vmatprep.subr.bf16.mxu1 %v17192_v46  ;;  %7583 = vrot.lane.b32.xlu0 %v17078_v1, %s14249_s16 }
0x1270   : > { %7581 = vrot.lane.b32.xlu1 %v17067_v21, %s14249_s16 }
0x1273   : > { %7723 = vrot.lane.b32.xlu0 %v17112_v5, %s14248_s15 }
0x1274   : > { %7721 = vrot.lane.b32.xlu1 %v17103_v16, %s14248_s15 }
0x1277   : > { %7651 = vrot.lane.b32.xlu0 %v17095_v32, %s14249_s16 }
0x1278   : > { %7649 = vrot.lane.b32.xlu1 %v17086_v3, %s14249_s16 }
0x1279   : > { %v7007_v22 = vpop.xlane.xlu1 %7006 }
0x127a   : > { %14013 = vrcp.f32 %v7007_v22 }
0x127b   : > { %7791 = vrot.lane.b32.xlu0 %v17127_v10, %s14248_s15  ;;  %v7016_v1 = vpop.xlane.xlu0 %7015  ;;  %14015 = vrcp.f32 %v7004_v13 }
0x127c   : > { %7789 = vrot.lane.b32.xlu1 %v17120_v61, %s14248_s15 }
0x127d   : > { %v7001_v21 = vpop.xlane.xlu1 %7000 }
0x127e   : > { %14017 = vrcp.f32 %v7001_v21 }
0x127f   : > { %14019 = vrcp.f32 %v7016_v1  ;;  %7719 = vrot.lane.b32.xlu0 %v17112_v5, %s14249_s16  ;;  %v7013_v32 = vpop.xlane.xlu0 %7012 }
0x1280   : > { %14021 = vrcp.f32 %v7013_v32  ;;  %7717 = vrot.lane.b32.xlu1 %v17103_v16, %s14249_s16 }
0x1281   : > { %v7010_v3 = vpop.xlane.xlu1 %7009 }
0x1282   : > { %14023 = vrcp.f32 %v7010_v3 }
0x1283   : > { %7859 = vrot.lane.b32.xlu0 %v17146_v55, %s14248_s15 }
0x1284   : > { %7857 = vrot.lane.b32.xlu1 %v17137_v31, %s14248_s15  ;;  %v14014_v38 = vpop.eup %14013 }
0x1285   : > { %v14016_v4 = vpop.eup %14015  ;;  %v7079_v5 = vmul.f32 %v14014_v38, %v17460_v15 }
0x1286   : > { %v7078_v8 = vmul.f32 %v14016_v4, %v17451_v30 }
0x1287   : > { %7787 = vrot.lane.b32.xlu0 %v17127_v10, %s14249_s16 }
0x1288   : > { %v14018_v26 = vpop.eup %14017  ;;  %7785 = vrot.lane.b32.xlu1 %v17120_v61, %s14249_s16  ;;  %v7099_v61 = vpack.c.bf16 %v7079_v5, %v7079_v5 }
0x1289   : > { %v14020_v16 = vpop.eup %14019  ;;  %v7077_v62 = vmul.f32 %v14018_v26, %v17462_v53 }
0x128a   : > { %v14022_v60 = vpop.eup %14021  ;;  %v7082_v15 = vmul.f32 %v14020_v16, %v17466_v57 }
0x128b   : > { %7927 = vrot.lane.b32.xlu0 %v17161_v49, %s14248_s15  ;;  %v7098_v59 = vpack.c.bf16 %v7078_v8, %v7077_v62  ;;  %v7081_v30 = vmul.f32 %v14022_v60, %v17470_v56  ;;  %v17629_v56 = vpack.c.bf16 %v6252_v52, %v6252_v52 }
0x128c   : > { %v14024_v10 = vpop.eup %14023  ;;  %7925 = vrot.lane.b32.xlu1 %v17154_v35, %s14248_s15  ;;  %v7101_v57 = vpack.c.bf16 %v7082_v15, %v7082_v15 }
0x128d   : > { %12868 = vmatprep.mubr.msk.bf16.mxu0 %vm2042_vm4, %v7098_v59  ;;  %v7080_v53 = vmul.f32 %v14024_v10, %v17474_v25  ;;  %v7457_v25 = vsel %vm2329_vm2, %v17629_v56, 0 }
0x128e   : > { %12869 = vmatmul.mubr.msk.bf16.vlgmr.msra.gmra.mrb[196].mxu0 %vm2042_vm4, %v7099_v61 }
0x128f   : > { %12881 = vmatpush3.bf16.msra.mxu0 %v17159_v54  ;;  %7855 = vrot.lane.b32.xlu0 %v17146_v55, %s14249_s16  ;;  %v7100_v23 = vpack.c.bf16 %v7081_v30, %v7080_v53  ;;  %v19569_v55 = vld [vmem:[#allocation31_spill] sm:$0xff] }
0x1290   : > { %13283 = vmatprep.subr.msk.bf16.mxu0 %vm2329_vm2, %v6291_v33  ;;  %7853 = vrot.lane.b32.xlu1 %v17137_v31, %s14249_s16  ;;  %v19570_v31 = vld [vmem:[#allocation23_spill] sm:$0xff] }
0x1291   : > { %12876 = vmatprep.mubr.msk.bf16.mxu1 %vm2042_vm4, %v7100_v23 }
0x1292   : > { %12877 = vmatmul.mubr.msk.bf16.vlgmr.msra.gmra.mrb[192].mxu1 %vm2042_vm4, %v7101_v57 }
0x1293   : > { %12883 = vmatpush3.bf16.msra.mxu0 %v7400_v18  ;;  %12889 = vmatpush3.bf16.msra.mxu1 %v17192_v46 }
0x1294   : > { %7995 = vrot.lane.b32.xlu0 %v17202_v63, %s14248_s15  ;;  %13284 = vmatprep.subr.msk.bf16.mxu1 %vm2329_vm2, %v17629_v56 }
0x1295   : > { %12896 = vmatprep.subr.bf16.mxu0 %v19569_v55  ;;  %7993 = vrot.lane.b32.xlu1 %v19570_v31, %s14248_s15 }
0x1297   : > { %12891 = vmatpush3.bf16.msra.mxu1 %v7457_v25 }
0x1298   : > { %7923 = vrot.lane.b32.xlu0 %v17161_v49, %s14249_s16  ;;  %v19573_v49 = vld [vmem:[#allocation29_spill] sm:$0xff] }
0x1299   : > { %7921 = vrot.lane.b32.xlu1 %v17154_v35, %s14249_s16  ;;  %v19574_v35 = vld [vmem:[#allocation37_spill] sm:$0xff] }
0x129c   : > { %7991 = vrot.lane.b32.xlu0 %v17202_v63, %s14249_s16  ;;  %v19575_v63 = vld [vmem:[#allocation38_spill] sm:$0xff] }
0x129d   : > { %8061 = vrot.lane.b32.xlu1 %v19571_v50, %s14248_s15 }
0x12a0   : > { %8057 = vrot.lane.b32.xlu0 %v19571_v50, %s14249_s16 }
0x12a1   : > { %7989 = vrot.lane.b32.xlu1 %v19570_v31, %s14249_s16 }
0x12a4   : > { %8407 = vrot.lane.b32.xlu0 %v19572_v42, %s14249_s16 }
0x12a5   : > { %8063 = vrot.lane.b32.xlu1 %v19573_v49, %s14248_s15 }
0x12a8   : > { %8409 = vrot.lane.b32.xlu0 %v19574_v35, %s14249_s16 }
0x12a9   : > { %8059 = vrot.lane.b32.xlu1 %v19573_v49, %s14249_s16 }
0x12ac   : > { %8473 = vrot.lane.b32.xlu0 %v17531_v2, %s14249_s16 }
0x12ad   : > { %8471 = vrot.lane.b32.xlu1 %v17091_v44, %s14249_s16 }
0x12b0   : > { %8537 = vrot.lane.b32.xlu0 %v19575_v63, %s14249_s16 }
0x12b1   : > { %8535 = vrot.lane.b32.xlu1 %v19576_v12, %s14249_s16 }
0x12b4   : > { %8663 = vrot.lane.b32.xlu0 %v17139_v9, %s14249_s16 }
0x12b5   : > { %8599 = vrot.lane.b32.xlu1 %v17125_v40, %s14249_s16 }
0x12b9   : > { %8601 = vrot.lane.b32.xlu1 %v17546_v29, %s14249_s16 }
0x12bd   : > { %8727 = vrot.lane.b32.xlu1 %v17159_v54, %s14249_s16 }
0x12c1   : > { %8665 = vrot.lane.b32.xlu1 %v17565_v0, %s14249_s16 }
0x12c5   : > { %8729 = vrot.lane.b32.xlu1 %v6291_v33, %s14249_s16 }
0x12d0   : > { %v7031_v44 = vpop.xlane.xlu1 %7030 }
0x12d2   : > { %v7034_v2 = vpop.xlane.xlu0 %7033 }
0x12d3   : > { %14025 = vrcp.f32 %v7034_v2 }
0x12d4   : > { %v7025_v36 = vpop.xlane.xlu1 %7024  ;;  %14027 = vrcp.f32 %v7031_v44 }
0x12d6   : > { %v7028_v9 = vpop.xlane.xlu0 %7027 }
0x12d7   : > { %14029 = vrcp.f32 %v7028_v9 }
0x12d8   : > { %14031 = vrcp.f32 %v7025_v36  ;;  %v7019_v40 = vpop.xlane.xlu1 %7018 }
0x12d9   : > { %14033 = vrcp.f32 %v7019_v40 }
0x12da   : > { %v7022_v48 = vpop.xlane.xlu0 %7021 }
0x12db   : > { %14035 = vrcp.f32 %v7022_v48 }
0x12dd   : > { %v14026_v29 = vpop.eup %14025 }
0x12de   : > { %v7040_v11 = vpop.xlane.xlu0 %7039  ;;  %v14028_v54 = vpop.eup %14027  ;;  %v7088_v20 = vmul.f32 %v14026_v29, %v17494_v47 }
0x12df   : > { %v7087_v0 = vmul.f32 %v14028_v54, %v17487_v7  ;;  %v19577_v7 = vld [vmem:[#allocation30_spill] sm:$0xff] }
0x12e0   : > { %v7043_v51 = vpop.xlane.xlu1 %7042  ;;  %v7105_v21 = vpack.c.bf16 %v7088_v20, %v7088_v20  ;;  %v6266_v38 = vadd.f32 %v19577_v7, %v17061_v27 }
0x12e1   : > { %v14030_v17 = vpop.eup %14029  ;;  %14037 = vrcp.f32 %v7043_v51 }
0x12e2   : > { %v14032_v43 = vpop.eup %14031  ;;  %v7586_v58 = vpop.permute.xlu0 %7585  ;;  %v7086_v45 = vmul.f32 %v14030_v17, %v17499_v39  ;;  %14039 = vrcp.f32 %v7040_v11  ;;  %v17696_v62 = vpack.c.bf16 %v6266_v38, %v6266_v38 }
0x12e3   : > { %v14034_v34 = vpop.eup %14033  ;;  %13286 = vmatprep.subr.msk.bf16.mxu1 %vm1519_vm1, %v7586_v58  ;;  %v7085_v32 = vmul.f32 %v14032_v43, %v17490_v37  ;;  %v7596_v4 = vsel %vm1519_vm1, %v7586_v58, 0 }
0x12e4   : > { %v7037_v13 = vpop.xlane.xlu1 %7036  ;;  %v7104_v22 = vpack.c.bf16 %v7087_v0, %v7086_v45  ;;  %v7083_v47 = vmul.f32 %v14034_v34, %v17503_v28  ;;  %v7514_v6 = vsel %vm2329_vm2, %v17696_v62, 0 }
0x12e5   : > { %v14036_v1 = vpop.eup %14035  ;;  %14041 = vrcp.f32 %v7037_v13  ;;  %v7103_v37 = vpack.c.bf16 %v7085_v32, %v7085_v32 }
0x12e6   : > { %v7656_v3 = vpop.permute.xlu0 %7655  ;;  %12892 = vmatprep.mubr.msk.bf16.mxu1 %vm2042_vm4, %v7104_v22  ;;  %v7084_v39 = vmul.f32 %v14036_v1, %v17507_v19 }
0x12e7   : > { %12893 = vmatmul.mubr.msk.bf16.vlgmr.msra.gmra.mrb[196].mxu1 %vm2042_vm4, %v7105_v21  ;;  %v7667_v42 = vsel %vm1519_vm1, %v7656_v3, 0 }
0x12e8   : > { %12905 = vmatpush3.bf16.xpose.msra.mxu1 %v7596_v4  ;;  %v7588_v26 = vpop.permute.xlu1 %7587  ;;  %v7102_v5 = vpack.c.bf16 %v7084_v39, %v7083_v47 }
0x12e9   : > { %13287 = vmatprep.subr.msk.bf16.mxu1 %vm1519_vm1, %v7588_v26  ;;  %v7599_v59 = vsel %vm1519_vm1, %v7588_v26, 0 }
0x12ea   : > { %v7584_v16 = vpop.permute.xlu0 %7583  ;;  %12884 = vmatprep.mubr.msk.bf16.mxu0 %vm2042_vm4, %v7102_v5 }
0x12eb   : > { %12885 = vmatmul.mubr.msk.bf16.vlgmr.msra.gmra.mrb[200].mxu0 %vm2042_vm4, %v7103_v37  ;;  %v14038_v28 = vpop.eup %14037 }
0x12ec   : > { %12897 = vmatpush3.bf16.msra.mxu0 %v19569_v55  ;;  %v7654_v27 = vpop.permute.xlu1 %7653  ;;  %v14040_v19 = vpop.eup %14039  ;;  %v7091_v10 = vmul.f32 %v14038_v28, %v17519_v14 }
0x12ed   : > { %13285 = vmatprep.subr.msk.bf16.mxu0 %vm2329_vm2, %v17696_v62  ;;  %v7090_v53 = vmul.f32 %v14040_v19, %v17515_v41 }
0x12ee   : > { %v7724_v8 = vpop.permute.xlu0 %7723  ;;  %v7107_v52 = vpack.c.bf16 %v7091_v10, %v7091_v10 }
0x12ef   : > { %v14042_v60 = vpop.eup %14041  ;;  %v7735_v50 = vsel %vm1519_vm1, %v7724_v8, 0 }
0x12f0   : > { %12899 = vmatpush3.bf16.msra.mxu0 %v7514_v6  ;;  %12907 = vmatpush3.bf16.xpose.msra.mxu1 %v7599_v59  ;;  %v7582_v61 = vpop.permute.xlu1 %7581  ;;  %v7089_v15 = vmul.f32 %v14042_v60, %v17513_v24  ;;  %v7664_v24 = vsel %vm1519_vm1, %v7654_v27, 0 }
0x12f1   : > { %13288 = vmatprep.subr.msk.bf16.mxu0 %vm1519_vm1, %v7654_v27  ;;  %12908 = vmatprep.mubr.msk.bf16.mxu1 %vm1519_vm1, %v7582_v61 }
0x12f2   : > { %v7652_v30 = vpop.permute.xlu0 %7651  ;;  %v7106_v33 = vpack.c.bf16 %v7090_v53, %v7089_v15 }
0x12f4   : > { %12900 = vmatprep.mubr.msk.bf16.mxu0 %vm2042_vm4, %v7106_v33  ;;  %v7722_v23 = vpop.permute.xlu1 %7721 }
0x12f5   : > { %12901 = vmatmul.mubr.msk.bf16.vlgmr.msra.gmra.mrb[204].mxu0 %vm2042_vm4, %v7107_v52  ;;  %13290 = vmatprep.subr.msk.bf16.mxu1 %vm1519_vm1, %v7722_v23  ;;  %v7732_v14 = vsel %vm1519_vm1, %v7722_v23, 0 }
0x12f6   : > { %v7792_v57 = vpop.permute.xlu0 %7791 }
0x12f7   : > { %12909 = vmatmul.mubr.msk.bf16.vlgmr.msra.gmra.mrb[200].mxu1 %vm1519_vm1, %v7584_v16  ;;  %v7803_v11 = vsel %vm1519_vm1, %v7792_v57, 0 }
0x12f8   : > { %12921 = vmatpush3.bf16.xpose.msra.mxu1 %v7732_v14  ;;  %v7650_v41 = vpop.permute.xlu1 %7649 }
0x12f9   : > { %12913 = vmatpush3.bf16.xpose.msra.mxu0 %v7664_v24  ;;  %13291 = vmatprep.subr.msk.bf16.mxu1 %vm1519_vm1, %v7724_v8 }
0x12fa   : > { %13289 = vmatprep.subr.msk.bf16.mxu0 %vm1519_vm1, %v7656_v3  ;;  %12916 = vmatprep.mubr.msk.bf16.mxu0 %vm1519_vm1, %v7650_v41  ;;  %v7720_v18 = vpop.permute.xlu0 %7719 }
0x12fc   : > { %v7790_v31 = vpop.permute.xlu1 %7789 }
0x12fd   : > { %v7800_v2 = vsel %vm1519_vm1, %v7790_v31, 0 }
0x12fe   : > { %v7860_v25 = vpop.permute.xlu0 %7859 }
0x12ff   : > { %v7871_v29 = vsel %vm1519_vm1, %v7860_v25, 0 }
0x1300   : > { %12923 = vmatpush3.bf16.xpose.msra.mxu1 %v7735_v50  ;;  %v7718_v49 = vpop.permute.xlu1 %7717 }
0x1301   : > { %12915 = vmatpush3.bf16.xpose.msra.mxu0 %v7667_v42  ;;  %12924 = vmatprep.mubr.msk.bf16.mxu1 %vm1519_vm1, %v7718_v49 }
0x1302   : > { %13292 = vmatprep.subr.msk.bf16.mxu0 %vm1519_vm1, %v7790_v31  ;;  %v7788_v35 = vpop.permute.xlu0 %7787 }
0x1304   : > { %v7858_v63 = vpop.permute.xlu1 %7857 }
0x1305   : > { %13294 = vmatprep.subr.msk.bf16.mxu1 %vm1519_vm1, %v7858_v63  ;;  %v7868_v12 = vsel %vm1519_vm1, %v7858_v63, 0 }
0x1306   : > { %v7928_v44 = vpop.permute.xlu0 %7927 }
0x1307   : > { %12925 = vmatmul.mubr.msk.bf16.vlgmr.msra.gmra.mrb[204].mxu1 %vm1519_vm1, %v7720_v18  ;;  %v7939_v1 = vsel %vm1519_vm1, %v7928_v44, 0 }
0x1308   : > { %12917 = vmatmul.mubr.msk.bf16.vlgmr.msra.gmra.mrb[208].mxu0 %vm1519_vm1, %v7652_v30  ;;  %12937 = vmatpush3.bf16.xpose.msra.mxu1 %v7868_v12  ;;  %v7786_v36 = vpop.permute.xlu1 %7785 }
0x1309   : > { %12929 = vmatpush3.bf16.xpose.msra.mxu0 %v7800_v2  ;;  %13295 = vmatprep.subr.msk.bf16.mxu1 %vm1519_vm1, %v7860_v25 }
0x130a   : > { %13293 = vmatprep.subr.msk.bf16.mxu0 %vm1519_vm1, %v7792_v57  ;;  %12932 = vmatprep.mubr.msk.bf16.mxu0 %vm1519_vm1, %v7786_v36  ;;  %v7856_v9 = vpop.permute.xlu0 %7855 }
0x130c   : > { %v7926_v40 = vpop.permute.xlu1 %7925 }
0x130d   : > { %v7936_v58 = vsel %vm1519_vm1, %v7926_v40, 0 }
0x130e   : > { %v7996_v48 = vpop.permute.xlu0 %7995 }
0x130f   : > { %v8007_v22 = vsel %vm1519_vm1, %v7996_v48, 0 }
0x1310   : > { %12939 = vmatpush3.bf16.xpose.msra.mxu1 %v7871_v29  ;;  %v7854_v54 = vpop.permute.xlu1 %7853 }
0x1311   : > { %12931 = vmatpush3.bf16.xpose.msra.mxu0 %v7803_v11  ;;  %12940 = vmatprep.mubr.msk.bf16.mxu1 %vm1519_vm1, %v7854_v54 }
0x1312   : > { %13296 = vmatprep.subr.msk.bf16.mxu0 %vm1519_vm1, %v7926_v40  ;;  %v7924_v51 = vpop.permute.xlu0 %7923 }
0x1314   : > { %v7994_v17 = vpop.permute.xlu1 %7993 }
0x1315   : > { %13298 = vmatprep.subr.msk.bf16.mxu1 %vm1519_vm1, %v7994_v17  ;;  %v8004_v20 = vsel %vm1519_vm1, %v7994_v17, 0 }
0x1316   : > { %v7992_v43 = vpop.permute.xlu0 %7991 }
0x1317   : > { %12941 = vmatmul.mubr.msk.bf16.vlgmr.msra.gmra.mrb[208].mxu1 %vm1519_vm1, %v7856_v9 }
0x1318   : > { %12933 = vmatmul.mubr.msk.bf16.vlgmr.msra.gmra.mrb[212].mxu0 %vm1519_vm1, %v7788_v35  ;;  %12953 = vmatpush3.bf16.xpose.msra.mxu1 %v8004_v20  ;;  %v7922_v45 = vpop.permute.xlu1 %7921 }
0x1319   : > { %12945 = vmatpush3.bf16.xpose.msra.mxu0 %v7936_v58  ;;  %13299 = vmatprep.subr.msk.bf16.mxu1 %vm1519_vm1, %v7996_v48 }
0x131a   : > { %13297 = vmatprep.subr.msk.bf16.mxu0 %vm1519_vm1, %v7928_v44  ;;  %12948 = vmatprep.mubr.msk.bf16.mxu0 %vm1519_vm1, %v7922_v45  ;;  %v8058_v0 = vpop.permute.xlu0 %8057 }
0x131c   : > { %v8062_v34 = vpop.permute.xlu1 %8061 }
0x131d   : > { %v8072_v47 = vsel %vm1519_vm1, %v8062_v34, 0 }
0x131e   : > { %v8408_v13 = vpop.permute.xlu0 %8407 }
0x1320   : > { %12955 = vmatpush3.bf16.xpose.msra.mxu1 %v8007_v22  ;;  %v7990_v21 = vpop.permute.xlu1 %7989 }
0x1321   : > { %12947 = vmatpush3.bf16.xpose.msra.mxu0 %v7939_v1  ;;  %12968 = vmatprep.subr.bf16.mxu1 %v8408_v13 }
0x1322   : > { %12956 = vmatprep.mubr.msk.bf16.mxu1 %vm1519_vm1, %v7990_v21  ;;  %13300 = vmatprep.subr.msk.bf16.mxu0 %vm1519_vm1, %v8062_v34  ;;  %v8410_v3 = vpop.permute.xlu0 %8409 }
0x1323   : > { %v8419_v7 = vsel %vm2329_vm2, %v8410_v3, 0 }
0x1324   : > { %v8064_v32 = vpop.permute.xlu1 %8063 }
0x1325   : > { %v8075_v28 = vsel %vm1519_vm1, %v8064_v32, 0 }
0x1326   : > { %v8474_v61 = vpop.permute.xlu0 %8473 }
0x1327   : > { %12957 = vmatmul.mubr.msk.bf16.vlgmr.msra.gmra.mrb[212].mxu1 %vm1519_vm1, %v7992_v43  ;;  %v8483_v53 = vsel %vm2329_vm2, %v8474_v61, 0 }
0x1328   : > { %12949 = vmatmul.mubr.msk.bf16.vlgmr.msra.gmra.mrb[216].mxu0 %vm1519_vm1, %v7924_v51  ;;  %12969 = vmatpush3.bf16.msra.mxu1 %v8408_v13  ;;  %v8060_v39 = vpop.permute.xlu1 %8059 }
0x1329   : > { %12961 = vmatpush3.bf16.xpose.msra.mxu0 %v8072_v47  ;;  %12964 = vmatprep.mubr.msk.bf16.mxu0 %vm1519_vm1, %v8058_v0  ;;  %v19585_v0 = vld [vmem:[#allocation36_spill] sm:$0xff] }
0x132a   : > { %13302 = vmatprep.subr.msk.bf16.mxu1 %vm2329_vm2, %v8410_v3  ;;  %13301 = vmatprep.subr.msk.bf16.mxu0 %vm1519_vm1, %v8064_v32 }
0x132c   : > { %12971 = vmatpush3.bf16.msra.mxu1 %v8419_v7  ;;  %v17754_v38 = vpop.f32.mrb[188].mxu0  ;;  %v8472_v4 = vpop.permute.xlu1 %8471 }
0x132d   : > { %v17756_v26 = vpop.f32.mrb[189].mxu0 }
0x132e   : > { %v12847_v5 = vpop.f32.mrb[190].mxu0 }
0x132f   : > { %v17758_v37 = vpop.f32.mrb[191].mxu0 }
0x1330   : > { %v17763_v27 = vpop.permute.xlu1 %8535 }
0x1331   : > { %12963 = vmatpush3.bf16.xpose.msra.mxu0 %v8075_v28  ;;  %12984 = vmatprep.subr.bf16.mxu1 %v17763_v27 }
0x1332   : > { %12976 = vmatprep.subr.bf16.mxu0 %v8472_v4 }
0x1334   : > { %v17766_v19 = vpop.f32.mrb[192].mxu0  ;;  %v17781_v30 = vpop.permute.xlu1 %8599 }
0x1335   : > { %v17768_v8 = vpop.f32.mrb[193].mxu0 }
0x1336   : > { %v12855_v6 = vpop.f32.mrb[194].mxu0 }
0x1337   : > { %v17772_v59 = vpop.f32.mrb[195].mxu0 }
0x1338   : > { %12965 = vmatmul.mubr.msk.bf16.vlgmr.msra.gmra.mrb[220].mxu0 %vm1519_vm1, %v8060_v39 }
0x1339   : > { %12977 = vmatpush3.bf16.msra.mxu0 %v8472_v4 }
0x133a   : > { %13303 = vmatprep.subr.msk.bf16.mxu0 %vm2329_vm2, %v8474_v61 }
0x133c   : > { %v17778_v15 = vpop.f32.mrb[188].mxu1 }
0x133d   : > { %12979 = vmatpush3.bf16.msra.mxu0 %v8483_v53  ;;  %v17783_v33 = vpop.f32.mrb[189].mxu1 }
0x133e   : > { %12992 = vmatprep.subr.bf16.mxu0 %v17781_v30  ;;  %v12863_v52 = vpop.f32.mrb[190].mxu1 }
0x133f   : > { %v17786_v23 = vpop.f32.mrb[191].mxu1 }
0x1361   : > { %v17790_v57 = vpop.f32.mrb[196].mxu0 }
0x1362   : > { %v17792_v24 = vpop.f32.mrb[197].mxu0 }
0x1363   : > { %v12871_v18 = vpop.f32.mrb[198].mxu0 }
0x1364   : > { %v17796_v31 = vpop.f32.mrb[199].mxu0 }
0x1365   : > { %v17800_v50 = vpop.f32.mrb[192].mxu1 }
0x1366   : > { %v17802_v42 = vpop.f32.mrb[193].mxu1 }
0x1367   : > { %v12879_v49 = vpop.f32.mrb[194].mxu1 }
0x1368   : > { %v17804_v35 = vpop.f32.mrb[195].mxu1 }
0x13ba   : > { %v17808_v12 = vpop.f32.mrb[196].mxu1 }
0x13bb   : > { %19578 = vst [vmem:[#allocation31_spill] sm:$0xff] %v17808_v12  ;;  %v17810_v44 = vpop.f32.mrb[197].mxu1 }
0x13bc   : > { %19579 = vst [vmem:[#allocation23_spill] sm:$0xff] %v17810_v44  ;;  %v12895_v2 = vpop.f32.mrb[198].mxu1 }
0x13bd   : > { %v17812_v36 = vpop.f32.mrb[199].mxu1 }
0x13be   : > { %19580 = vst [vmem:[#allocation33_spill] sm:$0xff] %v17812_v36  ;;  %v17816_v40 = vpop.f32.mrb[200].mxu0 }
0x13bf   : > { %19581 = vst [vmem:[#allocation22_spill] sm:$0xff] %v17816_v40  ;;  %v17818_v48 = vpop.f32.mrb[201].mxu0 }
0x13c0   : > { %v12887_v11 = vpop.f32.mrb[202].mxu0 }
0x13c1   : > { %v17822_v54 = vpop.f32.mrb[203].mxu0 }
0x13c2   : > { %19582 = vst [vmem:[#allocation29_spill] sm:$0xff] %v17822_v54 }
0x13c8   : > { %v17826_v17 = vpop.f32.mrb[204].mxu0 }
0x13c9   : > { %19583 = vst [vmem:[#allocation37_spill] sm:$0xff] %v17826_v17  ;;  %v17828_v20 = vpop.f32.mrb[205].mxu0 }
0x13ca   : > { %19584 = vst [vmem:[#allocation38_spill] sm:$0xff] %v17828_v20  ;;  %v12910_v58 = vpop.f32.mrb[200].mxu1  ;;  %v12903_v45 = vpop.f32.mrb[206].mxu0 }
0x13cb   : > { %v17833_v34 = vadd.f32 %v12910_v58, %v19585_v0  ;;  %v7635_v13 = vpop.f32.mrb[201].mxu1  ;;  %v17835_v22 = vpop.f32.mrb[207].mxu0 }
0x13cc   : > { %19586 = vst [vmem:[#allocation25_spill] sm:$0xff] %v17835_v22  ;;  %v12911_v21 = vpop.f32.mrb[202].mxu1  ;;  %v17840_v32 = vadd.f32 %v7635_v13, %v19585_v0 }
0x13cd   : > { %v7638_v3 = vpop.f32.mrb[203].mxu1  ;;  %v8131_v47 = vsel %vm2042_vm4, %v17833_v34, -inf }
0x13ce   : > { %v17845_v39 = vadd.f32 %v7638_v3, %v19585_v0  ;;  %8132 = vmax.xlane.f32.xlu0 %v8131_v47  ;;  %v8125_v4 = vsel %vm2042_vm4, %v17840_v32, -inf }
0x13d0   : > { %v8128_v7 = vsel %vm2042_vm4, %v17845_v39, -inf }
0x13d1   : > { %8129 = vmax.xlane.f32.xlu1 %v8128_v7 }
0x13d2   : > { %8126 = vmax.xlane.f32.xlu0 %v8125_v4 }
0x13da   : > { %v12926_v5 = vpop.f32.mrb[204].mxu1 }
0x13db   : > { %v17852_v28 = vadd.f32 %v12926_v5, %v19585_v0  ;;  %v12918_v6 = vpop.f32.mrb[208].mxu0  ;;  %v7771_v61 = vpop.f32.mrb[205].mxu1 }
0x13dc   : > { %v17855_v53 = vadd.f32 %v12918_v6, %v19585_v0  ;;  %v7703_v52 = vpop.f32.mrb[209].mxu0  ;;  %v12927_v18 = vpop.f32.mrb[206].mxu1  ;;  %v17858_v49 = vadd.f32 %v7771_v61, %v19585_v0 }
0x13dd   : > { %v12919_v2 = vpop.f32.mrb[210].mxu0  ;;  %v7774_v11 = vpop.f32.mrb[207].mxu1  ;;  %v8149_v58 = vsel %vm2042_vm4, %v17852_v28, -inf  ;;  %v17868_v3 = vadd.f32 %v7703_v52, %v19585_v0 }
0x13de   : > { %v17863_v45 = vadd.f32 %v7774_v11, %v19585_v0  ;;  %v7706_v13 = vpop.f32.mrb[211].mxu0  ;;  %8150 = vmax.xlane.f32.xlu0 %v8149_v58  ;;  %v8140_v21 = vsel %vm2042_vm4, %v17855_v53, -inf  ;;  %v8143_v47 = vsel %vm2042_vm4, %v17858_v49, -inf }
0x13df   : > { %8141 = vmax.xlane.f32.xlu1 %v8140_v21  ;;  %v17875_v4 = vadd.f32 %v7706_v13, %v19585_v0  ;;  %v8134_v5 = vsel %vm2042_vm4, %v17868_v3, -inf }
0x13e0   : > { %v8146_v7 = vsel %vm2042_vm4, %v17863_v45, -inf }
0x13e1   : > { %v8137_v6 = vsel %vm2042_vm4, %v17875_v4, -inf }
0x13e2   : > { %8144 = vmax.xlane.f32.xlu0 %v8143_v47 }
0x13e3   : > { %8147 = vmax.xlane.f32.xlu1 %v8146_v7 }
0x13e6   : > { %8135 = vmax.xlane.f32.xlu0 %v8134_v5 }
0x13ea   : > { %8138 = vmax.xlane.f32.xlu0 %v8137_v6  ;;  %v12942_v61 = vpop.f32.mrb[208].mxu1 }
0x13eb   : > { %v17882_v52 = vadd.f32 %v12942_v61, %v19585_v0  ;;  %v12934_v18 = vpop.f32.mrb[212].mxu0  ;;  %v7907_v2 = vpop.f32.mrb[209].mxu1 }
0x13ec   : > { %v17885_v11 = vadd.f32 %v12934_v18, %v19585_v0  ;;  %v7839_v58 = vpop.f32.mrb[213].mxu0  ;;  %v12943_v13 = vpop.f32.mrb[210].mxu1  ;;  %v17888_v21 = vadd.f32 %v7907_v2, %v19585_v0 }
0x13ed   : > { %v12935_v47 = vpop.f32.mrb[214].mxu0  ;;  %v7910_v7 = vpop.f32.mrb[211].mxu1  ;;  %v8167_v5 = vsel %vm2042_vm4, %v17882_v52, -inf  ;;  %v17903_v13 = vadd.f32 %v7839_v58, %v19585_v0 }
0x13ee   : > { %v17893_v6 = vadd.f32 %v7910_v7, %v19585_v0  ;;  %v7842_v61 = vpop.f32.mrb[215].mxu0  ;;  %8168 = vmax.xlane.f32.xlu0 %v8167_v5  ;;  %v8158_v1 = vsel %vm2042_vm4, %v17885_v11, -inf  ;;  %v8161_v2 = vsel %vm2042_vm4, %v17888_v21, -inf }
0x13ef   : > { %8159 = vmax.xlane.f32.xlu1 %v8158_v1  ;;  %v17898_v18 = vadd.f32 %v7842_v61, %v19585_v0  ;;  %v8152_v1 = vsel %vm2042_vm4, %v17903_v13, -inf }
0x13f0   : > { %v8164_v47 = vsel %vm2042_vm4, %v17893_v6, -inf }
0x13f1   : > { %v8155_v7 = vsel %vm2042_vm4, %v17898_v18, -inf }
0x13f2   : > { %8162 = vmax.xlane.f32.xlu0 %v8161_v2 }
0x13f3   : > { %8165 = vmax.xlane.f32.xlu1 %v8164_v47 }
0x13f6   : > { %8156 = vmax.xlane.f32.xlu0 %v8155_v7 }
0x13f7   : > { %8153 = vmax.xlane.f32.xlu1 %v8152_v1 }
0x13fa   : > { %v12958_v5 = vpop.f32.mrb[212].mxu1 }
0x13fb   : > { %v17912_v61 = vadd.f32 %v12958_v5, %v19585_v0  ;;  %v12950_v43 = vpop.f32.mrb[216].mxu0  ;;  %v8043_v58 = vpop.f32.mrb[213].mxu1 }
0x13fc   : > { %v17915_v2 = vadd.f32 %v12950_v43, %v19585_v0  ;;  %v7975_v9 = vpop.f32.mrb[217].mxu0  ;;  %v12959_v51 = vpop.f32.mrb[214].mxu1  ;;  %v17918_v47 = vadd.f32 %v8043_v58, %v19585_v0 }
0x13fd   : > { %v12951_v29 = vpop.f32.mrb[218].mxu0  ;;  %v8046_v7 = vpop.f32.mrb[215].mxu1  ;;  %v8185_v63 = vsel %vm2042_vm4, %v17912_v61, -inf }
0x13fe   : > { %v17923_v1 = vadd.f32 %v8046_v7, %v19585_v0  ;;  %v7978_v5 = vpop.f32.mrb[219].mxu0  ;;  %8186 = vmax.xlane.f32.xlu0 %v8185_v63  ;;  %v8176_v25 = vsel %vm2042_vm4, %v17915_v2, -inf  ;;  %v8179_v51 = vsel %vm2042_vm4, %v17918_v47, -inf  ;;  %v17933_v29 = vadd.f32 %v7975_v9, %v19585_v0 }
0x13ff   : > { %8177 = vmax.xlane.f32.xlu1 %v8176_v25  ;;  %v17928_v43 = vadd.f32 %v7978_v5, %v19585_v0 }
0x1400   : > { %v8182_v58 = vsel %vm2042_vm4, %v17923_v1, -inf  ;;  %v8170_v25 = vsel %vm2042_vm4, %v17933_v29, -inf }
0x1401   : > { %v8173_v63 = vsel %vm2042_vm4, %v17928_v43, -inf }
0x1402   : > { %8180 = vmax.xlane.f32.xlu0 %v8179_v51 }
0x1403   : > { %8183 = vmax.xlane.f32.xlu1 %v8182_v58 }
0x1406   : > { %8174 = vmax.xlane.f32.xlu0 %v8173_v63 }
0x1407   : > { %8171 = vmax.xlane.f32.xlu1 %v8170_v25 }
0x140b   : > { %v12966_v7 = vpop.f32.mrb[220].mxu0 }
0x140c   : > { %v17942_v5 = vadd.f32 %v12966_v7, %v19585_v0  ;;  %v8111_v41 = vpop.f32.mrb[221].mxu0  ;;  %v17956_v7 = vpop.permute.xlu1 %8601 }
0x140d   : > { %v12967_v9 = vpop.f32.mrb[222].mxu0  ;;  %v17945_v51 = vadd.f32 %v8111_v41, %v19585_v0 }
0x140e   : > { %v8114_v14 = vpop.f32.mrb[223].mxu0  ;;  %v8194_v58 = vsel %vm2042_vm4, %v17942_v5, -inf  ;;  %v17960_v9 = vpop.permute.xlu0 %8537 }
0x140f   : > { %v17950_v10 = vadd.f32 %v8114_v14, %v19585_v0  ;;  %8195 = vmax.xlane.f32.xlu1 %v8194_v58  ;;  %v8188_v25 = vsel %vm2042_vm4, %v17945_v51, -inf }
0x1410   : > { %v17958_v41 = vpop.permute.xlu1 %8727 }
0x1411   : > { %v8191_v63 = vsel %vm2042_vm4, %v17950_v10, -inf }
0x1412   : > { %8192 = vmax.xlane.f32.xlu0 %v8191_v63  ;;  %v17964_v16 = vpop.permute.xlu0 %8663 }
0x1413   : > { %8189 = vmax.xlane.f32.xlu1 %v8188_v25 }
0x1414   : > { %v17962_v60 = vpop.permute.xlu1 %8665 }
0x1418   : > { %v17966_v14 = vpop.permute.xlu1 %8729 }
0x145b   : > { %v8133_v0 = vpop.xlane.xlu0 %8132 }
0x145c   : > { %v8199_v58 = vsub.f32 %v17833_v34, %v8133_v0 }
0x145e   : > { %v8225_v63 = vmul.f32 1.442695, %v8199_v58  ;;  %v8130_v22 = vpop.xlane.xlu1 %8129 }
0x145f   : > { %v8198_v17 = vsub.f32 %v17845_v39, %v8130_v22  ;;  %v8127_v25 = vpop.xlane.xlu0 %8126 }
0x1460   : > { %14043 = vpow2.f32 %v8225_v63  ;;  %v8197_v12 = vsub.f32 %v17840_v32, %v8127_v25 }
0x1461   : > { %v8223_v20 = vmul.f32 1.442695, %v8198_v17 }
0x1462   : > { %v8221_v44 = vmul.f32 1.442695, %v8197_v12 }
0x1463   : > { %14045 = vpow2.f32 %v8223_v20 }
0x1464   : > { %14047 = vpow2.f32 %v8221_v44 }
0x146a   : > { %v17971_v36 = vpop.eup %14043 }
0x146b   : > { %v8151_v54 = vpop.xlane.xlu0 %8150  ;;  %v8275_v40 = vsel %vm2042_vm4, %v17971_v36, 0.0 }
0x146c   : > { %v8205_v34 = vsub.f32 %v17852_v28, %v8151_v54  ;;  %8276 = vadd.xlane.f32.xlu0 %v8275_v40  ;;  %v8142_v0 = vpop.xlane.xlu1 %8141 }
0x146d   : > { %v17976_v58 = vpop.eup %14045  ;;  %v8202_v22 = vsub.f32 %v17855_v53, %v8142_v0 }
0x146e   : > { %v17979_v39 = vpop.eup %14047  ;;  %v8237_v17 = vmul.f32 1.442695, %v8205_v34  ;;  %v8272_v12 = vsel %vm2042_vm4, %v17976_v58, 0.0 }
0x146f   : > { %v8231_v44 = vmul.f32 1.442695, %v8202_v22  ;;  %v8145_v20 = vpop.xlane.xlu0 %8144  ;;  %8273 = vadd.xlane.f32.xlu1 %v8272_v12  ;;  %v8269_v32 = vsel %vm2042_vm4, %v17979_v39, 0.0 }
0x1470   : > { %14049 = vpow2.f32 %v8237_v17  ;;  %v8203_v40 = vsub.f32 %v17858_v49, %v8145_v20  ;;  %8270 = vadd.xlane.f32.xlu0 %v8269_v32  ;;  %v8148_v54 = vpop.xlane.xlu1 %8147 }
0x1471   : > { %14051 = vpow2.f32 %v8231_v44  ;;  %v8204_v28 = vsub.f32 %v17863_v45, %v8148_v54 }
0x1472   : > { %v8233_v53 = vmul.f32 1.442695, %v8203_v40 }
0x1473   : > { %v8235_v63 = vmul.f32 1.442695, %v8204_v28  ;;  %v8136_v25 = vpop.xlane.xlu0 %8135 }
0x1474   : > { %14053 = vpow2.f32 %v8233_v53  ;;  %v8200_v34 = vsub.f32 %v17868_v3, %v8136_v25 }
0x1475   : > { %14055 = vpow2.f32 %v8235_v63 }
0x1476   : > { %v8227_v0 = vmul.f32 1.442695, %v8200_v34 }
0x1477   : > { %v8139_v22 = vpop.xlane.xlu0 %8138 }
0x1478   : > { %14057 = vpow2.f32 %v8227_v0  ;;  %v8201_v12 = vsub.f32 %v17875_v4, %v8139_v22 }
0x147a   : > { %v17989_v17 = vpop.eup %14049  ;;  %v8229_v49 = vmul.f32 1.442695, %v8201_v12 }
0x147b   : > { %v17991_v20 = vpop.eup %14051  ;;  %v8169_v44 = vpop.xlane.xlu0 %8168  ;;  %v8293_v45 = vsel %vm2042_vm4, %v17989_v17, 0.0 }
0x147c   : > { %14059 = vpow2.f32 %v8229_v49  ;;  %v8211_v32 = vsub.f32 %v17882_v52, %v8169_v44  ;;  %8294 = vadd.xlane.f32.xlu0 %v8293_v45  ;;  %v8160_v3 = vpop.xlane.xlu1 %8159  ;;  %v8284_v40 = vsel %vm2042_vm4, %v17991_v20, 0.0 }
0x147d   : > { %8285 = vadd.xlane.f32.xlu1 %v8284_v40  ;;  %v8208_v28 = vsub.f32 %v17885_v11, %v8160_v3 }
0x147e   : > { %v17998_v54 = vpop.eup %14053  ;;  %v8249_v4 = vmul.f32 1.442695, %v8211_v32 }
0x147f   : > { %v18001_v53 = vpop.eup %14055  ;;  %v8163_v63 = vpop.xlane.xlu0 %8162  ;;  %v8287_v25 = vsel %vm2042_vm4, %v17998_v54, 0.0  ;;  %v8243_v12 = vmul.f32 1.442695, %v8208_v28 }
0x1480   : > { %14061 = vpow2.f32 %v8249_v4  ;;  %v8209_v52 = vsub.f32 %v17888_v21, %v8163_v63  ;;  %8288 = vadd.xlane.f32.xlu0 %v8287_v25  ;;  %v8166_v34 = vpop.xlane.xlu1 %8165  ;;  %v8290_v0 = vsel %vm2042_vm4, %v18001_v53, 0.0 }
0x1481   : > { %8291 = vadd.xlane.f32.xlu1 %v8290_v0  ;;  %v8210_v11 = vsub.f32 %v17893_v6, %v8166_v34 }
0x1482   : > { %v18008_v22 = vpop.eup %14057  ;;  %v8245_v49 = vmul.f32 1.442695, %v8209_v52 }
0x1483   : > { %v8278_v44 = vsel %vm2042_vm4, %v18008_v22, 0.0  ;;  %v8247_v21 = vmul.f32 1.442695, %v8210_v11  ;;  %v8157_v11 = vpop.xlane.xlu0 %8156 }
0x1484   : > { %14063 = vpow2.f32 %v8245_v49  ;;  %v8154_v45 = vpop.xlane.xlu1 %8153 }
0x1485   : > { %8279 = vadd.xlane.f32.xlu1 %v8278_v44  ;;  %14065 = vpow2.f32 %v8243_v12  ;;  %v8206_v3 = vsub.f32 %v17903_v13, %v8154_v45  ;;  %v8207_v44 = vsub.f32 %v17898_v18, %v8157_v11 }
0x1486   : > { %v18013_v32 = vpop.eup %14059  ;;  %14067 = vpow2.f32 %v8247_v21 }
0x1487   : > { %v8281_v40 = vsel %vm2042_vm4, %v18013_v32, 0.0  ;;  %v8239_v6 = vmul.f32 1.442695, %v8206_v3  ;;  %v8241_v3 = vmul.f32 1.442695, %v8207_v44 }
0x1488   : > { %8282 = vadd.xlane.f32.xlu0 %v8281_v40 }
0x1489   : > { %14069 = vpow2.f32 %v8239_v6 }
0x148a   : > { %v18018_v4 = vpop.eup %14061  ;;  %14071 = vpow2.f32 %v8241_v3 }
0x148b   : > { %v8311_v28 = vsel %vm2042_vm4, %v18018_v4, 0.0  ;;  %v8187_v45 = vpop.xlane.xlu0 %8186 }
0x148c   : > { %8312 = vadd.xlane.f32.xlu1 %v8311_v28  ;;  %v8178_v21 = vpop.xlane.xlu1 %8177  ;;  %v8217_v40 = vsub.f32 %v17912_v61, %v8187_v45 }
0x148e   : > { %v18022_v63 = vpop.eup %14063  ;;  %v8261_v28 = vmul.f32 1.442695, %v8217_v40 }
0x148f   : > { %v8305_v25 = vsel %vm2042_vm4, %v18022_v63, 0.0  ;;  %v18026_v52 = vpop.eup %14065 }
0x1490   : > { %8306 = vadd.xlane.f32.xlu1 %v8305_v25  ;;  %v8302_v13 = vsel %vm2042_vm4, %v18026_v52, 0.0  ;;  %v18030_v34 = vpop.eup %14067  ;;  %v8184_v6 = vpop.xlane.xlu1 %8183  ;;  %v8214_v25 = vsub.f32 %v17915_v2, %v8178_v21  ;;  %14073 = vpow2.f32 %v8261_v28 }
0x1491   : > { %v8308_v0 = vsel %vm2042_vm4, %v18030_v34, 0.0 }
0x1493   : > { %v18034_v12 = vpop.eup %14069 }
0x1494   : > { %8303 = vadd.xlane.f32.xlu1 %v8302_v13  ;;  %v8296_v49 = vsel %vm2042_vm4, %v18034_v12, 0.0  ;;  %v8181_v13 = vpop.xlane.xlu0 %8180  ;;  %v18047_v45 = vpop.eup %14071 }
0x1495   : > { %v8299_v40 = vsel %vm2042_vm4, %v18047_v45, 0.0 }
0x1498   : > { %8309 = vadd.xlane.f32.xlu1 %v8308_v0  ;;  %v8255_v0 = vmul.f32 1.442695, %v8214_v25  ;;  %v8175_v44 = vpop.xlane.xlu0 %8174 }
0x149a   : > { %14075 = vpow2.f32 %v8255_v0 }
0x149c   : > { %8297 = vadd.xlane.f32.xlu1 %v8296_v49  ;;  %v8172_v49 = vpop.xlane.xlu1 %8171 }
0x149d   : > { %v8212_v11 = vsub.f32 %v17933_v29, %v8172_v49  ;;  %v8213_v29 = vsub.f32 %v17928_v43, %v8175_v44 }
0x149e   : > { %8791 = vrot.lane.b32.xlu0 %v17192_v46, %s14249_s16  ;;  %v8216_v46 = vsub.f32 %v17923_v1, %v8184_v6  ;;  %v18053_v1 = vpop.eup %14073 }
0x149f   : > { %v8251_v3 = vmul.f32 1.442695, %v8212_v11  ;;  %v8193_v21 = vpop.xlane.xlu0 %8192 }
0x14a0   : > { %v8259_v18 = vmul.f32 1.442695, %v8216_v46  ;;  %v8196_v61 = vpop.xlane.xlu1 %8195  ;;  %v8219_v25 = vsub.f32 %v17950_v10, %v8193_v21 }
0x14a1   : > { %v8220_v2 = vsub.f32 %v17942_v5, %v8196_v61  ;;  %v8253_v5 = vmul.f32 1.442695, %v8213_v29 }
0x14a2   : > { %14077 = vpow2.f32 %v8259_v18  ;;  %v8265_v46 = vmul.f32 1.442695, %v8219_v25 }
0x14a3   : > { %14079 = vpow2.f32 %v8251_v3  ;;  %v8267_v28 = vmul.f32 1.442695, %v8220_v2 }
0x14a4   : > { %v8190_v0 = vpop.xlane.xlu1 %8189 }
0x14a5   : > { %v8218_v49 = vsub.f32 %v17945_v51, %v8190_v0 }
0x14a7   : > { %v8263_v10 = vmul.f32 1.442695, %v8218_v49 }
0x14ad   : > { %8793 = vrot.lane.b32.xlu1 %v17629_v56, %s14249_s16  ;;  %v8215_v56 = vsub.f32 %v17918_v47, %v8181_v13  ;;  %v8329_v47 = vsel %vm2042_vm4, %v18053_v1, 0.0  ;;  %v18059_v13 = vpop.eup %14075 }
0x14ae   : > { %v8320_v43 = vsel %vm2042_vm4, %v18059_v13, 0.0  ;;  %v18064_v18 = vpop.eup %14077 }
0x14af   : > { %v8257_v6 = vmul.f32 1.442695, %v8215_v56  ;;  %v8326_v11 = vsel %vm2042_vm4, %v18064_v18, 0.0  ;;  %v18068_v44 = vpop.eup %14079 }
0x14b0   : > { %v8314_v51 = vsel %vm2042_vm4, %v18068_v44, 0.0 }
0x14b1   : > { %14081 = vpow2.f32 %v8257_v6 }
0x14b2   : > { %14083 = vpow2.f32 %v8267_v28 }
0x14b3   : > { %14085 = vpow2.f32 %v8253_v5 }
0x14b4   : > { %14087 = vpow2.f32 %v8265_v46 }
0x14b5   : > { %14089 = vpow2.f32 %v8263_v10 }
0x14bb   : > { %v18070_v61 = vpop.eup %14081 }
0x14bc   : > { %v18074_v56 = vpop.eup %14083  ;;  %v8323_v2 = vsel %vm2042_vm4, %v18070_v61, 0.0 }
0x14bd   : > { %8300 = vadd.xlane.f32.xlu0 %v8299_v40  ;;  %v18076_v3 = vpop.eup %14085  ;;  %v8338_v21 = vsel %vm2042_vm4, %v18074_v56, 0.0 }
0x14be   : > { %v18082_v40 = vpop.eup %14087  ;;  %v8317_v6 = vsel %vm2042_vm4, %v18076_v3, 0.0 }
0x14bf   : > { %v8335_v29 = vsel %vm2042_vm4, %v18082_v40, 0.0  ;;  %v18088_v28 = vpop.eup %14089 }
0x14c0   : > { %v8332_v25 = vsel %vm2042_vm4, %v18088_v28, 0.0 }
0x14c1   : > { %8330 = vadd.xlane.f32.xlu0 %v8329_v47 }
0x14c5   : > { %8321 = vadd.xlane.f32.xlu0 %v8320_v43 }
0x14c9   : > { %8327 = vadd.xlane.f32.xlu0 %v8326_v11 }
0x14cd   : > { %8315 = vadd.xlane.f32.xlu0 %v8314_v51 }
0x14d1   : > { %8324 = vadd.xlane.f32.xlu1 %v8323_v2  ;;  %8339 = vadd.xlane.f32.xlu0 %v8338_v21 }
0x14d5   : > { %8318 = vadd.xlane.f32.xlu1 %v8317_v6  ;;  %8336 = vadd.xlane.f32.xlu0 %v8335_v29 }
0x14d9   : > { %8333 = vadd.xlane.f32.xlu1 %v8332_v25 }
0x14ea   : > { %8857 = vrot.lane.b32.xlu1 %v17696_v62, %s14249_s16 }
0x14eb   : > { %8855 = vrot.lane.b32.xlu0 %v19569_v55, %s14249_s16 }
0x14f9   : > { %v8277_v0 = vpop.xlane.xlu0 %8276 }
0x14fa   : > { %14091 = vrcp.f32 %v8277_v0 }
0x14fc   : > { %v8274_v47 = vpop.xlane.xlu1 %8273 }
0x14fd   : > { %14093 = vrcp.f32 %v8274_v47  ;;  %v8271_v5 = vpop.xlane.xlu0 %8270 }
0x14fe   : > { %14095 = vrcp.f32 %v8271_v5 }
0x1504   : > { %v14092_v46 = vpop.eup %14091 }
0x1505   : > { %v8367_v10 = vmul.f32 %v14092_v46, %v17971_v36  ;;  %v8547_v36 = vsel %vm2329_vm2, %v17960_v9, 0 }
0x1507   : > { %v14094_v49 = vpop.eup %14093  ;;  %v8390_v55 = vpack.c.bf16 %v8367_v10, %v8367_v10 }
0x1508   : > { %v14096_v43 = vpop.eup %14095  ;;  %v8366_v11 = vmul.f32 %v14094_v49, %v17976_v58 }
0x1509   : > { %v8295_v51 = vpop.xlane.xlu0 %8294  ;;  %v8365_v2 = vmul.f32 %v14096_v43, %v17979_v39 }
0x150a   : > { %v8286_v62 = vpop.xlane.xlu1 %8285  ;;  %14097 = vrcp.f32 %v8295_v51 }
0x150b   : > { %v8389_v21 = vpack.c.bf16 %v8366_v11, %v8365_v2 }
0x150d   : > { %v8289_v6 = vpop.xlane.xlu0 %8288  ;;  %12972 = vmatprep.mubr.msk.bf16.mxu1 %vm2042_vm4, %v8389_v21  ;;  %v8675_v21 = vsel %vm2329_vm2, %v17962_v60, 0 }
0x150e   : > { %14099 = vrcp.f32 %v8289_v6  ;;  %12973 = vmatmul.mubr.msk.bf16.vlgmr.msra.gmra.mrb[216].mxu1 %vm2042_vm4, %v8390_v55  ;;  %v8292_v29 = vpop.xlane.xlu1 %8291 }
0x150f   : > { %12985 = vmatpush3.bf16.msra.mxu1 %v17763_v27  ;;  %14101 = vrcp.f32 %v8292_v29 }
0x1510   : > { %13304 = vmatprep.subr.msk.bf16.mxu1 %vm2329_vm2, %v17960_v9  ;;  %14103 = vrcp.f32 %v8286_v62 }
0x1512   : > { %v8280_v58 = vpop.xlane.xlu1 %8279 }
0x1513   : > { %12987 = vmatpush3.bf16.msra.mxu1 %v8547_v36  ;;  %14105 = vrcp.f32 %v8280_v58 }
0x1514   : > { %13000 = vmatprep.subr.bf16.mxu1 %v17964_v16  ;;  %v14098_v25 = vpop.eup %14097 }
0x1515   : > { %v8283_v39 = vpop.xlane.xlu0 %8282  ;;  %v8373_v27 = vmul.f32 %v14098_v25, %v17989_v17 }
0x1516   : > { %14107 = vrcp.f32 %v8283_v39 }
0x1517   : > { %v8394_v11 = vpack.c.bf16 %v8373_v27, %v8373_v27 }
0x1518   : > { %v14100_v0 = vpop.eup %14099 }
0x1519   : > { %v14102_v47 = vpop.eup %14101  ;;  %v8313_v5 = vpop.xlane.xlu1 %8312  ;;  %v8371_v46 = vmul.f32 %v14100_v0, %v17998_v54 }
0x151a   : > { %v8372_v49 = vmul.f32 %v14102_v47, %v18001_v53  ;;  %v14104_v9 = vpop.eup %14103  ;;  %14109 = vrcp.f32 %v8313_v5  ;;  %v8792_v6 = vpop.permute.xlu0 %8791 }
0x151b   : > { %v8370_v62 = vmul.f32 %v14104_v9, %v17991_v20 }
0x151c   : > { %v8393_v43 = vpack.c.bf16 %v8372_v49, %v8371_v46 }
0x151d   : > { %v8307_v10 = vpop.xlane.xlu1 %8306  ;;  %v14106_v51 = vpop.eup %14105  ;;  %v8392_v29 = vpack.c.bf16 %v8370_v62, %v8370_v62 }
0x151e   : > { %12988 = vmatprep.mubr.msk.bf16.mxu1 %vm2042_vm4, %v8393_v43  ;;  %v8368_v54 = vmul.f32 %v14106_v51, %v18008_v22  ;;  %14111 = vrcp.f32 %v8307_v10 }
0x151f   : > { %12989 = vmatmul.mubr.msk.bf16.vlgmr.msra.gmra.mrb[220].mxu1 %vm2042_vm4, %v8394_v11 }
0x1520   : > { %v14108_v2 = vpop.eup %14107  ;;  %13001 = vmatpush3.bf16.msra.mxu1 %v17964_v16 }
0x1521   : > { %13306 = vmatprep.subr.msk.bf16.mxu1 %vm2329_vm2, %v17962_v60  ;;  %v8304_v17 = vpop.xlane.xlu1 %8303  ;;  %v8369_v53 = vmul.f32 %v14108_v2, %v18013_v32  ;;  %v8611_v60 = vsel %vm2329_vm2, %v17956_v7, 0 }
0x1523   : > { %v8391_v55 = vpack.c.bf16 %v8369_v53, %v8368_v54 }
0x1524   : > { %13003 = vmatpush3.bf16.msra.mxu1 %v8675_v21  ;;  %v14110_v20 = vpop.eup %14109 }
0x1525   : > { %13016 = vmatprep.subr.bf16.mxu1 %v8792_v6  ;;  %12980 = vmatprep.mubr.msk.bf16.mxu0 %vm2042_vm4, %v8391_v55  ;;  %v8310_v16 = vpop.xlane.xlu1 %8309  ;;  %v8379_v36 = vmul.f32 %v14110_v20, %v18018_v4 }
0x1526   : > { %14113 = vrcp.f32 %v8310_v16  ;;  %12981 = vmatmul.mubr.msk.bf16.vlgmr.msra.gmra.mrb[224].mxu0 %vm2042_vm4, %v8392_v29 }
0x1527   : > { %12993 = vmatpush3.bf16.msra.mxu0 %v17781_v30  ;;  %v8398_v0 = vpack.c.bf16 %v8379_v36, %v8379_v36  ;;  %14115 = vrcp.f32 %v8304_v17 }
0x1528   : > { %13305 = vmatprep.subr.msk.bf16.mxu0 %vm2329_vm2, %v17956_v7  ;;  %v14112_v22 = vpop.eup %14111 }
0x1529   : > { %v8298_v58 = vpop.xlane.xlu1 %8297  ;;  %v8377_v39 = vmul.f32 %v14112_v22, %v18022_v63 }
0x152a   : > { %14117 = vrcp.f32 %v8298_v58 }
0x152b   : > { %12995 = vmatpush3.bf16.msra.mxu0 %v8611_v60 }
0x152c   : > { %13008 = vmatprep.subr.bf16.mxu0 %v17958_v41 }
0x152d   : > { %v8794_v7 = vpop.permute.xlu1 %8793 }
0x152e   : > { %v8803_v47 = vsel %vm2329_vm2, %v8794_v7, 0 }
0x1530   : > { %v14114_v32 = vpop.eup %14113 }
0x1531   : > { %v8378_v25 = vmul.f32 %v14114_v32, %v18030_v34  ;;  %v14116_v27 = vpop.eup %14115 }
0x1532   : > { %v8376_v49 = vmul.f32 %v14116_v27, %v18026_v52 }
0x1533   : > { %v8397_v30 = vpack.c.bf16 %v8378_v25, %v8377_v39 }
0x1534   : > { %v14118_v5 = vpop.eup %14117  ;;  %v8396_v51 = vpack.c.bf16 %v8376_v49, %v8376_v49 }
0x1535   : > { %13004 = vmatprep.mubr.msk.bf16.mxu1 %vm2042_vm4, %v8397_v30  ;;  %v8374_v9 = vmul.f32 %v14118_v5, %v18034_v12  ;;  %v8739_v12 = vsel %vm2329_vm2, %v17966_v14, 0 }
0x1536   : > { %13005 = vmatmul.mubr.msk.bf16.vlgmr.msra.gmra.mrb[224].mxu1 %vm2042_vm4, %v8398_v0 }
0x1537   : > { %13017 = vmatpush3.bf16.msra.mxu1 %v8792_v6 }
0x1538   : > { %13308 = vmatprep.subr.msk.bf16.mxu1 %vm2329_vm2, %v8794_v7 }
0x153b   : > { %13019 = vmatpush3.bf16.msra.mxu1 %v8803_v47 }
0x154a   : > { %v8301_v4 = vpop.xlane.xlu0 %8300 }
0x154b   : > { %14119 = vrcp.f32 %v8301_v4 }
0x154e   : > { %v8331_v63 = vpop.xlane.xlu0 %8330 }
0x154f   : > { %14121 = vrcp.f32 %v8331_v63 }
0x1552   : > { %v8322_v34 = vpop.xlane.xlu0 %8321 }
0x1555   : > { %v14120_v46 = vpop.eup %14119 }
0x1556   : > { %v8328_v43 = vpop.xlane.xlu0 %8327  ;;  %v8375_v10 = vmul.f32 %v14120_v46, %v18047_v45 }
0x1557   : > { %14123 = vrcp.f32 %v8328_v43 }
0x1558   : > { %v8395_v11 = vpack.c.bf16 %v8375_v10, %v8374_v9 }
0x1559   : > { %v14122_v53 = vpop.eup %14121 }
0x155a   : > { %v8316_v2 = vpop.xlane.xlu0 %8315  ;;  %12996 = vmatprep.mubr.msk.bf16.mxu0 %vm2042_vm4, %v8395_v11  ;;  %v8385_v6 = vmul.f32 %v14122_v53, %v18053_v1 }
0x155b   : > { %12997 = vmatmul.mubr.msk.bf16.vlgmr.msra.gmra.mrb[228].mxu0 %vm2042_vm4, %v8396_v51 }
0x155c   : > { %13009 = vmatpush3.bf16.msra.mxu0 %v17958_v41  ;;  %v8402_v36 = vpack.c.bf16 %v8385_v6, %v8385_v6 }
0x155d   : > { %13307 = vmatprep.subr.msk.bf16.mxu0 %vm2329_vm2, %v17966_v14 }
0x155e   : > { %v8340_v52 = vpop.xlane.xlu0 %8339  ;;  %v8325_v62 = vpop.xlane.xlu1 %8324 }
0x155f   : > { %14125 = vrcp.f32 %v8325_v62 }
0x1560   : > { %13011 = vmatpush3.bf16.msra.mxu0 %v8739_v12  ;;  %14127 = vrcp.f32 %v8322_v34  ;;  %v13414_v12 = vld [vmem:[%s19315_s4 + $0x28] sm:$0xff]  }
0x1561   : > { %14129 = vrcp.f32 %v8316_v2  ;;  %v14124_v21 = vpop.eup %14123 }
0x1562   : > { %v8337_v45 = vpop.xlane.xlu0 %8336  ;;  %v8319_v17 = vpop.xlane.xlu1 %8318  ;;  %v8384_v16 = vmul.f32 %v14124_v21, %v18064_v18 }
0x1563   : > { %14131 = vrcp.f32 %v8319_v17 }
0x1564   : > { %14133 = vrcp.f32 %v8337_v45 }
0x1566   : > { %v8856_v54 = vpop.permute.xlu0 %8855  ;;  %v8334_v41 = vpop.xlane.xlu1 %8333 }
0x1567   : > { %14135 = vrcp.f32 %v8334_v41  ;;  %13024 = vmatprep.subr.bf16.mxu0 %v8856_v54 }
0x1568   : > { %14137 = vrcp.f32 %v8340_v52 }
0x1569   : > { %v14126_v55 = vpop.eup %14125 }
0x156a   : > { %v14128_v29 = vpop.eup %14127  ;;  %v8383_v14 = vmul.f32 %v14126_v55, %v18070_v61  ;;  %v8858_v47 = vpop.permute.xlu1 %8857 }
0x156b   : > { %v14130_v60 = vpop.eup %14129  ;;  %v8382_v32 = vmul.f32 %v14128_v29, %v18059_v13 }
0x156c   : > { %v8401_v20 = vpack.c.bf16 %v8384_v16, %v8383_v14  ;;  %v8380_v39 = vmul.f32 %v14130_v60, %v18068_v44  ;;  %v13411_v44 = vld [vmem:[%s19315_s4 + $0x30] sm:$0xff]  }
0x156d   : > { %v14132_v22 = vpop.eup %14131  ;;  %v8400_v61 = vpack.c.bf16 %v8382_v32, %v8382_v32  ;;  %13032 = vmatprep.subr.bf16.mxu1 %v13411_v44 }
0x156e   : > { %v14134_v58 = vpop.eup %14133  ;;  %13020 = vmatprep.mubr.msk.bf16.mxu1 %vm2042_vm4, %v8401_v20  ;;  %v8381_v25 = vmul.f32 %v14132_v22, %v18076_v3 }
0x156f   : > { %13021 = vmatmul.mubr.msk.bf16.vlgmr.msra.gmra.mrb[228].mxu1 %vm2042_vm4, %v8402_v36  ;;  %v8387_v0 = vmul.f32 %v14134_v58, %v18082_v40  ;;  %v8867_v40 = vsel %vm2329_vm2, %v8858_v47, 0 }
0x1570   : > { %v8399_v30 = vpack.c.bf16 %v8381_v25, %v8380_v39  ;;  %13033 = vmatpush3.bf16.msra.mxu1 %v13411_v44 }
0x1571   : > { %v14136_v1 = vpop.eup %14135 }
0x1572   : > { %v8386_v18 = vmul.f32 %v14136_v1, %v18088_v28  ;;  %v14138_v7 = vpop.eup %14137  ;;  %13012 = vmatprep.mubr.msk.bf16.mxu0 %vm2042_vm4, %v8399_v30  ;;  %v13412_v28 = vld [vmem:[%s19315_s4 + $0x38] sm:$0xff]  }
0x1573   : > { %13013 = vmatmul.mubr.msk.bf16.vlgmr.msra.gmra.mrb[232].mxu0 %vm2042_vm4, %v8400_v61  ;;  %v8388_v3 = vmul.f32 %v14138_v7, %v18074_v56  ;;  %13034 = vmatprep.subr.bf16.mxu1 %v13412_v28  ;;  %v13413_v56 = vld [vmem:[%s19315_s4 + $0x20] sm:$0xff]  }
0x1574   : > { %v8403_v13 = vpack.c.bf16 %v8387_v0, %v8386_v18  ;;  %13025 = vmatpush3.bf16.msra.mxu0 %v8856_v54  ;;  %13035 = vmatpush3.bf16.msra.mxu1 %v13412_v28  ;;  %v19587_v28 = vpack.c.bf16 %v17758_v37, %v17756_v26  ;;  %v19591_v26 = vpack.c.bf16 %v17792_v24, %v17778_v15  ;;  %v19601_v24 = vld [vmem:[#allocation38_spill] sm:$0xff] }
0x1575   : > { %13309 = vmatprep.subr.msk.bf16.mxu0 %vm2329_vm2, %v8858_v47  ;;  %v8404_v4 = vpack.c.bf16 %v8388_v3, %v8388_v3  ;;  %13060 = vmatprep.subr.bf16.mxu1 %v13413_v56  ;;  %v19593_v37 = vpack.c.bf16 %v17804_v35, %v17802_v42  ;;  %v19604_v35 = vld [vmem:[#allocation37_spill] sm:$0xff] }
0x1576   : > { %13028 = vmatprep.mubr.msk.bf16.mxu0 %vm2042_vm4, %v8403_v13 }
0x1578   : > { %13027 = vmatpush3.bf16.msra.mxu0 %v8867_v40 }
0x157b   : > { %13029 = vmatmul.mubr.msk.bf16.vlgmr.msra.gmra.mrb[236].mxu0 %vm2042_vm4, %v8404_v4  ;;  %v19588_v4 = vpack.c.bf16 %v17768_v8, %v17754_v38  ;;  %v19592_v38 = vpack.c.bf16 %v17790_v57, %v17796_v31  ;;  %v19595_v8 = vld [vmem:[#allocation22_spill] sm:$0xff]  ;;  %v19602_v31 = vld [vmem:[#allocation31_spill] sm:$0xff] }
0x157c   : > { %v19603_v42 = vpack.c.bf16 %v19601_v24, %v19602_v31 }
0x15e1   : > { %v12974_v63 = vpop.f32.mrb[216].mxu1 }
0x15e2   : > { %v8455_v27 = vpop.f32.mrb[217].mxu1 }
0x15e3   : > { %v12975_v34 = vpop.f32.mrb[218].mxu1 }
0x15e4   : > { %v8458_v5 = vpop.f32.mrb[219].mxu1 }
0x15e5   : > { %v8917_v46 = vpack.c.bf16 %v8458_v5, %v8455_v27  ;;  %v19605_v27 = vld [vmem:[#allocation25_spill] sm:$0xff]  ;;  %v19607_v5 = vld [vmem:[#allocation27_spill] sm:$0xff] }
0x15e7   : > { %13036 = vmatprep.mubr.msk.bf16.mxu1 %vm1519_vm1, %v8917_v46 }
0x15f2   : > { %v12990_v49 = vpop.f32.mrb[220].mxu1 }
0x15f3   : > { %v8583_v43 = vpop.f32.mrb[221].mxu1 }
0x15f4   : > { %v12991_v9 = vpop.f32.mrb[222].mxu1 }
0x15f5   : > { %v8586_v10 = vpop.f32.mrb[223].mxu1 }
0x15f6   : > { %v8920_v11 = vpack.c.bf16 %v8586_v10, %v8583_v43  ;;  %v19608_v43 = vld [vmem:[#allocation34_spill] sm:$0xff]  ;;  %v19609_v10 = vld [vmem:[#allocation32_spill] sm:$0xff] }
0x15f9   : > { %v12982_v51 = vpop.f32.mrb[224].mxu0 }
0x15fa   : > { %v8519_v2 = vpop.f32.mrb[225].mxu0 }
0x15fb   : > { %v8918_v52 = vpack.c.bf16 %v8519_v2, %v12974_v63  ;;  %v12983_v62 = vpop.f32.mrb[226].mxu0  ;;  %v19590_v63 = vpack.c.bf16 %v17786_v23, %v17783_v33  ;;  %v19598_v33 = vld [vmem:[#allocation33_spill] sm:$0xff]  ;;  %v19599_v23 = vld [vmem:[#allocation23_spill] sm:$0xff] }
0x15fc   : > { %v8522_v45 = vpop.f32.mrb[227].mxu0  ;;  %v19600_v57 = vpack.c.bf16 %v19598_v33, %v19599_v23  ;;  %v19610_v62 = vld [vmem:[#allocation35_spill] sm:$0xff] }
0x15fd   : > { %v8919_v17 = vpack.c.bf16 %v12982_v51, %v8522_v45  ;;  %13037 = vmatmul.mubr.msk.bf16.vlgmr.msra.gmra.mrb[232].mxu1 %vm1519_vm1, %v8918_v52 }
0x15fe   : > { %13061 = vmatpush3.bf16.msra.mxu1 %v13413_v56  ;;  %v19589_v56 = vpack.c.bf16 %v17766_v19, %v17772_v59  ;;  %v19594_v19 = vpack.c.bf16 %v17818_v48, %v17800_v50  ;;  %v19596_v59 = vld [vmem:[#allocation29_spill] sm:$0xff]  ;;  %v19606_v50 = vpack.c.bf16 %v19604_v35, %v19605_v27 }
0x15ff   : > { %13040 = vmatprep.mubr.msk.bf16.mxu1 %vm1519_vm1, %v8919_v17  ;;  %13062 = vmatprep.subr.bf16.mxu1 %v13414_v12  ;;  %v19597_v15 = vpack.c.bf16 %v19595_v8, %v19596_v59  ;;  %v11828_v48 = vld [vmem:[%s19318_s7 + $0x13] ss:$8 sm:$0x3]  ;;  %v19619_v8 = vld [vmem:[#allocation7_spill] sm:$0xff] }
0x1600   : > { %v18238_v46 = vrot.slane %v11828_v48, %v19607_v5  ;;  %v19611_v17 = vld [vmem:[#allocation4_spill] sm:$0xff]  ;;  %v19620_v27 = vld [vmem:[#allocation13_spill] sm:$0xff] }
0x1602   : > { %13063 = vmatpush3.bf16.msra.mxu1 %v13414_v12 }
0x1605   : > { %13041 = vmatmul.mubr.msk.bf16.gmra.mrb[236].mxu1 %vm1519_vm1, %v8920_v11 }
0x1609   : > { %v13006_v54 = vpop.f32.mrb[224].mxu1 }
0x160a   : > { %v8711_v41 = vpop.f32.mrb[225].mxu1 }
0x160b   : > { %v13007_v53 = vpop.f32.mrb[226].mxu1 }
0x160c   : > { %v8714_v21 = vpop.f32.mrb[227].mxu1 }
0x160d   : > { %v8923_v55 = vpack.c.bf16 %v8714_v21, %v8711_v41 }
0x162e   : > { %v12998_v6 = vpop.f32.mrb[228].mxu0 }
0x162f   : > { %v8647_v29 = vpop.f32.mrb[229].mxu0 }
0x1630   : > { %v8921_v14 = vpack.c.bf16 %v8647_v29, %v12990_v49  ;;  %v12999_v16 = vpop.f32.mrb[230].mxu0 }
0x1631   : > { %v8650_v60 = vpop.f32.mrb[231].mxu0 }
0x1632   : > { %v8922_v20 = vpack.c.bf16 %v12998_v6, %v8650_v60  ;;  %13044 = vmatprep.mubr.msk.bf16.mxu1 %vm1519_vm1, %v8921_v14  ;;  %v19612_v14 = vld [vmem:[#allocation2_spill] sm:$0xff] }
0x1634   : > { %13045 = vmatmul.mubr.msk.bf16.gmra.mrb[240].mxu1 %vm1519_vm1, %v8922_v20 }
0x1635   : > { %13048 = vmatprep.mubr.msk.bf16.mxu1 %vm1519_vm1, %v8923_v55 }
0x1642   : > { %v13022_v22 = vpop.f32.mrb[228].mxu1 }
0x1643   : > { %v8839_v32 = vpop.f32.mrb[229].mxu1 }
0x1644   : > { %v13023_v36 = vpop.f32.mrb[230].mxu1 }
0x1645   : > { %v8842_v58 = vpop.f32.mrb[231].mxu1 }
0x1646   : > { %v8926_v39 = vpack.c.bf16 %v8842_v58, %v8839_v32  ;;  %v13014_v25 = vpop.f32.mrb[232].mxu0  ;;  %v19613_v32 = vld [vmem:[#allocation6_spill] sm:$0xff]  ;;  %v19614_v58 = vld [vmem:[#allocation5_spill] sm:$0xff] }
0x1647   : > { %v8775_v1 = vpop.f32.mrb[233].mxu0 }
0x1648   : > { %v8924_v30 = vpack.c.bf16 %v8775_v1, %v13006_v54  ;;  %v13015_v61 = vpop.f32.mrb[234].mxu0 }
0x1649   : > { %v8778_v18 = vpop.f32.mrb[235].mxu0 }
0x164a   : > { %v8925_v0 = vpack.c.bf16 %v13014_v25, %v8778_v18  ;;  %13049 = vmatmul.mubr.msk.bf16.gmra.mrb[244].mxu1 %vm1519_vm1, %v8924_v30  ;;  %v19615_v25 = vld [vmem:[#allocation3_spill] sm:$0xff] }
0x164c   : > { %13052 = vmatprep.mubr.msk.bf16.mxu1 %vm1519_vm1, %v8925_v0 }
0x164e   : > { %v13030_v7 = vpop.f32.mrb[236].mxu0 }
0x164f   : > { %v8903_v13 = vpop.f32.mrb[237].mxu0 }
0x1650   : > { %v8927_v47 = vpack.c.bf16 %v8903_v13, %v13022_v22  ;;  %v13031_v44 = vpop.f32.mrb[238].mxu0 }
0x1651   : > { %v8906_v3 = vpop.f32.mrb[239].mxu0 }
0x1652   : > { %v8928_v40 = vpack.c.bf16 %v13030_v7, %v8906_v3  ;;  %13053 = vmatmul.mubr.msk.bf16.gmra.mrb[248].mxu1 %vm1519_vm1, %v8926_v39  ;;  %v19616_v3 = vld [vmem:[#allocation9_spill] sm:$0xff] }
0x1653   : > { %13056 = vmatprep.mubr.msk.bf16.mxu1 %vm1519_vm1, %v8927_v47 }
0x165a   : > { %13057 = vmatmul.mubr.msk.bf16.gmra.mrb[252].mxu1 %vm1519_vm1, %v8928_v40 }
0x165b   : > { %13064 = vmatprep.mubr.msk.bf16.mxu1 %vm1519_vm1, %v19587_v28 }
0x1662   : > { %13065 = vmatmul.mubr.msk.bf16.vlgmr.msra.gmra.mrb[232].mxu1 %vm1519_vm1, %v19588_v4 }
0x1663   : > { %13068 = vmatprep.mubr.msk.bf16.mxu1 %vm1519_vm1, %v19589_v56 }
0x166a   : > { %13069 = vmatmul.mubr.msk.bf16.gmra.mrb[236].mxu1 %vm1519_vm1, %v19590_v63  ;;  %v19617_v63 = vld [vmem:[#allocation10_spill] sm:$0xff] }
0x166b   : > { %13072 = vmatprep.mubr.msk.bf16.mxu1 %vm1519_vm1, %v19591_v26 }
0x1672   : > { %13073 = vmatmul.mubr.msk.bf16.gmra.mrb[240].mxu1 %vm1519_vm1, %v19592_v38  ;;  %v19618_v38 = vld [vmem:[#allocation8_spill] sm:$0xff] }
0x1673   : > { %13076 = vmatprep.mubr.msk.bf16.mxu1 %vm1519_vm1, %v19593_v37 }
0x167a   : > { %13077 = vmatmul.mubr.msk.bf16.gmra.mrb[244].mxu1 %vm1519_vm1, %v19594_v19 }
0x167b   : > { %13080 = vmatprep.mubr.msk.bf16.mxu1 %vm1519_vm1, %v19597_v15 }
0x1682   : > { %13081 = vmatmul.mubr.msk.bf16.gmra.mrb[248].mxu1 %vm1519_vm1, %v19600_v57 }
0x1683   : > { %13084 = vmatprep.mubr.msk.bf16.mxu1 %vm1519_vm1, %v19603_v42 }
0x168a   : > { %13085 = vmatmul.mubr.msk.bf16.gmra.mrb[252].mxu1 %vm1519_vm1, %v19606_v50 }
0x1735   : > { %v13066_v34 = vpop.f32.mrb[232].mxu1 }
0x1736   : > { %v9193_v49 = vpop.f32.mrb[233].mxu1  ;;  %v9290_v9 = vadd.f32 %v13066_v34, %v19608_v43  ;;  %v19621_v43 = vld [vmem:[#allocation14_spill] sm:$0xff] }
0x1737   : > { %v9288_v11 = vadd.f32 %v9193_v49, %v19609_v10  ;;  %v13067_v51 = vpop.f32.mrb[234].mxu1  ;;  %v19622_v10 = vld [vmem:[#allocation12_spill] sm:$0xff] }
0x1738   : > { %v9196_v2 = vpop.f32.mrb[235].mxu1  ;;  %v18247_v45 = vadd.f32 %v18238_v46, %v9290_v9  ;;  %v9291_v54 = vadd.f32 %v13067_v51, %v19611_v17 }
0x1739   : > { %v18243_v52 = vadd.f32 %v18238_v46, %v9288_v11  ;;  %v9289_v12 = vadd.f32 %v9196_v2, %v19610_v62  ;;  %v19623_v2 = vld [vmem:[#allocation11_spill] sm:$0xff] }
0x173a   : > { %v18258_v29 = vadd.f32 %v18238_v46, %v9291_v54  ;;  %v9354_v20 = vsel %vm646_vm0, %v18247_v45, 0.0 }
0x173b   : > { %v18251_v41 = vadd.f32 %v18238_v46, %v9289_v12  ;;  %v9348_v53 = vsel %vm646_vm0, %v18243_v52, 0.0 }
0x173c   : > { %9349 = vadd.xlane.f32.xlu0 %v9348_v53  ;;  %v9357_v18 = vsel %vm646_vm0, %v18258_v29, 0.0 }
0x173d   : > { %v13070_v21 = vpop.f32.mrb[236].mxu1  ;;  %v9351_v55 = vsel %vm646_vm0, %v18251_v41, 0.0 }
0x173e   : > { %9352 = vadd.xlane.f32.xlu1 %v9351_v55  ;;  %v9209_v6 = vpop.f32.mrb[237].mxu1  ;;  %v9294_v1 = vadd.f32 %v13070_v21, %v19615_v25 }
0x173f   : > { %v9292_v16 = vadd.f32 %v9209_v6, %v19612_v14  ;;  %v13071_v60 = vpop.f32.mrb[238].mxu1 }
0x1740   : > { %9355 = vadd.xlane.f32.xlu0 %v9354_v20  ;;  %v9212_v22 = vpop.f32.mrb[239].mxu1  ;;  %v9295_v36 = vadd.f32 %v13071_v60, %v19613_v32  ;;  %v18280_v44 = vadd.f32 %v18238_v46, %v9294_v1 }
0x1741   : > { %v9293_v39 = vadd.f32 %v9212_v22, %v19614_v58  ;;  %v18267_v30 = vadd.f32 %v18238_v46, %v9292_v16  ;;  %v19624_v16 = vld [vmem:[#allocation17_spill] sm:$0xff] }
0x1742   : > { %v18275_v0 = vadd.f32 %v18238_v46, %v9295_v36  ;;  %v9366_v23 = vsel %vm646_vm0, %v18280_v44, 0.0  ;;  %v19625_v36 = vld [vmem:[#allocation20_spill] sm:$0xff] }
0x1743   : > { %v18270_v61 = vadd.f32 %v18238_v46, %v9293_v39  ;;  %v9360_v4 = vsel %vm646_vm0, %v18267_v30, 0.0  ;;  %v19626_v39 = vld [vmem:[#allocation15_spill] sm:$0xff] }
0x1744   : > { %9358 = vadd.xlane.f32.xlu0 %v9357_v18  ;;  %v9369_v19 = vsel %vm646_vm0, %v18275_v0, 0.0  ;;  %v19627_v18 = vld [vmem:[#allocation16_spill] sm:$0xff] }
0x1745   : > { %v13074_v7 = vpop.f32.mrb[240].mxu1  ;;  %v9363_v13 = vsel %vm646_vm0, %v18270_v61, 0.0 }
0x1746   : > { %9364 = vadd.xlane.f32.xlu1 %v9363_v13  ;;  %v9225_v47 = vpop.f32.mrb[241].mxu1  ;;  %v9298_v59 = vadd.f32 %v13074_v7, %v19619_v8 }
0x1747   : > { %v9296_v40 = vadd.f32 %v9225_v47, %v19616_v3  ;;  %v13075_v28 = vpop.f32.mrb[242].mxu1 }
0x1748   : > { %9361 = vadd.xlane.f32.xlu0 %v9360_v4  ;;  %v9228_v56 = vpop.f32.mrb[243].mxu1  ;;  %v9299_v26 = vadd.f32 %v13075_v28, %v19617_v63  ;;  %v18304_v35 = vadd.f32 %v18238_v46, %v9298_v59  ;;  %v19629_v59 = vld [vmem:[#allocation24_spill] sm:$0xff] }
0x1749   : > { %v9297_v37 = vadd.f32 %v9228_v56, %v19618_v38  ;;  %v18291_v15 = vadd.f32 %v18238_v46, %v9296_v40 }
0x174a   : > { %9370 = vadd.xlane.f32.xlu1 %v9369_v19  ;;  %v18299_v57 = vadd.f32 %v18238_v46, %v9299_v26  ;;  %v9378_v54 = vsel %vm646_vm0, %v18304_v35, 0.0  ;;  %v19628_v26 = vld [vmem:[#allocation21_spill] sm:$0xff] }
0x174b   : > { %v18294_v33 = vadd.f32 %v18238_v46, %v9297_v37  ;;  %v9372_v34 = vsel %vm646_vm0, %v18291_v15, 0.0 }
0x174c   : > { %9367 = vadd.xlane.f32.xlu0 %v9366_v23  ;;  %v9381_v51 = vsel %vm646_vm0, %v18299_v57, 0.0 }
0x174d   : > { %v13078_v24 = vpop.f32.mrb[244].mxu1  ;;  %v9375_v31 = vsel %vm646_vm0, %v18294_v33, 0.0 }
0x174e   : > { %9376 = vadd.xlane.f32.xlu1 %v9375_v31  ;;  %v9241_v42 = vpop.f32.mrb[245].mxu1  ;;  %v9302_v62 = vadd.f32 %v13078_v24, %v19623_v2  ;;  %v19630_v24 = vld [vmem:[#allocation19_spill] sm:$0xff] }
0x174f   : > { %v9300_v50 = vadd.f32 %v9241_v42, %v19620_v27  ;;  %v13079_v48 = vpop.f32.mrb[246].mxu1  ;;  %v19631_v27 = vld [vmem:[#allocation18_spill] sm:$0xff] }
0x1750   : > { %9373 = vadd.xlane.f32.xlu0 %v9372_v34  ;;  %v9244_v49 = vpop.f32.mrb[247].mxu1  ;;  %v9303_v9 = vadd.f32 %v13079_v48, %v19621_v43  ;;  %v18328_v14 = vadd.f32 %v18238_v46, %v9302_v62 }
0x1751   : > { %v9301_v11 = vadd.f32 %v9244_v49, %v19622_v10  ;;  %v18315_v12 = vadd.f32 %v18238_v46, %v9300_v50 }
0x1752   : > { %9382 = vadd.xlane.f32.xlu1 %v9381_v51  ;;  %v18323_v53 = vadd.f32 %v18238_v46, %v9303_v9  ;;  %v9390_v3 = vsel %vm646_vm0, %v18328_v14, 0.0 }
0x1753   : > { %v18318_v17 = vadd.f32 %v18238_v46, %v9301_v11  ;;  %v9384_v22 = vsel %vm646_vm0, %v18315_v12, 0.0 }
0x1754   : > { %9379 = vadd.xlane.f32.xlu0 %v9378_v54  ;;  %v9393_v1 = vsel %vm646_vm0, %v18323_v53, 0.0 }
0x1755   : > { %v13082_v21 = vpop.f32.mrb[248].mxu1  ;;  %v9387_v55 = vsel %vm646_vm0, %v18318_v17, 0.0 }
0x1756   : > { %9388 = vadd.xlane.f32.xlu1 %v9387_v55  ;;  %v9257_v6 = vpop.f32.mrb[249].mxu1  ;;  %v9306_v7 = vadd.f32 %v13082_v21, %v19627_v18 }
0x1757   : > { %v9304_v60 = vadd.f32 %v9257_v6, %v19624_v16  ;;  %v13083_v20 = vpop.f32.mrb[250].mxu1 }
0x1758   : > { %9385 = vadd.xlane.f32.xlu0 %v9384_v22  ;;  %v9260_v32 = vpop.f32.mrb[251].mxu1  ;;  %v9307_v58 = vadd.f32 %v13083_v20, %v19625_v36  ;;  %v18352_v63 = vadd.f32 %v18238_v46, %v9306_v7 }
0x1759   : > { %v9305_v25 = vadd.f32 %v9260_v32, %v19626_v39  ;;  %v18339_v13 = vadd.f32 %v18238_v46, %v9304_v60 }
0x175a   : > { %9394 = vadd.xlane.f32.xlu1 %v9393_v1  ;;  %v18347_v40 = vadd.f32 %v18238_v46, %v9307_v58  ;;  %v9402_v49 = vsel %vm646_vm0, %v18352_v63, 0.0 }
0x175b   : > { %v18342_v47 = vadd.f32 %v18238_v46, %v9305_v25  ;;  %v9396_v19 = vsel %vm646_vm0, %v18339_v13, 0.0 }
0x175c   : > { %9391 = vadd.xlane.f32.xlu0 %v9390_v3  ;;  %v9405_v42 = vsel %vm646_vm0, %v18347_v40, 0.0 }
0x175d   : > { %v13086_v28 = vpop.f32.mrb[252].mxu1  ;;  %v9399_v4 = vsel %vm646_vm0, %v18342_v47, 0.0 }
0x175e   : > { %9400 = vadd.xlane.f32.xlu1 %v9399_v4  ;;  %v9273_v56 = vpop.f32.mrb[253].mxu1  ;;  %v9310_v50 = vadd.f32 %v13086_v28, %v19631_v27 }
0x175f   : > { %v9308_v38 = vadd.f32 %v9273_v56, %v19628_v26  ;;  %v13087_v37 = vpop.f32.mrb[254].mxu1 }
0x1760   : > { %9397 = vadd.xlane.f32.xlu0 %v9396_v19  ;;  %v9276_v8 = vpop.f32.mrb[255].mxu1  ;;  %v9311_v23 = vadd.f32 %v13087_v37, %v19629_v59  ;;  %v18376_v10 = vadd.f32 %v18238_v46, %v9310_v50 }
0x1761   : > { %v9309_v31 = vadd.f32 %v9276_v8, %v19630_v24  ;;  %v18363_v48 = vadd.f32 %v18238_v46, %v9308_v38 }
0x1762   : > { %9406 = vadd.xlane.f32.xlu1 %v9405_v42  ;;  %v18371_v43 = vadd.f32 %v18238_v46, %v9311_v23  ;;  %v9414_v2 = vsel %vm646_vm0, %v18376_v10, 0.0 }
0x1763   : > { %v18366_v34 = vadd.f32 %v18238_v46, %v9309_v31  ;;  %v9408_v11 = vsel %vm646_vm0, %v18363_v48, 0.0 }
0x1764   : > { %9403 = vadd.xlane.f32.xlu0 %v9402_v49  ;;  %v9417_v51 = vsel %vm646_vm0, %v18371_v43, 0.0 }
0x1765   : > { %v9411_v9 = vsel %vm646_vm0, %v18366_v34, 0.0 }
0x1766   : > { %9412 = vadd.xlane.f32.xlu1 %v9411_v9 }
0x1768   : > { %9409 = vadd.xlane.f32.xlu0 %v9408_v11 }
0x176a   : > { %9418 = vadd.xlane.f32.xlu1 %v9417_v51 }
0x176c   : > { %9415 = vadd.xlane.f32.xlu0 %v9414_v2 }
0x17c9   : > { %v9350_v62 = vpop.xlane.xlu0 %9349 }
0x17ca   : > { %v9420_v54 = vmul.f32 0.015625, %v9350_v62 }
0x17cb   : > { %v9353_v21 = vpop.xlane.xlu1 %9352 }
0x17cc   : > { %v18385_v55 = vsub.f32 %v18243_v52, %v9420_v54  ;;  %v9421_v46 = vmul.f32 0.015625, %v9353_v21 }
0x17cd   : > { %v9356_v6 = vpop.xlane.xlu0 %9355 }
0x17ce   : > { %v18388_v16 = vsub.f32 %v18251_v41, %v9421_v46  ;;  %v9422_v60 = vmul.f32 0.015625, %v9356_v6  ;;  %v9468_v20 = vmul.f32 %v18385_v55, %v18385_v55 }
0x17d0   : > { %v18393_v22 = vsub.f32 %v18247_v45, %v9422_v60  ;;  %v9492_v32 = vsel %vm646_vm0, %v9468_v20, 0.0  ;;  %v9469_v36 = vmul.f32 %v18388_v16, %v18388_v16 }
0x17d1   : > { %v9359_v58 = vpop.xlane.xlu0 %9358  ;;  %9493 = vadd.xlane.f32.xlu0 %v9492_v32 }
0x17d2   : > { %v9423_v39 = vmul.f32 0.015625, %v9359_v58  ;;  %v9495_v25 = vsel %vm646_vm0, %v9469_v36, 0.0  ;;  %v9470_v41 = vmul.f32 %v18393_v22, %v18393_v22 }
0x17d3   : > { %v9365_v1 = vpop.xlane.xlu1 %9364  ;;  %9496 = vadd.xlane.f32.xlu1 %v9495_v25 }
0x17d4   : > { %v18402_v18 = vsub.f32 %v18258_v29, %v9423_v39  ;;  %v9425_v45 = vmul.f32 0.015625, %v9365_v1  ;;  %v9498_v7 = vsel %vm646_vm0, %v9470_v41, 0.0 }
0x17d5   : > { %v9362_v3 = vpop.xlane.xlu0 %9361  ;;  %9499 = vadd.xlane.f32.xlu0 %v9498_v7 }
0x17d6   : > { %v18406_v28 = vsub.f32 %v18270_v61, %v9425_v45  ;;  %v9424_v4 = vmul.f32 0.015625, %v9362_v3  ;;  %v9471_v56 = vmul.f32 %v18402_v18, %v18402_v18 }
0x17d7   : > { %v9371_v26 = vpop.xlane.xlu1 %9370 }
0x17d8   : > { %v18411_v38 = vsub.f32 %v18267_v30, %v9424_v4  ;;  %v9427_v37 = vmul.f32 0.015625, %v9371_v26  ;;  %v9501_v19 = vsel %vm646_vm0, %v9471_v56, 0.0  ;;  %v9473_v8 = vmul.f32 %v18406_v28, %v18406_v28 }
0x17d9   : > { %v9368_v59 = vpop.xlane.xlu0 %9367  ;;  %9502 = vadd.xlane.f32.xlu1 %v9501_v19 }
0x17da   : > { %v18417_v23 = vsub.f32 %v18275_v0, %v9427_v37  ;;  %v9426_v61 = vmul.f32 0.015625, %v9368_v59  ;;  %v9472_v24 = vmul.f32 %v18411_v38, %v18411_v38  ;;  %v9507_v42 = vsel %vm646_vm0, %v9473_v8, 0.0 }
0x17db   : > { %v9377_v31 = vpop.xlane.xlu1 %9376 }
0x17dc   : > { %v18423_v30 = vsub.f32 %v18280_v44, %v9426_v61  ;;  %v9429_v27 = vmul.f32 0.015625, %v9377_v31  ;;  %v9504_v50 = vsel %vm646_vm0, %v9472_v24, 0.0  ;;  %v9475_v49 = vmul.f32 %v18417_v23, %v18417_v23 }
0x17dd   : > { %v9374_v9 = vpop.xlane.xlu0 %9373  ;;  %9505 = vadd.xlane.f32.xlu0 %v9504_v50  ;;  %9508 = vadd.xlane.f32.xlu1 %v9507_v42 }
0x17de   : > { %v18429_v0 = vsub.f32 %v18294_v33, %v9429_v27  ;;  %v9428_v11 = vmul.f32 0.015625, %v9374_v9  ;;  %v9474_v51 = vmul.f32 %v18423_v30, %v18423_v30  ;;  %v9513_v62 = vsel %vm646_vm0, %v9475_v49, 0.0 }
0x17df   : > { %v9383_v2 = vpop.xlane.xlu1 %9382 }
0x17e0   : > { %v18435_v54 = vsub.f32 %v18291_v15, %v9428_v11  ;;  %v9431_v21 = vmul.f32 0.015625, %v9383_v2  ;;  %v9510_v46 = vsel %vm646_vm0, %v9474_v51, 0.0  ;;  %v9477_v6 = vmul.f32 %v18429_v0, %v18429_v0  ;;  %v13415_v11 = vld [vmem:[%s19316_s5 + $0x20] sm:$0xff]  }
0x17e1   : > { %v9380_v60 = vpop.xlane.xlu0 %9379  ;;  %9511 = vadd.xlane.f32.xlu0 %v9510_v46  ;;  %9514 = vadd.xlane.f32.xlu1 %v9513_v62 }
0x17e2   : > { %v18441_v20 = vsub.f32 %v18299_v57, %v9431_v21  ;;  %v9430_v32 = vmul.f32 0.015625, %v9380_v60  ;;  %v9476_v36 = vmul.f32 %v18435_v54, %v18435_v54  ;;  %v9519_v15 = vsel %vm646_vm0, %v9477_v6, 0.0  ;;  %13088 = vmatprep.subr.bf16.mxu0 %v13415_v11 }
0x17e3   : > { %v9389_v58 = vpop.xlane.xlu1 %9388  ;;  %13089 = vmatpush3.bf16.msra.mxu0 %v13415_v11 }
0x17e4   : > { %v18447_v39 = vsub.f32 %v18304_v35, %v9430_v32  ;;  %v9433_v25 = vmul.f32 0.015625, %v9389_v58  ;;  %v9516_v41 = vsel %vm646_vm0, %v9476_v36, 0.0  ;;  %v9479_v1 = vmul.f32 %v18441_v20, %v18441_v20  ;;  %v13416_v36 = vld [vmem:[%s19316_s5 + $0x28] sm:$0xff]  }
0x17e5   : > { %v9386_v45 = vpop.xlane.xlu0 %9385  ;;  %9517 = vadd.xlane.f32.xlu0 %v9516_v41  ;;  %9520 = vadd.xlane.f32.xlu1 %v9519_v15 }
0x17e6   : > { %v18453_v57 = vsub.f32 %v18318_v17, %v9433_v25  ;;  %v9432_v7 = vmul.f32 0.015625, %v9386_v45  ;;  %v9478_v3 = vmul.f32 %v18447_v39, %v18447_v39  ;;  %v9525_v35 = vsel %vm646_vm0, %v9479_v1, 0.0  ;;  %13090 = vmatprep.subr.bf16.mxu0 %v13416_v36 }
0x17e7   : > { %v9395_v4 = vpop.xlane.xlu1 %9394  ;;  %13091 = vmatpush3.bf16.msra.mxu0 %v13416_v36 }
0x17e8   : > { %v18459_v56 = vsub.f32 %v18315_v12, %v9432_v7  ;;  %v9435_v26 = vmul.f32 0.015625, %v9395_v4  ;;  %v9522_v37 = vsel %vm646_vm0, %v9478_v3, 0.0  ;;  %v9481_v19 = vmul.f32 %v18453_v57, %v18453_v57  ;;  %v13417_v4 = vld [vmem:[%s19316_s5 + $0x30] sm:$0xff]  }
0x17e9   : > { %v9392_v8 = vpop.xlane.xlu0 %9391  ;;  %9523 = vadd.xlane.f32.xlu0 %v9522_v37  ;;  %9526 = vadd.xlane.f32.xlu1 %v9525_v35 }
0x17ea   : > { %v18465_v17 = vsub.f32 %v18323_v53, %v9435_v26  ;;  %v9434_v59 = vmul.f32 0.015625, %v9392_v8  ;;  %v9480_v61 = vmul.f32 %v18459_v56, %v18459_v56  ;;  %v9531_v31 = vsel %vm646_vm0, %v9481_v19, 0.0  ;;  %13092 = vmatprep.subr.bf16.mxu0 %v13417_v4 }
0x17eb   : > { %v9401_v24 = vpop.xlane.xlu1 %9400  ;;  %13093 = vmatpush3.bf16.msra.mxu0 %v13417_v4 }
0x17ec   : > { %v18471_v42 = vsub.f32 %v18328_v14, %v9434_v59  ;;  %v9437_v27 = vmul.f32 0.015625, %v9401_v24  ;;  %v9528_v50 = vsel %vm646_vm0, %v9480_v61, 0.0  ;;  %v9483_v49 = vmul.f32 %v18465_v17, %v18465_v17 }
0x17ed   : > { %v9398_v9 = vpop.xlane.xlu0 %9397  ;;  %9529 = vadd.xlane.f32.xlu0 %v9528_v50  ;;  %9532 = vadd.xlane.f32.xlu1 %v9531_v31  ;;  %v13418_v50 = vld [vmem:[%s19316_s5 + $0x38] sm:$0xff]  }
0x17ee   : > { %v18480_v51 = vsub.f32 %v18342_v47, %v9437_v27  ;;  %v9436_v2 = vmul.f32 0.015625, %v9398_v9  ;;  %v9482_v14 = vmul.f32 %v18471_v42, %v18471_v42  ;;  %v9537_v21 = vsel %vm646_vm0, %v9483_v49, 0.0  ;;  %13094 = vmatprep.subr.bf16.mxu0 %v13418_v50 }
0x17ef   : > { %v9407_v62 = vpop.xlane.xlu1 %9406  ;;  %13095 = vmatpush3.bf16.msra.mxu0 %v13418_v50 }
0x17f0   : > { %v18486_v46 = vsub.f32 %v18339_v13, %v9436_v2  ;;  %v9439_v6 = vmul.f32 0.015625, %v9407_v62  ;;  %v9534_v60 = vsel %vm646_vm0, %v9482_v14, 0.0  ;;  %v9485_v32 = vmul.f32 %v18480_v51, %v18480_v51 }
0x17f1   : > { %v9404_v47 = vpop.xlane.xlu0 %9403  ;;  %9535 = vadd.xlane.f32.xlu0 %v9534_v60  ;;  %9538 = vadd.xlane.f32.xlu1 %v9537_v21 }
0x17f2   : > { %v18495_v58 = vsub.f32 %v18347_v40, %v9439_v6  ;;  %v9438_v15 = vmul.f32 0.015625, %v9404_v47  ;;  %v9484_v13 = vmul.f32 %v18486_v46, %v18486_v46  ;;  %v9543_v41 = vsel %vm646_vm0, %v9485_v32, 0.0 }
0x17f3   : > { %v9413_v25 = vpop.xlane.xlu1 %9412 }
0x17f4   : > { %v18501_v1 = vsub.f32 %v18352_v63, %v9438_v15  ;;  %v9441_v45 = vmul.f32 0.015625, %v9413_v25  ;;  %v9540_v7 = vsel %vm646_vm0, %v9484_v13, 0.0  ;;  %v9487_v3 = vmul.f32 %v18495_v58, %v18495_v58 }
0x17f5   : > { %9541 = vadd.xlane.f32.xlu0 %v9540_v7  ;;  %v9410_v40 = vpop.xlane.xlu0 %9409  ;;  %9544 = vadd.xlane.f32.xlu1 %v9543_v41 }
0x17f6   : > { %v18510_v35 = vsub.f32 %v18366_v34, %v9441_v45  ;;  %v9440_v26 = vmul.f32 0.015625, %v9410_v40  ;;  %v9486_v37 = vmul.f32 %v18501_v1, %v18501_v1  ;;  %v9549_v8 = vsel %vm646_vm0, %v9487_v3, 0.0  ;;  %v11829_v3 = vld [vmem:[%s19318_s7 + $0x14] ss:$8 sm:$0x3] }
0x17f7   : > { %v9419_v19 = vpop.xlane.xlu1 %9418 }
0x17f8   : > { %v18516_v59 = vsub.f32 %v18363_v48, %v9440_v26  ;;  %v9443_v61 = vmul.f32 0.015625, %v9419_v19  ;;  %v9546_v24 = vsel %vm646_vm0, %v9486_v37, 0.0  ;;  %v9489_v31 = vmul.f32 %v18510_v35, %v18510_v35 }
0x17f9   : > { %9547 = vadd.xlane.f32.xlu0 %v9546_v24  ;;  %v9416_v27 = vpop.xlane.xlu0 %9415  ;;  %9550 = vadd.xlane.f32.xlu1 %v9549_v8  ;;  %v18544_v8 = vrot.slane %v11829_v3, %v19607_v5 }
0x17fa   : > { %v18525_v49 = vsub.f32 %v18371_v43, %v9443_v61  ;;  %v9442_v9 = vmul.f32 0.015625, %v9416_v27  ;;  %v9488_v48 = vmul.f32 %v18516_v59, %v18516_v59  ;;  %v9555_v14 = vsel %vm646_vm0, %v9489_v31, 0.0  ;;  %v11830_v61 = vld [vmem:[%s19318_s7 + $0x15] ss:$8 sm:$0x3] }
0x17fc   : > { %v18530_v11 = vsub.f32 %v18376_v10, %v9442_v9  ;;  %v9552_v2 = vsel %vm646_vm0, %v9488_v48, 0.0  ;;  %v9491_v62 = vmul.f32 %v18525_v49, %v18525_v49 }
0x17fd   : > { %9553 = vadd.xlane.f32.xlu0 %v9552_v2  ;;  %9556 = vadd.xlane.f32.xlu1 %v9555_v14 }
0x17fe   : > { %v9490_v43 = vmul.f32 %v18530_v11, %v18530_v11  ;;  %v9561_v6 = vsel %vm646_vm0, %v9491_v62, 0.0 }
0x1800   : > { %v9558_v21 = vsel %vm646_vm0, %v9490_v43, 0.0 }
0x1801   : > { %9559 = vadd.xlane.f32.xlu0 %v9558_v21  ;;  %9562 = vadd.xlane.f32.xlu1 %v9561_v6  ;;  %v18553_v6 = vrot.slane %v11830_v61, %v19607_v5 }
0x185e   : > { %v9494_v10 = vpop.xlane.xlu0 %9493 }
0x185f   : > { %v9564_v60 = vmul.f32 0.015625, %v9494_v10 }
0x1860   : > { %v9497_v32 = vpop.xlane.xlu1 %9496 }
0x1861   : > { %v9588_v47 = vadd.f32 1e-12, %v9564_v60  ;;  %v9565_v36 = vmul.f32 0.015625, %v9497_v32 }
0x1862   : > { %v9500_v15 = vpop.xlane.xlu0 %9499 }
0x1863   : > { %14139 = vrsqrt.f32 %v9588_v47  ;;  %v9589_v13 = vadd.f32 1e-12, %v9565_v36  ;;  %v9566_v25 = vmul.f32 0.015625, %v9500_v15 }
0x1865   : > { %14141 = vrsqrt.f32 %v9589_v13  ;;  %v9590_v41 = vadd.f32 1e-12, %v9566_v25 }
0x1866   : > { %v9503_v45 = vpop.xlane.xlu1 %9502 }
0x1867   : > { %14143 = vrsqrt.f32 %v9590_v41  ;;  %v9567_v7 = vmul.f32 0.015625, %v9503_v45 }
0x1869   : > { %v9591_v40 = vadd.f32 1e-12, %v9567_v7 }
0x186a   : > { %v9506_v4 = vpop.xlane.xlu0 %9505  ;;  %v9509_v26 = vpop.xlane.xlu1 %9508 }
0x186b   : > { %14145 = vrsqrt.f32 %v9591_v40  ;;  %v9568_v37 = vmul.f32 0.015625, %v9506_v4  ;;  %v9569_v19 = vmul.f32 0.015625, %v9509_v26 }
0x186d   : > { %v14140_v24 = vpop.eup %14139  ;;  %v9592_v31 = vadd.f32 1e-12, %v9568_v37  ;;  %v9593_v27 = vadd.f32 1e-12, %v9569_v19 }
0x186e   : > { %v9636_v50 = vmul.f32 %v14140_v24, %v18385_v55  ;;  %v9512_v9 = vpop.xlane.xlu0 %9511  ;;  %v9515_v48 = vpop.xlane.xlu1 %9514 }
0x186f   : > { %v14142_v2 = vpop.eup %14141  ;;  %14147 = vrsqrt.f32 %v9592_v31  ;;  %v9570_v14 = vmul.f32 0.015625, %v9512_v9  ;;  %v9571_v62 = vmul.f32 0.015625, %v9515_v48 }
0x1870   : > { %v9637_v43 = vmul.f32 %v14142_v2, %v18388_v16  ;;  %14149 = vrsqrt.f32 %v9593_v27  ;;  %v9666_v21 = vmul.f32 %v18544_v8, %v9636_v50 }
0x1871   : > { %v14144_v10 = vpop.eup %14143  ;;  %v9594_v60 = vadd.f32 1e-12, %v9570_v14  ;;  %v9595_v32 = vadd.f32 1e-12, %v9571_v62 }
0x1872   : > { %v9638_v47 = vmul.f32 %v14144_v10, %v18393_v22  ;;  %v9518_v55 = vpop.xlane.xlu0 %9517  ;;  %v9521_v36 = vpop.xlane.xlu1 %9520  ;;  %v9667_v15 = vmul.f32 %v18544_v8, %v9637_v43  ;;  %v9696_v16 = vadd.f32 %v18553_v6, %v9666_v21 }
0x1873   : > { %14151 = vrsqrt.f32 %v9594_v60  ;;  %v9572_v13 = vmul.f32 0.015625, %v9518_v55  ;;  %v9573_v25 = vmul.f32 0.015625, %v9521_v36 }
0x1874   : > { %14153 = vrsqrt.f32 %v9595_v32  ;;  %v9697_v41 = vadd.f32 %v18553_v6, %v9667_v15  ;;  %v9668_v40 = vmul.f32 %v18544_v8, %v9638_v47 }
0x1875   : > { %v14146_v45 = vpop.eup %14145  ;;  %v9596_v7 = vadd.f32 1e-12, %v9572_v13  ;;  %v9597_v3 = vadd.f32 1e-12, %v9573_v25 }
0x1876   : > { %v9639_v4 = vmul.f32 %v14146_v45, %v18402_v18  ;;  %v9524_v22 = vpop.xlane.xlu0 %9523  ;;  %v9527_v26 = vpop.xlane.xlu1 %9526  ;;  %v9720_v37 = vpack.c.bf16 %v9697_v41, %v9696_v16  ;;  %v9698_v18 = vadd.f32 %v18553_v6, %v9668_v40 }
0x1877   : > { %14155 = vrsqrt.f32 %v9596_v7  ;;  %v9574_v19 = vmul.f32 0.015625, %v9524_v22  ;;  %v9575_v61 = vmul.f32 0.015625, %v9527_v26 }
0x1878   : > { %v9669_v24 = vmul.f32 %v18544_v8, %v9639_v4  ;;  %14157 = vrsqrt.f32 %v9597_v3  ;;  %13096 = vmatprep.mubr.msk.bf16.mxu0 %vm646_vm0, %v9720_v37 }
0x1879   : > { %v14148_v31 = vpop.eup %14147  ;;  %v9598_v27 = vadd.f32 1e-12, %v9574_v19  ;;  %v9599_v50 = vadd.f32 1e-12, %v9575_v61 }
0x187a   : > { %v14150_v9 = vpop.eup %14149  ;;  %v9640_v48 = vmul.f32 %v14148_v31, %v18411_v38  ;;  %v9530_v2 = vpop.xlane.xlu0 %9529  ;;  %v9699_v62 = vadd.f32 %v18553_v6, %v9669_v24 }
0x187b   : > { %v9533_v14 = vpop.xlane.xlu1 %9532  ;;  %v9641_v43 = vmul.f32 %v14150_v9, %v18406_v28  ;;  %14159 = vrsqrt.f32 %v9598_v27  ;;  %v9576_v21 = vmul.f32 0.015625, %v9530_v2 }
0x187c   : > { %v9577_v10 = vmul.f32 0.015625, %v9533_v14  ;;  %14161 = vrsqrt.f32 %v9599_v50  ;;  %v9721_v60 = vpack.c.bf16 %v9699_v62, %v9698_v18  ;;  %v9670_v32 = vmul.f32 %v18544_v8, %v9640_v48 }
0x187d   : > { %v14152_v47 = vpop.eup %14151  ;;  %v9600_v55 = vadd.f32 1e-12, %v9576_v21  ;;  %v9671_v38 = vmul.f32 %v18544_v8, %v9641_v43 }
0x187e   : > { %v9601_v36 = vadd.f32 1e-12, %v9577_v10  ;;  %v14154_v15 = vpop.eup %14153  ;;  %v9642_v13 = vmul.f32 %v14152_v47, %v18423_v30  ;;  %v9536_v25 = vpop.xlane.xlu0 %9535  ;;  %13097 = vmatmul.mubr.msk.bf16.vlgmr.msra.gmra.mrb[240].mxu0 %vm646_vm0, %v9721_v60  ;;  %v9700_v28 = vadd.f32 %v18553_v6, %v9670_v32 }
0x187f   : > { %v9539_v16 = vpop.xlane.xlu1 %9538  ;;  %v9643_v41 = vmul.f32 %v14154_v15, %v18417_v23  ;;  %14163 = vrsqrt.f32 %v9600_v55  ;;  %v9578_v45 = vmul.f32 0.015625, %v9536_v25  ;;  %v9701_v3 = vadd.f32 %v18553_v6, %v9671_v38 }
0x1880   : > { %v9579_v7 = vmul.f32 0.015625, %v9539_v16  ;;  %14165 = vrsqrt.f32 %v9601_v36  ;;  %v9672_v40 = vmul.f32 %v18544_v8, %v9642_v13 }
0x1881   : > { %v14156_v4 = vpop.eup %14155  ;;  %v9602_v22 = vadd.f32 1e-12, %v9578_v45  ;;  %v9673_v30 = vmul.f32 %v18544_v8, %v9643_v41  ;;  %v9722_v24 = vpack.c.bf16 %v9701_v3, %v9700_v28 }
0x1882   : > { %v9603_v26 = vadd.f32 1e-12, %v9579_v7  ;;  %v14158_v37 = vpop.eup %14157  ;;  %v9644_v19 = vmul.f32 %v14156_v4, %v18435_v54  ;;  %v9542_v61 = vpop.xlane.xlu0 %9541  ;;  %v9702_v23 = vadd.f32 %v18553_v6, %v9672_v40 }
0x1883   : > { %v9545_v31 = vpop.xlane.xlu1 %9544  ;;  %v9645_v27 = vmul.f32 %v14158_v37, %v18429_v0  ;;  %14167 = vrsqrt.f32 %v9602_v22  ;;  %v9580_v50 = vmul.f32 0.015625, %v9542_v61  ;;  %13100 = vmatprep.mubr.msk.bf16.mxu0 %vm646_vm0, %v9722_v24  ;;  %v9703_v48 = vadd.f32 %v18553_v6, %v9673_v30 }
0x1884   : > { %v9581_v9 = vmul.f32 0.015625, %v9545_v31  ;;  %14169 = vrsqrt.f32 %v9603_v26  ;;  %v9674_v2 = vmul.f32 %v18544_v8, %v9644_v19 }
0x1885   : > { %v14160_v14 = vpop.eup %14159  ;;  %v9604_v18 = vadd.f32 1e-12, %v9580_v50  ;;  %v9675_v62 = vmul.f32 %v18544_v8, %v9645_v27  ;;  %v9723_v0 = vpack.c.bf16 %v9703_v48, %v9702_v23 }
0x1886   : > { %v9605_v54 = vadd.f32 1e-12, %v9581_v9  ;;  %v14162_v43 = vpop.eup %14161  ;;  %v9646_v21 = vmul.f32 %v14160_v14, %v18447_v39  ;;  %v9548_v10 = vpop.xlane.xlu0 %9547  ;;  %v9704_v32 = vadd.f32 %v18553_v6, %v9674_v2 }
0x1887   : > { %v9551_v60 = vpop.xlane.xlu1 %9550  ;;  %v9647_v47 = vmul.f32 %v14162_v43, %v18441_v20  ;;  %14171 = vrsqrt.f32 %v9604_v18  ;;  %v9582_v55 = vmul.f32 0.015625, %v9548_v10  ;;  %13101 = vmatmul.mubr.msk.bf16.gmra.mrb[244].mxu0 %vm646_vm0, %v9723_v0  ;;  %v9705_v38 = vadd.f32 %v18553_v6, %v9675_v62 }
0x1888   : > { %v9583_v36 = vmul.f32 0.015625, %v9551_v60  ;;  %14173 = vrsqrt.f32 %v9605_v54  ;;  %v9676_v15 = vmul.f32 %v18544_v8, %v9646_v21 }
0x1889   : > { %v14164_v13 = vpop.eup %14163  ;;  %v9606_v25 = vadd.f32 1e-12, %v9582_v55  ;;  %v9677_v16 = vmul.f32 %v18544_v8, %v9647_v47  ;;  %v9724_v20 = vpack.c.bf16 %v9705_v38, %v9704_v32 }
0x188a   : > { %v9607_v39 = vadd.f32 1e-12, %v9583_v36  ;;  %v14166_v28 = vpop.eup %14165  ;;  %v9648_v41 = vmul.f32 %v14164_v13, %v18459_v56  ;;  %v9554_v45 = vpop.xlane.xlu0 %9553  ;;  %v9706_v3 = vadd.f32 %v18553_v6, %v9676_v15 }
0x188b   : > { %v9557_v7 = vpop.xlane.xlu1 %9556  ;;  %v9649_v40 = vmul.f32 %v14166_v28, %v18453_v57  ;;  %14175 = vrsqrt.f32 %v9606_v25  ;;  %v9584_v4 = vmul.f32 0.015625, %v9554_v45  ;;  %13104 = vmatprep.mubr.msk.bf16.mxu0 %vm646_vm0, %v9724_v20  ;;  %v9707_v26 = vadd.f32 %v18553_v6, %v9677_v16 }
0x188c   : > { %v9585_v22 = vmul.f32 0.015625, %v9557_v7  ;;  %14177 = vrsqrt.f32 %v9607_v39  ;;  %v9678_v30 = vmul.f32 %v18544_v8, %v9648_v41 }
0x188d   : > { %v14168_v37 = vpop.eup %14167  ;;  %v9608_v19 = vadd.f32 1e-12, %v9584_v4  ;;  %v9679_v61 = vmul.f32 %v18544_v8, %v9649_v40  ;;  %v9725_v57 = vpack.c.bf16 %v9707_v26, %v9706_v3 }
0x188e   : > { %v9609_v56 = vadd.f32 1e-12, %v9585_v22  ;;  %v14170_v24 = vpop.eup %14169  ;;  %v9650_v31 = vmul.f32 %v14168_v37, %v18471_v42  ;;  %v9560_v23 = vpop.xlane.xlu0 %9559  ;;  %v9708_v50 = vadd.f32 %v18553_v6, %v9678_v30 }
0x188f   : > { %v9563_v27 = vpop.xlane.xlu1 %9562  ;;  %v9651_v9 = vmul.f32 %v14170_v24, %v18465_v17  ;;  %14179 = vrsqrt.f32 %v9608_v19  ;;  %v9586_v48 = vmul.f32 0.015625, %v9560_v23  ;;  %13105 = vmatmul.mubr.msk.bf16.gmra.mrb[248].mxu0 %vm646_vm0, %v9725_v57  ;;  %v9709_v14 = vadd.f32 %v18553_v6, %v9679_v61  ;;  %v13422_v23 = vld [vmem:[%s19317_s6 + $0x58] sm:$0xff]   ;;  %v13423_v57 = vld [vmem:[%s19317_s6 + $0x60] sm:$0xff]  }
0x1890   : > { %v9587_v2 = vmul.f32 0.015625, %v9563_v27  ;;  %14181 = vrsqrt.f32 %v9609_v56  ;;  %v9680_v18 = vmul.f32 %v18544_v8, %v9650_v31  ;;  %v13424_v27 = vld [vmem:[%s19317_s6 + $0x68] sm:$0xff]  }
0x1891   : > { %v14172_v54 = vpop.eup %14171  ;;  %v9610_v62 = vadd.f32 1e-12, %v9586_v48  ;;  %v9681_v43 = vmul.f32 %v18544_v8, %v9651_v9  ;;  %v9726_v0 = vpack.c.bf16 %v9709_v14, %v9708_v50  ;;  %v13425_v50 = vld [vmem:[%s19317_s6 + $0x70] sm:$0xff]   ;;  %v13426_v9 = vld [vmem:[%s19317_s6 + $0x78] sm:$0xff]  }
0x1892   : > { %v9611_v42 = vadd.f32 1e-12, %v9587_v2  ;;  %v14174_v21 = vpop.eup %14173  ;;  %v9652_v10 = vmul.f32 %v14172_v54, %v18486_v46  ;;  %v9710_v17 = vadd.f32 %v18553_v6, %v9680_v18  ;;  %v11839_v48 = vld [vmem:[%s19318_s7 + $0x16] ss:$8 sm:$0x3] }
0x1893   : > { %v9653_v60 = vmul.f32 %v14174_v21, %v18480_v51  ;;  %14183 = vrsqrt.f32 %v9610_v62  ;;  %v9711_v32 = vadd.f32 %v18553_v6, %v9681_v43  ;;  %13108 = vmatprep.mubr.msk.bf16.mxu0 %vm646_vm0, %v9726_v0  ;;  %v18664_v2 = vrot.slane %v11839_v48, %v19607_v5 }
0x1894   : > { %14185 = vrsqrt.f32 %v9611_v42  ;;  %v9682_v47 = vmul.f32 %v18544_v8, %v9652_v10 }
0x1895   : > { %v14176_v55 = vpop.eup %14175  ;;  %v9727_v36 = vpack.c.bf16 %v9711_v32, %v9710_v17  ;;  %v9683_v38 = vmul.f32 %v18544_v8, %v9653_v60 }
0x1896   : > { %v14178_v15 = vpop.eup %14177  ;;  %v9654_v46 = vmul.f32 %v14176_v55, %v18501_v1  ;;  %v9712_v13 = vadd.f32 %v18553_v6, %v9682_v47 }
0x1897   : > { %v9655_v25 = vmul.f32 %v14178_v15, %v18495_v58  ;;  %v9713_v51 = vadd.f32 %v18553_v6, %v9683_v38  ;;  %13109 = vmatmul.mubr.msk.bf16.gmra.mrb[252].mxu0 %vm646_vm0, %v9727_v36 }
0x1898   : > { %v9684_v39 = vmul.f32 %v18544_v8, %v9654_v46 }
0x1899   : > { %v14180_v16 = vpop.eup %14179  ;;  %v9685_v28 = vmul.f32 %v18544_v8, %v9655_v25  ;;  %v9728_v41 = vpack.c.bf16 %v9713_v51, %v9712_v13 }
0x189a   : > { %v14182_v45 = vpop.eup %14181  ;;  %v9714_v20 = vadd.f32 %v18553_v6, %v9684_v39  ;;  %v9656_v7 = vmul.f32 %v14180_v16, %v18516_v59 }
0x189b   : > { %v9715_v1 = vadd.f32 %v18553_v6, %v9685_v28  ;;  %v9657_v3 = vmul.f32 %v14182_v45, %v18510_v35  ;;  %13112 = vmatprep.mubr.msk.bf16.mxu0 %vm646_vm0, %v9728_v41 }
0x189c   : > { %v9686_v58 = vmul.f32 %v18544_v8, %v9656_v7 }
0x189d   : > { %v14184_v40 = vpop.eup %14183  ;;  %v9729_v4 = vpack.c.bf16 %v9715_v1, %v9714_v20  ;;  %v9687_v22 = vmul.f32 %v18544_v8, %v9657_v3 }
0x189e   : > { %v14186_v26 = vpop.eup %14185  ;;  %v9658_v30 = vmul.f32 %v14184_v40, %v18530_v11  ;;  %v9716_v37 = vadd.f32 %v18553_v6, %v9686_v58 }
0x189f   : > { %v9659_v19 = vmul.f32 %v14186_v26, %v18525_v49  ;;  %v9717_v59 = vadd.f32 %v18553_v6, %v9687_v22  ;;  %13113 = vmatmul.mubr.msk.bf16.gmra.mrb[0].mxu0 %vm646_vm0, %v9729_v4  ;;  %v13419_v49 = vld [vmem:[%s19317_s6 + $0x40] sm:$0xff]  }
0x18a0   : > { %v9688_v56 = vmul.f32 %v18544_v8, %v9658_v30  ;;  %13120 = vmatprep.subr.bf16.mxu0 %v13419_v49 }
0x18a1   : > { %v9689_v35 = vmul.f32 %v18544_v8, %v9659_v19  ;;  %v9730_v61 = vpack.c.bf16 %v9717_v59, %v9716_v37  ;;  %13121 = vmatpush3.bf16.msra.mxu0 %v13419_v49  ;;  %v13420_v8 = vld [vmem:[%s19317_s6 + $0x48] sm:$0xff]  }
0x18a2   : > { %v9718_v24 = vadd.f32 %v18553_v6, %v9688_v56  ;;  %13122 = vmatprep.subr.bf16.mxu0 %v13420_v8 }
0x18a3   : > { %v9719_v31 = vadd.f32 %v18553_v6, %v9689_v35  ;;  %13116 = vmatprep.mubr.msk.bf16.mxu0 %vm646_vm0, %v9730_v61  ;;  %v13421_v6 = vld [vmem:[%s19317_s6 + $0x50] sm:$0xff]  }
0x18a5   : > { %v9731_v11 = vpack.c.bf16 %v9719_v31, %v9718_v24  ;;  %13123 = vmatpush3.bf16.msra.mxu0 %v13420_v8 }
0x18a6   : > { %13124 = vmatprep.subr.bf16.mxu0 %v13421_v6 }
0x18a7   : > { %13117 = vmatmul.mubr.msk.bf16.gmra.mrb[4].mxu0 %vm646_vm0, %v9731_v11 }
0x18a9   : > { %13125 = vmatpush3.bf16.msra.mxu0 %v13421_v6 }
0x18aa   : > { %13126 = vmatprep.subr.bf16.mxu0 %v13422_v23 }
0x18ad   : > { %13127 = vmatpush3.bf16.msra.mxu0 %v13422_v23 }
0x18ae   : > { %13128 = vmatprep.subr.bf16.mxu0 %v13423_v57 }
0x18b1   : > { %13129 = vmatpush3.bf16.msra.mxu0 %v13423_v57 }
0x18b2   : > { %13130 = vmatprep.subr.bf16.mxu0 %v13424_v27 }
0x18b5   : > { %13131 = vmatpush3.bf16.msra.mxu0 %v13424_v27 }
0x18b6   : > { %13132 = vmatprep.subr.bf16.mxu0 %v13425_v50 }
0x18b9   : > { %13133 = vmatpush3.bf16.msra.mxu0 %v13425_v50 }
0x18ba   : > { %13134 = vmatprep.subr.bf16.mxu0 %v13426_v9 }
0x18bd   : > { %13135 = vmatpush3.bf16.msra.mxu0 %v13426_v9 }
0x1951   : > { %v13098_v14 = vpop.f32.mrb[240].mxu0 }
0x1952   : > { %v18667_v18 = vadd.f32 %v13098_v14, %v18664_v2  ;;  %v9843_v54 = vpop.f32.mrb[241].mxu0 }
0x1953   : > { %v18670_v62 = vadd.f32 %v9843_v54, %v18664_v2  ;;  %v13099_v42 = vpop.f32.mrb[242].mxu0 }
0x1954   : > { %v9940_v43 = vmul.f32 %v18667_v18, %v18667_v18  ;;  %v18675_v21 = vadd.f32 %v13099_v42, %v18664_v2  ;;  %v9846_v10 = vpop.f32.mrb[243].mxu0 }
0x1955   : > { %v9938_v0 = vmul.f32 %v18670_v62, %v18670_v62  ;;  %v18680_v17 = vadd.f32 %v9846_v10, %v18664_v2 }
0x1956   : > { %v9964_v60 = vmul.f32 %v9940_v43, %v18667_v18  ;;  %v9941_v32 = vmul.f32 %v18675_v21, %v18675_v21 }
0x1957   : > { %v9962_v47 = vmul.f32 %v9938_v0, %v18670_v62  ;;  %v9939_v55 = vmul.f32 %v18680_v17, %v18680_v17 }
0x1958   : > { %v9988_v36 = vmul.f32 0.044715, %v9964_v60  ;;  %v9965_v38 = vmul.f32 %v9941_v32, %v18675_v21 }
0x1959   : > { %v9986_v15 = vmul.f32 0.044715, %v9962_v47  ;;  %v9963_v46 = vmul.f32 %v9939_v55, %v18680_v17 }
0x195a   : > { %v10012_v13 = vadd.f32 %v9988_v36, %v18667_v18  ;;  %v9989_v25 = vmul.f32 0.044715, %v9965_v38  ;;  %v13102_v39 = vpop.f32.mrb[244].mxu0 }
0x195b   : > { %v9987_v51 = vmul.f32 0.044715, %v9963_v46  ;;  %v10010_v28 = vadd.f32 %v9986_v15, %v18670_v62  ;;  %v18694_v45 = vadd.f32 %v13102_v39, %v18664_v2  ;;  %v9859_v20 = vpop.f32.mrb[245].mxu0 }
0x195c   : > { %v10036_v16 = vmul.f32 0.7978846, %v10012_v13  ;;  %v10013_v41 = vadd.f32 %v9989_v25, %v18675_v21  ;;  %v18698_v1 = vadd.f32 %v9859_v20, %v18664_v2  ;;  %v13103_v3 = vpop.f32.mrb[246].mxu0 }
0x195d   : > { %v10011_v7 = vadd.f32 %v9987_v51, %v18680_v17  ;;  %v9944_v40 = vmul.f32 %v18694_v45, %v18694_v45  ;;  %v18703_v4 = vadd.f32 %v13103_v3, %v18664_v2  ;;  %v9862_v22 = vpop.f32.mrb[247].mxu0  ;;  %v10034_v37 = vmul.f32 0.7978846, %v10010_v28 }
0x195e   : > { %14187 = vtanh.f32 %v10036_v16  ;;  %v10037_v58 = vmul.f32 0.7978846, %v10013_v41  ;;  %v9942_v26 = vmul.f32 %v18698_v1, %v18698_v1  ;;  %v18708_v30 = vadd.f32 %v9862_v22, %v18664_v2 }
0x195f   : > { %v9968_v19 = vmul.f32 %v9944_v40, %v18694_v45  ;;  %v9945_v59 = vmul.f32 %v18703_v4, %v18703_v4  ;;  %v10035_v56 = vmul.f32 0.7978846, %v10011_v7 }
0x1960   : > { %14189 = vtanh.f32 %v10037_v58  ;;  %v9966_v35 = vmul.f32 %v9942_v26, %v18698_v1  ;;  %v9943_v61 = vmul.f32 %v18708_v30, %v18708_v30 }
0x1961   : > { %v9992_v24 = vmul.f32 0.044715, %v9968_v19  ;;  %v9969_v31 = vmul.f32 %v9945_v59, %v18703_v4  ;;  %14191 = vtanh.f32 %v10034_v37 }
0x1962   : > { %v9990_v11 = vmul.f32 0.044715, %v9966_v35  ;;  %v9967_v49 = vmul.f32 %v9943_v61, %v18708_v30  ;;  %v13106_v8 = vpop.f32.mrb[248].mxu0  ;;  %14193 = vtanh.f32 %v10035_v56 }
0x1963   : > { %v10016_v6 = vadd.f32 %v9992_v24, %v18694_v45  ;;  %v9993_v23 = vmul.f32 0.044715, %v9969_v31  ;;  %v18720_v57 = vadd.f32 %v13106_v8, %v18664_v2  ;;  %v9875_v27 = vpop.f32.mrb[249].mxu0 }
0x1964   : > { %v10014_v50 = vadd.f32 %v9990_v11, %v18698_v1  ;;  %v9991_v9 = vmul.f32 0.044715, %v9967_v49  ;;  %v18724_v48 = vadd.f32 %v9875_v27, %v18664_v2  ;;  %v13107_v14 = vpop.f32.mrb[250].mxu0 }
0x1965   : > { %v10040_v54 = vmul.f32 0.7978846, %v10016_v6  ;;  %v10017_v42 = vadd.f32 %v9993_v23, %v18703_v4  ;;  %v9948_v43 = vmul.f32 %v18720_v57, %v18720_v57  ;;  %v18730_v10 = vadd.f32 %v13107_v14, %v18664_v2  ;;  %v9878_v0 = vpop.f32.mrb[251].mxu0 }
0x1966   : > { %v10038_v60 = vmul.f32 0.7978846, %v10014_v50  ;;  %v10015_v32 = vadd.f32 %v9991_v9, %v18708_v30  ;;  %v9946_v47 = vmul.f32 %v18724_v48, %v18724_v48  ;;  %v18736_v55 = vadd.f32 %v9878_v0, %v18664_v2 }
0x1967   : > { %14195 = vtanh.f32 %v10040_v54  ;;  %v10041_v38 = vmul.f32 0.7978846, %v10017_v42  ;;  %v9972_v15 = vmul.f32 %v9948_v43, %v18720_v57  ;;  %v9949_v46 = vmul.f32 %v18730_v10, %v18730_v10 }
0x1968   : > { %v14188_v36 = vpop.eup %14187  ;;  %14197 = vtanh.f32 %v10038_v60  ;;  %v10039_v25 = vmul.f32 0.7978846, %v10015_v32  ;;  %v9970_v51 = vmul.f32 %v9946_v47, %v18724_v48  ;;  %v9947_v41 = vmul.f32 %v18736_v55, %v18736_v55 }
0x1969   : > { %v10084_v13 = vadd.f32 1.0, %v14188_v36  ;;  %14199 = vtanh.f32 %v10041_v38  ;;  %v9996_v16 = vmul.f32 0.044715, %v9972_v15  ;;  %v9973_v28 = vmul.f32 %v9949_v46, %v18730_v10 }
0x196a   : > { %v14190_v39 = vpop.eup %14189  ;;  %14201 = vtanh.f32 %v10039_v25  ;;  %v9994_v3 = vmul.f32 0.044715, %v9970_v51  ;;  %v13110_v58 = vpop.f32.mrb[252].mxu0  ;;  %v9971_v26 = vmul.f32 %v9947_v41, %v18736_v55 }
0x196b   : > { %v10108_v20 = vmul.f32 0.5, %v10084_v13  ;;  %v10085_v7 = vadd.f32 1.0, %v14190_v39  ;;  %v10020_v40 = vadd.f32 %v9996_v16, %v18720_v57  ;;  %v9997_v22 = vmul.f32 0.044715, %v9973_v28  ;;  %v9891_v19 = vpop.f32.mrb[253].mxu0  ;;  %v14192_v31 = vpop.eup %14191 }
0x196c   : > { %v18748_v37 = vadd.f32 %v13110_v58, %v18664_v2  ;;  %v10018_v35 = vadd.f32 %v9994_v3, %v18724_v48  ;;  %v18755_v61 = vadd.f32 %v9891_v19, %v18664_v2  ;;  %v13111_v24 = vpop.f32.mrb[254].mxu0  ;;  %v9995_v8 = vmul.f32 0.044715, %v9971_v26  ;;  %v18760_v27 = vpop.eup %14193 }
0x196d   : > { %v18751_v59 = vmul.f32 %v10108_v20, %v18667_v18  ;;  %v10109_v56 = vmul.f32 0.5, %v10085_v7  ;;  %v10044_v11 = vmul.f32 0.7978846, %v10020_v40  ;;  %v10021_v49 = vadd.f32 %v9997_v22, %v18730_v10  ;;  %v9894_v23 = vpop.f32.mrb[255].mxu0 }
0x196e   : > { %v9952_v6 = vmul.f32 %v18748_v37, %v18748_v37  ;;  %v10042_v50 = vmul.f32 0.7978846, %v10018_v35  ;;  %v9950_v9 = vmul.f32 %v18755_v61, %v18755_v61  ;;  %v18768_v14 = vadd.f32 %v13111_v24, %v18664_v2 }
0x196f   : > { %v18763_v18 = vmul.f32 %v10109_v56, %v18675_v21  ;;  %14203 = vtanh.f32 %v10044_v11  ;;  %v10045_v54 = vmul.f32 0.7978846, %v10021_v49  ;;  %v10019_v42 = vadd.f32 %v9995_v8, %v18736_v55 }
0x1970   : > { %v9976_v43 = vmul.f32 %v9952_v6, %v18748_v37  ;;  %14205 = vtanh.f32 %v10042_v50  ;;  %v9974_v21 = vmul.f32 %v9950_v9, %v18755_v61  ;;  %v9953_v60 = vmul.f32 %v18768_v14, %v18768_v14 }
0x1971   : > { %v10155_v0 = vpack.c.bf16 %v18763_v18, %v18751_v59  ;;  %v14196_v32 = vpop.eup %14195  ;;  %14207 = vtanh.f32 %v10045_v54  ;;  %v10043_v47 = vmul.f32 0.7978846, %v10019_v42  ;;  %v18778_v38 = vadd.f32 %v9894_v23, %v18664_v2 }
0x1972   : > { %v10000_v36 = vmul.f32 0.044715, %v9976_v43  ;;  %v18780_v15 = vpop.eup %14197  ;;  %v10088_v46 = vadd.f32 1.0, %v14196_v32  ;;  %v9998_v13 = vmul.f32 0.044715, %v9974_v21  ;;  %v9977_v25 = vmul.f32 %v9953_v60, %v18768_v14  ;;  %v13114_v51 = vpop.f32.mrb[0].mxu0 }
0x1973   : > { %v10082_v39 = vadd.f32 1.0, %v14192_v31  ;;  %v14200_v16 = vpop.eup %14199  ;;  %14209 = vtanh.f32 %v10043_v47  ;;  %v9951_v41 = vmul.f32 %v18778_v38, %v18778_v38  ;;  %v18787_v20 = vadd.f32 %v13114_v51, %v18664_v2  ;;  %v9907_v7 = vpop.f32.mrb[1].mxu0 }
0x1974   : > { %v10024_v28 = vadd.f32 %v10000_v36, %v18748_v37  ;;  %v18789_v3 = vpop.eup %14201  ;;  %v10112_v58 = vmul.f32 0.5, %v10088_v46  ;;  %v10089_v40 = vadd.f32 1.0, %v14200_v16  ;;  %v10022_v22 = vadd.f32 %v9998_v13, %v18755_v61  ;;  %v13115_v19 = vpop.f32.mrb[2].mxu0 }
0x1975   : > { %v10001_v26 = vmul.f32 0.044715, %v9977_v25  ;;  %v9975_v35 = vmul.f32 %v9951_v41, %v18778_v38  ;;  %v9956_v24 = vmul.f32 %v18787_v20, %v18787_v20  ;;  %v18796_v31 = vadd.f32 %v9907_v7, %v18664_v2  ;;  %v9910_v11 = vpop.f32.mrb[3].mxu0 }
0x1976   : > { %v10048_v56 = vmul.f32 0.7978846, %v10024_v28  ;;  %v18799_v49 = vmul.f32 %v10112_v58, %v18694_v45  ;;  %v10113_v8 = vmul.f32 0.5, %v10089_v40  ;;  %v10046_v6 = vmul.f32 0.7978846, %v10022_v22 }
0x1977   : > { %v10025_v23 = vadd.f32 %v10001_v26, %v18768_v14  ;;  %v9999_v50 = vmul.f32 0.044715, %v9975_v35  ;;  %v9980_v9 = vmul.f32 %v9956_v24, %v18787_v20  ;;  %v9954_v54 = vmul.f32 %v18796_v31, %v18796_v31 }
0x1978   : > { %14211 = vtanh.f32 %v10048_v56  ;;  %v18806_v42 = vmul.f32 %v10113_v8, %v18703_v4  ;;  %v18809_v21 = vadd.f32 %v13115_v19, %v18664_v2  ;;  %v18814_v36 = vadd.f32 %v9910_v11, %v18664_v2 }
0x1979   : > { %14213 = vtanh.f32 %v10046_v6  ;;  %v10049_v43 = vmul.f32 0.7978846, %v10025_v23  ;;  %v14204_v45 = vpop.eup %14203  ;;  %v10023_v60 = vadd.f32 %v9999_v50, %v18778_v38  ;;  %v10004_v32 = vmul.f32 0.044715, %v9980_v9 }
0x197a   : > { %v9978_v47 = vmul.f32 %v9954_v54, %v18796_v31  ;;  %v18816_v46 = vpop.eup %14205  ;;  %v10157_v4 = vpack.c.bf16 %v18806_v42, %v18799_v49  ;;  %v10092_v13 = vadd.f32 1.0, %v14204_v45  ;;  %v9957_v25 = vmul.f32 %v18809_v21, %v18809_v21  ;;  %v13118_v51 = vpop.f32.mrb[4].mxu0 }
0x197b   : > { %14215 = vtanh.f32 %v10049_v43  ;;  %v14208_v16 = vpop.eup %14207  ;;  %v10047_v28 = vmul.f32 0.7978846, %v10023_v60  ;;  %v10028_v41 = vadd.f32 %v10004_v32, %v18787_v20  ;;  %v9955_v58 = vmul.f32 %v18814_v36, %v18814_v36  ;;  %v9923_v40 = vpop.f32.mrb[5].mxu0 }
0x197c   : > { %v10002_v7 = vmul.f32 0.044715, %v9978_v47  ;;  %v10116_v22 = vmul.f32 0.5, %v10092_v13  ;;  %v10093_v26 = vadd.f32 1.0, %v14208_v16  ;;  %v9981_v19 = vmul.f32 %v9957_v25, %v18809_v21  ;;  %v13119_v35 = vpop.f32.mrb[6].mxu0 }
0x197d   : > { %v10083_v56 = vadd.f32 1.0, %v18760_v27  ;;  %v18827_v24 = vpop.eup %14209  ;;  %14217 = vtanh.f32 %v10047_v28  ;;  %v10052_v11 = vmul.f32 0.7978846, %v10028_v41  ;;  %v9979_v6 = vmul.f32 %v9955_v58, %v18814_v36  ;;  %v9926_v23 = vpop.f32.mrb[7].mxu0 }
0x197e   : > { %v10026_v8 = vadd.f32 %v10002_v7, %v18796_v31  ;;  %v18832_v50 = vmul.f32 %v10116_v22, %v18720_v57  ;;  %v10117_v9 = vmul.f32 0.5, %v10093_v26  ;;  %v10005_v54 = vmul.f32 0.044715, %v9981_v19 }
0x197f   : > { %v10106_v43 = vmul.f32 0.5, %v10082_v39  ;;  %14219 = vtanh.f32 %v10052_v11  ;;  %v10003_v60 = vmul.f32 0.044715, %v9979_v6  ;;  %v10107_v27 = vmul.f32 0.5, %v10083_v56 }
0x1980   : > { %v10050_v45 = vmul.f32 0.7978846, %v10026_v8  ;;  %v18835_v32 = vmul.f32 %v10117_v9, %v18730_v10  ;;  %v10029_v47 = vadd.f32 %v10005_v54, %v18809_v21  ;;  %v18840_v25 = vadd.f32 %v13118_v51, %v18664_v2 }
0x1981   : > { %v10130_v13 = vmul.f32 %v10106_v43, %v18670_v62  ;;  %v10027_v57 = vadd.f32 %v10003_v60, %v18814_v36  ;;  %v10131_v39 = vmul.f32 %v10107_v27, %v18680_v17  ;;  %v18845_v28 = vadd.f32 %v9923_v40, %v18664_v2 }
0x1982   : > { %v14212_v16 = vpop.eup %14211  ;;  %14221 = vtanh.f32 %v10050_v45  ;;  %v10159_v10 = vpack.c.bf16 %v18835_v32, %v18832_v50  ;;  %v10053_v58 = vmul.f32 0.7978846, %v10029_v47  ;;  %v9960_v62 = vmul.f32 %v18840_v25, %v18840_v25 }
0x1983   : > { %v14214_v41 = vpop.eup %14213  ;;  %v10096_v7 = vadd.f32 1.0, %v14212_v16  ;;  %v10051_v51 = vmul.f32 0.7978846, %v10027_v57  ;;  %v10154_v22 = vpack.c.bf16 %v10131_v39, %v10130_v13  ;;  %v9958_v26 = vmul.f32 %v18845_v28, %v18845_v28 }
0x1984   : > { %v18854_v19 = vadd.f32 %v13119_v35, %v18664_v2  ;;  %14223 = vtanh.f32 %v10053_v58  ;;  %v9984_v56 = vmul.f32 %v9960_v62, %v18840_v25  ;;  %v18858_v11 = vadd.f32 %v9926_v23, %v18664_v2 }
0x1985   : > { %v14216_v17 = vpop.eup %14215  ;;  %v10120_v40 = vmul.f32 0.5, %v10096_v7  ;;  %14225 = vtanh.f32 %v10051_v51  ;;  %13136 = vmatprep.mubr.bf16.mxu0 %v10154_v22  ;;  %v9982_v6 = vmul.f32 %v9958_v26, %v18845_v28  ;;  %v10086_v23 = vadd.f32 1.0, %v18780_v15 }
0x1986   : > { %v10097_v8 = vadd.f32 1.0, %v14216_v17  ;;  %v9961_v9 = vmul.f32 %v18854_v19, %v18854_v19  ;;  %13137 = vmatmul.mubr.bf16.vlgmr.msra.gmra.mrb[8].mxu0 %v10155_v0  ;;  %v10008_v35 = vmul.f32 0.044715, %v9984_v56  ;;  %v9959_v2 = vmul.f32 %v18858_v11, %v18858_v11 }
0x1987   : > { %v18864_v54 = vmul.f32 %v10120_v40, %v18748_v37  ;;  %v14218_v43 = vpop.eup %14217  ;;  %v10006_v60 = vmul.f32 0.044715, %v9982_v6  ;;  %v10087_v47 = vadd.f32 1.0, %v18789_v3  ;;  %v10110_v16 = vmul.f32 0.5, %v10086_v23 }
0x1988   : > { %v10121_v45 = vmul.f32 0.5, %v10097_v8  ;;  %v9985_v27 = vmul.f32 %v9961_v9, %v18854_v19  ;;  %v10032_v37 = vadd.f32 %v10008_v35, %v18840_v25  ;;  %v9983_v13 = vmul.f32 %v9959_v2, %v18858_v11 }
0x1989   : > { %v10090_v59 = vadd.f32 1.0, %v18816_v46  ;;  %v14220_v18 = vpop.eup %14219  ;;  %v10030_v15 = vadd.f32 %v10006_v60, %v18845_v28  ;;  %v10111_v39 = vmul.f32 0.5, %v10087_v47  ;;  %v10134_v3 = vmul.f32 %v10110_v16, %v18698_v1 }
0x198a   : > { %v18878_v0 = vmul.f32 %v10121_v45, %v18768_v14  ;;  %v10009_v57 = vmul.f32 0.044715, %v9985_v27  ;;  %v10100_v7 = vadd.f32 1.0, %v14220_v18  ;;  %v10056_v58 = vmul.f32 0.7978846, %v10032_v37 }
0x198b   : > { %v10007_v62 = vmul.f32 0.044715, %v9983_v13  ;;  %v10054_v26 = vmul.f32 0.7978846, %v10030_v15  ;;  %v10135_v17 = vmul.f32 %v10111_v39, %v18708_v30  ;;  %v10091_v40 = vadd.f32 1.0, %v18827_v24 }
0x198c   : > { %v14222_v51 = vpop.eup %14221  ;;  %v10161_v22 = vpack.c.bf16 %v18878_v0, %v18864_v54  ;;  %v10033_v46 = vadd.f32 %v10009_v57, %v18854_v19  ;;  %14227 = vtanh.f32 %v10056_v58  ;;  %v10114_v6 = vmul.f32 0.5, %v10090_v59 }
0x198d   : > { %v10031_v14 = vadd.f32 %v10007_v62, %v18858_v11  ;;  %14229 = vtanh.f32 %v10054_v26  ;;  %v10156_v8 = vpack.c.bf16 %v10135_v17, %v10134_v3  ;;  %v10124_v1 = vmul.f32 0.5, %v10100_v7 }
0x198e   : > { %v10057_v56 = vmul.f32 0.7978846, %v10033_v46  ;;  %v14224_v9 = vpop.eup %14223  ;;  %v10115_v2 = vmul.f32 0.5, %v10091_v40  ;;  %v10094_v23 = vadd.f32 1.0, %v14214_v41  ;;  %v10138_v30 = vmul.f32 %v10114_v6, %v18724_v48 }
0x198f   : > { %v10055_v35 = vmul.f32 0.7978846, %v10031_v14  ;;  %v14226_v54 = vpop.eup %14225  ;;  %v10101_v45 = vadd.f32 1.0, %v14224_v9  ;;  %13140 = vmatprep.mubr.bf16.mxu0 %v10156_v8  ;;  %v10095_v60 = vadd.f32 1.0, %v14218_v43  ;;  %v10098_v47 = vadd.f32 1.0, %v14222_v51 }
0x1990   : > { %14231 = vtanh.f32 %v10057_v56  ;;  %13141 = vmatmul.mubr.bf16.gmra.mrb[12].mxu0 %v10157_v4  ;;  %v10139_v24 = vmul.f32 %v10115_v2, %v18736_v55  ;;  %v10118_v27 = vmul.f32 0.5, %v10094_v23  ;;  %v10099_v16 = vadd.f32 1.0, %v14226_v54 }
0x1991   : > { %14233 = vtanh.f32 %v10055_v35  ;;  %v10125_v37 = vmul.f32 0.5, %v10101_v45  ;;  %v10119_v13 = vmul.f32 0.5, %v10095_v60  ;;  %v10148_v41 = vmul.f32 %v10124_v1, %v18787_v20  ;;  %v11880_v45 = vld [vmem:[%s19318_s7 + $0x17] ss:$8 sm:$0x3] }
0x1992   : > { %v10158_v59 = vpack.c.bf16 %v10139_v24, %v10138_v30  ;;  %v10122_v18 = vmul.f32 0.5, %v10098_v47  ;;  %v10142_v48 = vmul.f32 %v10118_v27, %v18755_v61  ;;  %v10123_v15 = vmul.f32 0.5, %v10099_v16 }
0x1993   : > { %v10149_v0 = vmul.f32 %v10125_v37, %v18809_v21  ;;  %v10143_v43 = vmul.f32 %v10119_v13, %v18778_v38  ;;  %v10358_v60 = vrot.slane %v11880_v45, %v19607_v5 }
0x1994   : > { %13144 = vmatprep.mubr.bf16.mxu0 %v10158_v59  ;;  %v10146_v55 = vmul.f32 %v10122_v18, %v18796_v31  ;;  %v10147_v4 = vmul.f32 %v10123_v15, %v18814_v36 }
0x1995   : > { %v10163_v49 = vpack.c.bf16 %v10149_v0, %v10148_v41  ;;  %v10160_v42 = vpack.c.bf16 %v10143_v43, %v10142_v48 }
0x1996   : > { %v14228_v57 = vpop.eup %14227  ;;  %v10162_v20 = vpack.c.bf16 %v10147_v4, %v10146_v55 }
0x1997   : > { %v14230_v39 = vpop.eup %14229  ;;  %v10104_v7 = vadd.f32 1.0, %v14228_v57 }
0x1998   : > { %13145 = vmatmul.mubr.bf16.gmra.mrb[16].mxu0 %v10159_v10  ;;  %v10102_v21 = vadd.f32 1.0, %v14230_v39  ;;  %v19632_v10 = vmov 0  }
0x1999   : > { %13148 = vmatprep.mubr.bf16.mxu0 %v10160_v42  ;;  %v10128_v58 = vmul.f32 0.5, %v10104_v7 }
0x199a   : > { %v14232_v61 = vpop.eup %14231  ;;  %v10126_v51 = vmul.f32 0.5, %v10102_v21 }
0x199b   : > { %v14234_v38 = vpop.eup %14233  ;;  %v10105_v62 = vadd.f32 1.0, %v14232_v61  ;;  %v10152_v36 = vmul.f32 %v10128_v58, %v18840_v25 }
0x199c   : > { %v10103_v3 = vadd.f32 1.0, %v14234_v38  ;;  %v10150_v17 = vmul.f32 %v10126_v51, %v18845_v28 }
0x199d   : > { %v10129_v26 = vmul.f32 0.5, %v10105_v62 }
0x199e   : > { %v10127_v31 = vmul.f32 0.5, %v10103_v3 }
0x199f   : > { %v10153_v46 = vmul.f32 %v10129_v26, %v18854_v19 }
0x19a0   : > { %v10151_v14 = vmul.f32 %v10127_v31, %v18858_v11  ;;  %13149 = vmatmul.mubr.bf16.gmra.mrb[20].mxu0 %v10161_v22 }
0x19a1   : > { %v10165_v50 = vpack.c.bf16 %v10153_v46, %v10152_v36  ;;  %13152 = vmatprep.mubr.bf16.mxu0 %v10162_v20 }
0x19a2   : > { %v10164_v32 = vpack.c.bf16 %v10151_v14, %v10150_v17 }
0x19a8   : > { %13153 = vmatmul.mubr.bf16.gmra.mrb[24].mxu0 %v10163_v49 }
0x19a9   : > { %13156 = vmatprep.mubr.bf16.mxu0 %v10164_v32 }
0x19b0   : > { %13157 = vmatmul.mubr.bf16.gmra.mrb[28].mxu0 %v10165_v50 }
0x19b1   : > { %10711 = vmatprep.mubr.bf16.mxu0 %v19632_v10 }
0x1a59   : > { %v13138_v40 = vpop.f32.mrb[8].mxu0 }
0x1a5a   : > { %v10265_v56 = vpop.f32.mrb[9].mxu0 }
0x1a5b   : > { %v13139_v8 = vpop.f32.mrb[10].mxu0  ;;  %v10344_v48 = vadd.f32 %v10265_v56, %v18243_v52 }
0x1a5c   : > { %v10268_v6 = vpop.f32.mrb[11].mxu0  ;;  %v10345_v24 = vadd.f32 %v13139_v8, %v18258_v29 }
0x1a5e   : > { %v10361_v41 = vadd.f32 %v10358_v60, %v10345_v24 }
0x1a60   : > { %v10379_v42 = vrot.slane %v10361_v41, 7 }
0x1a63   : > { %v13142_v25 = vpop.f32.mrb[12].mxu0 }
0x1a64   : > { %v10279_v9 = vpop.f32.mrb[13].mxu0  ;;  %v10346_v27 = vadd.f32 %v13142_v25, %v18280_v44 }
0x1a65   : > { %v13143_v19 = vpop.f32.mrb[14].mxu0 }
0x1a66   : > { %v10281_v1 = vpop.f32.mrb[15].mxu0  ;;  %v10362_v18 = vadd.f32 %v10358_v60, %v10346_v27 }
0x1a68   : > { %v10382_v44 = vrot.slane %v10362_v18, 6 }
0x1a6b   : > { %v13146_v28 = vpop.f32.mrb[16].mxu0 }
0x1a6c   : > { %v10292_v35 = vpop.f32.mrb[17].mxu0 }
0x1a6d   : > { %v13147_v11 = vpop.f32.mrb[18].mxu0 }
0x1a6e   : > { %v10294_v2 = vpop.f32.mrb[19].mxu0 }
0x1a6f   : > { %v10347_v47 = vadd.f32 %v10294_v2, %v18294_v33  ;;  %v10360_v33 = vadd.f32 %v10358_v60, %v10344_v48 }
0x1a71   : > { %v10363_v43 = vadd.f32 %v10358_v60, %v10347_v47  ;;  %v10381_v52 = vsel %vm10380_vm5, %v10379_v42, %v10360_v33 }
0x1a73   : > { %v13150_v22 = vpop.f32.mrb[20].mxu0  ;;  %v10385_v55 = vrot.slane %v10363_v43, 5 }
0x1a74   : > { %v10305_v23 = vpop.f32.mrb[21].mxu0 }
0x1a75   : > { %v13151_v54 = vpop.f32.mrb[22].mxu0  ;;  %v10348_v13 = vadd.f32 %v10305_v23, %v18315_v12 }
0x1a76   : > { %v10308_v30 = vpop.f32.mrb[23].mxu0  ;;  %v10349_v15 = vadd.f32 %v13151_v54, %v18323_v53  ;;  %v10384_v53 = vsel %vm10383_vm6, %v10382_v44, %v10381_v52  ;;  %v13436_v52 = vld [vmem:[%s19320_s9 + $0x60] ss:$16 sps:$4 sm:$0xff]  }
0x1a77   : > { %v10364_v49 = vadd.f32 %v10358_v60, %v10348_v13 }
0x1a78   : > { %v10365_v12 = vadd.f32 %v10358_v60, %v10349_v15 }
0x1a79   : > { %v10388_v57 = vrot.slane %v10364_v49, 4 }
0x1a7a   : > { %v10391_v61 = vrot.slane %v10365_v12, 3 }
0x1a7b   : > { %v13154_v37 = vpop.f32.mrb[24].mxu0 }
0x1a7c   : > { %v10319_v16 = vpop.f32.mrb[25].mxu0  ;;  %v10350_v29 = vadd.f32 %v13154_v37, %v18352_v63  ;;  %v10387_v63 = vsel %vm10386_vm7, %v10385_v55, %v10384_v53  ;;  %v13429_v55 = vld [vmem:[%s19320_s9 + $0x4] ss:$16 sps:$4 sm:$0xff]   ;;  %v13451_v53 = vld [vmem:[%s19321_s10] ss:$8 sps:$4 sm:$0xff]  }
0x1a7d   : > { %v13155_v59 = vpop.f32.mrb[26].mxu0  ;;  %v10390_v58 = vsel %vm10389_vm8, %v10388_v57, %v10387_v63  ;;  %10679 = vmatprep.subr.bf16.mxu0 %v13429_v55  ;;  %v13435_v57 = vld [vmem:[%s19320_s9 + $0x44] ss:$16 sps:$4 sm:$0xff]  }
0x1a7e   : > { %v10321_v0 = vpop.f32.mrb[27].mxu0  ;;  %v10366_v39 = vadd.f32 %v10358_v60, %v10350_v29  ;;  %v10393_v26 = vsel %vm10392_vm9, %v10391_v61, %v10390_v58  ;;  %v13456_v63 = vld [vmem:[%s19321_s10 + $0x14] ss:$8 sps:$4 sm:$0xff]   ;;  %v13454_v61 = vld [vmem:[%s19321_s10 + $0x10] ss:$8 sps:$4 sm:$0xff]  }
0x1a7f   : > { %v13457_v58 = vld [vmem:[%s19321_s10 + $0x20] ss:$8 sps:$4 sm:$0xff]  }
0x1a80   : > { %v10394_v62 = vrot.slane %v10366_v39, 2 }
0x1a82   : > { %v10396_v31 = vsel %vm10395_vm10, %v10394_v62, %v10393_v26  ;;  %v13462_v62 = vld [vmem:[%s19321_s10 + $0x34] ss:$8 sps:$4 sm:$0xff]   ;;  %v13463_v26 = vld [vmem:[%s19321_s10 + $0x40] ss:$8 sps:$4 sm:$0xff]  }
0x1a83   : > { %v13158_v4 = vpop.f32.mrb[28].mxu0 }
0x1a84   : > { %v10332_v7 = vpop.f32.mrb[29].mxu0  ;;  %v13430_v4 = vld [vmem:[%s19320_s9 + $0x20] ss:$16 sps:$4 sm:$0xff]  }
0x1a85   : > { %v13159_v20 = vpop.f32.mrb[30].mxu0  ;;  %v13438_v7 = vld [vmem:[%s19320_s9 + $0x64] ss:$16 sps:$4 sm:$0xff]  }
0x1a86   : > { %v10334_v21 = vpop.f32.mrb[31].mxu0  ;;  %v13441_v20 = vld [vmem:[%s19320_s9 + $0xc] ss:$16 sps:$4 sm:$0xff]  }
0x1a87   : > { %v10351_v38 = vadd.f32 %v10334_v21, %v18366_v34  ;;  %v13453_v21 = vld [vmem:[%s19321_s10 + $0x4] ss:$8 sps:$4 sm:$0xff]  }
0x1a88   : > { %11174 = vmatprep.subr.bf16.mxu1 %v13453_v21 }
0x1a89   : > { %v10367_v3 = vadd.f32 %v10358_v60, %v10351_v38  ;;  %11175 = vmatpush1.bf16.msra.mxu1 %v13451_v53  ;;  %v13459_v38 = vld [vmem:[%s19321_s10 + $0x24] ss:$8 sps:$4 sm:$0xff]  }
0x1a8a   : > { %11176 = vmatprep.subr.bf16.mxu1 %v13456_v63 }
0x1a8b   : > { %v10397_v51 = vrot.slane %v10367_v3, 1 }
0x1a8d   : > { %v10399_v36 = vsel %vm10398_vm11, %v10397_v51, %v10396_v31  ;;  %11177 = vmatpush1.bf16.msra.mxu1 %v13454_v61  ;;  %v13465_v51 = vld [vmem:[%s19321_s10 + $0x44] ss:$8 sps:$4 sm:$0xff]   ;;  %v13468_v31 = vld [vmem:[%s19321_s10 + $0x54] ss:$8 sps:$4 sm:$0xff]  }
0x1a8e   : > { %v10401_v46 = vsel %vm646_vm0, %v10399_v36, 0.0  ;;  %11178 = vmatprep.subr.bf16.mxu1 %v13459_v38  ;;  %v13466_v36 = vld [vmem:[%s19321_s10 + $0x50] ss:$8 sps:$4 sm:$0xff]  }
0x1a8f   : > { %10402 = vadd.xlane.f32.xlu0 %v10401_v46  ;;  %v13471_v46 = vld [vmem:[%s19321_s10 + $0x64] ss:$8 sps:$4 sm:$0xff]  }
0x1a91   : > { %11179 = vmatpush1.bf16.msra.mxu1 %v13457_v58 }
0x1a92   : > { %11180 = vmatprep.subr.bf16.mxu1 %v13462_v62 }
0x1b1c   : > { %v10403_v17 = vpop.xlane.xlu0 %10402 }
0x1b1d   : > { %v10404_v14 = vmul.f32 0.015625, %v10403_v17  ;;  %v13469_v17 = vld [vmem:[%s19321_s10 + $0x60] ss:$8 sps:$4 sm:$0xff]  }
0x1b1f   : > { %v10406_v34 = vrot.slane %v10404_v14, 1  ;;  %v10407_v50 = vrot.slane %v10404_v14, 2  ;;  %v10408_v32 = vrot.slane %v10404_v14, 3  ;;  %v10409_v40 = vrot.slane %v10404_v14, 4 }
0x1b20   : > { %v10410_v56 = vrot.slane %v10404_v14, 5  ;;  %v10411_v8 = vrot.slane %v10404_v14, 6  ;;  %v10412_v6 = vrot.slane %v10404_v14, 7  ;;  %v18927_v25 = vsub.f32 %v10360_v33, %v10404_v14  ;;  %v13427_v33 = vld [vmem:[%s19320_s9] ss:$16 sps:$4 sm:$0xff]  }
0x1b21   : > { %v18929_v9 = vsub.f32 %v10361_v41, %v10406_v34  ;;  %v18931_v19 = vsub.f32 %v10362_v18, %v10407_v50  ;;  %v18933_v1 = vsub.f32 %v10363_v43, %v10408_v32  ;;  %v18935_v28 = vsub.f32 %v10364_v49, %v10409_v40  ;;  %10680 = vmatpush1.bf16.msra.mxu0 %v13427_v33  ;;  %v13474_v14 = vld [vmem:[%s19321_s10 + $0x74] ss:$8 sps:$4 sm:$0xff]   ;;  %v13472_v34 = vld [vmem:[%s19321_s10 + $0x70] ss:$8 sps:$4 sm:$0xff]   ;;  %v13477_v50 = vld [vmem:[%s19321_s10 + $0x84] ss:$8 sps:$4 sm:$0xff]  }
0x1b22   : > { %v18937_v35 = vsub.f32 %v10365_v12, %v10410_v56  ;;  %v18939_v11 = vsub.f32 %v10366_v39, %v10411_v8  ;;  %v18941_v2 = vsub.f32 %v10367_v3, %v10412_v6  ;;  %v10429_v30 = vmul.f32 %v18927_v25, %v18927_v25  ;;  %v13432_v12 = vld [vmem:[%s19320_s9 + $0x24] ss:$16 sps:$4 sm:$0xff]   ;;  %v13433_v39 = vld [vmem:[%s19320_s9 + $0x40] ss:$16 sps:$4 sm:$0xff]  }
0x1b23   : > { %v10430_v22 = vmul.f32 %v18929_v9, %v18929_v9  ;;  %v10431_v23 = vmul.f32 %v18931_v19, %v18931_v19  ;;  %v10432_v54 = vmul.f32 %v18933_v1, %v18933_v1  ;;  %v10433_v45 = vmul.f32 %v18935_v28, %v18935_v28  ;;  %10681 = vmatprep.subr.bf16.mxu0 %v13432_v12  ;;  %v13460_v3 = vld [vmem:[%s19321_s10 + $0x30] ss:$8 sps:$4 sm:$0xff]   ;;  %v13475_v32 = vld [vmem:[%s19321_s10 + $0x80] ss:$8 sps:$4 sm:$0xff]   ;;  %v13480_v40 = vld [vmem:[%s19321_s10 + $0x94] ss:$8 sps:$4 sm:$0xff]  }
0x1b24   : > { %v10434_v60 = vmul.f32 %v18937_v35, %v18937_v35  ;;  %v10435_v47 = vmul.f32 %v18939_v11, %v18939_v11  ;;  %v10436_v37 = vmul.f32 %v18941_v2, %v18941_v2  ;;  %11181 = vmatpush1.bf16.msra.mxu1 %v13460_v3  ;;  %v13478_v56 = vld [vmem:[%s19321_s10 + $0x90] ss:$8 sps:$4 sm:$0xff]   ;;  %v13483_v8 = vld [vmem:[%s19321_s10 + $0xa4] ss:$8 sps:$4 sm:$0xff]   ;;  %v13481_v6 = vld [vmem:[%s19321_s10 + $0xa0] ss:$8 sps:$4 sm:$0xff]  }
0x1b25   : > { %v10445_v24 = vrot.slane %v10430_v22, 7  ;;  %v10447_v27 = vrot.slane %v10431_v23, 6  ;;  %v10449_v16 = vrot.slane %v10432_v54, 5  ;;  %v10451_v59 = vrot.slane %v10433_v45, 4  ;;  %10682 = vmatpush1.bf16.msra.mxu0 %v13430_v4  ;;  %11182 = vmatprep.subr.bf16.mxu1 %v13465_v51  ;;  %v13486_v22 = vld [vmem:[%s19321_s10 + $0xb4] ss:$8 sps:$4 sm:$0xff]  }
0x1b26   : > { %v10453_v0 = vrot.slane %v10434_v60, 3  ;;  %v10455_v43 = vrot.slane %v10435_v47, 2  ;;  %v10457_v49 = vrot.slane %v10436_v37, 1  ;;  %10683 = vmatprep.subr.bf16.mxu0 %v13435_v57  ;;  %v13484_v23 = vld [vmem:[%s19321_s10 + $0xb0] ss:$8 sps:$4 sm:$0xff]  }
0x1b27   : > { %v10446_v13 = vsel %vm10380_vm5, %v10445_v24, %v10429_v30  ;;  %v13489_v54 = vld [vmem:[%s19321_s10 + $0xc4] ss:$8 sps:$4 sm:$0xff]   ;;  %v13487_v45 = vld [vmem:[%s19321_s10 + $0xc0] ss:$8 sps:$4 sm:$0xff]   ;;  %v13492_v30 = vld [vmem:[%s19321_s10 + $0xd4] ss:$8 sps:$4 sm:$0xff]  }
0x1b28   : > { %v10448_v41 = vsel %vm10383_vm6, %v10447_v27, %v10446_v13  ;;  %11183 = vmatpush1.bf16.msra.mxu1 %v13463_v26  ;;  %v13490_v60 = vld [vmem:[%s19321_s10 + $0xd0] ss:$8 sps:$4 sm:$0xff]  }
0x1b29   : > { %v10450_v18 = vsel %vm10386_vm7, %v10449_v16, %v10448_v41  ;;  %10684 = vmatpush1.bf16.msra.mxu0 %v13433_v39  ;;  %11184 = vmatprep.subr.bf16.mxu1 %v13468_v31  ;;  %v10368_v37 = vld [vmem:[%s19319_s8] ss:$8 sm:$0xf]  ;;  %v11881_v13 = vld [vmem:[%s19319_s8 + $0x1] ss:$8 sm:$0xf] }
0x1b2a   : > { %v10452_v48 = vsel %vm10389_vm8, %v10451_v59, %v10450_v18  ;;  %10685 = vmatprep.subr.bf16.mxu0 %v13438_v7  ;;  %v10494_v41 = vrot.slane %v10368_v37, %v19607_v5  ;;  %v10508_v59 = vrot.slane %v11881_v13, %v19607_v5 }
0x1b2b   : > { %v10454_v15 = vsel %vm10392_vm9, %v10453_v0, %v10452_v48 }
0x1b2c   : > { %v10456_v29 = vsel %vm10395_vm10, %v10455_v43, %v10454_v15  ;;  %11185 = vmatpush1.bf16.msra.mxu1 %v13466_v36 }
0x1b2d   : > { %v10458_v42 = vsel %vm10398_vm11, %v10457_v49, %v10456_v29  ;;  %10686 = vmatpush1.bf16.msra.mxu0 %v13436_v52  ;;  %11186 = vmatprep.subr.bf16.mxu1 %v13471_v46 }
0x1b2e   : > { %v10460_v44 = vsel %vm646_vm0, %v10458_v42, 0.0  ;;  %10720 = vmatprep.subr.bf16.mxu0 %v13441_v20 }
0x1b2f   : > { %10461 = vadd.xlane.f32.xlu1 %v10460_v44 }
0x1b30   : > { %11187 = vmatpush1.bf16.msra.mxu1 %v13469_v17 }
0x1b31   : > { %11188 = vmatprep.subr.bf16.mxu1 %v13474_v14 }
0x1b34   : > { %11189 = vmatpush1.bf16.msra.mxu1 %v13472_v34 }
0x1b35   : > { %11190 = vmatprep.subr.bf16.mxu1 %v13477_v50 }
0x1b38   : > { %11191 = vmatpush1.bf16.msra.mxu1 %v13475_v32 }
0x1b39   : > { %11192 = vmatprep.subr.bf16.mxu1 %v13480_v40 }
0x1b3c   : > { %11193 = vmatpush1.bf16.msra.mxu1 %v13478_v56 }
0x1b3d   : > { %11194 = vmatprep.subr.bf16.mxu1 %v13483_v8 }
0x1b40   : > { %11195 = vmatpush1.bf16.msra.mxu1 %v13481_v6 }
0x1b41   : > { %11196 = vmatprep.subr.bf16.mxu1 %v13486_v22 }
0x1b44   : > { %11197 = vmatpush1.bf16.msra.mxu1 %v13484_v23 }
0x1b45   : > { %11198 = vmatprep.subr.bf16.mxu1 %v13489_v54 }
0x1b48   : > { %11199 = vmatpush1.bf16.msra.mxu1 %v13487_v45 }
0x1b49   : > { %11200 = vmatprep.subr.bf16.mxu1 %v13492_v30 }
0x1b4c   : > { %11201 = vmatpush1.bf16.msra.mxu1 %v13490_v60 }
0x1bbc   : > { %v10462_v24 = vpop.xlane.xlu1 %10461 }
0x1bbd   : > { %v10463_v27 = vmul.f32 0.015625, %v10462_v24 }
0x1bbf   : > { %v10464_v47 = vadd.f32 1e-12, %v10463_v27 }
0x1bc1   : > { %14235 = vrsqrt.f32 %v10464_v47 }
0x1bcb   : > { %v14236_v16 = vpop.eup %14235 }
0x1bcc   : > { %v10467_v18 = vrot.slane %v14236_v16, 1  ;;  %v10468_v0 = vrot.slane %v14236_v16, 2  ;;  %v10469_v48 = vrot.slane %v14236_v16, 3  ;;  %v10470_v43 = vrot.slane %v14236_v16, 4 }
0x1bcd   : > { %v10471_v15 = vrot.slane %v14236_v16, 5  ;;  %v10472_v49 = vrot.slane %v14236_v16, 6  ;;  %v10473_v29 = vrot.slane %v14236_v16, 7  ;;  %v10482_v42 = vmul.f32 %v14236_v16, %v18927_v25 }
0x1bce   : > { %v10483_v44 = vmul.f32 %v10467_v18, %v18929_v9  ;;  %v10484_v33 = vmul.f32 %v10468_v0, %v18931_v19  ;;  %v10485_v55 = vmul.f32 %v10469_v48, %v18933_v1  ;;  %v10486_v12 = vmul.f32 %v10470_v43, %v18935_v28  ;;  %v13444_v0 = vld [vmem:[%s19320_s9 + $0x2c] ss:$16 sps:$4 sm:$0xff]   ;;  %v13442_v48 = vld [vmem:[%s19320_s9 + $0x28] ss:$16 sps:$4 sm:$0xff]  }
0x1bcf   : > { %v10487_v4 = vmul.f32 %v10471_v15, %v18937_v35  ;;  %v10488_v57 = vmul.f32 %v10472_v49, %v18939_v11  ;;  %v10489_v39 = vmul.f32 %v10473_v29, %v18941_v2  ;;  %v10496_v7 = vmul.f32 %v10494_v41, %v10482_v42  ;;  %v13447_v43 = vld [vmem:[%s19320_s9 + $0x4c] ss:$16 sps:$4 sm:$0xff]   ;;  %v13445_v15 = vld [vmem:[%s19320_s9 + $0x48] ss:$16 sps:$4 sm:$0xff]  }
0x1bd0   : > { %v10497_v52 = vmul.f32 %v10494_v41, %v10483_v44  ;;  %v10498_v20 = vmul.f32 %v10494_v41, %v10484_v33  ;;  %v10499_v53 = vmul.f32 %v10494_v41, %v10485_v55  ;;  %v10500_v21 = vmul.f32 %v10494_v41, %v10486_v12  ;;  %v13450_v49 = vld [vmem:[%s19320_s9 + $0x6c] ss:$16 sps:$4 sm:$0xff]   ;;  %v13493_v42 = vld [vmem:[%s19321_s10 + $0xe0] ss:$8 sps:$4 sm:$0xff]   ;;  %v13496_v33 = vld [vmem:[%s19321_s10 + $0xf0] ss:$8 sps:$4 sm:$0xff]  }
0x1bd1   : > { %v10501_v25 = vmul.f32 %v10494_v41, %v10487_v4  ;;  %v10502_v63 = vmul.f32 %v10494_v41, %v10488_v57  ;;  %v10503_v9 = vmul.f32 %v10494_v41, %v10489_v39  ;;  %v10510_v61 = vadd.f32 %v10508_v59, %v10496_v7  ;;  %v13439_v41 = vld [vmem:[%s19320_s9 + $0x8] ss:$16 sps:$4 sm:$0xff]   ;;  %v13495_v29 = vld [vmem:[%s19321_s10 + $0xe4] ss:$8 sps:$4 sm:$0xff]   ;;  %v13498_v44 = vld [vmem:[%s19321_s10 + $0xf4] ss:$8 sps:$4 sm:$0xff]  }
0x1bd2   : > { %v10511_v19 = vadd.f32 %v10508_v59, %v10497_v52  ;;  %v10512_v38 = vadd.f32 %v10508_v59, %v10498_v20  ;;  %v10513_v1 = vadd.f32 %v10508_v59, %v10499_v53  ;;  %v10514_v58 = vadd.f32 %v10508_v59, %v10500_v21  ;;  %11202 = vmatprep.subr.bf16.mxu1 %v13495_v29  ;;  %v13501_v55 = vld [vmem:[%s19321_s10 + $0x104] ss:$8 sps:$4 sm:$0xff]   ;;  %v13551_v7 = vld [vmem:[%s19322_s11 + $0x50] sm:$0xff]   ;;  %v13553_v20 = vld [vmem:[%s19322_s11 + $0x58] sm:$0xff]  }
0x1bd3   : > { %v10515_v28 = vadd.f32 %v10508_v59, %v10501_v25  ;;  %v10516_v62 = vadd.f32 %v10508_v59, %v10502_v63  ;;  %v10517_v35 = vadd.f32 %v10508_v59, %v10503_v9  ;;  %v10518_v3 = vpack.c.bf16 %v10510_v61, %v10510_v61  ;;  %11203 = vmatpush1.bf16.msra.mxu1 %v13493_v42  ;;  %v13547_v12 = vld [vmem:[%s19322_s11 + $0x40] sm:$0xff]   ;;  %v13549_v57 = vld [vmem:[%s19322_s11 + $0x48] sm:$0xff]   ;;  %v13552_v52 = vld [vmem:[%s19322_s11 + $0x10] sm:$0xff]  }
0x1bd4   : > { %v10519_v11 = vpack.c.bf16 %v10511_v19, %v10511_v19  ;;  %v10520_v51 = vpack.c.bf16 %v10512_v38, %v10512_v38  ;;  %v10521_v2 = vpack.c.bf16 %v10513_v1, %v10513_v1  ;;  %v10522_v26 = vpack.c.bf16 %v10514_v58, %v10514_v58  ;;  %11204 = vmatprep.subr.bf16.mxu1 %v13498_v44  ;;  %v13548_v4 = vld [vmem:[%s19322_s11] sm:$0xff]   ;;  %v13550_v39 = vld [vmem:[%s19322_s11 + $0x8] sm:$0xff]   ;;  %v13554_v53 = vld [vmem:[%s19322_s11 + $0x18] sm:$0xff]  }
0x1bd5   : > { %v10523_v31 = vpack.c.bf16 %v10515_v28, %v10515_v28  ;;  %v10524_v36 = vpack.c.bf16 %v10516_v62, %v10516_v62  ;;  %v10525_v46 = vpack.c.bf16 %v10517_v35, %v10517_v35  ;;  %v10573_v32 = vunpack.c.l.b16 %v10518_v3  ;;  %v13555_v21 = vld [vmem:[%s19322_s11 + $0x60] sm:$0xff]   ;;  %v13557_v63 = vld [vmem:[%s19322_s11 + $0x68] sm:$0xff]   ;;  %v19633_v38 = vld [vmem:[#allocation28_spill] sm:$0xff] }
0x1bd6   : > { %v10574_v17 = vunpack.c.l.b16 %v10519_v11  ;;  %v10575_v14 = vunpack.c.l.b16 %v10520_v51  ;;  %v10576_v34 = vunpack.c.l.b16 %v10521_v2  ;;  %v10577_v50 = vunpack.c.l.b16 %v10522_v26  ;;  %v13556_v25 = vld [vmem:[%s19322_s11 + $0x20] sm:$0xff]   ;;  %v13558_v9 = vld [vmem:[%s19322_s11 + $0x28] sm:$0xff]   ;;  %v13534_v44 = vld [vmem:[%s19321_s10 + $0x1b4] ss:$8 sps:$4 sm:$0xff]  }
0x1bd7   : > { %v10578_v40 = vunpack.c.l.b16 %v10523_v31  ;;  %v10579_v6 = vunpack.c.l.b16 %v10524_v36  ;;  %v10580_v22 = vunpack.c.l.b16 %v10525_v46  ;;  %11205 = vmatpush1.bf16.msra.mxu1 %v13496_v33  ;;  %v19179_v61 = vld [vmem:[%s19319_s8 + $0x2] ss:$8 sm:$0xf]  ;;  %v13531_v29 = vld [vmem:[%s19321_s10 + $0x1a4] ss:$8 sps:$4 sm:$0xff]  }
0x1bd8   : > { %v10581_v56 = vrot.slane %v10574_v17, 7  ;;  %v10583_v8 = vrot.slane %v10575_v14, 6  ;;  %v10585_v54 = vrot.slane %v10576_v34, 5  ;;  %v10587_v30 = vrot.slane %v10577_v50, 4  ;;  %11215 = vmatprep.subr.bf16.mxu1 %v13501_v55  ;;  %v13499_v46 = vld [vmem:[%s19321_s10 + $0x100] ss:$8 sps:$4 sm:$0xff]  }
0x1bd9   : > { %v10589_v24 = vrot.slane %v10578_v40, 3  ;;  %v10591_v47 = vrot.slane %v10579_v6, 2  ;;  %v10593_v13 = vrot.slane %v10580_v22, 1  ;;  %v10548_v19 = vrot.slane %v19179_v61, %v19607_v5  ;;  %v13504_v14 = vld [vmem:[%s19321_s10 + $0x114] ss:$8 sps:$4 sm:$0xff]   ;;  %v19634_v34 = vld [vmem:[#allocation26_spill] sm:$0xff] }
0x1bda   : > { %v10582_v23 = vsel %vm10380_vm5, %v10581_v56, %v10573_v32  ;;  %v10552_v1 = vrot.slane %v19179_v61, %v19633_v38  ;;  %v10559_v50 = vsub.s32 3, %v19634_v34  ;;  %v13502_v32 = vld [vmem:[%s19321_s10 + $0x110] ss:$8 sps:$4 sm:$0xff]   ;;  %v13507_v40 = vld [vmem:[%s19321_s10 + $0x124] ss:$8 sps:$4 sm:$0xff]  }
0x1bdb   : > { %v10584_v45 = vsel %vm10383_vm6, %v10583_v8, %v10582_v23  ;;  %v13505_v8 = vld [vmem:[%s19321_s10 + $0x120] ss:$8 sps:$4 sm:$0xff]   ;;  %v13510_v22 = vld [vmem:[%s19321_s10 + $0x134] ss:$8 sps:$4 sm:$0xff]   ;;  %v13532_v33 = vld [vmem:[%s19321_s10 + $0x1b0] ss:$8 sps:$4 sm:$0xff]  }
0x1bdc   : > { %v10586_v60 = vsel %vm10386_vm7, %v10585_v54, %v10584_v45  ;;  %v10560_v56 = vrot.slane %v19179_v61, %v10559_v50  ;;  %v13529_v42 = vld [vmem:[%s19321_s10 + $0x1a0] ss:$8 sps:$4 sm:$0xff]   ;;  %v13537_v55 = vld [vmem:[%s19321_s10 + $0x1c4] ss:$8 sps:$4 sm:$0xff]  }
0x1bdd   : > { %v10588_v27 = vsel %vm10389_vm8, %v10587_v30, %v10586_v60  ;;  %v13508_v60 = vld [vmem:[%s19321_s10 + $0x130] ss:$8 sps:$4 sm:$0xff]  }
0x1bde   : > { %v10590_v37 = vsel %vm10392_vm9, %v10589_v24, %v10588_v27  ;;  %v13513_v27 = vld [vmem:[%s19321_s10 + $0x144] ss:$8 sps:$4 sm:$0xff]  }
0x1bdf   : > { %v10592_v16 = vsel %vm10395_vm10, %v10591_v47, %v10590_v37 }
0x1be0   : > { %v10594_v59 = vsel %vm10398_vm11, %v10593_v13, %v10592_v16  ;;  %v13511_v13 = vld [vmem:[%s19321_s10 + $0x140] ss:$8 sps:$4 sm:$0xff]   ;;  %v13516_v16 = vld [vmem:[%s19321_s10 + $0x154] ss:$8 sps:$4 sm:$0xff]  }
0x1be1   : > { %v10595_v18 = vpack.c.b16 %v10594_v59, %v10594_v59  ;;  %v13519_v59 = vld [vmem:[%s19321_s10 + $0x164] ss:$8 sps:$4 sm:$0xff]  }
0x1be3   : > { %11899 = vmatmul.mubr.msk.bf16.vlgmr.msra.gmra.mrb[32].mxu0 %vm646_vm0, %v10595_v18 }
0x1be4   : > { %10721 = vmatpush1.bf16.msra.mxu0 %v13439_v41  ;;  %10752 = vmatprep.mubr.bf16.mxu0 %v19632_v10  ;;  %v13448_v10 = vld [vmem:[%s19320_s9 + $0x68] ss:$16 sps:$4 sm:$0xff]  }
0x1be5   : > { %10722 = vmatprep.subr.bf16.mxu0 %v13444_v0  ;;  %v13514_v41 = vld [vmem:[%s19321_s10 + $0x150] ss:$8 sps:$4 sm:$0xff]   ;;  %v13522_v0 = vld [vmem:[%s19321_s10 + $0x174] ss:$8 sps:$4 sm:$0xff]  }
0x1be8   : > { %10723 = vmatpush1.bf16.msra.mxu0 %v13442_v48  ;;  %v13520_v48 = vld [vmem:[%s19321_s10 + $0x170] ss:$8 sps:$4 sm:$0xff]  }
0x1be9   : > { %10724 = vmatprep.subr.bf16.mxu0 %v13447_v43  ;;  %v13525_v43 = vld [vmem:[%s19321_s10 + $0x184] ss:$8 sps:$4 sm:$0xff]  }
0x1bec   : > { %10725 = vmatpush1.bf16.msra.mxu0 %v13445_v15  ;;  %v13523_v15 = vld [vmem:[%s19321_s10 + $0x180] ss:$8 sps:$4 sm:$0xff]  }
0x1bed   : > { %10726 = vmatprep.subr.bf16.mxu0 %v13450_v49  ;;  %v13528_v49 = vld [vmem:[%s19321_s10 + $0x194] ss:$8 sps:$4 sm:$0xff]  }
0x1bf0   : > { %10727 = vmatpush1.bf16.msra.mxu0 %v13448_v10  ;;  %v13526_v10 = vld [vmem:[%s19321_s10 + $0x190] ss:$8 sps:$4 sm:$0xff]  }
0x1bf1   : > { %12370 = vmatprep.subr.bf16.mxu0 %v13547_v12  ;;  %v10555_v12 = vsub.s32 2, %v19634_v34 }
0x1bf3   : > { %11900 = vmatmul.mubr.msk.bf16.vlgmr.msra.gmra.mrb[36].mxu0 %vm646_vm0, %v10595_v18  ;;  %v13517_v18 = vld [vmem:[%s19321_s10 + $0x160] ss:$8 sps:$4 sm:$0xff]  }
0x1bf4   : > { %12371 = vmatpush3.bf16.msra.mxu0 %v13548_v4  ;;  %v13535_v4 = vld [vmem:[%s19321_s10 + $0x1c0] ss:$8 sps:$4 sm:$0xff]  }
0x1bf5   : > { %12372 = vmatprep.subr.bf16.mxu0 %v13549_v57  ;;  %v13540_v57 = vld [vmem:[%s19321_s10 + $0x1d4] ss:$8 sps:$4 sm:$0xff]  }
0x1bf8   : > { %12373 = vmatpush3.bf16.msra.mxu0 %v13550_v39  ;;  %v10556_v39 = vrot.slane %v19179_v61, %v10555_v12 }
0x1bf9   : > { %12374 = vmatprep.subr.bf16.mxu0 %v13551_v7  ;;  %v13538_v7 = vld [vmem:[%s19321_s10 + $0x1d0] ss:$8 sps:$4 sm:$0xff]  }
0x1bfc   : > { %12375 = vmatpush3.bf16.msra.mxu0 %v13552_v52  ;;  %v13543_v52 = vld [vmem:[%s19321_s10 + $0x1e4] ss:$8 sps:$4 sm:$0xff]  }
0x1bfd   : > { %12376 = vmatprep.subr.bf16.mxu0 %v13553_v20 }
0x1c00   : > { %12377 = vmatpush3.bf16.msra.mxu0 %v13554_v53  ;;  %v13541_v53 = vld [vmem:[%s19321_s10 + $0x1e0] ss:$8 sps:$4 sm:$0xff]  }
0x1c01   : > { %12378 = vmatprep.subr.bf16.mxu0 %v13555_v21  ;;  %v13546_v21 = vld [vmem:[%s19321_s10 + $0x1f4] ss:$8 sps:$4 sm:$0xff]  }
0x1c04   : > { %12379 = vmatpush3.bf16.msra.mxu0 %v13556_v25 }
0x1c05   : > { %12380 = vmatprep.subr.bf16.mxu0 %v13557_v63  ;;  %v13544_v63 = vld [vmem:[%s19321_s10 + $0x1f0] ss:$8 sps:$4 sm:$0xff]  }
0x1c08   : > { %12381 = vmatpush3.bf16.msra.mxu0 %v13558_v9 }
0x1cb6   : > { %v10713_v58 = vpop.f32.mrb[32].mxu0 }
0x1cb7   : > { %v10714_v28 = vadd.f32 %v10713_v58, %v10548_v19  ;;  %v10715_v62 = vpop.f32.mrb[33].mxu0  ;;  %v13559_v19 = vld [vmem:[%s19322_s11 + $0x70] sm:$0xff]   ;;  %v13561_v58 = vld [vmem:[%s19322_s11 + $0x78] sm:$0xff]  }
0x1cb8   : > { %v10716_v35 = vadd.f32 %v10715_v62, %v10552_v1  ;;  %v10717_v3 = vpop.f32.mrb[34].mxu0  ;;  %v13560_v1 = vld [vmem:[%s19322_s11 + $0x30] sm:$0xff]   ;;  %12382 = vmatprep.subr.bf16.mxu0 %v13559_v19 }
0x1cb9   : > { %vm10761_vm12 = vcmp.ge.f32.partialorder %v10714_v28, 0.0  ;;  %v10765_v11 = vmul.f32 0.1, %v10714_v28  ;;  %v10718_v51 = vpop.f32.mrb[35].mxu0  ;;  %12383 = vmatpush3.bf16.msra.mxu0 %v13560_v1 }
0x1cba   : > { %vm10762_vm13 = vcmp.ge.f32.partialorder %v10716_v35, 0.0  ;;  %v10766_v2 = vmul.f32 0.1, %v10716_v35  ;;  %12384 = vmatprep.subr.bf16.mxu0 %v13561_v58  ;;  %v11901_v62 = vld [vmem:[%s19319_s8 + $0x3] ss:$8 sm:$0xf] }
0x1cbb   : > { %v10769_v26 = vsel %vm10761_vm12, %v10714_v28, %v10765_v11  ;;  %v13562_v28 = vld [vmem:[%s19322_s11 + $0x38] sm:$0xff]   ;;  %v10851_v3 = vrot.slane %v11901_v62, %v19633_v38 }
0x1cbc   : > { %v10770_v31 = vsel %vm10762_vm13, %v10716_v35, %v10766_v2  ;;  %v10773_v17 = vpack.c.bf16 %v10769_v26, %v10769_v26  ;;  %v10847_v35 = vrot.slane %v11901_v62, %v19607_v5  ;;  %v11966_v38 = vld [vmem:[%s19319_s8 + $0x4] ss:$8 sm:$0xf] }
0x1cbd   : > { %v10774_v36 = vpack.c.bf16 %v10770_v31, %v10770_v31  ;;  %12385 = vmatpush3.bf16.msra.mxu0 %v13562_v28 }
0x1cbf   : > { %11206 = vmatprep.mubr.bf16.mxu1 %v10774_v36 }
0x1cc0   : > { %11207 = vmatmul.mubr.bf16.vlgmr.msra.gmra.mrb[0].mxu1 %v10773_v17 }
0x1cc1   : > { %11216 = vmatpush1.bf16.msra.mxu1 %v13499_v46 }
0x1cc2   : > { %11217 = vmatprep.subr.bf16.mxu1 %v13504_v14 }
0x1cc5   : > { %11218 = vmatpush1.bf16.msra.mxu1 %v13502_v32 }
0x1cc6   : > { %v10754_v6 = vpop.f32.mrb[36].mxu0  ;;  %11219 = vmatprep.subr.bf16.mxu1 %v13507_v40 }
0x1cc7   : > { %v10756_v23 = vpop.f32.mrb[37].mxu0  ;;  %v10755_v20 = vadd.f32 %v10754_v6, %v10556_v39 }
0x1cc8   : > { %v10757_v54 = vadd.f32 %v10756_v23, %v10560_v56  ;;  %v10758_v45 = vpop.f32.mrb[38].mxu0  ;;  %v11302_v56 = vrot.slane %v11966_v38, %v19607_v5 }
0x1cc9   : > { %v10759_v30 = vpop.f32.mrb[39].mxu0  ;;  %11220 = vmatpush1.bf16.msra.mxu1 %v13505_v8  ;;  %v10767_v25 = vmul.f32 0.1, %v10755_v20  ;;  %vm10763_vm15 = vcmp.ge.f32.partialorder %v10755_v20, 0.0 }
0x1cca   : > { %vm10764_vm14 = vcmp.ge.f32.partialorder %v10757_v54, 0.0  ;;  %v10768_v24 = vmul.f32 0.1, %v10757_v54  ;;  %11221 = vmatprep.subr.bf16.mxu1 %v13510_v22 }
0x1ccb   : > { %v10771_v9 = vsel %vm10763_vm15, %v10755_v20, %v10767_v25 }
0x1ccc   : > { %v10772_v47 = vsel %vm10764_vm14, %v10757_v54, %v10768_v24  ;;  %v10775_v61 = vpack.c.bf16 %v10771_v9, %v10771_v9 }
0x1ccd   : > { %11222 = vmatpush1.bf16.msra.mxu1 %v13508_v60  ;;  %v10776_v37 = vpack.c.bf16 %v10772_v47, %v10772_v47 }
0x1cce   : > { %11223 = vmatprep.subr.bf16.mxu1 %v13513_v27 }
0x1ccf   : > { %11247 = vmatprep.mubr.bf16.mxu1 %v10776_v37 }
0x1cd1   : > { %11224 = vmatpush1.bf16.msra.mxu1 %v13511_v13 }
0x1cd2   : > { %11225 = vmatprep.subr.bf16.mxu1 %v13516_v16 }
0x1cd5   : > { %11226 = vmatpush1.bf16.msra.mxu1 %v13514_v41 }
0x1cd6   : > { %11227 = vmatprep.subr.bf16.mxu1 %v13519_v59 }
0x1cd9   : > { %11228 = vmatpush1.bf16.msra.mxu1 %v13517_v18 }
0x1cda   : > { %11229 = vmatprep.subr.bf16.mxu1 %v13522_v0 }
0x1cdd   : > { %11230 = vmatpush1.bf16.msra.mxu1 %v13520_v48 }
0x1cde   : > { %11231 = vmatprep.subr.bf16.mxu1 %v13525_v43 }
0x1ce1   : > { %11232 = vmatpush1.bf16.msra.mxu1 %v13523_v15 }
0x1ce2   : > { %11233 = vmatprep.subr.bf16.mxu1 %v13528_v49 }
0x1ce5   : > { %11234 = vmatpush1.bf16.msra.mxu1 %v13526_v10 }
0x1ce6   : > { %11235 = vmatprep.subr.bf16.mxu1 %v13531_v29 }
0x1ce9   : > { %11236 = vmatpush1.bf16.msra.mxu1 %v13529_v42 }
0x1cea   : > { %11237 = vmatprep.subr.bf16.mxu1 %v13534_v44 }
0x1ced   : > { %11238 = vmatpush1.bf16.msra.mxu1 %v13532_v33 }
0x1cee   : > { %11239 = vmatprep.subr.bf16.mxu1 %v13537_v55 }
0x1cf1   : > { %11240 = vmatpush1.bf16.msra.mxu1 %v13535_v4 }
0x1cf2   : > { %11241 = vmatprep.subr.bf16.mxu1 %v13540_v57 }
0x1cf5   : > { %11242 = vmatpush1.bf16.msra.mxu1 %v13538_v7 }
0x1cf6   : > { %11243 = vmatprep.subr.bf16.mxu1 %v13543_v52 }
0x1cf9   : > { %11244 = vmatpush1.bf16.msra.mxu1 %v13541_v53 }
0x1cfa   : > { %11245 = vmatprep.subr.bf16.mxu1 %v13546_v21 }
0x1cfd   : > { %11246 = vmatpush1.bf16.msra.mxu1 %v13544_v63 }
0x1d00   : > { %11248 = vmatmul.mubr.bf16.vlgmr.msra.gmra.mrb[0].mxu1 %v10775_v61 }
0x1dd3   : > { %v11249_v11 = vpop.f32.mrb[0].mxu1 }
0x1dd4   : > { %v13160_v51 = vadd.f32 %v11249_v11, %v10847_v35  ;;  %v11251_v2 = vpop.f32.mrb[1].mxu1 }
0x1dd5   : > { %v13161_v26 = vadd.f32 %v11251_v2, %v10851_v3  ;;  %v11253_v31 = vpop.f32.mrb[2].mxu1 }
0x1dd6   : > { %vm11256_vm0 = vcmp.ge.f32.partialorder %v13160_v51, 0.0  ;;  %v11258_v36 = vmul.f32 0.1, %v13160_v51  ;;  %v11254_v46 = vpop.f32.mrb[3].mxu1 }
0x1dd7   : > { %vm11257_vm1 = vcmp.ge.f32.partialorder %v13161_v26, 0.0  ;;  %v11259_v17 = vmul.f32 0.1, %v13161_v26 }
0x1dd8   : > { %v11260_v14 = vsel %vm11256_vm0, %v13160_v51, %v11258_v36 }
0x1dd9   : > { %v11261_v34 = vsel %vm11257_vm1, %v13161_v26, %v11259_v17  ;;  %v11262_v32 = vpack.c.bf16 %v11260_v14, %v11260_v14 }
0x1dda   : > { %v11263_v50 = vpack.c.bf16 %v11261_v34, %v11261_v34 }
0x1ddc   : > { %11432 = vmatprep.mubr.bf16.mxu0 %v11263_v50 }
0x1ddd   : > { %11433 = vmatmul.mubr.bf16.vlgmr.msra.gmra.mrb[40].mxu0 %v11262_v32 }
0x1eb0   : > { %v12386_v40 = vpop.f32.mrb[40].mxu0 }
0x1eb1   : > { %v12387_v8 = vpop.f32.mrb[41].mxu0 }
0x1eb2   : > { %v12388_v6 = vadd.f32 %v12387_v8, %v12386_v40  ;;  %v12389_v22 = vpop.f32.mrb[42].mxu0 }
0x1eb3   : > { %v12390_v23 = vpop.f32.mrb[43].mxu0 }
0x1eb4   : > { %v11435_v54 = vadd.f32 %v12388_v6, %v11302_v56 }
0x1eb6   : > { %11440 = vst [vmem:[%s416_s23] sm:$0xff] %v11435_v54 }
0x1eb7 PF: > { %s22_s21 = sadd.s32 1, %s14243_s21  }
0x1eb8   : > { %p19_p5 = scmp.ge.s32.totalorder %s22_s21, 4  }
0x1eba   :  { %21 = sbr.rel (!%p19_p5) target bundleno = 1 (0x1), region = 123 }

</bundles_post_ra>
